<compile_context>
chip_gen: v7x
topology: tpu7x:2x2x1
jax: 0.10.0
libtpu: 0.0.40
codegen_flags: <defaults>
</compile_context>

<pallas_src>
import jax
import jax.numpy as jnp
from jax import lax
from jax.experimental import pallas as pl
from jax.experimental.pallas import tpu as pltpu

KH = 5   # conv kernel height
KW = 5   # conv kernel width
CIN_PAD = 8  # pad input channels so W*Cin = 128 (lane-dense conv1 path)


# -----------------------------------------------------------------------------
# Banded weights: fold the kw taps and the W axis (incl. SAME zero padding
# along W) into a (5, W*Cin, W*Cout) matrix so that
#   out[h, wo*Cout + co] = sum_kh padded_rows[h + kh, :] @ band[kh]
# where padded_rows is the activation with a 2-row zero halo along H, stored
# lane-folded as (H+4, W*Cin).
# -----------------------------------------------------------------------------
def make_banded_weight(w, W):
    """w: (5, 5, Cin, Cout) HWIO -> (5, W*Cin, W*Cout) bfloat16."""
    kh, kw, cin, cout = w.shape
    pad = kw // 2
    w_in = jnp.arange(W)[:, None]                    # (W, 1)
    w_out = jnp.arange(W)[None, :]                   # (1, W)
    tap = w_in - w_out + pad                         # (W, W)
    valid = (tap >= 0) & (tap < kw)
    tap = jnp.clip(tap, 0, kw - 1)
    band = w[:, tap, :, :]                           # (kh, W_in, W_out, Cin, Cout)
    band = jnp.where(valid[None, :, :, None, None], band, 0.0)
    band = jnp.transpose(band, (0, 1, 3, 2, 4))      # (kh, W_in, Cin, W_out, Cout)
    return band.reshape(kh, W * cin, W * cout).astype(jnp.bfloat16)


# -----------------------------------------------------------------------------
# Fused encoder kernel: block_b batch elements per grid step, all four conv
# layers + pos-embed epilogue with activations resident in VMEM.
# -----------------------------------------------------------------------------
def fused_encoder_kernel(x_ref, wb1_ref, b1_ref, wb2_ref, b2_ref,
                         wb3_ref, b3_ref, wb4_ref, b4_ref, pos_ref,
                         o_ref, pad1_ref, pad_ref):
    block_b, H, _ = o_ref.shape
    HP = H + 4                        # per-image stride in the stacked scratch
    M = block_b * HP - 4              # rows per banded matmul

    # Halo rows only need to be zeroed once: interiors are fully overwritten
    # each layer and halo rows are never written, so they stay zero across the
    # whole grid (scratch persists across grid steps).
    @pl.when(pl.program_id(0) == 0)
    def _init():
        pad1_ref[...] = jnp.zeros_like(pad1_ref)
        pad_ref[...] = jnp.zeros_like(pad_ref)

    def band_conv(pad, wb_ref, b_ref):
        # 5 row-shifted dense MXU matmuls over the whole stacked buffer,
        # bf16 operands, f32 accumulation.
        acc = None
        for kh in range(KH):
            rows = pad[pl.ds(kh, M), :]                     # bf16 (M, K)
            part = jnp.dot(rows, wb_ref[kh],
                           preferred_element_type=jnp.float32)
            acc = part if acc is None else acc + part
        return jnp.maximum(acc + b_ref[...], 0.0)           # (M, W*Cout) f32

    # conv1: write the (already bf16) input rows into the stacked padded
    # scratch interiors.
    for b in range(block_b):
        pad1_ref[pl.ds(b * HP + 2, H), :] = x_ref[b]
    act = band_conv(pad1_ref, wb1_ref, b1_ref)

    # conv2..conv4: one whole-buffer f32->bf16 cast per layer, per-image
    # interior stores (halo-zero invariant preserved), activations stay in
    # VMEM the whole time.
    for wb_ref, b_ref in ((wb2_ref, b2_ref), (wb3_ref, b3_ref), (wb4_ref, b4_ref)):
        act_bf = act.astype(jnp.bfloat16)
        for b in range(block_b):
            pad_ref[pl.ds(b * HP + 2, H), :] = act_bf[b * HP:b * HP + H, :]
        act = band_conv(pad_ref, wb_ref, b_ref)

    # Position-embedding epilogue (pos precomputed in the wrapper); the
    # lane-folded (H, W*Dh) rows already are the flattened (H*W, Dh) order.
    for b in range(block_b):
        o_ref[b] = (act[b * HP:b * HP + H, :] + pos_ref[b]).astype(o_ref.dtype)


# -----------------------------------------------------------------------------
# Wrapper
# -----------------------------------------------------------------------------
def pick_block_b(B, target=8):
    bb = min(B, target)
    while B % bb:
        bb -= 1
    return bb


def encoder_forward(params, x_nchw, grid, block_b=None):
    B, Cin, H, W = x_nchw.shape
    Ch = params["conv1_b"].shape[0]
    cin_p = max(CIN_PAD, Cin)
    if block_b is None:
        block_b = pick_block_b(B)

    # NCHW -> NHWC -> zero-pad Cin -> lane-folded (B, H, W*cin_p) in bf16.
    x_nhwc = jnp.transpose(x_nchw, (0, 2, 3, 1))
    x_nhwc = jnp.pad(x_nhwc, ((0, 0), (0, 0), (0, 0), (0, cin_p - Cin)))
    x2 = x_nhwc.reshape(B, H, W * cin_p).astype(jnp.bfloat16)

    # Banded weights (kw taps + W folded) and W-tiled biases.
    w1 = jnp.pad(params["conv1_w"],
                 ((0, 0), (0, 0), (0, cin_p - Cin), (0, 0)))
    wbs = [make_banded_weight(w1, W)]
    for i in range(2, 5):
        wbs.append(make_banded_weight(params[f"conv{i}_w"], W))
    brs = [jnp.tile(params[f"conv{i}_b"], W).reshape(1, W * Ch)
           for i in range(1, 5)]

    # Position embedding precomputed once (K=4 matmul, trivially cheap in XLA)
    # and fused into the conv4 epilogue inside the kernel.
    pos = (grid @ params["pos_w"] + params["pos_b"]).reshape(B, H, W * Ch)

    kcin = W * cin_p
    kch = W * Ch
    HP = H + 4

    out2d = pl.pallas_call(
        fused_encoder_kernel,
        out_shape=jax.ShapeDtypeStruct((B, H, kch), jnp.float32),
        grid_spec=pltpu.PrefetchScalarGridSpec(
            num_scalar_prefetch=0,
            grid=(B // block_b,),
            in_specs=[
                pl.BlockSpec((block_b, H, kcin), lambda i: (i, 0, 0)),   # x
                pl.BlockSpec((KH, kcin, kch), lambda i: (0, 0, 0)),      # conv1 W
                pl.BlockSpec((1, kch), lambda i: (0, 0)),                # conv1 b
                pl.BlockSpec((KH, kch, kch), lambda i: (0, 0, 0)),       # conv2 W
                pl.BlockSpec((1, kch), lambda i: (0, 0)),                # conv2 b
                pl.BlockSpec((KH, kch, kch), lambda i: (0, 0, 0)),       # conv3 W
                pl.BlockSpec((1, kch), lambda i: (0, 0)),                # conv3 b
                pl.BlockSpec((KH, kch, kch), lambda i: (0, 0, 0)),       # conv4 W
                pl.BlockSpec((1, kch), lambda i: (0, 0)),                # conv4 b
                pl.BlockSpec((block_b, H, kch), lambda i: (i, 0, 0)),    # pos
            ],
            out_specs=pl.BlockSpec((block_b, H, kch), lambda i: (i, 0, 0)),
            scratch_shapes=[
                pltpu.VMEM((block_b * HP, kcin), jnp.bfloat16),  # conv1 padded in
                pltpu.VMEM((block_b * HP, kch), jnp.bfloat16),   # conv2-4 padded in
            ],
        ),
        compiler_params=pltpu.CompilerParams(
            dimension_semantics=("parallel",),
            vmem_limit_bytes=32 * 1024 * 1024,
        ),
    )(x2, wbs[0], brs[0], wbs[1], brs[1], wbs[2], brs[2], wbs[3], brs[3], pos)

    # (B, H, W*Ch) row-major == (B, H*W, Ch)
    return out2d.reshape(B, H * W, Ch)


def init_params(key, in_channels, hidden):
    ks = jax.random.split(key, 10)

    def w(k, shape, fan_in):
        return jax.random.normal(k, shape, jnp.float32) / jnp.sqrt(fan_in)

    params = {}
    cins = [in_channels, hidden, hidden, hidden]
    for i, cin in enumerate(cins, start=1):
        params[f"conv{i}_w"] = w(ks[2 * i - 2], (KH, KW, cin, hidden), 25 * cin)
        params[f"conv{i}_b"] = 0.01 * jax.random.normal(
            ks[2 * i - 1], (hidden,), jnp.float32)
    params["pos_w"] = w(ks[8], (4, hidden), 4)
    params["pos_b"] = 0.01 * jax.random.normal(ks[9], (hidden,), jnp.float32)
    return params


# Pure-JAX reference with the same bf16-operand / f32-accumulate rounding as
# the kernel (MXU bf16 inputs), used for the correctness check.
def encoder_ref(params, x_nchw, grid):
    x = jnp.transpose(x_nchw, (0, 2, 3, 1))
    for i in range(1, 5):
        w = params[f"conv{i}_w"].astype(jnp.bfloat16).astype(jnp.float32)
        b = params[f"conv{i}_b"]
        xb = x.astype(jnp.bfloat16).astype(jnp.float32)
        x = lax.conv_general_dilated(
            xb, w, window_strides=(1, 1), padding="SAME",
            dimension_numbers=("NHWC", "HWIO", "NHWC"),
            preferred_element_type=jnp.float32)
        x = jnp.maximum(x + b, 0.0)
    x = x + (grid @ params["pos_w"] + params["pos_b"])
    B, H, W, Dh = x.shape
    return x.reshape(B, H * W, Dh)


if __name__ == "__main__":
    B, Cin, H, W, hidden = 2, 4, 16, 16, 32

    key = jax.random.PRNGKey(0)
    k_x, k_g, k_p = jax.random.split(key, 3)
    x = jax.random.normal(k_x, (B, Cin, H, W), jnp.float32)    # NCHW input
    grid = jax.random.uniform(k_g, (B, H, W, 4), jnp.float32)  # pos grid
    params = init_params(k_p, Cin, hidden)

    out = jax.jit(encoder_forward)(params, x, grid)
    out = jax.block_until_ready(out)
    assert out.shape == (B, H * W, hidden), out.shape

    ref = encoder_ref(params, x, grid)
    err = float(jnp.max(jnp.abs(out - ref)))
    assert jnp.allclose(out, ref, atol=5e-3, rtol=5e-3), f"max abs err {err}"

    print("KERNEL_OK")
</pallas_src>

<mosaic_0001>
module attributes {stable_mosaic.version = 11 : i64} {
  func.func @fused_encoder_kernel(%arg0: i32, %arg1: memref<2x16x128xbf16, #tpu.memory_space<vmem>>, %arg2: memref<5x128x512xbf16, #tpu.memory_space<vmem>>, %arg3: memref<1x512xf32, #tpu.memory_space<vmem>>, %arg4: memref<5x512x512xbf16, #tpu.memory_space<vmem>>, %arg5: memref<1x512xf32, #tpu.memory_space<vmem>>, %arg6: memref<5x512x512xbf16, #tpu.memory_space<vmem>>, %arg7: memref<1x512xf32, #tpu.memory_space<vmem>>, %arg8: memref<5x512x512xbf16, #tpu.memory_space<vmem>>, %arg9: memref<1x512xf32, #tpu.memory_space<vmem>>, %arg10: memref<2x16x512xf32, #tpu.memory_space<vmem>>, %arg11: memref<2x16x512xf32, #tpu.memory_space<vmem>>, %arg12: memref<40x128xbf16, #tpu.memory_space<vmem>>, %arg13: memref<40x512xbf16, #tpu.memory_space<vmem>>) attributes {dimension_semantics = [#tpu.dimension_semantics<parallel>], iteration_bounds = array<i64: 1>, scalar_prefetch = 0 : i64, scratch_operands = 2 : i64, tpu.core_type = #tpu.core_type<tc>, window_params = [{transform_indices = @transform_0, window_bounds = array<i64: 2, 16, 128>}, {pipeline_mode = #tpu.pipeline_mode<synchronous>, transform_indices = @transform_1, window_bounds = array<i64: 5, 128, 512>}, {pipeline_mode = #tpu.pipeline_mode<synchronous>, transform_indices = @transform_2, window_bounds = array<i64: 1, 512>}, {pipeline_mode = #tpu.pipeline_mode<synchronous>, transform_indices = @transform_3, window_bounds = array<i64: 5, 512, 512>}, {pipeline_mode = #tpu.pipeline_mode<synchronous>, transform_indices = @transform_4, window_bounds = array<i64: 1, 512>}, {pipeline_mode = #tpu.pipeline_mode<synchronous>, transform_indices = @transform_5, window_bounds = array<i64: 5, 512, 512>}, {pipeline_mode = #tpu.pipeline_mode<synchronous>, transform_indices = @transform_6, window_bounds = array<i64: 1, 512>}, {pipeline_mode = #tpu.pipeline_mode<synchronous>, transform_indices = @transform_7, window_bounds = array<i64: 5, 512, 512>}, {pipeline_mode = #tpu.pipeline_mode<synchronous>, transform_indices = @transform_8, window_bounds = array<i64: 1, 512>}, {transform_indices = @transform_9, window_bounds = array<i64: 2, 16, 512>}, {transform_indices = @transform_10, window_bounds = array<i64: 2, 16, 512>}]} {
    %c0_i32 = arith.constant 0 : i32
    %0 = arith.cmpi eq, %arg0, %c0_i32 : i32
    %1 = arith.extui %0 : i1 to i32
    %c0_i32_0 = arith.constant 0 : i32
    %2 = arith.cmpi ne, %1, %c0_i32_0 : i32
    scf.if %2 {
      %cst_160 = arith.constant 0.000000e+00 : bf16
      %154 = vector.broadcast %cst_160 : bf16 to vector<40x128xbf16>
      %c0_161 = arith.constant 0 : index
      %c0_162 = arith.constant 0 : index
      %155 = vector.load %arg12[%c0_161, %c0_162] : memref<40x128xbf16, #tpu.memory_space<vmem>>, vector<40x128xbf16>
      tpu.vector_store %arg12[%c0_161, %c0_162], %154 {strides = array<i32>} : memref<40x128xbf16, #tpu.memory_space<vmem>>, vector<40x128xbf16>,
      %cst_163 = arith.constant 0.000000e+00 : bf16
      %156 = vector.broadcast %cst_163 : bf16 to vector<40x512xbf16>
      %c0_164 = arith.constant 0 : index
      %c0_165 = arith.constant 0 : index
      %157 = vector.load %arg13[%c0_164, %c0_165] : memref<40x512xbf16, #tpu.memory_space<vmem>>, vector<40x512xbf16>
      tpu.vector_store %arg13[%c0_164, %c0_165], %156 {strides = array<i32>} : memref<40x512xbf16, #tpu.memory_space<vmem>>, vector<40x512xbf16>,
    } else {
    }
    %c0 = arith.constant 0 : index
    %c0_1 = arith.constant 0 : index
    %c0_2 = arith.constant 0 : index
    %3 = vector.load %arg1[%c0, %c0_1, %c0_2] : memref<2x16x128xbf16, #tpu.memory_space<vmem>>, vector<1x16x128xbf16>
    %4 = vector.shape_cast %3 : vector<1x16x128xbf16> to vector<16x128xbf16>
    %c2 = arith.constant 2 : index
    %c0_3 = arith.constant 0 : index
    %5 = vector.load %arg12[%c2, %c0_3] : memref<40x128xbf16, #tpu.memory_space<vmem>>, vector<16x128xbf16>
    tpu.vector_store %arg12[%c2, %c0_3], %4 {strides = array<i32>} : memref<40x128xbf16, #tpu.memory_space<vmem>>, vector<16x128xbf16>,
    %c1 = arith.constant 1 : index
    %c0_4 = arith.constant 0 : index
    %c0_5 = arith.constant 0 : index
    %6 = vector.load %arg1[%c1, %c0_4, %c0_5] : memref<2x16x128xbf16, #tpu.memory_space<vmem>>, vector<1x16x128xbf16>
    %7 = vector.shape_cast %6 : vector<1x16x128xbf16> to vector<16x128xbf16>
    %c22 = arith.constant 22 : index
    %c0_6 = arith.constant 0 : index
    %8 = vector.load %arg12[%c22, %c0_6] : memref<40x128xbf16, #tpu.memory_space<vmem>>, vector<16x128xbf16>
    tpu.vector_store %arg12[%c22, %c0_6], %7 {strides = array<i32>} : memref<40x128xbf16, #tpu.memory_space<vmem>>, vector<16x128xbf16>,
    %c0_7 = arith.constant 0 : index
    %c0_8 = arith.constant 0 : index
    %9 = vector.load %arg12[%c0_7, %c0_8] : memref<40x128xbf16, #tpu.memory_space<vmem>>, vector<36x128xbf16>
    %c0_9 = arith.constant 0 : index
    %c0_10 = arith.constant 0 : index
    %c0_11 = arith.constant 0 : index
    %10 = vector.load %arg2[%c0_9, %c0_10, %c0_11] : memref<5x128x512xbf16, #tpu.memory_space<vmem>>, vector<1x128x512xbf16>
    %11 = vector.shape_cast %10 : vector<1x128x512xbf16> to vector<128x512xbf16>
    %cst = arith.constant dense<0.000000e+00> : vector<36x512xf32>
    %12 = tpu.matmul %9, %11, %cst {dimension_numbers = #tpu.dot_dimension_numbers<[1], [0], [0], [1], [0, 0, 1, 1], [], []>} : vector<36x128xbf16>, vector<128x512xbf16>, vector<36x512xf32> -> vector<36x512xf32>
    %c1_12 = arith.constant 1 : index
    %c0_13 = arith.constant 0 : index
    %13 = vector.load %arg12[%c1_12, %c0_13] : memref<40x128xbf16, #tpu.memory_space<vmem>>, vector<36x128xbf16>
    %c1_14 = arith.constant 1 : index
    %c0_15 = arith.constant 0 : index
    %c0_16 = arith.constant 0 : index
    %14 = vector.load %arg2[%c1_14, %c0_15, %c0_16] : memref<5x128x512xbf16, #tpu.memory_space<vmem>>, vector<1x128x512xbf16>
    %15 = vector.shape_cast %14 : vector<1x128x512xbf16> to vector<128x512xbf16>
    %cst_17 = arith.constant dense<0.000000e+00> : vector<36x512xf32>
    %16 = tpu.matmul %13, %15, %cst_17 {dimension_numbers = #tpu.dot_dimension_numbers<[1], [0], [0], [1], [0, 0, 1, 1], [], []>} : vector<36x128xbf16>, vector<128x512xbf16>, vector<36x512xf32> -> vector<36x512xf32>
    %17 = arith.addf %12, %16 : vector<36x512xf32>
    %c2_18 = arith.constant 2 : index
    %c0_19 = arith.constant 0 : index
    %18 = vector.load %arg12[%c2_18, %c0_19] : memref<40x128xbf16, #tpu.memory_space<vmem>>, vector<36x128xbf16>
    %c2_20 = arith.constant 2 : index
    %c0_21 = arith.constant 0 : index
    %c0_22 = arith.constant 0 : index
    %19 = vector.load %arg2[%c2_20, %c0_21, %c0_22] : memref<5x128x512xbf16, #tpu.memory_space<vmem>>, vector<1x128x512xbf16>
    %20 = vector.shape_cast %19 : vector<1x128x512xbf16> to vector<128x512xbf16>
    %cst_23 = arith.constant dense<0.000000e+00> : vector<36x512xf32>
    %21 = tpu.matmul %18, %20, %cst_23 {dimension_numbers = #tpu.dot_dimension_numbers<[1], [0], [0], [1], [0, 0, 1, 1], [], []>} : vector<36x128xbf16>, vector<128x512xbf16>, vector<36x512xf32> -> vector<36x512xf32>
    %22 = arith.addf %17, %21 : vector<36x512xf32>
    %c3 = arith.constant 3 : index
    %c0_24 = arith.constant 0 : index
    %23 = vector.load %arg12[%c3, %c0_24] : memref<40x128xbf16, #tpu.memory_space<vmem>>, vector<36x128xbf16>
    %c3_25 = arith.constant 3 : index
    %c0_26 = arith.constant 0 : index
    %c0_27 = arith.constant 0 : index
    %24 = vector.load %arg2[%c3_25, %c0_26, %c0_27] : memref<5x128x512xbf16, #tpu.memory_space<vmem>>, vector<1x128x512xbf16>
    %25 = vector.shape_cast %24 : vector<1x128x512xbf16> to vector<128x512xbf16>
    %cst_28 = arith.constant dense<0.000000e+00> : vector<36x512xf32>
    %26 = tpu.matmul %23, %25, %cst_28 {dimension_numbers = #tpu.dot_dimension_numbers<[1], [0], [0], [1], [0, 0, 1, 1], [], []>} : vector<36x128xbf16>, vector<128x512xbf16>, vector<36x512xf32> -> vector<36x512xf32>
    %27 = arith.addf %22, %26 : vector<36x512xf32>
    %c4 = arith.constant 4 : index
    %c0_29 = arith.constant 0 : index
    %28 = vector.load %arg12[%c4, %c0_29] : memref<40x128xbf16, #tpu.memory_space<vmem>>, vector<36x128xbf16>
    %c4_30 = arith.constant 4 : index
    %c0_31 = arith.constant 0 : index
    %c0_32 = arith.constant 0 : index
    %29 = vector.load %arg2[%c4_30, %c0_31, %c0_32] : memref<5x128x512xbf16, #tpu.memory_space<vmem>>, vector<1x128x512xbf16>
    %30 = vector.shape_cast %29 : vector<1x128x512xbf16> to vector<128x512xbf16>
    %cst_33 = arith.constant dense<0.000000e+00> : vector<36x512xf32>
    %31 = tpu.matmul %28, %30, %cst_33 {dimension_numbers = #tpu.dot_dimension_numbers<[1], [0], [0], [1], [0, 0, 1, 1], [], []>} : vector<36x128xbf16>, vector<128x512xbf16>, vector<36x512xf32> -> vector<36x512xf32>
    %32 = arith.addf %27, %31 : vector<36x512xf32>
    %c0_34 = arith.constant 0 : index
    %c0_35 = arith.constant 0 : index
    %33 = vector.load %arg3[%c0_34, %c0_35] : memref<1x512xf32, #tpu.memory_space<vmem>>, vector<1x512xf32>
    %34 = vector.broadcast %33 : vector<1x512xf32> to vector<36x512xf32>
    %35 = arith.addf %32, %34 : vector<36x512xf32>
    %cst_36 = arith.constant 0.000000e+00 : f32
    %36 = vector.broadcast %cst_36 : f32 to vector<36x512xf32>
    %37 = arith.maximumf %35, %36 : vector<36x512xf32>
    %38 = arith.truncf %37 : vector<36x512xf32> to vector<36x512xbf16>
    %39 = vector.extract_strided_slice %38 {offsets = [0, 0], sizes = [16, 512], strides = [1, 1]} : vector<36x512xbf16> to vector<16x512xbf16>
    %c2_37 = arith.constant 2 : index
    %c0_38 = arith.constant 0 : index
    %40 = vector.load %arg13[%c2_37, %c0_38] : memref<40x512xbf16, #tpu.memory_space<vmem>>, vector<16x512xbf16>
    tpu.vector_store %arg13[%c2_37, %c0_38], %39 {strides = array<i32>} : memref<40x512xbf16, #tpu.memory_space<vmem>>, vector<16x512xbf16>,
    %41 = vector.extract_strided_slice %38 {offsets = [20, 0], sizes = [16, 512], strides = [1, 1]} : vector<36x512xbf16> to vector<16x512xbf16>
    %c22_39 = arith.constant 22 : index
    %c0_40 = arith.constant 0 : index
    %42 = vector.load %arg13[%c22_39, %c0_40] : memref<40x512xbf16, #tpu.memory_space<vmem>>, vector<16x512xbf16>
    tpu.vector_store %arg13[%c22_39, %c0_40], %41 {strides = array<i32>} : memref<40x512xbf16, #tpu.memory_space<vmem>>, vector<16x512xbf16>,
    %c0_41 = arith.constant 0 : index
    %c0_42 = arith.constant 0 : index
    %43 = vector.load %arg13[%c0_41, %c0_42] : memref<40x512xbf16, #tpu.memory_space<vmem>>, vector<36x512xbf16>
    %c0_43 = arith.constant 0 : index
    %c0_44 = arith.constant 0 : index
    %c0_45 = arith.constant 0 : index
    %44 = vector.load %arg4[%c0_43, %c0_44, %c0_45] : memref<5x512x512xbf16, #tpu.memory_space<vmem>>, vector<1x512x512xbf16>
    %45 = vector.shape_cast %44 : vector<1x512x512xbf16> to vector<512x512xbf16>
    %cst_46 = arith.constant dense<0.000000e+00> : vector<36x512xf32>
    %46 = tpu.matmul %43, %45, %cst_46 {dimension_numbers = #tpu.dot_dimension_numbers<[1], [0], [0], [1], [0, 0, 1, 1], [], []>} : vector<36x512xbf16>, vector<512x512xbf16>, vector<36x512xf32> -> vector<36x512xf32>
    %c1_47 = arith.constant 1 : index
    %c0_48 = arith.constant 0 : index
    %47 = vector.load %arg13[%c1_47, %c0_48] : memref<40x512xbf16, #tpu.memory_space<vmem>>, vector<36x512xbf16>
    %c1_49 = arith.constant 1 : index
    %c0_50 = arith.constant 0 : index
    %c0_51 = arith.constant 0 : index
    %48 = vector.load %arg4[%c1_49, %c0_50, %c0_51] : memref<5x512x512xbf16, #tpu.memory_space<vmem>>, vector<1x512x512xbf16>
    %49 = vector.shape_cast %48 : vector<1x512x512xbf16> to vector<512x512xbf16>
    %cst_52 = arith.constant dense<0.000000e+00> : vector<36x512xf32>
    %50 = tpu.matmul %47, %49, %cst_52 {dimension_numbers = #tpu.dot_dimension_numbers<[1], [0], [0], [1], [0, 0, 1, 1], [], []>} : vector<36x512xbf16>, vector<512x512xbf16>, vector<36x512xf32> -> vector<36x512xf32>
    %51 = arith.addf %46, %50 : vector<36x512xf32>
    %c2_53 = arith.constant 2 : index
    %c0_54 = arith.constant 0 : index
    %52 = vector.load %arg13[%c2_53, %c0_54] : memref<40x512xbf16, #tpu.memory_space<vmem>>, vector<36x512xbf16>
    %c2_55 = arith.constant 2 : index
    %c0_56 = arith.constant 0 : index
    %c0_57 = arith.constant 0 : index
    %53 = vector.load %arg4[%c2_55, %c0_56, %c0_57] : memref<5x512x512xbf16, #tpu.memory_space<vmem>>, vector<1x512x512xbf16>
    %54 = vector.shape_cast %53 : vector<1x512x512xbf16> to vector<512x512xbf16>
    %cst_58 = arith.constant dense<0.000000e+00> : vector<36x512xf32>
    %55 = tpu.matmul %52, %54, %cst_58 {dimension_numbers = #tpu.dot_dimension_numbers<[1], [0], [0], [1], [0, 0, 1, 1], [], []>} : vector<36x512xbf16>, vector<512x512xbf16>, vector<36x512xf32> -> vector<36x512xf32>
    %56 = arith.addf %51, %55 : vector<36x512xf32>
    %c3_59 = arith.constant 3 : index
    %c0_60 = arith.constant 0 : index
    %57 = vector.load %arg13[%c3_59, %c0_60] : memref<40x512xbf16, #tpu.memory_space<vmem>>, vector<36x512xbf16>
    %c3_61 = arith.constant 3 : index
    %c0_62 = arith.constant 0 : index
    %c0_63 = arith.constant 0 : index
    %58 = vector.load %arg4[%c3_61, %c0_62, %c0_63] : memref<5x512x512xbf16, #tpu.memory_space<vmem>>, vector<1x512x512xbf16>
    %59 = vector.shape_cast %58 : vector<1x512x512xbf16> to vector<512x512xbf16>
    %cst_64 = arith.constant dense<0.000000e+00> : vector<36x512xf32>
    %60 = tpu.matmul %57, %59, %cst_64 {dimension_numbers = #tpu.dot_dimension_numbers<[1], [0], [0], [1], [0, 0, 1, 1], [], []>} : vector<36x512xbf16>, vector<512x512xbf16>, vector<36x512xf32> -> vector<36x512xf32>
    %61 = arith.addf %56, %60 : vector<36x512xf32>
    %c4_65 = arith.constant 4 : index
    %c0_66 = arith.constant 0 : index
    %62 = vector.load %arg13[%c4_65, %c0_66] : memref<40x512xbf16, #tpu.memory_space<vmem>>, vector<36x512xbf16>
    %c4_67 = arith.constant 4 : index
    %c0_68 = arith.constant 0 : index
    %c0_69 = arith.constant 0 : index
    %63 = vector.load %arg4[%c4_67, %c0_68, %c0_69] : memref<5x512x512xbf16, #tpu.memory_space<vmem>>, vector<1x512x512xbf16>
    %64 = vector.shape_cast %63 : vector<1x512x512xbf16> to vector<512x512xbf16>
    %cst_70 = arith.constant dense<0.000000e+00> : vector<36x512xf32>
    %65 = tpu.matmul %62, %64, %cst_70 {dimension_numbers = #tpu.dot_dimension_numbers<[1], [0], [0], [1], [0, 0, 1, 1], [], []>} : vector<36x512xbf16>, vector<512x512xbf16>, vector<36x512xf32> -> vector<36x512xf32>
    %66 = arith.addf %61, %65 : vector<36x512xf32>
    %c0_71 = arith.constant 0 : index
    %c0_72 = arith.constant 0 : index
    %67 = vector.load %arg5[%c0_71, %c0_72] : memref<1x512xf32, #tpu.memory_space<vmem>>, vector<1x512xf32>
    %68 = vector.broadcast %67 : vector<1x512xf32> to vector<36x512xf32>
    %69 = arith.addf %66, %68 : vector<36x512xf32>
    %cst_73 = arith.constant 0.000000e+00 : f32
    %70 = vector.broadcast %cst_73 : f32 to vector<36x512xf32>
    %71 = arith.maximumf %69, %70 : vector<36x512xf32>
    %72 = arith.truncf %71 : vector<36x512xf32> to vector<36x512xbf16>
    %73 = vector.extract_strided_slice %72 {offsets = [0, 0], sizes = [16, 512], strides = [1, 1]} : vector<36x512xbf16> to vector<16x512xbf16>
    %c2_74 = arith.constant 2 : index
    %c0_75 = arith.constant 0 : index
    %74 = vector.load %arg13[%c2_74, %c0_75] : memref<40x512xbf16, #tpu.memory_space<vmem>>, vector<16x512xbf16>
    tpu.vector_store %arg13[%c2_74, %c0_75], %73 {strides = array<i32>} : memref<40x512xbf16, #tpu.memory_space<vmem>>, vector<16x512xbf16>,
    %75 = vector.extract_strided_slice %72 {offsets = [20, 0], sizes = [16, 512], strides = [1, 1]} : vector<36x512xbf16> to vector<16x512xbf16>
    %c22_76 = arith.constant 22 : index
    %c0_77 = arith.constant 0 : index
    %76 = vector.load %arg13[%c22_76, %c0_77] : memref<40x512xbf16, #tpu.memory_space<vmem>>, vector<16x512xbf16>
    tpu.vector_store %arg13[%c22_76, %c0_77], %75 {strides = array<i32>} : memref<40x512xbf16, #tpu.memory_space<vmem>>, vector<16x512xbf16>,
    %c0_78 = arith.constant 0 : index
    %c0_79 = arith.constant 0 : index
    %77 = vector.load %arg13[%c0_78, %c0_79] : memref<40x512xbf16, #tpu.memory_space<vmem>>, vector<36x512xbf16>
    %c0_80 = arith.constant 0 : index
    %c0_81 = arith.constant 0 : index
    %c0_82 = arith.constant 0 : index
    %78 = vector.load %arg6[%c0_80, %c0_81, %c0_82] : memref<5x512x512xbf16, #tpu.memory_space<vmem>>, vector<1x512x512xbf16>
    %79 = vector.shape_cast %78 : vector<1x512x512xbf16> to vector<512x512xbf16>
    %cst_83 = arith.constant dense<0.000000e+00> : vector<36x512xf32>
    %80 = tpu.matmul %77, %79, %cst_83 {dimension_numbers = #tpu.dot_dimension_numbers<[1], [0], [0], [1], [0, 0, 1, 1], [], []>} : vector<36x512xbf16>, vector<512x512xbf16>, vector<36x512xf32> -> vector<36x512xf32>
    %c1_84 = arith.constant 1 : index
    %c0_85 = arith.constant 0 : index
    %81 = vector.load %arg13[%c1_84, %c0_85] : memref<40x512xbf16, #tpu.memory_space<vmem>>, vector<36x512xbf16>
    %c1_86 = arith.constant 1 : index
    %c0_87 = arith.constant 0 : index
    %c0_88 = arith.constant 0 : index
    %82 = vector.load %arg6[%c1_86, %c0_87, %c0_88] : memref<5x512x512xbf16, #tpu.memory_space<vmem>>, vector<1x512x512xbf16>
    %83 = vector.shape_cast %82 : vector<1x512x512xbf16> to vector<512x512xbf16>
    %cst_89 = arith.constant dense<0.000000e+00> : vector<36x512xf32>
    %84 = tpu.matmul %81, %83, %cst_89 {dimension_numbers = #tpu.dot_dimension_numbers<[1], [0], [0], [1], [0, 0, 1, 1], [], []>} : vector<36x512xbf16>, vector<512x512xbf16>, vector<36x512xf32> -> vector<36x512xf32>
    %85 = arith.addf %80, %84 : vector<36x512xf32>
    %c2_90 = arith.constant 2 : index
    %c0_91 = arith.constant 0 : index
    %86 = vector.load %arg13[%c2_90, %c0_91] : memref<40x512xbf16, #tpu.memory_space<vmem>>, vector<36x512xbf16>
    %c2_92 = arith.constant 2 : index
    %c0_93 = arith.constant 0 : index
    %c0_94 = arith.constant 0 : index
    %87 = vector.load %arg6[%c2_92, %c0_93, %c0_94] : memref<5x512x512xbf16, #tpu.memory_space<vmem>>, vector<1x512x512xbf16>
    %88 = vector.shape_cast %87 : vector<1x512x512xbf16> to vector<512x512xbf16>
    %cst_95 = arith.constant dense<0.000000e+00> : vector<36x512xf32>
    %89 = tpu.matmul %86, %88, %cst_95 {dimension_numbers = #tpu.dot_dimension_numbers<[1], [0], [0], [1], [0, 0, 1, 1], [], []>} : vector<36x512xbf16>, vector<512x512xbf16>, vector<36x512xf32> -> vector<36x512xf32>
    %90 = arith.addf %85, %89 : vector<36x512xf32>
    %c3_96 = arith.constant 3 : index
    %c0_97 = arith.constant 0 : index
    %91 = vector.load %arg13[%c3_96, %c0_97] : memref<40x512xbf16, #tpu.memory_space<vmem>>, vector<36x512xbf16>
    %c3_98 = arith.constant 3 : index
    %c0_99 = arith.constant 0 : index
    %c0_100 = arith.constant 0 : index
    %92 = vector.load %arg6[%c3_98, %c0_99, %c0_100] : memref<5x512x512xbf16, #tpu.memory_space<vmem>>, vector<1x512x512xbf16>
    %93 = vector.shape_cast %92 : vector<1x512x512xbf16> to vector<512x512xbf16>
    %cst_101 = arith.constant dense<0.000000e+00> : vector<36x512xf32>
    %94 = tpu.matmul %91, %93, %cst_101 {dimension_numbers = #tpu.dot_dimension_numbers<[1], [0], [0], [1], [0, 0, 1, 1], [], []>} : vector<36x512xbf16>, vector<512x512xbf16>, vector<36x512xf32> -> vector<36x512xf32>
    %95 = arith.addf %90, %94 : vector<36x512xf32>
    %c4_102 = arith.constant 4 : index
    %c0_103 = arith.constant 0 : index
    %96 = vector.load %arg13[%c4_102, %c0_103] : memref<40x512xbf16, #tpu.memory_space<vmem>>, vector<36x512xbf16>
    %c4_104 = arith.constant 4 : index
    %c0_105 = arith.constant 0 : index
    %c0_106 = arith.constant 0 : index
    %97 = vector.load %arg6[%c4_104, %c0_105, %c0_106] : memref<5x512x512xbf16, #tpu.memory_space<vmem>>, vector<1x512x512xbf16>
    %98 = vector.shape_cast %97 : vector<1x512x512xbf16> to vector<512x512xbf16>
    %cst_107 = arith.constant dense<0.000000e+00> : vector<36x512xf32>
    %99 = tpu.matmul %96, %98, %cst_107 {dimension_numbers = #tpu.dot_dimension_numbers<[1], [0], [0], [1], [0, 0, 1, 1], [], []>} : vector<36x512xbf16>, vector<512x512xbf16>, vector<36x512xf32> -> vector<36x512xf32>
    %100 = arith.addf %95, %99 : vector<36x512xf32>
    %c0_108 = arith.constant 0 : index
    %c0_109 = arith.constant 0 : index
    %101 = vector.load %arg7[%c0_108, %c0_109] : memref<1x512xf32, #tpu.memory_space<vmem>>, vector<1x512xf32>
    %102 = vector.broadcast %101 : vector<1x512xf32> to vector<36x512xf32>
    %103 = arith.addf %100, %102 : vector<36x512xf32>
    %cst_110 = arith.constant 0.000000e+00 : f32
    %104 = vector.broadcast %cst_110 : f32 to vector<36x512xf32>
    %105 = arith.maximumf %103, %104 : vector<36x512xf32>
    %106 = arith.truncf %105 : vector<36x512xf32> to vector<36x512xbf16>
    %107 = vector.extract_strided_slice %106 {offsets = [0, 0], sizes = [16, 512], strides = [1, 1]} : vector<36x512xbf16> to vector<16x512xbf16>
    %c2_111 = arith.constant 2 : index
    %c0_112 = arith.constant 0 : index
    %108 = vector.load %arg13[%c2_111, %c0_112] : memref<40x512xbf16, #tpu.memory_space<vmem>>, vector<16x512xbf16>
    tpu.vector_store %arg13[%c2_111, %c0_112], %107 {strides = array<i32>} : memref<40x512xbf16, #tpu.memory_space<vmem>>, vector<16x512xbf16>,
    %109 = vector.extract_strided_slice %106 {offsets = [20, 0], sizes = [16, 512], strides = [1, 1]} : vector<36x512xbf16> to vector<16x512xbf16>
    %c22_113 = arith.constant 22 : index
    %c0_114 = arith.constant 0 : index
    %110 = vector.load %arg13[%c22_113, %c0_114] : memref<40x512xbf16, #tpu.memory_space<vmem>>, vector<16x512xbf16>
    tpu.vector_store %arg13[%c22_113, %c0_114], %109 {strides = array<i32>} : memref<40x512xbf16, #tpu.memory_space<vmem>>, vector<16x512xbf16>,
    %c0_115 = arith.constant 0 : index
    %c0_116 = arith.constant 0 : index
    %111 = vector.load %arg13[%c0_115, %c0_116] : memref<40x512xbf16, #tpu.memory_space<vmem>>, vector<36x512xbf16>
    %c0_117 = arith.constant 0 : index
    %c0_118 = arith.constant 0 : index
    %c0_119 = arith.constant 0 : index
    %112 = vector.load %arg8[%c0_117, %c0_118, %c0_119] : memref<5x512x512xbf16, #tpu.memory_space<vmem>>, vector<1x512x512xbf16>
    %113 = vector.shape_cast %112 : vector<1x512x512xbf16> to vector<512x512xbf16>
    %cst_120 = arith.constant dense<0.000000e+00> : vector<36x512xf32>
    %114 = tpu.matmul %111, %113, %cst_120 {dimension_numbers = #tpu.dot_dimension_numbers<[1], [0], [0], [1], [0, 0, 1, 1], [], []>} : vector<36x512xbf16>, vector<512x512xbf16>, vector<36x512xf32> -> vector<36x512xf32>
    %c1_121 = arith.constant 1 : index
    %c0_122 = arith.constant 0 : index
    %115 = vector.load %arg13[%c1_121, %c0_122] : memref<40x512xbf16, #tpu.memory_space<vmem>>, vector<36x512xbf16>
    %c1_123 = arith.constant 1 : index
    %c0_124 = arith.constant 0 : index
    %c0_125 = arith.constant 0 : index
    %116 = vector.load %arg8[%c1_123, %c0_124, %c0_125] : memref<5x512x512xbf16, #tpu.memory_space<vmem>>, vector<1x512x512xbf16>
    %117 = vector.shape_cast %116 : vector<1x512x512xbf16> to vector<512x512xbf16>
    %cst_126 = arith.constant dense<0.000000e+00> : vector<36x512xf32>
    %118 = tpu.matmul %115, %117, %cst_126 {dimension_numbers = #tpu.dot_dimension_numbers<[1], [0], [0], [1], [0, 0, 1, 1], [], []>} : vector<36x512xbf16>, vector<512x512xbf16>, vector<36x512xf32> -> vector<36x512xf32>
    %119 = arith.addf %114, %118 : vector<36x512xf32>
    %c2_127 = arith.constant 2 : index
    %c0_128 = arith.constant 0 : index
    %120 = vector.load %arg13[%c2_127, %c0_128] : memref<40x512xbf16, #tpu.memory_space<vmem>>, vector<36x512xbf16>
    %c2_129 = arith.constant 2 : index
    %c0_130 = arith.constant 0 : index
    %c0_131 = arith.constant 0 : index
    %121 = vector.load %arg8[%c2_129, %c0_130, %c0_131] : memref<5x512x512xbf16, #tpu.memory_space<vmem>>, vector<1x512x512xbf16>
    %122 = vector.shape_cast %121 : vector<1x512x512xbf16> to vector<512x512xbf16>
    %cst_132 = arith.constant dense<0.000000e+00> : vector<36x512xf32>
    %123 = tpu.matmul %120, %122, %cst_132 {dimension_numbers = #tpu.dot_dimension_numbers<[1], [0], [0], [1], [0, 0, 1, 1], [], []>} : vector<36x512xbf16>, vector<512x512xbf16>, vector<36x512xf32> -> vector<36x512xf32>
    %124 = arith.addf %119, %123 : vector<36x512xf32>
    %c3_133 = arith.constant 3 : index
    %c0_134 = arith.constant 0 : index
    %125 = vector.load %arg13[%c3_133, %c0_134] : memref<40x512xbf16, #tpu.memory_space<vmem>>, vector<36x512xbf16>
    %c3_135 = arith.constant 3 : index
    %c0_136 = arith.constant 0 : index
    %c0_137 = arith.constant 0 : index
    %126 = vector.load %arg8[%c3_135, %c0_136, %c0_137] : memref<5x512x512xbf16, #tpu.memory_space<vmem>>, vector<1x512x512xbf16>
    %127 = vector.shape_cast %126 : vector<1x512x512xbf16> to vector<512x512xbf16>
    %cst_138 = arith.constant dense<0.000000e+00> : vector<36x512xf32>
    %128 = tpu.matmul %125, %127, %cst_138 {dimension_numbers = #tpu.dot_dimension_numbers<[1], [0], [0], [1], [0, 0, 1, 1], [], []>} : vector<36x512xbf16>, vector<512x512xbf16>, vector<36x512xf32> -> vector<36x512xf32>
    %129 = arith.addf %124, %128 : vector<36x512xf32>
    %c4_139 = arith.constant 4 : index
    %c0_140 = arith.constant 0 : index
    %130 = vector.load %arg13[%c4_139, %c0_140] : memref<40x512xbf16, #tpu.memory_space<vmem>>, vector<36x512xbf16>
    %c4_141 = arith.constant 4 : index
    %c0_142 = arith.constant 0 : index
    %c0_143 = arith.constant 0 : index
    %131 = vector.load %arg8[%c4_141, %c0_142, %c0_143] : memref<5x512x512xbf16, #tpu.memory_space<vmem>>, vector<1x512x512xbf16>
    %132 = vector.shape_cast %131 : vector<1x512x512xbf16> to vector<512x512xbf16>
    %cst_144 = arith.constant dense<0.000000e+00> : vector<36x512xf32>
    %133 = tpu.matmul %130, %132, %cst_144 {dimension_numbers = #tpu.dot_dimension_numbers<[1], [0], [0], [1], [0, 0, 1, 1], [], []>} : vector<36x512xbf16>, vector<512x512xbf16>, vector<36x512xf32> -> vector<36x512xf32>
    %134 = arith.addf %129, %133 : vector<36x512xf32>
    %c0_145 = arith.constant 0 : index
    %c0_146 = arith.constant 0 : index
    %135 = vector.load %arg9[%c0_145, %c0_146] : memref<1x512xf32, #tpu.memory_space<vmem>>, vector<1x512xf32>
    %136 = vector.broadcast %135 : vector<1x512xf32> to vector<36x512xf32>
    %137 = arith.addf %134, %136 : vector<36x512xf32>
    %cst_147 = arith.constant 0.000000e+00 : f32
    %138 = vector.broadcast %cst_147 : f32 to vector<36x512xf32>
    %139 = arith.maximumf %137, %138 : vector<36x512xf32>
    %140 = vector.extract_strided_slice %139 {offsets = [0, 0], sizes = [16, 512], strides = [1, 1]} : vector<36x512xf32> to vector<16x512xf32>
    %c0_148 = arith.constant 0 : index
    %c0_149 = arith.constant 0 : index
    %c0_150 = arith.constant 0 : index
    %141 = vector.load %arg10[%c0_148, %c0_149, %c0_150] : memref<2x16x512xf32, #tpu.memory_space<vmem>>, vector<1x16x512xf32>
    %142 = vector.shape_cast %141 : vector<1x16x512xf32> to vector<16x512xf32>
    %143 = arith.addf %140, %142 : vector<16x512xf32>
    %c0_151 = arith.constant 0 : index
    %c0_152 = arith.constant 0 : index
    %c0_153 = arith.constant 0 : index
    %144 = vector.load %arg11[%c0_151, %c0_152, %c0_153] : memref<2x16x512xf32, #tpu.memory_space<vmem>>, vector<1x16x512xf32>
    %145 = vector.shape_cast %144 : vector<1x16x512xf32> to vector<16x512xf32>
    %146 = vector.shape_cast %143 : vector<16x512xf32> to vector<1x16x512xf32>
    tpu.vector_store %arg11[%c0_151, %c0_152, %c0_153], %146 {strides = array<i32>} : memref<2x16x512xf32, #tpu.memory_space<vmem>>, vector<1x16x512xf32>,
    %147 = vector.extract_strided_slice %139 {offsets = [20, 0], sizes = [16, 512], strides = [1, 1]} : vector<36x512xf32> to vector<16x512xf32>
    %c1_154 = arith.constant 1 : index
    %c0_155 = arith.constant 0 : index
    %c0_156 = arith.constant 0 : index
    %148 = vector.load %arg10[%c1_154, %c0_155, %c0_156] : memref<2x16x512xf32, #tpu.memory_space<vmem>>, vector<1x16x512xf32>
    %149 = vector.shape_cast %148 : vector<1x16x512xf32> to vector<16x512xf32>
    %150 = arith.addf %147, %149 : vector<16x512xf32>
    %c1_157 = arith.constant 1 : index
    %c0_158 = arith.constant 0 : index
    %c0_159 = arith.constant 0 : index
    %151 = vector.load %arg11[%c1_157, %c0_158, %c0_159] : memref<2x16x512xf32, #tpu.memory_space<vmem>>, vector<1x16x512xf32>
    %152 = vector.shape_cast %151 : vector<1x16x512xf32> to vector<16x512xf32>
    %153 = vector.shape_cast %150 : vector<16x512xf32> to vector<1x16x512xf32>
    tpu.vector_store %arg11[%c1_157, %c0_158, %c0_159], %153 {strides = array<i32>} : memref<2x16x512xf32, #tpu.memory_space<vmem>>, vector<1x16x512xf32>,
    return
  }
  func.func @transform_0(%arg0: i32) -> (i32, i32, i32) {
    %c0_i32 = arith.constant 0 : i32
    %c0_i32_0 = arith.constant 0 : i32
    %c0_i32_1 = arith.constant 0 : i32
    return %arg0, %c0_i32, %c0_i32_0 : i32, i32, i32
  }
  func.func @transform_1(%arg0: i32) -> (i32, i32, i32) {
    %c0_i32 = arith.constant 0 : i32
    %c0_i32_0 = arith.constant 0 : i32
    %c0_i32_1 = arith.constant 0 : i32
    %c0_i32_2 = arith.constant 0 : i32
    return %c0_i32, %c0_i32_0, %c0_i32_1 : i32, i32, i32
  }
  func.func @transform_2(%arg0: i32) -> (i32, i32) {
    %c0_i32 = arith.constant 0 : i32
    %c0_i32_0 = arith.constant 0 : i32
    %c0_i32_1 = arith.constant 0 : i32
    return %c0_i32, %c0_i32_0 : i32, i32
  }
  func.func @transform_3(%arg0: i32) -> (i32, i32, i32) {
    %c0_i32 = arith.constant 0 : i32
    %c0_i32_0 = arith.constant 0 : i32
    %c0_i32_1 = arith.constant 0 : i32
    %c0_i32_2 = arith.constant 0 : i32
    return %c0_i32, %c0_i32_0, %c0_i32_1 : i32, i32, i32
  }
  func.func @transform_4(%arg0: i32) -> (i32, i32) {
    %c0_i32 = arith.constant 0 : i32
    %c0_i32_0 = arith.constant 0 : i32
    %c0_i32_1 = arith.constant 0 : i32
    return %c0_i32, %c0_i32_0 : i32, i32
  }
  func.func @transform_5(%arg0: i32) -> (i32, i32, i32) {
    %c0_i32 = arith.constant 0 : i32
    %c0_i32_0 = arith.constant 0 : i32
    %c0_i32_1 = arith.constant 0 : i32
    %c0_i32_2 = arith.constant 0 : i32
    return %c0_i32, %c0_i32_0, %c0_i32_1 : i32, i32, i32
  }
  func.func @transform_6(%arg0: i32) -> (i32, i32) {
    %c0_i32 = arith.constant 0 : i32
    %c0_i32_0 = arith.constant 0 : i32
    %c0_i32_1 = arith.constant 0 : i32
    return %c0_i32, %c0_i32_0 : i32, i32
  }
  func.func @transform_7(%arg0: i32) -> (i32, i32, i32) {
    %c0_i32 = arith.constant 0 : i32
    %c0_i32_0 = arith.constant 0 : i32
    %c0_i32_1 = arith.constant 0 : i32
    %c0_i32_2 = arith.constant 0 : i32
    return %c0_i32, %c0_i32_0, %c0_i32_1 : i32, i32, i32
  }
  func.func @transform_8(%arg0: i32) -> (i32, i32) {
    %c0_i32 = arith.constant 0 : i32
    %c0_i32_0 = arith.constant 0 : i32
    %c0_i32_1 = arith.constant 0 : i32
    return %c0_i32, %c0_i32_0 : i32, i32
  }
  func.func @transform_9(%arg0: i32) -> (i32, i32, i32) {
    %c0_i32 = arith.constant 0 : i32
    %c0_i32_0 = arith.constant 0 : i32
    %c0_i32_1 = arith.constant 0 : i32
    return %arg0, %c0_i32, %c0_i32_0 : i32, i32, i32
  }
  func.func @transform_10(%arg0: i32) -> (i32, i32, i32) {
    %c0_i32 = arith.constant 0 : i32
    %c0_i32_0 = arith.constant 0 : i32
    %c0_i32_1 = arith.constant 0 : i32
    return %arg0, %c0_i32, %c0_i32_0 : i32, i32, i32
  }
}

</mosaic_0001>

<bundles_post_ra>
// kernel: tile.23
= control target key start
LH: loop header
LB: loop body
LE: loop exit
PB: predicated region body
PF: predicated region fallthrough
CT: control target
= control target key end

     0   :  { %s28_s0 = inlined_call_operand.vmem [shape: f32[32], index: 0, kind: input, shape index: {}]   ;;  %s29_s1 = inlined_call_operand.vmem [shape: f32[16,32], index: 1, kind: output, shape index: {}]  }
   0x1   :  { %v4_v0 = vld [vmem:[%s28_s0] ss:$0 sm:$0xff] }
   0x2   :  { %5 = vst [vmem:[%s29_s1] sm:$0xff] %v4_v0  ;;  %8 = vst [vmem:[%s29_s1 + $0x8] sm:$0xff] %v4_v0 }

// kernel: tile.24
= control target key start
LH: loop header
LB: loop body
LE: loop exit
PB: predicated region body
PF: predicated region fallthrough
CT: control target
= control target key end

     0   :  { %s57_s8 = smov 96   ;;  %vm3_vm0 = vcmask 261120   ;;  %s59_s15 = smov 64   ;;  %vm9_vm1 = vcmask 1048320   ;;  %vm15_vm2 = vcmask 785920   ;;  %vm21_vm3 = vcmask 523520   ;;  %s94_s0 = inlined_call_operand.vmem [shape: f32[16,32], index: 0, kind: input, shape index: {}]   ;;  %s95_s1 = inlined_call_operand.vmem [shape: f32[1,512], index: 1, kind: output, shape index: {}]  }
   0x1   :  { %v48_v0 = vld [vmem:[%s94_s0 + $0x3] ss:$4 sm:$0xf]   ;;  %v49_v1 = vld [vmem:[%s94_s0 + $0x2] ss:$4 sm:$0xf]  }
   0x2   :  { %7 = vrot.lane.b32.xlu0 %v48_v0, %s57_s8  ;;  %v50_v2 = vld [vmem:[%s94_s0 + $0x1] ss:$4 sm:$0xf]   ;;  %v2_v3 = vld [vmem:[%s94_s0] ss:$4 sm:$0xf]  }
   0x3   :  { %s58_s0 = smov 32   ;;  %4 = vst.msk [vmem:[#allocation0] ss:$8 sm:$0xf] %vm3_vm0, %v2_v3  }
   0x4   :  { %19 = vrot.lane.b32.xlu1 %v50_v2, %s58_s0 }
   0x6   :  { %13 = vrot.lane.b32.xlu0 %v49_v1, %s59_s15 }
  0x74   :  { %v8_v4 = vpop.permute.xlu0 %7  }
  0x75   :  { %10 = vst.msk [vmem:[#allocation0] ss:$8 sm:$0xf] %vm9_vm1, %v8_v4  }
  0x76   :  { %v20_v5 = vpop.permute.xlu1 %19  }
  0x78   :  { %v14_v6 = vpop.permute.xlu0 %13  }
  0x79   :  { %16 = vst.msk [vmem:[#allocation0] ss:$8 sm:$0xf] %vm15_vm2, %v14_v6  }
  0x7a   :  { %22 = vst.msk [vmem:[#allocation0] ss:$8 sm:$0xf] %vm21_vm3, %v20_v5  }
  0x81   :  { %v26_v7 = vld [vmem:[#allocation0] sm:$0x1]  ;;  %v30_v8 = vld [vmem:[#allocation0 + $0x8] sm:$0x1]  ;;  %v35_v9 = vld [vmem:[#allocation0 + $0x10] sm:$0x1] }
  0x82   :  { %28 = vst [vmem:[%s95_s1] sm:$0x1] %v26_v7  ;;  %51 = vst [vmem:[%s95_s1 + $0x1] sm:$0x1] %v30_v8  ;;  %v41_v10 = vld [vmem:[#allocation0 + $0x18] sm:$0x1] }
  0x83   :  { %52 = vst [vmem:[%s95_s1 + $0x2] sm:$0x1] %v35_v9  ;;  %53 = vst [vmem:[%s95_s1 + $0x3] sm:$0x1] %v41_v10 }

// kernel: encoder_forward.1
= control target key start
LH: loop header
LB: loop body
LE: loop exit
PB: predicated region body
PF: predicated region fallthrough
CT: control target
= control target key end

     0   :  { %v26594_v1 = vmov 0   ;;  %vm59_vm0 = vcmask 1040384   ;;  %vm60_vm1 = vcmask 1044484   ;;  %vm78_vm2 = vcmask 1042432   ;;  %s34451_s1 = inlined_call_operand.vmem [shape: bf16[5,128,512], index: 1, kind: input, shape index: {}]   ;;  %s34452_s0 = inlined_call_operand.vmem [shape: bf16[2,16,128], index: 0, kind: input, shape index: {}]   ;;  %s34453_s3 = inlined_call_operand.vmem [shape: bf16[5,512,512], index: 3, kind: input, shape index: {}]   ;;  %s34454_s2 = inlined_call_operand.vmem [shape: f32[1,512], index: 2, kind: input, shape index: {}]   ;;  %s34455_s5 = inlined_call_operand.vmem [shape: bf16[5,512,512], index: 5, kind: input, shape index: {}]   ;;  %s34456_s4 = inlined_call_operand.vmem [shape: f32[1,512], index: 4, kind: input, shape index: {}]   ;;  %s34457_s7 = inlined_call_operand.vmem [shape: bf16[5,512,512], index: 7, kind: input, shape index: {}]   ;;  %s34458_s6 = inlined_call_operand.vmem [shape: f32[1,512], index: 6, kind: input, shape index: {}]   ;;  %s34459_s8 = inlined_call_operand.vmem [shape: f32[1,512], index: 8, kind: input, shape index: {}]   ;;  %s34460_s9 = inlined_call_operand.vmem [shape: f32[2,16,512], index: 9, kind: input, shape index: {}]   ;;  %s34461_s10 = inlined_call_operand.vmem [shape: f32[2,16,512], index: 10, kind: output, shape index: {}]  }
   0x1   :  { %v23428_v0 = vld [vmem:[%s34451_s1 + $0x104] ss:$16 sps:$4 sm:$0xff]   ;;  %395 = vmatprep.mubr.bf16.mxu0 %v26594_v1  ;;  %40 = vst [vmem:[#allocation2] sm:$0xf] %v26594_v1  ;;  %41 = vst [vmem:[#allocation2 + $0x4] sm:$0xf] %v26594_v1  ;;  %456 = vmatprep.mubr.bf16.mxu1 %v26594_v1 }
   0x2   :  { %42 = vst [vmem:[#allocation2 + $0x8] sm:$0xf] %v26594_v1  ;;  %43 = vst [vmem:[#allocation2 + $0xc] sm:$0xf] %v26594_v1  ;;  %v23430_v2 = vld [vmem:[%s34451_s1 + $0x10c] ss:$16 sps:$4 sm:$0xff]   ;;  %363 = vmatprep.subr.bf16.mxu0 %v23428_v0 }
   0x3   :  { %44 = vst [vmem:[#allocation2 + $0x10] sm:$0xf] %v26594_v1  ;;  %45 = vst [vmem:[#allocation3] sm:$0xff] %v26594_v1  ;;  %v23432_v3 = vld [vmem:[%s34451_s1 + $0x100] ss:$16 sps:$4 sm:$0xff]   ;;  %424 = vmatprep.subr.bf16.mxu1 %v23430_v2  ;;  %vm79_vm3 = vcmask 1046532  }
   0x4   :  { %46 = vst [vmem:[#allocation3 + $0x8] sm:$0xff] %v26594_v1  ;;  %49 = vst [vmem:[#allocation3 + $0x20] sm:$0xff] %v26594_v1  ;;  %v23433_v4 = vld [vmem:[%s34451_s1 + $0x108] ss:$16 sps:$4 sm:$0xff]   ;;  %v23434_v5 = vld [vmem:[%s34451_s1 + $0x124] ss:$16 sps:$4 sm:$0xff]   ;;  %364 = vmatpush1.bf16.msra.mxu0 %v23432_v3 }
   0x5   :  { %50 = vst [vmem:[#allocation3 + $0x28] sm:$0xff] %v26594_v1  ;;  %53 = vst [vmem:[#allocation3 + $0x40] sm:$0xff] %v26594_v1  ;;  %425 = vmatpush1.bf16.msra.mxu1 %v23433_v4  ;;  %v23436_v6 = vld [vmem:[%s34451_s1 + $0x12c] ss:$16 sps:$4 sm:$0xff]   ;;  %v23438_v7 = vld [vmem:[%s34451_s1 + $0x120] ss:$16 sps:$4 sm:$0xff]   ;;  %365 = vmatprep.subr.bf16.mxu0 %v23434_v5 }
   0x6   :  { %54 = vst [vmem:[#allocation3 + $0x48] sm:$0xff] %v26594_v1  ;;  %v23439_v8 = vld [vmem:[%s34451_s1 + $0x128] ss:$16 sps:$4 sm:$0xff]   ;;  %426 = vmatprep.subr.bf16.mxu1 %v23436_v6  ;;  %v23440_v9 = vld [vmem:[%s34451_s1 + $0x144] ss:$16 sps:$4 sm:$0xff]   ;;  %vm26767_vm4 = vmor %vm59_vm0, %vm60_vm1  ;;  %vm810_vm7 = vcmask 1046528  }
   0x7   :  { %v23442_v10 = vld [vmem:[%s34451_s1 + $0x14c] ss:$16 sps:$4 sm:$0xff]   ;;  %v23444_v11 = vld [vmem:[%s34451_s1 + $0x140] ss:$16 sps:$4 sm:$0xff]   ;;  %v23445_v12 = vld [vmem:[%s34451_s1 + $0x148] ss:$16 sps:$4 sm:$0xff]  }
   0x8   :  { %366 = vmatpush1.bf16.msra.mxu0 %v23438_v7  ;;  %v23446_v13 = vld [vmem:[%s34451_s1 + $0x164] ss:$16 sps:$4 sm:$0xff]   ;;  %v23448_v14 = vld [vmem:[%s34451_s1 + $0x16c] ss:$16 sps:$4 sm:$0xff]   ;;  %v23450_v15 = vld [vmem:[%s34451_s1 + $0x160] ss:$16 sps:$4 sm:$0xff]  }
   0x9   :  { %427 = vmatpush1.bf16.msra.mxu1 %v23439_v8  ;;  %367 = vmatprep.subr.bf16.mxu0 %v23440_v9  ;;  %v23451_v16 = vld [vmem:[%s34451_s1 + $0x168] ss:$16 sps:$4 sm:$0xff]   ;;  %v23452_v17 = vld [vmem:[%s34451_s1 + $0x184] ss:$16 sps:$4 sm:$0xff]   ;;  %v23454_v18 = vld [vmem:[%s34451_s1 + $0x18c] ss:$16 sps:$4 sm:$0xff]  }
   0xa   :  { %428 = vmatprep.subr.bf16.mxu1 %v23442_v10  ;;  %v23456_v19 = vld [vmem:[%s34451_s1 + $0x180] ss:$16 sps:$4 sm:$0xff]   ;;  %v23457_v20 = vld [vmem:[%s34451_s1 + $0x188] ss:$16 sps:$4 sm:$0xff]   ;;  %v23458_v21 = vld [vmem:[%s34451_s1 + $0x1a4] ss:$16 sps:$4 sm:$0xff]  }
   0xb   :  { %v23460_v22 = vld [vmem:[%s34451_s1 + $0x1ac] ss:$16 sps:$4 sm:$0xff]   ;;  %v23462_v23 = vld [vmem:[%s34451_s1 + $0x1a0] ss:$16 sps:$4 sm:$0xff]   ;;  %v23463_v24 = vld [vmem:[%s34451_s1 + $0x1a8] ss:$16 sps:$4 sm:$0xff]  }
   0xc   :  { %368 = vmatpush1.bf16.msra.mxu0 %v23444_v11  ;;  %v23464_v25 = vld [vmem:[%s34451_s1 + $0x1c4] ss:$16 sps:$4 sm:$0xff]   ;;  %v23466_v26 = vld [vmem:[%s34451_s1 + $0x1cc] ss:$16 sps:$4 sm:$0xff]   ;;  %v23468_v27 = vld [vmem:[%s34451_s1 + $0x1c0] ss:$16 sps:$4 sm:$0xff]  }
   0xd   :  { %429 = vmatpush1.bf16.msra.mxu1 %v23445_v12  ;;  %369 = vmatprep.subr.bf16.mxu0 %v23446_v13  ;;  %v23469_v28 = vld [vmem:[%s34451_s1 + $0x1c8] ss:$16 sps:$4 sm:$0xff]   ;;  %v23470_v29 = vld [vmem:[%s34451_s1 + $0x1e4] ss:$16 sps:$4 sm:$0xff]   ;;  %v23472_v30 = vld [vmem:[%s34451_s1 + $0x1ec] ss:$16 sps:$4 sm:$0xff]  }
   0xe   :  { %430 = vmatprep.subr.bf16.mxu1 %v23448_v14  ;;  %v55_v31 = vld [vmem:[%s34452_s0] sm:$0xf]  ;;  %v56_v32 = vld [vmem:[%s34452_s0 + $0x4] sm:$0xf]  ;;  %v19018_v35 = vld [vmem:[%s34452_s0 + $0x8] sm:$0xf] }
   0xf   :  { %v62_v33 = vrot.slane %v55_v31, 7  ;;  %v64_v34 = vrot.slane %v56_v32, 7  ;;  %v19019_v36 = vld [vmem:[%s34452_s0 + $0xc] sm:$0xf]  ;;  %v81_v38 = vrot.slane %v19018_v35, 5  ;;  %vm80_vm5 = vmor %vm78_vm2, %vm79_vm3  ;;  %vm1522_vm9 = vcmask 1045504  }
  0x10   :  { %370 = vmatpush1.bf16.msra.mxu0 %v23450_v15  ;;  %v83_v39 = vrot.slane %v19019_v36, 5  ;;  %v23474_v42 = vld [vmem:[%s34451_s1 + $0x1e0] ss:$16 sps:$4 sm:$0xff]   ;;  %v23475_v43 = vld [vmem:[%s34451_s1 + $0x1e8] ss:$16 sps:$4 sm:$0xff]   ;;  %vm18928_vm10 = vcmask 1043456  }
  0x11   :  { %431 = vmatpush1.bf16.msra.mxu1 %v23451_v16  ;;  %371 = vmatprep.subr.bf16.mxu0 %v23452_v17  ;;  %v63_v40 = vrot.slane %v62_v33, 4  ;;  %v66_v41 = vrot.slane %v64_v34, 4  ;;  %70 = vst [vmem:[#allocation2] sm:$0xe] %v62_v33  ;;  %v82_v44 = vrot.slane %v81_v38, 4 }
  0x12   :  { %432 = vmatprep.subr.bf16.mxu1 %v23454_v18  ;;  %89 = vst [vmem:[#allocation2 + $0x8] sm:$0x8] %v81_v38  ;;  %v23478_v45 = vld [vmem:[%s34451_s1 + $0x4] ss:$16 sps:$4 sm:$0xff]   ;;  %v23481_v46 = vld [vmem:[%s34451_s1 + $0xc] ss:$16 sps:$4 sm:$0xff]  }
  0x13   :  { %v65_v47 = vsel %vm26767_vm4, %v63_v40, %v64_v34  ;;  %72 = vst [vmem:[#allocation2 + $0x8] sm:$0x1] %v66_v41  ;;  %v85_v48 = vrot.slane %v83_v39, 4  ;;  %v84_v49 = vsel %vm80_vm5, %v82_v44, %v83_v39  ;;  %vm176_vm6 = vsmask.f32 7424 }
  0x14   :  { %372 = vmatpush1.bf16.msra.mxu0 %v23456_v19  ;;  %71 = vst [vmem:[#allocation2 + $0x4] sm:$0xf] %v65_v47  ;;  %90 = vst [vmem:[#allocation2 + $0xc] sm:$0xf] %v84_v49  ;;  %v23476_v63 = vld [vmem:[%s34451_s1] ss:$16 sps:$4 sm:$0xff]  }
  0x15   :  { %433 = vmatpush1.bf16.msra.mxu1 %v23457_v20  ;;  %373 = vmatprep.subr.bf16.mxu0 %v23458_v21  ;;  %91 = vst [vmem:[#allocation2 + $0x10] sm:$0x7] %v85_v48  ;;  %v23479_v2 = vld [vmem:[%s34451_s1 + $0x8] ss:$16 sps:$4 sm:$0xff]   ;;  %v23486_v7 = vld [vmem:[%s34451_s1 + $0x24] ss:$16 sps:$4 sm:$0xff]  }
  0x16   :  { %434 = vmatprep.subr.bf16.mxu1 %v23460_v22  ;;  %v23489_v8 = vld [vmem:[%s34451_s1 + $0x2c] ss:$16 sps:$4 sm:$0xff]   ;;  %v23484_v11 = vld [vmem:[%s34451_s1 + $0x20] ss:$16 sps:$4 sm:$0xff]   ;;  %v23487_v12 = vld [vmem:[%s34451_s1 + $0x28] ss:$16 sps:$4 sm:$0xff]  }
  0x17   :  { %v23492_v15 = vld [vmem:[%s34451_s1 + $0x44] ss:$16 sps:$4 sm:$0xff]   ;;  %v23495_v16 = vld [vmem:[%s34451_s1 + $0x4c] ss:$16 sps:$4 sm:$0xff]   ;;  %v23490_v17 = vld [vmem:[%s34451_s1 + $0x40] ss:$16 sps:$4 sm:$0xff]  }
  0x18   :  { %374 = vmatpush1.bf16.msra.mxu0 %v23462_v23  ;;  %v92_v50 = vld [vmem:[#allocation2] sm:$0xf]  ;;  %v23493_v18 = vld [vmem:[%s34451_s1 + $0x48] ss:$16 sps:$4 sm:$0xff]   ;;  %v23498_v20 = vld [vmem:[%s34451_s1 + $0x64] ss:$16 sps:$4 sm:$0xff]  }
  0x19   :  { %435 = vmatpush1.bf16.msra.mxu1 %v23463_v24  ;;  %375 = vmatprep.subr.bf16.mxu0 %v23464_v25  ;;  %v23501_v21 = vld [vmem:[%s34451_s1 + $0x6c] ss:$16 sps:$4 sm:$0xff]   ;;  %v23496_v22 = vld [vmem:[%s34451_s1 + $0x60] ss:$16 sps:$4 sm:$0xff]   ;;  %v23499_v24 = vld [vmem:[%s34451_s1 + $0x68] ss:$16 sps:$4 sm:$0xff]  }
  0x1a   :  { %436 = vmatprep.subr.bf16.mxu1 %v23466_v26  ;;  %v23505_v25 = vld [vmem:[%s34451_s1 + $0x84] ss:$16 sps:$4 sm:$0xff]   ;;  %v23508_v26 = vld [vmem:[%s34451_s1 + $0x8c] ss:$16 sps:$4 sm:$0xff]   ;;  %v23509_v32 = vld [vmem:[%s34451_s1 + $0xa0] ss:$16 sps:$4 sm:$0xff]  }
  0x1b   :  { %v26787_v51 = vld [vmem:[#allocation2 + $0x4] sm:$0xf]  ;;  %v26792_v53 = vld [vmem:[#allocation2 + $0x8] sm:$0xff]   ;;  %v23515_v36 = vld [vmem:[%s34451_s1 + $0xc0] ss:$16 sps:$4 sm:$0xff]  }
  0x1c   :  { %376 = vmatpush1.bf16.msra.mxu0 %v23468_v27  ;;  %v26790_v52 = vcombine.low %v92_v50, %v26787_v51  ;;  %v23502_v54 = vld [vmem:[#allocation2 + $0x10] ss:$0 sps:$4 sm:$0x77]   ;;  %v185_v57 = vshll.u32 %v26792_v53, 16  ;;  %v189_v58 = vshrl.u32 %v26792_v53, 16  ;;  %v812_v4 = vrot.slane %v26792_v53, 1 }
  0x1d   :  { %437 = vmatpush1.bf16.msra.mxu1 %v23469_v28  ;;  %377 = vmatprep.subr.bf16.mxu0 %v23470_v29  ;;  %v193_v0 = vshll.u32 %v23502_v54, 16  ;;  %v26805_v5 = vrot.slane %v23502_v54, 1  ;;  %v197_v23 = vshrl.u32 %v23502_v54, 16  ;;  %v23503_v27 = vld [vmem:[%s34451_s1 + $0x80] ss:$16 sps:$4 sm:$0xff]  }
  0x1e   :  { %438 = vmatprep.subr.bf16.mxu1 %v23472_v30  ;;  %v178_v55 = vshrl.u32 %v26790_v52, 16  ;;  %v180_v56 = vshll.u32 %v26790_v52, 16  ;;  %v187_v60 = vrot.slane %v185_v57, 1  ;;  %v1168_v61 = vrot.slane %v185_v57, 2  ;;  %v23506_v29 = vld [vmem:[%s34451_s1 + $0x88] ss:$16 sps:$4 sm:$0xff]  }
  0x1f   :  { %v1167_v62 = vrot.slane %v189_v58, 1  ;;  %v26820_v10 = vsel %vm810_vm7, %v812_v4, %v26805_v5  ;;  %v195_v14 = vrot.slane %v193_v0, 1  ;;  %v23511_v30 = vld [vmem:[%s34451_s1 + $0xa4] ss:$16 sps:$4 sm:$0xff]   ;;  %v23514_v31 = vld [vmem:[%s34451_s1 + $0xac] ss:$16 sps:$4 sm:$0xff]  }
  0x20   :  { %378 = vmatpush1.bf16.msra.mxu0 %v23474_v42  ;;  %v182_v59 = vrot.slane %v180_v56, 1  ;;  %v191_v13 = vor.u32 %v189_v58, %v187_v60  ;;  %v23512_v33 = vld [vmem:[%s34451_s1 + $0xa8] ss:$16 sps:$4 sm:$0xff]   ;;  %v23517_v34 = vld [vmem:[%s34451_s1 + $0xc4] ss:$16 sps:$4 sm:$0xff]  }
  0x21   :  { %439 = vmatpush1.bf16.msra.mxu1 %v23475_v43  ;;  %651 = vmatprep.subr.bf16.mxu0 %v23478_v45  ;;  %v26807_v6 = vor.u32 %v1168_v61, %v1167_v62  ;;  %v199_v28 = vor.u32 %v197_v23, %v195_v14  ;;  %v23520_v35 = vld [vmem:[%s34451_s1 + $0xcc] ss:$16 sps:$4 sm:$0xff]   ;;  %v23518_v38 = vld [vmem:[%s34451_s1 + $0xc8] ss:$16 sps:$4 sm:$0xff]   ;;  %v23523_v39 = vld [vmem:[%s34451_s1 + $0xe4] ss:$16 sps:$4 sm:$0xff]  }
  0x22   :  { %712 = vmatprep.subr.bf16.mxu1 %v23481_v46  ;;  %v183_v3 = vor.u32 %v182_v59, %v178_v55  ;;  %v196_v19 = vsel %vm176_vm6, %v191_v13, %v195_v14  ;;  %v23526_v40 = vld [vmem:[%s34451_s1 + $0xec] ss:$16 sps:$4 sm:$0xff]   ;;  %v23521_v41 = vld [vmem:[%s34451_s1 + $0xe0] ss:$16 sps:$4 sm:$0xff]   ;;  %v23524_v42 = vld [vmem:[%s34451_s1 + $0xe8] ss:$16 sps:$4 sm:$0xff]  }
  0x23   :  { %v23529_v43 = vld [vmem:[%s34451_s1 + $0x204] ss:$16 sps:$4 sm:$0xff]   ;;  %v23532_v44 = vld [vmem:[%s34451_s1 + $0x20c] ss:$16 sps:$4 sm:$0xff]   ;;  %v23527_v45 = vld [vmem:[%s34451_s1 + $0x200] ss:$16 sps:$4 sm:$0xff]  }
  0x24   :  { %v188_v9 = vsel %vm176_vm6, %v183_v3, %v187_v60  ;;  %v23530_v46 = vld [vmem:[%s34451_s1 + $0x208] ss:$16 sps:$4 sm:$0xff]   ;;  %v23535_v47 = vld [vmem:[%s34451_s1 + $0x224] ss:$16 sps:$4 sm:$0xff]   ;;  %v23538_v48 = vld [vmem:[%s34451_s1 + $0x22c] ss:$16 sps:$4 sm:$0xff]  }
  0x25   :  { %396 = vmatmul.mubr.bf16.vlgmr.msra.gmra.mrb[0].mxu0 %v188_v9  ;;  %457 = vmatmul.mubr.bf16.vlgmr.msra.gmra.mrb[0].mxu1 %v188_v9  ;;  %v23533_v49 = vld [vmem:[%s34451_s1 + $0x220] ss:$16 sps:$4 sm:$0xff]   ;;  %v23536_v50 = vld [vmem:[%s34451_s1 + $0x228] ss:$16 sps:$4 sm:$0xff]   ;;  %v23541_v54 = vld [vmem:[%s34451_s1 + $0x244] ss:$16 sps:$4 sm:$0xff]  }
  0x26   :  { %652 = vmatpush1.bf16.msra.mxu0 %v23476_v63  ;;  %713 = vmatpush1.bf16.msra.mxu1 %v23479_v2  ;;  %v23539_v55 = vld [vmem:[%s34451_s1 + $0x240] ss:$16 sps:$4 sm:$0xff]   ;;  %v23542_v56 = vld [vmem:[%s34451_s1 + $0x248] ss:$16 sps:$4 sm:$0xff]   ;;  %v23547_v57 = vld [vmem:[%s34451_s1 + $0x264] ss:$16 sps:$4 sm:$0xff]  }
  0x27   :  { %653 = vmatprep.subr.bf16.mxu0 %v23486_v7  ;;  %714 = vmatprep.subr.bf16.mxu1 %v23489_v8  ;;  %v23550_v58 = vld [vmem:[%s34451_s1 + $0x26c] ss:$16 sps:$4 sm:$0xff]   ;;  %v23545_v59 = vld [vmem:[%s34451_s1 + $0x260] ss:$16 sps:$4 sm:$0xff]   ;;  %v23548_v60 = vld [vmem:[%s34451_s1 + $0x268] ss:$16 sps:$4 sm:$0xff]  }
  0x28   :  { %405 = vmatprep.mubr.bf16.mxu0 %v26594_v1  ;;  %466 = vmatprep.mubr.bf16.mxu1 %v26594_v1  ;;  %v23554_v61 = vld [vmem:[%s34451_s1 + $0x284] ss:$16 sps:$4 sm:$0xff]   ;;  %v23557_v62 = vld [vmem:[%s34451_s1 + $0x28c] ss:$16 sps:$4 sm:$0xff]   ;;  %v23552_v0 = vld [vmem:[%s34451_s1 + $0x280] ss:$16 sps:$4 sm:$0xff]  }
  0x29   :  { %v23551_v63 = vld [vmem:[#allocation2 + $0x10] ss:$0 sps:$4 sm:$0x33]   ;;  %v23555_v2 = vld [vmem:[%s34451_s1 + $0x288] ss:$16 sps:$4 sm:$0xff]  }
  0x2a   :  { %654 = vmatpush1.bf16.msra.mxu0 %v23484_v11  ;;  %715 = vmatpush1.bf16.msra.mxu1 %v23487_v12  ;;  %v23560_v3 = vld [vmem:[%s34451_s1 + $0x2a4] ss:$16 sps:$4 sm:$0xff]   ;;  %v23563_v7 = vld [vmem:[%s34451_s1 + $0x2ac] ss:$16 sps:$4 sm:$0xff]   ;;  %v23558_v8 = vld [vmem:[%s34451_s1 + $0x2a0] ss:$16 sps:$4 sm:$0xff]  }
  0x2b   :  { %655 = vmatprep.subr.bf16.mxu0 %v23492_v15  ;;  %716 = vmatprep.subr.bf16.mxu1 %v23495_v16  ;;  %v23561_v9 = vld [vmem:[%s34451_s1 + $0x2a8] ss:$16 sps:$4 sm:$0xff]   ;;  %v23566_v11 = vld [vmem:[%s34451_s1 + $0x2c4] ss:$16 sps:$4 sm:$0xff]   ;;  %v23569_v12 = vld [vmem:[%s34451_s1 + $0x2cc] ss:$16 sps:$4 sm:$0xff]  }
  0x2c   :  { %v773_v13 = vld [vmem:[#allocation2] sm:$0xe]  ;;  %v23567_v15 = vld [vmem:[%s34451_s1 + $0x2c8] ss:$16 sps:$4 sm:$0xff]   ;;  %v23572_v16 = vld [vmem:[%s34451_s1 + $0x2e4] ss:$16 sps:$4 sm:$0xff]  }
  0x2d   :  { %406 = vmatmul.mubr.bf16.gmra.mrb[4].mxu0 %v196_v19  ;;  %467 = vmatmul.mubr.bf16.gmra.mrb[4].mxu1 %v196_v19  ;;  %v23564_v14 = vld [vmem:[%s34451_s1 + $0x2c0] ss:$16 sps:$4 sm:$0xff]   ;;  %v23582_v23 = vld [vmem:[%s34451_s1 + $0x30c] ss:$16 sps:$4 sm:$0xff]   ;;  %vm1158_vm8 = vsmask.f32 6400 }
  0x2e   :  { %656 = vmatpush1.bf16.msra.mxu0 %v23490_v17  ;;  %717 = vmatpush1.bf16.msra.mxu1 %v23493_v18  ;;  %v27005_v17 = vcombine.low %v773_v13, %v26787_v51  ;;  %v23575_v18 = vld [vmem:[%s34451_s1 + $0x2ec] ss:$16 sps:$4 sm:$0xff]   ;;  %v23570_v19 = vld [vmem:[%s34451_s1 + $0x2e0] ss:$16 sps:$4 sm:$0xff]   ;;  %v23634_v13 = vld [vmem:[%s34451_s1 + $0x428] ss:$16 sps:$4 sm:$0xff]  }
  0x2f   :  { %657 = vmatprep.subr.bf16.mxu0 %v23498_v20  ;;  %718 = vmatprep.subr.bf16.mxu1 %v23501_v21  ;;  %v23573_v20 = vld [vmem:[%s34451_s1 + $0x2e8] ss:$16 sps:$4 sm:$0xff]   ;;  %v25726_v37 = vld [vmem:[%s34457_s7 + $0x62c] ss:$16 sps:$4 sm:$0xff]  }
  0x30   :  { %415 = vmatprep.mubr.bf16.mxu0 %v26594_v1  ;;  %476 = vmatprep.mubr.bf16.mxu1 %v26594_v1  ;;  %v811_v21 = vrot.slane %v27005_v17, 1 }
  0x32   :  { %658 = vmatpush1.bf16.msra.mxu0 %v23496_v22  ;;  %719 = vmatpush1.bf16.msra.mxu1 %v23499_v24  ;;  %v23579_v22 = vld [vmem:[%s34451_s1 + $0x304] ss:$16 sps:$4 sm:$0xff]   ;;  %v813_v24 = vsel %vm810_vm7, %v811_v21, %v812_v4  ;;  %v23583_v4 = vld [vmem:[%s34451_s1 + $0x320] ss:$16 sps:$4 sm:$0xff]  }
  0x33   :  { %659 = vmatprep.subr.bf16.mxu0 %v23505_v25  ;;  %720 = vmatprep.subr.bf16.mxu1 %v23508_v26  ;;  %v23577_v25 = vld [vmem:[%s34451_s1 + $0x300] ss:$16 sps:$4 sm:$0xff]   ;;  %v23580_v26 = vld [vmem:[%s34451_s1 + $0x308] ss:$16 sps:$4 sm:$0xff]   ;;  %v23646_v21 = vld [vmem:[%s34451_s1 + $0x464] ss:$16 sps:$4 sm:$0xff]  }
  0x35   :  { %416 = vmatmul.mubr.bf16.gmra.mrb[8].mxu0 %v199_v28  ;;  %477 = vmatmul.mubr.bf16.gmra.mrb[8].mxu1 %v199_v28  ;;  %v23588_v28 = vld [vmem:[%s34451_s1 + $0x32c] ss:$16 sps:$4 sm:$0xff]  }
  0x36   :  { %660 = vmatpush1.bf16.msra.mxu0 %v23503_v27  ;;  %721 = vmatpush1.bf16.msra.mxu1 %v23506_v29  ;;  %v23585_v27 = vld [vmem:[%s34451_s1 + $0x324] ss:$16 sps:$4 sm:$0xff]   ;;  %v23586_v29 = vld [vmem:[%s34451_s1 + $0x328] ss:$16 sps:$4 sm:$0xff]  }
  0x37   :  { %661 = vmatprep.subr.bf16.mxu0 %v23511_v30  ;;  %722 = vmatprep.subr.bf16.mxu1 %v23514_v31  ;;  %v23591_v30 = vld [vmem:[%s34451_s1 + $0x344] ss:$16 sps:$4 sm:$0xff]   ;;  %v23594_v31 = vld [vmem:[%s34451_s1 + $0x34c] ss:$16 sps:$4 sm:$0xff]  }
  0x38   :  { %683 = vmatprep.mubr.bf16.mxu0 %v26594_v1  ;;  %744 = vmatprep.mubr.bf16.mxu1 %v26594_v1 }
  0x3a   :  { %662 = vmatpush1.bf16.msra.mxu0 %v23509_v32  ;;  %723 = vmatpush1.bf16.msra.mxu1 %v23512_v33  ;;  %v23589_v32 = vld [vmem:[%s34451_s1 + $0x340] ss:$16 sps:$4 sm:$0xff]   ;;  %v23592_v33 = vld [vmem:[%s34451_s1 + $0x348] ss:$16 sps:$4 sm:$0xff]  }
  0x3b   :  { %663 = vmatprep.subr.bf16.mxu0 %v23517_v34  ;;  %724 = vmatprep.subr.bf16.mxu1 %v23520_v35  ;;  %v23597_v34 = vld [vmem:[%s34451_s1 + $0x364] ss:$16 sps:$4 sm:$0xff]   ;;  %v23600_v35 = vld [vmem:[%s34451_s1 + $0x36c] ss:$16 sps:$4 sm:$0xff]  }
  0x3e   :  { %664 = vmatpush1.bf16.msra.mxu0 %v23515_v36  ;;  %725 = vmatpush1.bf16.msra.mxu1 %v23518_v38  ;;  %v23595_v36 = vld [vmem:[%s34451_s1 + $0x360] ss:$16 sps:$4 sm:$0xff]   ;;  %v23598_v38 = vld [vmem:[%s34451_s1 + $0x368] ss:$16 sps:$4 sm:$0xff]  }
  0x3f   :  { %665 = vmatprep.subr.bf16.mxu0 %v23523_v39  ;;  %726 = vmatprep.subr.bf16.mxu1 %v23526_v40  ;;  %v23603_v39 = vld [vmem:[%s34451_s1 + $0x384] ss:$16 sps:$4 sm:$0xff]   ;;  %v23601_v40 = vld [vmem:[%s34451_s1 + $0x380] ss:$16 sps:$4 sm:$0xff]  }
  0x42   :  { %666 = vmatpush1.bf16.msra.mxu0 %v23521_v41  ;;  %727 = vmatpush1.bf16.msra.mxu1 %v23524_v42  ;;  %v23604_v41 = vld [vmem:[%s34451_s1 + $0x388] ss:$16 sps:$4 sm:$0xff]   ;;  %v23609_v42 = vld [vmem:[%s34451_s1 + $0x3a4] ss:$16 sps:$4 sm:$0xff]  }
  0x43   :  { %979 = vmatprep.subr.bf16.mxu0 %v23529_v43  ;;  %1040 = vmatprep.subr.bf16.mxu1 %v23532_v44  ;;  %v23612_v43 = vld [vmem:[%s34451_s1 + $0x3ac] ss:$16 sps:$4 sm:$0xff]   ;;  %v1160_v44 = vshrl.u32 %v27005_v17, 16 }
  0x45   :  { %684 = vmatmul.mubr.bf16.vlgmr.msra.gmra.mrb[0].mxu0 %v26790_v52  ;;  %745 = vmatmul.mubr.bf16.vlgmr.msra.gmra.mrb[0].mxu1 %v26790_v52  ;;  %v23544_v52 = vld [vmem:[%s34451_s1 + $0x24c] ss:$16 sps:$4 sm:$0xff]  }
  0x46   :  { %980 = vmatpush1.bf16.msra.mxu0 %v23527_v45  ;;  %1041 = vmatpush1.bf16.msra.mxu1 %v23530_v46  ;;  %v1163_v45 = vshll.u32 %v27005_v17, 16  ;;  %v23607_v46 = vld [vmem:[%s34451_s1 + $0x3a0] ss:$16 sps:$4 sm:$0xff]   ;;  %v27164_v17 = vld [vmem:[#allocation3] sm:$0xff] }
  0x47   :  { %981 = vmatprep.subr.bf16.mxu0 %v23535_v47  ;;  %1042 = vmatprep.subr.bf16.mxu1 %v23538_v48  ;;  %v23610_v47 = vld [vmem:[%s34451_s1 + $0x3a8] ss:$16 sps:$4 sm:$0xff]   ;;  %v23618_v48 = vld [vmem:[%s34451_s1 + $0x3cc] ss:$16 sps:$4 sm:$0xff]  }
  0x48   :  { %693 = vmatprep.mubr.bf16.mxu0 %v26594_v1  ;;  %754 = vmatprep.mubr.bf16.mxu1 %v26594_v1 }
  0x4a   :  { %982 = vmatpush1.bf16.msra.mxu0 %v23533_v49  ;;  %1043 = vmatpush1.bf16.msra.mxu1 %v23536_v50  ;;  %v1162_v49 = vrot.slane %v1160_v44, 1  ;;  %v1165_v50 = vrot.slane %v1163_v45, 2  ;;  %v23677_v45 = vld [vmem:[%s34453_s3 + $0x404] ss:$16 sps:$4 sm:$0xff]  }
  0x4b   :  { %983 = vmatprep.subr.bf16.mxu0 %v23541_v54  ;;  %1044 = vmatprep.subr.bf16.mxu1 %v23544_v52  ;;  %v23613_v54 = vld [vmem:[%s34451_s1 + $0x3c0] ss:$16 sps:$4 sm:$0xff]   ;;  %v23616_v52 = vld [vmem:[%s34451_s1 + $0x3c8] ss:$16 sps:$4 sm:$0xff]  }
  0x4d   :  { %694 = vmatmul.mubr.bf16.gmra.mrb[4].mxu0 %v26792_v53  ;;  %755 = vmatmul.mubr.bf16.gmra.mrb[4].mxu1 %v26792_v53 }
  0x4e   :  { %984 = vmatpush1.bf16.msra.mxu0 %v23539_v55  ;;  %1045 = vmatpush1.bf16.msra.mxu1 %v23542_v56  ;;  %v27116_v55 = vld [vmem:[#allocation2 + $0x10] ss:$0 sps:$4 sm:$0xff]   ;;  %v23624_v56 = vld [vmem:[%s34451_s1 + $0x3ec] ss:$16 sps:$4 sm:$0xff]  }
  0x4f   :  { %985 = vmatprep.subr.bf16.mxu0 %v23547_v57  ;;  %1046 = vmatprep.subr.bf16.mxu1 %v23550_v58  ;;  %v23619_v57 = vld [vmem:[%s34451_s1 + $0x3e0] ss:$16 sps:$4 sm:$0xff]   ;;  %v23622_v58 = vld [vmem:[%s34451_s1 + $0x3e8] ss:$16 sps:$4 sm:$0xff]  }
  0x50   :  { %703 = vmatprep.mubr.bf16.mxu0 %v26594_v1  ;;  %764 = vmatprep.mubr.bf16.mxu1 %v26594_v1 }
  0x52   :  { %986 = vmatpush1.bf16.msra.mxu0 %v23545_v59  ;;  %1047 = vmatpush1.bf16.msra.mxu1 %v23548_v60  ;;  %v1166_v59 = vor.u32 %v1165_v50, %v1162_v49  ;;  %v1172_v60 = vshrl.u32 %v27116_v55, 16  ;;  %v23684_v49 = vld [vmem:[%s34453_s3 + $0x428] ss:$16 sps:$4 sm:$0xff]   ;;  %v23686_v50 = vld [vmem:[%s34453_s3 + $0x42c] ss:$16 sps:$4 sm:$0xff]  }
  0x53   :  { %987 = vmatprep.subr.bf16.mxu0 %v23554_v61  ;;  %1048 = vmatprep.subr.bf16.mxu1 %v23557_v62  ;;  %v1175_v61 = vshll.u32 %v27116_v55, 16  ;;  %v23627_v62 = vld [vmem:[%s34451_s1 + $0x404] ss:$16 sps:$4 sm:$0xff]  }
  0x55   :  { %704 = vmatmul.mubr.bf16.gmra.mrb[12].mxu0 %v23551_v63  ;;  %765 = vmatmul.mubr.bf16.gmra.mrb[12].mxu1 %v23551_v63  ;;  %v23630_v63 = vld [vmem:[%s34451_s1 + $0x40c] ss:$16 sps:$4 sm:$0xff]  }
  0x56   :  { %988 = vmatpush1.bf16.msra.mxu0 %v23552_v0  ;;  %1049 = vmatpush1.bf16.msra.mxu1 %v23555_v2  ;;  %v1170_v0 = vsel %vm1158_vm8, %v1166_v59, %v26807_v6  ;;  %v23625_v2 = vld [vmem:[%s34451_s1 + $0x400] ss:$16 sps:$4 sm:$0xff]   ;;  %v23696_v59 = vld [vmem:[%s34453_s3 + $0x468] ss:$16 sps:$4 sm:$0xff]  }
  0x57   :  { %989 = vmatprep.subr.bf16.mxu0 %v23560_v3  ;;  %1050 = vmatprep.subr.bf16.mxu1 %v23563_v7  ;;  %v23628_v3 = vld [vmem:[%s34451_s1 + $0x408] ss:$16 sps:$4 sm:$0xff]   ;;  %v1174_v7 = vrot.slane %v1172_v60, 1  ;;  %v23701_v60 = vld [vmem:[%s34453_s3 + $0x484] ss:$16 sps:$4 sm:$0xff]  }
  0x58   :  { %1011 = vmatprep.mubr.bf16.mxu0 %v26594_v1  ;;  %1072 = vmatprep.mubr.bf16.mxu1 %v26594_v1 }
  0x5a   :  { %990 = vmatpush1.bf16.msra.mxu0 %v23558_v8  ;;  %1051 = vmatpush1.bf16.msra.mxu1 %v23561_v9  ;;  %v1177_v8 = vrot.slane %v1175_v61, 2  ;;  %v23633_v9 = vld [vmem:[%s34451_s1 + $0x424] ss:$16 sps:$4 sm:$0xff]   ;;  %v23704_v61 = vld [vmem:[%s34453_s3 + $0x48c] ss:$16 sps:$4 sm:$0xff]  }
  0x5b   :  { %991 = vmatprep.subr.bf16.mxu0 %v23566_v11  ;;  %1052 = vmatprep.subr.bf16.mxu1 %v23569_v12  ;;  %v23636_v11 = vld [vmem:[%s34451_s1 + $0x42c] ss:$16 sps:$4 sm:$0xff]   ;;  %v23631_v12 = vld [vmem:[%s34451_s1 + $0x420] ss:$16 sps:$4 sm:$0xff]  }
  0x5e   :  { %992 = vmatpush1.bf16.msra.mxu0 %v23564_v14  ;;  %1053 = vmatpush1.bf16.msra.mxu1 %v23567_v15  ;;  %v1178_v14 = vor.u32 %v1177_v8, %v1174_v7  ;;  %v23640_v15 = vld [vmem:[%s34451_s1 + $0x444] ss:$16 sps:$4 sm:$0xff]   ;;  %v23710_v7 = vld [vmem:[%s34453_s3 + $0x4ac] ss:$16 sps:$4 sm:$0xff]   ;;  %v23711_v8 = vld [vmem:[%s34453_s3 + $0x4c0] ss:$16 sps:$4 sm:$0xff]  }
  0x5f   :  { %993 = vmatprep.subr.bf16.mxu0 %v23572_v16  ;;  %1054 = vmatprep.subr.bf16.mxu1 %v23575_v18  ;;  %v23643_v16 = vld [vmem:[%s34451_s1 + $0x44c] ss:$16 sps:$4 sm:$0xff]  }
  0x60   :  { %v1179_v18 = vsel %vm1158_vm8, %v26807_v6, %v1178_v14  ;;  %v23644_v6 = vld [vmem:[%s34451_s1 + $0x460] ss:$16 sps:$4 sm:$0xff]  }
  0x62   :  { %994 = vmatpush1.bf16.msra.mxu0 %v23570_v19  ;;  %1055 = vmatpush1.bf16.msra.mxu1 %v23573_v20  ;;  %v23638_v19 = vld [vmem:[%s34451_s1 + $0x440] ss:$16 sps:$4 sm:$0xff]   ;;  %v23641_v20 = vld [vmem:[%s34451_s1 + $0x448] ss:$16 sps:$4 sm:$0xff]  }
  0x63   :  { %1343 = vmatprep.subr.bf16.mxu0 %v23579_v22  ;;  %1404 = vmatprep.subr.bf16.mxu1 %v23582_v23  ;;  %v23649_v22 = vld [vmem:[%s34451_s1 + $0x46c] ss:$16 sps:$4 sm:$0xff]   ;;  %v23647_v23 = vld [vmem:[%s34451_s1 + $0x468] ss:$16 sps:$4 sm:$0xff]  }
  0x65   :  { %1012 = vmatmul.mubr.bf16.vlgmr.msra.gmra.mrb[0].mxu0 %v813_v24  ;;  %1073 = vmatmul.mubr.bf16.vlgmr.msra.gmra.mrb[0].mxu1 %v813_v24  ;;  %v23652_v24 = vld [vmem:[%s34451_s1 + $0x484] ss:$16 sps:$4 sm:$0xff]  }
  0x66   :  { %1344 = vmatpush1.bf16.msra.mxu0 %v23577_v25  ;;  %1405 = vmatpush1.bf16.msra.mxu1 %v23580_v26  ;;  %v23655_v25 = vld [vmem:[%s34451_s1 + $0x48c] ss:$16 sps:$4 sm:$0xff]   ;;  %v23650_v26 = vld [vmem:[%s34451_s1 + $0x480] ss:$16 sps:$4 sm:$0xff]  }
  0x67   :  { %1345 = vmatprep.subr.bf16.mxu0 %v23585_v27  ;;  %1406 = vmatprep.subr.bf16.mxu1 %v23588_v28  ;;  %v23653_v27 = vld [vmem:[%s34451_s1 + $0x488] ss:$16 sps:$4 sm:$0xff]   ;;  %v23658_v28 = vld [vmem:[%s34451_s1 + $0x4a4] ss:$16 sps:$4 sm:$0xff]  }
  0x68   :  { %1021 = vmatprep.mubr.bf16.mxu0 %v26594_v1  ;;  %1082 = vmatprep.mubr.bf16.mxu1 %v26594_v1 }
  0x6a   :  { %1346 = vmatpush1.bf16.msra.mxu0 %v23583_v4  ;;  %1407 = vmatpush1.bf16.msra.mxu1 %v23586_v29  ;;  %v23661_v4 = vld [vmem:[%s34451_s1 + $0x4ac] ss:$16 sps:$4 sm:$0xff]   ;;  %v23656_v29 = vld [vmem:[%s34451_s1 + $0x4a0] ss:$16 sps:$4 sm:$0xff]  }
  0x6b   :  { %1347 = vmatprep.subr.bf16.mxu0 %v23591_v30  ;;  %1408 = vmatprep.subr.bf16.mxu1 %v23594_v31  ;;  %v23659_v30 = vld [vmem:[%s34451_s1 + $0x4a8] ss:$16 sps:$4 sm:$0xff]   ;;  %v23664_v31 = vld [vmem:[%s34451_s1 + $0x4c4] ss:$16 sps:$4 sm:$0xff]  }
  0x6d   :  { %1022 = vmatmul.mubr.bf16.gmra.mrb[4].mxu0 %v26820_v10  ;;  %1083 = vmatmul.mubr.bf16.gmra.mrb[4].mxu1 %v26820_v10  ;;  %v23606_v10 = vld [vmem:[%s34451_s1 + $0x38c] ss:$16 sps:$4 sm:$0xff]  }
  0x6e   :  { %1348 = vmatpush1.bf16.msra.mxu0 %v23589_v32  ;;  %1409 = vmatpush1.bf16.msra.mxu1 %v23592_v33  ;;  %v23667_v32 = vld [vmem:[%s34451_s1 + $0x4cc] ss:$16 sps:$4 sm:$0xff]   ;;  %v1485_v33 = vld [vmem:[#allocation2] sm:$0xc] }
  0x6f   :  { %1349 = vmatprep.subr.bf16.mxu0 %v23597_v34  ;;  %1410 = vmatprep.subr.bf16.mxu1 %v23600_v35  ;;  %v23662_v34 = vld [vmem:[%s34451_s1 + $0x4c0] ss:$16 sps:$4 sm:$0xff]   ;;  %v23665_v35 = vld [vmem:[%s34451_s1 + $0x4c8] ss:$16 sps:$4 sm:$0xff]  }
  0x70   :  { %1031 = vmatprep.mubr.bf16.mxu0 %v26594_v1  ;;  %1092 = vmatprep.mubr.bf16.mxu1 %v26594_v1 }
  0x72   :  { %1350 = vmatpush1.bf16.msra.mxu0 %v23595_v36  ;;  %1411 = vmatpush1.bf16.msra.mxu1 %v23598_v38  ;;  %v19282_v36 = vcombine.low %v1485_v33, %v26787_v51  ;;  %v23670_v38 = vld [vmem:[%s34451_s1 + $0x4e4] ss:$16 sps:$4 sm:$0xff]   ;;  %v23671_v51 = vld [vmem:[%s34451_s1 + $0x4e8] ss:$16 sps:$4 sm:$0xff]  }
  0x73   :  { %1351 = vmatprep.subr.bf16.mxu0 %v23603_v39  ;;  %1412 = vmatprep.subr.bf16.mxu1 %v23606_v10  ;;  %v23673_v39 = vld [vmem:[%s34451_s1 + $0x4ec] ss:$16 sps:$4 sm:$0xff]   ;;  %v23668_v10 = vld [vmem:[%s34451_s1 + $0x4e0] ss:$16 sps:$4 sm:$0xff]  }
  0x75   :  { %1032 = vmatmul.mubr.bf16.gmra.mrb[16].mxu0 %v26805_v5  ;;  %1093 = vmatmul.mubr.bf16.gmra.mrb[16].mxu1 %v26805_v5  ;;  %v23615_v5 = vld [vmem:[%s34451_s1 + $0x3c4] ss:$16 sps:$4 sm:$0xff]  }
  0x76   :  { %1352 = vmatpush1.bf16.msra.mxu0 %v23601_v40  ;;  %1413 = vmatpush1.bf16.msra.mxu1 %v23604_v41  ;;  %v1523_v40 = vrot.slane %v19282_v36, 2  ;;  %v1524_v41 = vrot.slane %v26792_v53, 2  ;;  %v23675_v53 = vld [vmem:[%s34453_s3 + $0x400] ss:$16 sps:$4 sm:$0xff]   ;;  %v23752_v36 = vld [vmem:[%s34453_s3 + $0x58c] ss:$16 sps:$4 sm:$0xff]  }
  0x77   :  { %1353 = vmatprep.subr.bf16.mxu0 %v23609_v42  ;;  %1414 = vmatprep.subr.bf16.mxu1 %v23612_v43  ;;  %v1526_v43 = vrot.slane %v27116_v55, 2  ;;  %v23690_v55 = vld [vmem:[%s34453_s3 + $0x448] ss:$16 sps:$4 sm:$0xff]  }
  0x78   :  { %1375 = vmatprep.mubr.bf16.mxu0 %v26594_v1  ;;  %1436 = vmatprep.mubr.bf16.mxu1 %v26594_v1  ;;  %v23621_v1 = vld [vmem:[%s34451_s1 + $0x3e4] ss:$16 sps:$4 sm:$0xff]   ;;  %v1525_v42 = vsel %vm1522_vm9, %v1523_v40, %v1524_v41 }
  0x79   :  { %v1527_v44 = vsel %vm1522_vm9, %v1524_v41, %v1526_v43 }
  0x7a   :  { %1354 = vmatpush1.bf16.msra.mxu0 %v23607_v46  ;;  %1415 = vmatpush1.bf16.msra.mxu1 %v23610_v47  ;;  %v23678_v46 = vld [vmem:[%s34453_s3 + $0x408] ss:$16 sps:$4 sm:$0xff]   ;;  %v23680_v47 = vld [vmem:[%s34453_s3 + $0x40c] ss:$16 sps:$4 sm:$0xff]  }
  0x7b   :  { %1355 = vmatprep.subr.bf16.mxu0 %v23615_v5  ;;  %1416 = vmatprep.subr.bf16.mxu1 %v23618_v48  ;;  %v23681_v5 = vld [vmem:[%s34453_s3 + $0x420] ss:$16 sps:$4 sm:$0xff]   ;;  %v23683_v48 = vld [vmem:[%s34453_s3 + $0x424] ss:$16 sps:$4 sm:$0xff]  }
  0x7e   :  { %1356 = vmatpush1.bf16.msra.mxu0 %v23613_v54  ;;  %1417 = vmatpush1.bf16.msra.mxu1 %v23616_v52  ;;  %v23687_v54 = vld [vmem:[%s34453_s3 + $0x440] ss:$16 sps:$4 sm:$0xff]   ;;  %v23689_v52 = vld [vmem:[%s34453_s3 + $0x444] ss:$16 sps:$4 sm:$0xff]  }
  0x7f   :  { %1357 = vmatprep.subr.bf16.mxu0 %v23621_v1  ;;  %1418 = vmatprep.subr.bf16.mxu1 %v23624_v56  ;;  %v23692_v1 = vld [vmem:[%s34453_s3 + $0x44c] ss:$16 sps:$4 sm:$0xff]   ;;  %v23695_v56 = vld [vmem:[%s34453_s3 + $0x464] ss:$16 sps:$4 sm:$0xff]  }
  0x82   :  { %1358 = vmatpush1.bf16.msra.mxu0 %v23619_v57  ;;  %1419 = vmatpush1.bf16.msra.mxu1 %v23622_v58  ;;  %v23698_v57 = vld [vmem:[%s34453_s3 + $0x46c] ss:$16 sps:$4 sm:$0xff]   ;;  %v23693_v58 = vld [vmem:[%s34453_s3 + $0x460] ss:$16 sps:$4 sm:$0xff]  }
  0x83   :  { %1691 = vmatprep.subr.bf16.mxu0 %v23627_v62  ;;  %1752 = vmatprep.subr.bf16.mxu1 %v23630_v63  ;;  %v23699_v62 = vld [vmem:[%s34453_s3 + $0x480] ss:$16 sps:$4 sm:$0xff]   ;;  %v23702_v63 = vld [vmem:[%s34453_s3 + $0x488] ss:$16 sps:$4 sm:$0xff]  }
  0x85   :  { %1376 = vmatmul.mubr.bf16.vlgmr.msra.gmra.mrb[0].mxu0 %v1170_v0  ;;  %1437 = vmatmul.mubr.bf16.vlgmr.msra.gmra.mrb[0].mxu1 %v1170_v0  ;;  %v23705_v0 = vld [vmem:[%s34453_s3 + $0x4a0] ss:$16 sps:$4 sm:$0xff]  }
  0x86   :  { %1692 = vmatpush1.bf16.msra.mxu0 %v23625_v2  ;;  %1753 = vmatpush1.bf16.msra.mxu1 %v23628_v3  ;;  %v23707_v2 = vld [vmem:[%s34453_s3 + $0x4a4] ss:$16 sps:$4 sm:$0xff]   ;;  %v23708_v3 = vld [vmem:[%s34453_s3 + $0x4a8] ss:$16 sps:$4 sm:$0xff]  }
  0x87   :  { %1693 = vmatprep.subr.bf16.mxu0 %v23633_v9  ;;  %1754 = vmatprep.subr.bf16.mxu1 %v23636_v11  ;;  %v23713_v9 = vld [vmem:[%s34453_s3 + $0x4c4] ss:$16 sps:$4 sm:$0xff]   ;;  %v23714_v11 = vld [vmem:[%s34453_s3 + $0x4c8] ss:$16 sps:$4 sm:$0xff]  }
  0x88   :  { %1385 = vmatprep.mubr.bf16.mxu0 %v27164_v17  ;;  %1446 = vmatprep.mubr.bf16.mxu1 %v27164_v17 }
  0x8a   :  { %1694 = vmatpush1.bf16.msra.mxu0 %v23631_v12  ;;  %1755 = vmatpush1.bf16.msra.mxu1 %v23634_v13  ;;  %v23716_v12 = vld [vmem:[%s34453_s3 + $0x4cc] ss:$16 sps:$4 sm:$0xff]   ;;  %v23719_v13 = vld [vmem:[%s34453_s3 + $0x4e4] ss:$16 sps:$4 sm:$0xff]  }
  0x8b   :  { %1695 = vmatprep.subr.bf16.mxu0 %v23640_v15  ;;  %1756 = vmatprep.subr.bf16.mxu1 %v23643_v16  ;;  %v23717_v15 = vld [vmem:[%s34453_s3 + $0x4e0] ss:$16 sps:$4 sm:$0xff]   ;;  %v23720_v16 = vld [vmem:[%s34453_s3 + $0x4e8] ss:$16 sps:$4 sm:$0xff]  }
  0x8d   :  { %1386 = vmatmul.mubr.bf16.gmra.mrb[4].mxu0 %v1179_v18  ;;  %1447 = vmatmul.mubr.bf16.gmra.mrb[4].mxu1 %v1179_v18  ;;  %v23728_v18 = vld [vmem:[%s34453_s3 + $0x50c] ss:$16 sps:$4 sm:$0xff]  }
  0x8e   :  { %1696 = vmatpush1.bf16.msra.mxu0 %v23638_v19  ;;  %1757 = vmatpush1.bf16.msra.mxu1 %v23641_v20  ;;  %v23723_v19 = vld [vmem:[%s34453_s3 + $0x500] ss:$16 sps:$4 sm:$0xff]   ;;  %v23726_v20 = vld [vmem:[%s34453_s3 + $0x508] ss:$16 sps:$4 sm:$0xff]  }
  0x8f   :  { %1697 = vmatprep.subr.bf16.mxu0 %v23646_v21  ;;  %1758 = vmatprep.subr.bf16.mxu1 %v23649_v22  ;;  %v23731_v21 = vld [vmem:[%s34453_s3 + $0x524] ss:$16 sps:$4 sm:$0xff]   ;;  %v23734_v22 = vld [vmem:[%s34453_s3 + $0x52c] ss:$16 sps:$4 sm:$0xff]  }
  0x90   :  { %1395 = vmatprep.mubr.bf16.mxu0 %v27164_v17  ;;  %1456 = vmatprep.mubr.bf16.mxu1 %v27164_v17 }
  0x92   :  { %1698 = vmatpush1.bf16.msra.mxu0 %v23644_v6  ;;  %1759 = vmatpush1.bf16.msra.mxu1 %v23647_v23  ;;  %v23729_v6 = vld [vmem:[%s34453_s3 + $0x520] ss:$16 sps:$4 sm:$0xff]   ;;  %v23732_v23 = vld [vmem:[%s34453_s3 + $0x528] ss:$16 sps:$4 sm:$0xff]  }
  0x93   :  { %1699 = vmatprep.subr.bf16.mxu0 %v23652_v24  ;;  %1760 = vmatprep.subr.bf16.mxu1 %v23655_v25  ;;  %v23737_v24 = vld [vmem:[%s34453_s3 + $0x544] ss:$16 sps:$4 sm:$0xff]   ;;  %v23740_v25 = vld [vmem:[%s34453_s3 + $0x54c] ss:$16 sps:$4 sm:$0xff]  }
  0x95   :  { %1396 = vmatmul.mubr.bf16.gmra.mrb[20].mxu0 %v1178_v14  ;;  %1457 = vmatmul.mubr.bf16.gmra.mrb[20].mxu1 %v1178_v14  ;;  %v23722_v14 = vld [vmem:[%s34453_s3 + $0x4ec] ss:$16 sps:$4 sm:$0xff]  }
  0x96   :  { %1700 = vmatpush1.bf16.msra.mxu0 %v23650_v26  ;;  %1761 = vmatpush1.bf16.msra.mxu1 %v23653_v27  ;;  %v23735_v26 = vld [vmem:[%s34453_s3 + $0x540] ss:$16 sps:$4 sm:$0xff]   ;;  %v23738_v27 = vld [vmem:[%s34453_s3 + $0x548] ss:$16 sps:$4 sm:$0xff]  }
  0x97   :  { %1701 = vmatprep.subr.bf16.mxu0 %v23658_v28  ;;  %1762 = vmatprep.subr.bf16.mxu1 %v23661_v4  ;;  %v23743_v28 = vld [vmem:[%s34453_s3 + $0x564] ss:$16 sps:$4 sm:$0xff]   ;;  %v23746_v4 = vld [vmem:[%s34453_s3 + $0x56c] ss:$16 sps:$4 sm:$0xff]  }
  0x98   :  { %1723 = vmatprep.mubr.bf16.mxu0 %v27164_v17  ;;  %1784 = vmatprep.mubr.bf16.mxu1 %v27164_v17 }
  0x9a   :  { %1702 = vmatpush1.bf16.msra.mxu0 %v23656_v29  ;;  %1763 = vmatpush1.bf16.msra.mxu1 %v23659_v30  ;;  %v23741_v29 = vld [vmem:[%s34453_s3 + $0x560] ss:$16 sps:$4 sm:$0xff]   ;;  %v23744_v30 = vld [vmem:[%s34453_s3 + $0x568] ss:$16 sps:$4 sm:$0xff]  }
  0x9b   :  { %1703 = vmatprep.subr.bf16.mxu0 %v23664_v31  ;;  %1764 = vmatprep.subr.bf16.mxu1 %v23667_v32 }
  0x9e   :  { %1704 = vmatpush1.bf16.msra.mxu0 %v23662_v34  ;;  %1765 = vmatpush1.bf16.msra.mxu1 %v23665_v35  ;;  %v23749_v35 = vld [vmem:[%s34453_s3 + $0x584] ss:$16 sps:$4 sm:$0xff]  }
  0x9f   :  { %1705 = vmatprep.subr.bf16.mxu0 %v23670_v38  ;;  %1766 = vmatprep.subr.bf16.mxu1 %v23673_v39 }
  0xa2   :  { %1706 = vmatpush1.bf16.msra.mxu0 %v23668_v10  ;;  %1767 = vmatpush1.bf16.msra.mxu1 %v23671_v51  ;;  %v23747_v10 = vld [vmem:[%s34453_s3 + $0x580] ss:$16 sps:$4 sm:$0xff]   ;;  %v23750_v51 = vld [vmem:[%s34453_s3 + $0x588] ss:$16 sps:$4 sm:$0xff]  }
  0xa3   :  { %3052 = vmatprep.subr.bf16.mxu0 %v23677_v45  ;;  %3174 = vmatprep.subr.bf16.mxu1 %v23680_v47  ;;  %v23761_v45 = vld [vmem:[%s34453_s3 + $0x5c4] ss:$16 sps:$4 sm:$0xff]   ;;  %v23759_v47 = vld [vmem:[%s34453_s3 + $0x5c0] ss:$16 sps:$4 sm:$0xff]  }
  0xa5   :  { %1724 = vmatmul.mubr.bf16.vlgmr.msra.gmra.mrb[0].mxu0 %v1525_v42  ;;  %1785 = vmatmul.mubr.bf16.vlgmr.msra.gmra.mrb[0].mxu1 %v1525_v42  ;;  %v23755_v42 = vld [vmem:[%s34453_s3 + $0x5a4] ss:$16 sps:$4 sm:$0xff]  }
  0xa6   :  { %1733 = vmatprep.mubr.bf16.mxu0 %v27164_v17  ;;  %1794 = vmatprep.mubr.bf16.mxu1 %v27164_v17 }
  0xa7   :  { %3053 = vmatpush1.bf16.msra.mxu0 %v23675_v53  ;;  %3175 = vmatpush1.bf16.msra.mxu1 %v23678_v46  ;;  %v23756_v53 = vld [vmem:[%s34453_s3 + $0x5a8] ss:$16 sps:$4 sm:$0xff]   ;;  %v23764_v46 = vld [vmem:[%s34453_s3 + $0x5cc] ss:$16 sps:$4 sm:$0xff]  }
  0xa8   :  { %3054 = vmatprep.subr.bf16.mxu0 %v23683_v48  ;;  %3176 = vmatprep.subr.bf16.mxu1 %v23686_v50  ;;  %v23767_v48 = vld [vmem:[%s34453_s3 + $0x5e4] ss:$16 sps:$4 sm:$0xff]   ;;  %v23765_v50 = vld [vmem:[%s34453_s3 + $0x5e0] ss:$16 sps:$4 sm:$0xff]  }
  0xab   :  { %3055 = vmatpush1.bf16.msra.mxu0 %v23681_v5  ;;  %3177 = vmatpush1.bf16.msra.mxu1 %v23684_v49  ;;  %v23762_v5 = vld [vmem:[%s34453_s3 + $0x5c8] ss:$16 sps:$4 sm:$0xff]   ;;  %v23770_v49 = vld [vmem:[%s34453_s3 + $0x5ec] ss:$16 sps:$4 sm:$0xff]  }
  0xac   :  { %3056 = vmatprep.subr.bf16.mxu0 %v23689_v52  ;;  %3178 = vmatprep.subr.bf16.mxu1 %v23692_v1  ;;  %v23773_v52 = vld [vmem:[%s34453_s3 + $0x604] ss:$16 sps:$4 sm:$0xff]  }
  0xad   :  { %1734 = vmatmul.mubr.bf16.gmra.mrb[4].mxu0 %v1527_v44  ;;  %1795 = vmatmul.mubr.bf16.gmra.mrb[4].mxu1 %v1527_v44  ;;  %v23753_v44 = vld [vmem:[%s34453_s3 + $0x5a0] ss:$16 sps:$4 sm:$0xff]  }
  0xae   :  { %1743 = vmatprep.mubr.bf16.mxu0 %v27164_v17  ;;  %1804 = vmatprep.mubr.bf16.mxu1 %v27164_v17  ;;  %v23725_v17 = vld [vmem:[%s34453_s3 + $0x504] ss:$16 sps:$4 sm:$0xff]  }
  0xaf   :  { %3057 = vmatpush1.bf16.msra.mxu0 %v23687_v54  ;;  %3179 = vmatpush1.bf16.msra.mxu1 %v23690_v55  ;;  %v23768_v54 = vld [vmem:[%s34453_s3 + $0x5e8] ss:$16 sps:$4 sm:$0xff]   ;;  %v23776_v55 = vld [vmem:[%s34453_s3 + $0x60c] ss:$16 sps:$4 sm:$0xff]  }
  0xb0   :  { %3058 = vmatprep.subr.bf16.mxu0 %v23695_v56  ;;  %3180 = vmatprep.subr.bf16.mxu1 %v23698_v57 }
  0xb3   :  { %3059 = vmatpush1.bf16.msra.mxu0 %v23693_v58  ;;  %3181 = vmatpush1.bf16.msra.mxu1 %v23696_v59 }
  0xb4   :  { %3060 = vmatprep.subr.bf16.mxu0 %v23701_v60  ;;  %3182 = vmatprep.subr.bf16.mxu1 %v23704_v61 }
  0xb5   :  { %1744 = vmatmul.mubr.bf16.gmra.mrb[24].mxu0 %v1526_v43  ;;  %1805 = vmatmul.mubr.bf16.gmra.mrb[24].mxu1 %v1526_v43  ;;  %v23758_v43 = vld [vmem:[%s34453_s3 + $0x5ac] ss:$16 sps:$4 sm:$0xff]  }
  0xb7   :  { %3061 = vmatpush1.bf16.msra.mxu0 %v23699_v62  ;;  %3183 = vmatpush1.bf16.msra.mxu1 %v23702_v63 }
  0xb8   :  { %3062 = vmatprep.subr.bf16.mxu0 %v23707_v2  ;;  %3184 = vmatprep.subr.bf16.mxu1 %v23710_v7 }
  0xbb   :  { %3063 = vmatpush1.bf16.msra.mxu0 %v23705_v0  ;;  %3185 = vmatpush1.bf16.msra.mxu1 %v23708_v3 }
  0xbc   :  { %3064 = vmatprep.subr.bf16.mxu0 %v23713_v9  ;;  %3186 = vmatprep.subr.bf16.mxu1 %v23716_v12 }
  0xbf   :  { %3065 = vmatpush1.bf16.msra.mxu0 %v23711_v8  ;;  %3187 = vmatpush1.bf16.msra.mxu1 %v23714_v11 }
  0xc0   :  { %3066 = vmatprep.subr.bf16.mxu0 %v23719_v13  ;;  %3188 = vmatprep.subr.bf16.mxu1 %v23722_v14 }
  0xc3   :  { %3067 = vmatpush1.bf16.msra.mxu0 %v23717_v15  ;;  %3189 = vmatpush1.bf16.msra.mxu1 %v23720_v16 }
  0xc4   :  { %3068 = vmatprep.subr.bf16.mxu0 %v23725_v17  ;;  %3190 = vmatprep.subr.bf16.mxu1 %v23728_v18 }
  0xc7   :  { %3069 = vmatpush1.bf16.msra.mxu0 %v23723_v19  ;;  %3191 = vmatpush1.bf16.msra.mxu1 %v23726_v20 }
  0xc8   :  { %3070 = vmatprep.subr.bf16.mxu0 %v23731_v21  ;;  %3192 = vmatprep.subr.bf16.mxu1 %v23734_v22 }
  0xcb   :  { %3071 = vmatpush1.bf16.msra.mxu0 %v23729_v6  ;;  %3193 = vmatpush1.bf16.msra.mxu1 %v23732_v23 }
  0xcc   :  { %3072 = vmatprep.subr.bf16.mxu0 %v23737_v24  ;;  %3194 = vmatprep.subr.bf16.mxu1 %v23740_v25  ;;  %v1835_v25 = vlaneseq }
  0xcf   :  { %3073 = vmatpush1.bf16.msra.mxu0 %v23735_v26  ;;  %3195 = vmatpush1.bf16.msra.mxu1 %v23738_v27 }
  0xd0   :  { %3074 = vmatprep.subr.bf16.mxu0 %v23743_v28  ;;  %3196 = vmatprep.subr.bf16.mxu1 %v23746_v4 }
  0xd3   :  { %3075 = vmatpush1.bf16.msra.mxu0 %v23741_v29  ;;  %3197 = vmatpush1.bf16.msra.mxu1 %v23744_v30 }
  0xd4   :  { %3076 = vmatprep.subr.bf16.mxu0 %v23749_v35  ;;  %3198 = vmatprep.subr.bf16.mxu1 %v23752_v36 }
  0xd7   :  { %3077 = vmatpush1.bf16.msra.mxu0 %v23747_v10  ;;  %3199 = vmatpush1.bf16.msra.mxu1 %v23750_v51 }
  0xd8   :  { %3078 = vmatprep.subr.bf16.mxu0 %v23755_v42  ;;  %3200 = vmatprep.subr.bf16.mxu1 %v23758_v43 }
  0xdb   :  { %3079 = vmatpush1.bf16.msra.mxu0 %v23753_v44  ;;  %3201 = vmatpush1.bf16.msra.mxu1 %v23756_v53 }
  0xdc   :  { %3080 = vmatprep.subr.bf16.mxu0 %v23761_v45  ;;  %3202 = vmatprep.subr.bf16.mxu1 %v23764_v46 }
  0xdf   :  { %3081 = vmatpush1.bf16.msra.mxu0 %v23759_v47  ;;  %3203 = vmatpush1.bf16.msra.mxu1 %v23762_v5 }
  0xe0   :  { %3082 = vmatprep.subr.bf16.mxu0 %v23767_v48  ;;  %3204 = vmatprep.subr.bf16.mxu1 %v23770_v49 }
  0xe3   :  { %3083 = vmatpush1.bf16.msra.mxu0 %v23765_v50  ;;  %3205 = vmatpush1.bf16.msra.mxu1 %v23768_v54 }
  0xe4   :  { %3113 = vmatprep.subr.bf16.mxu0 %v23773_v52  ;;  %3235 = vmatprep.subr.bf16.mxu1 %v23776_v55 }
 0x108   :  { %v417_v31 = vpop.f32.mrb[8].mxu0  ;;  %v478_v32 = vpop.f32.mrb[8].mxu1 }
 0x109   :  { %v419_v33 = vpop.f32.mrb[9].mxu0  ;;  %v480_v34 = vpop.f32.mrb[9].mxu1 }
 0x10a   :  { %v421_v38 = vpop.f32.mrb[10].mxu0  ;;  %v482_v39 = vpop.f32.mrb[10].mxu1 }
 0x10b   :  { %v422_v40 = vpop.f32.mrb[11].mxu0  ;;  %v483_v41 = vpop.f32.mrb[11].mxu1 }
 0x128   :  { %v705_v1 = vpop.f32.mrb[12].mxu0  ;;  %v766_v56 = vpop.f32.mrb[12].mxu1 }
 0x129   :  { %v706_v57 = vadd.f32 %v705_v1, %v417_v31  ;;  %v707_v58 = vpop.f32.mrb[13].mxu0  ;;  %v767_v59 = vadd.f32 %v766_v56, %v478_v32  ;;  %v768_v60 = vpop.f32.mrb[13].mxu1  ;;  %v1836_v31 = vshrl.u32 %v1835_v25, 7 }
 0x12a   :  { %v708_v61 = vadd.f32 %v707_v58, %v419_v33  ;;  %v709_v62 = vpop.f32.mrb[14].mxu0  ;;  %v769_v63 = vadd.f32 %v768_v60, %v480_v34  ;;  %v770_v0 = vpop.f32.mrb[14].mxu1  ;;  %v1833_v34 = vld [vmem:[%s34454_s2] sm:$0xf] }
 0x12b   :  { %v710_v2 = vpop.f32.mrb[15].mxu0  ;;  %v771_v3 = vpop.f32.mrb[15].mxu1  ;;  %v27455_v32 = vsub.s32 0, %v1836_v31  ;;  %v27457_v33 = vsub.s32 2, %v1836_v31  ;;  %v27462_v35 = vsub.s32 1, %v1836_v31  ;;  %v27464_v36 = vsub.s32 3, %v1836_v31 }
 0x12d   :  { %v27467_v38 = vrot.slane %v1833_v34, %v27455_v32  ;;  %v27470_v39 = vrot.slane %v1833_v34, %v27457_v33  ;;  %v27473_v10 = vrot.slane %v1833_v34, %v27462_v35  ;;  %v27476_v51 = vrot.slane %v1833_v34, %v27464_v36 }
 0x148   :  { %v1033_v7 = vpop.f32.mrb[16].mxu0  ;;  %v1094_v8 = vpop.f32.mrb[16].mxu1 }
 0x149   :  { %v1117_v9 = vadd.f32 %v1033_v7, %v706_v57  ;;  %v1035_v11 = vpop.f32.mrb[17].mxu0  ;;  %v1119_v12 = vadd.f32 %v1094_v8, %v767_v59  ;;  %v1096_v13 = vpop.f32.mrb[17].mxu1 }
 0x14a   :  { %v1118_v14 = vadd.f32 %v1035_v11, %v708_v61  ;;  %v1037_v15 = vpop.f32.mrb[18].mxu0  ;;  %v1120_v16 = vadd.f32 %v1096_v13, %v769_v63  ;;  %v1098_v17 = vpop.f32.mrb[18].mxu1 }
 0x14b   :  { %v1038_v18 = vpop.f32.mrb[19].mxu0  ;;  %v1099_v19 = vpop.f32.mrb[19].mxu1 }
 0x168   :  { %v1397_v20 = vpop.f32.mrb[20].mxu0  ;;  %v1458_v21 = vpop.f32.mrb[20].mxu1 }
 0x169   :  { %v27447_v22 = vadd.f32 %v1397_v20, %v1117_v9  ;;  %v27449_v6 = vadd.f32 %v1458_v21, %v1119_v12  ;;  %v1399_v23 = vpop.f32.mrb[21].mxu0  ;;  %v1460_v24 = vpop.f32.mrb[21].mxu1 }
 0x16a   :  { %v27451_v26 = vadd.f32 %v1399_v23, %v1118_v14  ;;  %v27453_v27 = vadd.f32 %v1460_v24, %v1120_v16  ;;  %v1401_v28 = vpop.f32.mrb[22].mxu0  ;;  %v1462_v4 = vpop.f32.mrb[22].mxu1 }
 0x16b   :  { %v1402_v29 = vpop.f32.mrb[23].mxu0  ;;  %v1463_v30 = vpop.f32.mrb[23].mxu1 }
 0x178   :  { %v1725_v40 = vpop.f32.mrb[0].mxu0  ;;  %v1786_v41 = vpop.f32.mrb[0].mxu1 }
 0x179   :  { %v1855_v42 = vadd.f32 %v27467_v38, %v1725_v40  ;;  %v1857_v43 = vadd.f32 %v27470_v39, %v1786_v41  ;;  %v1727_v44 = vpop.f32.mrb[1].mxu0  ;;  %v1788_v53 = vpop.f32.mrb[1].mxu1 }
 0x17a   :  { %v1856_v45 = vadd.f32 %v27473_v10, %v1727_v44  ;;  %v1858_v46 = vadd.f32 %v27476_v51, %v1788_v53  ;;  %v1729_v47 = vpop.f32.mrb[2].mxu0  ;;  %v1790_v5 = vpop.f32.mrb[2].mxu1 }
 0x17b   :  { %v1875_v48 = vmax.f32 %v1855_v42, 0.0  ;;  %v1877_v49 = vmax.f32 %v1857_v43, 0.0  ;;  %v1859_v50 = vadd.f32 %v27467_v38, %v1729_v47  ;;  %v1861_v54 = vadd.f32 %v27470_v39, %v1790_v5  ;;  %v1731_v52 = vpop.f32.mrb[3].mxu0  ;;  %v1792_v55 = vpop.f32.mrb[3].mxu1 }
 0x17c   :  { %v1876_v1 = vmax.f32 %v1856_v45, 0.0  ;;  %v1878_v56 = vmax.f32 %v1858_v46, 0.0  ;;  %v1860_v57 = vadd.f32 %v27473_v10, %v1731_v52  ;;  %v1862_v58 = vadd.f32 %v27476_v51, %v1792_v55 }
 0x17d   :  { %v1879_v59 = vmax.f32 %v1859_v50, 0.0  ;;  %v1881_v60 = vmax.f32 %v1861_v54, 0.0 }
 0x17e   :  { %v22901_v61 = vpack.c.bf16 %v1876_v1, %v1875_v48  ;;  %v22902_v62 = vpack.c.bf16 %v1878_v56, %v1877_v49  ;;  %v1880_v63 = vmax.f32 %v1860_v57, 0.0  ;;  %v1882_v0 = vmax.f32 %v1862_v58, 0.0 }
 0x180   :  { %v1923_v2 = vrot.slane %v22901_v61, 7  ;;  %v1924_v3 = vrot.slane %v22902_v62, 7  ;;  %v22903_v7 = vpack.c.bf16 %v1880_v63, %v1879_v59  ;;  %v22904_v8 = vpack.c.bf16 %v1882_v0, %v1881_v60  ;;  %v1735_v9 = vpop.f32.mrb[4].mxu0  ;;  %v1796_v11 = vpop.f32.mrb[4].mxu1 }
 0x181   :  { %v1863_v12 = vadd.f32 %v27467_v38, %v1735_v9  ;;  %v1865_v13 = vadd.f32 %v27470_v39, %v1796_v11  ;;  %v1737_v14 = vpop.f32.mrb[5].mxu0  ;;  %v1798_v15 = vpop.f32.mrb[5].mxu1 }
 0x182   :  { %v1925_v16 = vrot.slane %v1923_v2, 4  ;;  %1939 = vst [vmem:[#allocation3] sm:$0xee] %v1923_v2  ;;  %v1928_v17 = vrot.slane %v1924_v3, 4  ;;  %1940 = vst [vmem:[#allocation3 + $0x8] sm:$0xee] %v1924_v3  ;;  %v1864_v25 = vadd.f32 %v27473_v10, %v1737_v14  ;;  %v1866_v28 = vadd.f32 %v27476_v51, %v1798_v15 }
 0x183   :  { %v1926_v18 = vrot.slane %v22903_v7, 7  ;;  %v1929_v19 = vrot.slane %v22904_v8, 7  ;;  %v1739_v20 = vpop.f32.mrb[6].mxu0  ;;  %v1800_v21 = vpop.f32.mrb[6].mxu1  ;;  %v1883_v23 = vmax.f32 %v1863_v12, 0.0  ;;  %v1885_v24 = vmax.f32 %v1865_v13, 0.0 }
 0x184   :  { %v1741_v4 = vpop.f32.mrb[7].mxu0  ;;  %v1802_v29 = vpop.f32.mrb[7].mxu1  ;;  %v1884_v41 = vmax.f32 %v1864_v25, 0.0  ;;  %v1886_v42 = vmax.f32 %v1866_v28, 0.0  ;;  %v1867_v43 = vadd.f32 %v27467_v38, %v1739_v20  ;;  %v1869_v44 = vadd.f32 %v27470_v39, %v1800_v21 }
 0x185   :  { %v27492_v30 = vsel %vm26767_vm4, %v1925_v16, %v1926_v18  ;;  %v1931_v31 = vrot.slane %v1926_v18, 4  ;;  %v27496_v34 = vsel %vm26767_vm4, %v1928_v17, %v1929_v19  ;;  %v1932_v40 = vrot.slane %v1929_v19, 4 }
 0x186   :  { %v1868_v53 = vadd.f32 %v27473_v10, %v1741_v4  ;;  %v1870_v45 = vadd.f32 %v27476_v51, %v1802_v29  ;;  %v22905_v46 = vpack.c.bf16 %v1884_v41, %v1883_v23  ;;  %v22906_v47 = vpack.c.bf16 %v1886_v42, %v1885_v24 }
 0x187   :  { %1943 = vst [vmem:[#allocation3 + $0x20] sm:$0x11] %v1931_v31  ;;  %1944 = vst [vmem:[#allocation3 + $0x28] sm:$0x11] %v1932_v40  ;;  %v1887_v5 = vmax.f32 %v1867_v43, 0.0  ;;  %v1889_v48 = vmax.f32 %v1869_v44, 0.0 }
 0x188   :  { %v1888_v49 = vmax.f32 %v1868_v53, 0.0  ;;  %v1890_v50 = vmax.f32 %v1870_v45, 0.0  ;;  %v1745_v54 = vpop.f32.mrb[24].mxu0  ;;  %v1806_v52 = vpop.f32.mrb[24].mxu1  ;;  %v1971_v55 = vrot.slane %v22905_v46, 7  ;;  %v1972_v1 = vrot.slane %v22906_v47, 7 }
 0x189   :  { %v1829_v56 = vadd.f32 %v1745_v54, %v27447_v22  ;;  %v1831_v57 = vadd.f32 %v1806_v52, %v27449_v6  ;;  %v1747_v58 = vpop.f32.mrb[25].mxu0  ;;  %v1808_v59 = vpop.f32.mrb[25].mxu1  ;;  %v1997_v0 = vld [vmem:[#allocation3] sm:$0xff] }
 0x18a   :  { %v22907_v60 = vpack.c.bf16 %v1888_v49, %v1887_v5  ;;  %v22908_v61 = vpack.c.bf16 %v1890_v50, %v1889_v48  ;;  %v1830_v62 = vadd.f32 %v1747_v58, %v27451_v26  ;;  %v1832_v63 = vadd.f32 %v1808_v59, %v27453_v27  ;;  %v1749_v2 = vpop.f32.mrb[26].mxu0  ;;  %v1810_v3 = vpop.f32.mrb[26].mxu1  ;;  %1991 = vst [vmem:[#allocation3 + $0x20] sm:$0x88] %v1971_v55  ;;  %v23771_v48 = vld [vmem:[%s34453_s3 + $0x600] ss:$16 sps:$4 sm:$0xff]  }
 0x18b   :  { %v1973_v7 = vrot.slane %v1971_v55, 4  ;;  %v1976_v8 = vrot.slane %v1972_v1, 4  ;;  %1992 = vst [vmem:[#allocation3 + $0x28] sm:$0x88] %v1972_v1  ;;  %v1871_v9 = vadd.f32 %v27467_v38, %v1829_v56  ;;  %v1873_v22 = vadd.f32 %v27470_v39, %v1831_v57  ;;  %v1750_v6 = vpop.f32.mrb[27].mxu0  ;;  %v1811_v11 = vpop.f32.mrb[27].mxu1 }
 0x18c   :  { %v1974_v12 = vrot.slane %v22907_v60, 7  ;;  %v1977_v13 = vrot.slane %v22908_v61, 7  ;;  %v1872_v14 = vadd.f32 %v27473_v10, %v1830_v62  ;;  %v1874_v26 = vadd.f32 %v27476_v51, %v1832_v63  ;;  %v23774_v49 = vld [vmem:[%s34453_s3 + $0x608] ss:$16 sps:$4 sm:$0xff]   ;;  %v23779_v52 = vld [vmem:[%s34453_s3 + $0x624] ss:$16 sps:$4 sm:$0xff]  }
 0x18d   :  { %v1891_v27 = vmax.f32 %v1871_v9, 0.0  ;;  %v1893_v15 = vmax.f32 %v1873_v22, 0.0  ;;  %v27511_v16 = vcombine.high %v1997_v0, %v27492_v30  ;;  %v27514_v17 = vcombine.low %v1997_v0, %v27492_v30  ;;  %v23782_v1 = vld [vmem:[%s34453_s3 + $0x62c] ss:$16 sps:$4 sm:$0xff]   ;;  %v23777_v57 = vld [vmem:[%s34453_s3 + $0x620] ss:$16 sps:$4 sm:$0xff]  }
 0x18e   :  { %v1975_v38 = vsel %vm26767_vm4, %v1973_v7, %v1974_v12  ;;  %v27520_v39 = vsel %vm26767_vm4, %v1976_v8, %v1977_v13  ;;  %v1892_v18 = vmax.f32 %v1872_v14, 0.0  ;;  %v1894_v19 = vmax.f32 %v1874_v26, 0.0  ;;  %v23780_v58 = vld [vmem:[%s34453_s3 + $0x628] ss:$16 sps:$4 sm:$0xff]   ;;  %v27560_v59 = vld [vmem:[#allocation3 + $0x8] sm:$0xff] }
 0x18f   :  { %v2323_v10 = vshll.u32 %v27511_v16, 16  ;;  %v2311_v51 = vshll.u32 %v27514_v17, 16  ;;  %v1979_v23 = vrot.slane %v1974_v12, 4  ;;  %v1982_v24 = vrot.slane %v1977_v13, 4  ;;  %v23786_v61 = vld [vmem:[%s34453_s3 + $0x644] ss:$16 sps:$4 sm:$0xff]  }
 0x190   :  { %v22909_v20 = vpack.c.bf16 %v1892_v18, %v1891_v27  ;;  %v22910_v21 = vpack.c.bf16 %v1894_v19, %v1893_v15  ;;  %v2321_v44 = vshrl.u32 %v27511_v16, 16  ;;  %v2309_v45 = vshrl.u32 %v27514_v17, 16  ;;  %v23789_v62 = vld [vmem:[%s34453_s3 + $0x64c] ss:$16 sps:$4 sm:$0xff]   ;;  %v23784_v7 = vld [vmem:[%s34453_s3 + $0x640] ss:$16 sps:$4 sm:$0xff]  }
 0x191   :  { %v2001_v25 = vld [vmem:[#allocation3 + $0x20] sm:$0xff]  ;;  %v2325_v31 = vrot.slane %v2323_v10, 1  ;;  %v2313_v41 = vrot.slane %v2311_v51, 1  ;;  %v27578_v8 = vcombine.high %v27560_v59, %v27496_v34  ;;  %v23796_v19 = vld [vmem:[%s34453_s3 + $0x66c] ss:$16 sps:$4 sm:$0xff]  }
 0x192   :  { %v1980_v28 = vrot.slane %v22909_v20, 7  ;;  %v1983_v4 = vrot.slane %v22910_v21, 7  ;;  %v27524_v29 = vcombine.high %v2001_v25, %v1975_v38  ;;  %v27526_v40 = vcombine.low %v2001_v25, %v1975_v38  ;;  %v2002_v2 = vld [vmem:[#allocation3 + $0x28] sm:$0xff]  ;;  %v23787_v22 = vld [vmem:[%s34453_s3 + $0x648] ss:$16 sps:$4 sm:$0xff]  }
 0x193   :  { %v2326_v47 = vor.u32 %v2325_v31, %v2321_v44  ;;  %v2314_v50 = vor.u32 %v2313_v41, %v2309_v45  ;;  %v27587_v13 = vcombine.high %v2002_v2, %v27520_v39  ;;  %v4202_v14 = vld [vmem:[#allocation3] sm:$0xee]  ;;  %v23791_v10 = vld [vmem:[%s34453_s3 + $0x660] ss:$16 sps:$4 sm:$0xff]   ;;  %v2347_v51 = vshll.u32 %v27578_v8, 16 }
 0x194   :  { %v1981_v42 = vsel %vm26767_vm4, %v1979_v23, %v1980_v28  ;;  %v1984_v43 = vsel %vm26767_vm4, %v1982_v24, %v1983_v4  ;;  %v2328_v53 = vshll.u32 %v27524_v29, 16  ;;  %v2316_v46 = vshll.u32 %v27526_v40, 16  ;;  %v23793_v18 = vld [vmem:[%s34453_s3 + $0x664] ss:$16 sps:$4 sm:$0xff]   ;;  %v23794_v24 = vld [vmem:[%s34453_s3 + $0x668] ss:$16 sps:$4 sm:$0xff]  }
 0x195   :  { %1995 = vst [vmem:[#allocation3 + $0x40] sm:$0x77] %v1981_v42  ;;  %1996 = vst [vmem:[#allocation3 + $0x48] sm:$0x77] %v1984_v43  ;;  %v2364_v3 = vshrl.u32 %v27524_v29, 16  ;;  %v2356_v6 = vshrl.u32 %v27526_v40, 16  ;;  %v27613_v31 = vcombine.high %v4202_v14, %v27492_v30  ;;  %v27622_v44 = vcombine.low %v4202_v14, %v27492_v30 }
 0x196   :  { %v2330_v5 = vrot.slane %v2328_v53, 1  ;;  %v2318_v54 = vrot.slane %v2316_v46, 1  ;;  %v23799_v25 = vld [vmem:[%s34453_s3 + $0x684] ss:$16 sps:$4 sm:$0xff]   ;;  %v2352_v28 = vshll.u32 %v27587_v13, 16  ;;  %v2349_v41 = vrot.slane %v2347_v51, 1 }
 0x197   :  { %v23802_v4 = vld [vmem:[%s34453_s3 + $0x68c] ss:$16 sps:$4 sm:$0xff]   ;;  %v23797_v42 = vld [vmem:[%s34453_s3 + $0x680] ss:$16 sps:$4 sm:$0xff]   ;;  %v23800_v43 = vld [vmem:[%s34453_s3 + $0x688] ss:$16 sps:$4 sm:$0xff]  }
 0x198   :  { %v2331_v55 = vsel %vm176_vm6, %v2326_v47, %v2330_v5  ;;  %v2319_v56 = vsel %vm176_vm6, %v2314_v50, %v2318_v54  ;;  %v2366_v12 = vor.u32 %v2364_v3, %v2330_v5  ;;  %v2358_v27 = vor.u32 %v2356_v6, %v2318_v54  ;;  %v4203_v45 = vld [vmem:[#allocation3 + $0x8] sm:$0xee] }
 0x199   :  { %3084 = vmatprep.mubr.bf16.mxu0 %v2331_v55  ;;  %3206 = vmatprep.mubr.bf16.mxu1 %v2331_v55  ;;  %v2345_v5 = vshrl.u32 %v27578_v8, 16  ;;  %v23808_v50 = vld [vmem:[%s34453_s3 + $0x6ac] ss:$16 sps:$4 sm:$0xff]   ;;  %v5433_v54 = vshrl.u32 %v27613_v31, 16  ;;  %v5440_v55 = vrot.slane %v2364_v3, 1 }
 0x19a   :  { %3085 = vmatmul.mubr.bf16.vlgmr.msra.gmra.mrb[28].mxu0 %v2319_v56  ;;  %3207 = vmatmul.mubr.bf16.vlgmr.msra.gmra.mrb[28].mxu1 %v2319_v56  ;;  %v23803_v56 = vld [vmem:[%s34453_s3 + $0x6a0] ss:$16 sps:$4 sm:$0xff]   ;;  %v23820_v51 = vld [vmem:[%s34453_s3 + $0x6ec] ss:$16 sps:$4 sm:$0xff]  }
 0x19b   :  { %3114 = vmatpush1.bf16.msra.mxu0 %v23771_v48  ;;  %3236 = vmatpush1.bf16.msra.mxu1 %v23774_v49  ;;  %v27628_v48 = vrot.slane %v2352_v28, 1  ;;  %v23805_v49 = vld [vmem:[%s34453_s3 + $0x6a4] ss:$16 sps:$4 sm:$0xff]  }
 0x19c   :  { %3115 = vmatprep.subr.bf16.mxu0 %v23779_v52  ;;  %3237 = vmatprep.subr.bf16.mxu1 %v23782_v1  ;;  %v2135_v60 = vld [vmem:[#allocation3 + $0x40] sm:$0x77]  ;;  %v5436_v52 = vshll.u32 %v27613_v31, 16  ;;  %v2350_v1 = vor.u32 %v2349_v41, %v2345_v5 }
 0x19d   :  { %v27568_v63 = vcombine.high %v2135_v60, %v2135_v60  ;;  %v27570_v0 = vcombine.low %v2135_v60, %v2135_v60  ;;  %v5441_v60 = vrot.slane %v2328_v53, 2  ;;  %v27657_v53 = vcombine.high %v4203_v45, %v27496_v34  ;;  %v23818_v5 = vld [vmem:[%s34453_s3 + $0x6e8] ss:$16 sps:$4 sm:$0xff]  }
 0x19e   :  { %v2355_v3 = vsel %vm176_vm6, %v2350_v1, %v27628_v48 }
 0x19f   :  { %3116 = vmatpush1.bf16.msra.mxu0 %v23777_v57  ;;  %3238 = vmatpush1.bf16.msra.mxu1 %v23780_v58  ;;  %v2368_v9 = vshll.u32 %v27568_v63, 16  ;;  %v2360_v11 = vshll.u32 %v27570_v0, 16  ;;  %v2391_v38 = vshrl.u32 %v27568_v63, 16  ;;  %v2388_v47 = vshrl.u32 %v27570_v0, 16 }
 0x1a0   :  { %3117 = vmatprep.subr.bf16.mxu0 %v23786_v61  ;;  %3239 = vmatprep.subr.bf16.mxu1 %v23789_v62  ;;  %v27642_v57 = vcombine.low %v2002_v2, %v27520_v39  ;;  %v2380_v58 = vshrl.u32 %v27587_v13, 16  ;;  %v5435_v62 = vrot.slane %v5433_v54, 1  ;;  %v23806_v39 = vld [vmem:[%s34453_s3 + $0x6a8] ss:$16 sps:$4 sm:$0xff]   ;;  %v23811_v2 = vld [vmem:[%s34453_s3 + $0x6c4] ss:$16 sps:$4 sm:$0xff]  }
 0x1a1   :  { %v2370_v26 = vrot.slane %v2368_v9, 1  ;;  %v2362_v15 = vrot.slane %v2360_v11, 1  ;;  %v5421_v9 = vshrl.u32 %v27622_v44, 16  ;;  %v27659_v11 = vor.u32 %v5441_v60, %v5440_v55 }
 0x1a3   :  { %v2371_v20 = vsel %vm176_vm6, %v2366_v12, %v2370_v26  ;;  %v2363_v21 = vsel %vm176_vm6, %v2358_v27, %v2362_v15  ;;  %3118 = vmatpush1.bf16.msra.mxu0 %v23784_v7  ;;  %3240 = vmatpush1.bf16.msra.mxu1 %v23787_v22  ;;  %v2393_v23 = vor.u32 %v2391_v38, %v2370_v26  ;;  %v5438_v7 = vrot.slane %v5436_v52, 2  ;;  %v23812_v38 = vld [vmem:[%s34453_s3 + $0x6c8] ss:$16 sps:$4 sm:$0xff]  }
 0x1a4   :  { %3094 = vmatprep.mubr.bf16.mxu0 %v2371_v20  ;;  %3216 = vmatprep.mubr.bf16.mxu1 %v2371_v20  ;;  %v2390_v61 = vor.u32 %v2388_v47, %v2362_v15  ;;  %v5428_v22 = vrot.slane %v2356_v6, 1  ;;  %v23814_v6 = vld [vmem:[%s34453_s3 + $0x6cc] ss:$16 sps:$4 sm:$0xff]   ;;  %v27665_v12 = vcombine.low %v4203_v45, %v27496_v34  ;;  %v5423_v26 = vrot.slane %v5421_v9, 1  ;;  %v23809_v15 = vld [vmem:[%s34453_s3 + $0x6c0] ss:$16 sps:$4 sm:$0xff]  }
 0x1a5   :  { %3095 = vmatmul.mubr.bf16.gmra.mrb[32].mxu0 %v2363_v21  ;;  %3217 = vmatmul.mubr.bf16.gmra.mrb[32].mxu1 %v2363_v21  ;;  %v5439_v14 = vor.u32 %v5438_v7, %v5435_v62  ;;  %v5424_v27 = vshll.u32 %v27622_v44, 16  ;;  %v2340_v20 = vshll.u32 %v27642_v57, 16  ;;  %v23815_v47 = vld [vmem:[%s34453_s3 + $0x6e0] ss:$16 sps:$4 sm:$0xff]   ;;  %v23824_v9 = vld [vmem:[%s34453_s3 + $0x708] ss:$16 sps:$4 sm:$0xff]  }
 0x1a6   :  { %3104 = vmatprep.mubr.bf16.mxu0 %v2393_v23  ;;  %3226 = vmatprep.mubr.bf16.mxu1 %v2393_v23  ;;  %v5448_v45 = vshll.u32 %v27665_v12, 16  ;;  %v23821_v7 = vld [vmem:[%s34453_s3 + $0x700] ss:$16 sps:$4 sm:$0xff]  }
 0x1a7   :  { %3119 = vmatprep.subr.bf16.mxu0 %v23793_v18  ;;  %3241 = vmatprep.subr.bf16.mxu1 %v23796_v19  ;;  %v2372_v18 = vshrl.u32 %v27642_v57, 16  ;;  %v5429_v19 = vrot.slane %v2316_v46, 2  ;;  %v27686_v21 = vsel %vm1158_vm8, %v5439_v14, %v27659_v11  ;;  %v5426_v23 = vrot.slane %v5424_v27, 2  ;;  %v23830_v27 = vld [vmem:[%s34453_s3 + $0x728] ss:$16 sps:$4 sm:$0xff]  }
 0x1a8   :  { %3120 = vmatpush1.bf16.msra.mxu0 %v23791_v10  ;;  %3242 = vmatpush1.bf16.msra.mxu1 %v23794_v24  ;;  %v23817_v10 = vld [vmem:[%s34453_s3 + $0x6e4] ss:$16 sps:$4 sm:$0xff]   ;;  %v5457_v24 = vshrl.u32 %v27657_v53, 16  ;;  %v5450_v60 = vrot.slane %v5448_v45, 2 }
 0x1a9   :  { %3121 = vmatprep.subr.bf16.mxu0 %v23799_v25  ;;  %3243 = vmatprep.subr.bf16.mxu1 %v23802_v4  ;;  %v27688_v46 = vor.u32 %v5429_v19, %v5428_v22  ;;  %v5460_v25 = vshll.u32 %v27657_v53, 16  ;;  %v5464_v4 = vrot.slane %v2380_v58, 1  ;;  %v5427_v41 = vor.u32 %v5426_v23, %v5423_v26  ;;  %v23827_v26 = vld [vmem:[%s34453_s3 + $0x720] ss:$16 sps:$4 sm:$0xff]   ;;  %v23844_v23 = vld [vmem:[%s34453_s3 + $0x76c] ss:$16 sps:$4 sm:$0xff]  }
 0x1aa   :  { %v5459_v52 = vrot.slane %v5457_v24, 1  ;;  %v23833_v19 = vld [vmem:[%s34453_s3 + $0x740] ss:$16 sps:$4 sm:$0xff]   ;;  %v23853_v45 = vld [vmem:[%s34453_s3 + $0x7a4] ss:$16 sps:$4 sm:$0xff]  }
 0x1ab   :  { %v27714_v54 = vsel %vm1158_vm8, %v5427_v41, %v27688_v46  ;;  %v5462_v55 = vrot.slane %v5460_v25, 2  ;;  %v23839_v24 = vld [vmem:[%s34453_s3 + $0x760] ss:$16 sps:$4 sm:$0xff]   ;;  %v23842_v25 = vld [vmem:[%s34453_s3 + $0x768] ss:$16 sps:$4 sm:$0xff]  }
 0x1ac   :  { %3122 = vmatpush1.bf16.msra.mxu0 %v23797_v42  ;;  %3244 = vmatpush1.bf16.msra.mxu1 %v23800_v43  ;;  %v5465_v42 = vrot.slane %v2352_v28, 2  ;;  %v5445_v43 = vshrl.u32 %v27665_v12, 16  ;;  %v23826_v28 = vld [vmem:[%s34453_s3 + $0x70c] ss:$16 sps:$4 sm:$0xff]  }
 0x1ad   :  { %3105 = vmatmul.mubr.bf16.gmra.mrb[36].mxu0 %v2390_v61  ;;  %3227 = vmatmul.mubr.bf16.gmra.mrb[36].mxu1 %v2390_v61  ;;  %v5453_v61 = vrot.slane %v2340_v20, 2  ;;  %v5463_v62 = vor.u32 %v5462_v55, %v5459_v52  ;;  %v23850_v41 = vld [vmem:[%s34453_s3 + $0x78c] ss:$16 sps:$4 sm:$0xff]   ;;  %v27804_v55 = vcombine.low %v27560_v59, %v27496_v34 }
 0x1ae   :  { %3145 = vmatprep.mubr.bf16.mxu0 %v2355_v3  ;;  %3267 = vmatprep.mubr.bf16.mxu1 %v2355_v3  ;;  %v27716_v1 = vor.u32 %v5465_v42, %v5464_v4  ;;  %v23847_v4 = vld [vmem:[%s34453_s3 + $0x784] ss:$16 sps:$4 sm:$0xff]   ;;  %v23845_v42 = vld [vmem:[%s34453_s3 + $0x780] ss:$16 sps:$4 sm:$0xff]  }
 0x1af   :  { %3123 = vmatprep.subr.bf16.mxu0 %v23805_v49  ;;  %3245 = vmatprep.subr.bf16.mxu1 %v23808_v50  ;;  %v5452_v49 = vrot.slane %v2372_v18, 1  ;;  %v23823_v50 = vld [vmem:[%s34453_s3 + $0x704] ss:$16 sps:$4 sm:$0xff]   ;;  %v2136_v52 = vld [vmem:[#allocation3 + $0x48] sm:$0x77] }
 0x1b0   :  { %3124 = vmatpush1.bf16.msra.mxu0 %v23803_v56  ;;  %3246 = vmatpush1.bf16.msra.mxu1 %v23806_v39  ;;  %v5447_v56 = vrot.slane %v5445_v43, 1  ;;  %v23829_v39 = vld [vmem:[%s34453_s3 + $0x724] ss:$16 sps:$4 sm:$0xff]   ;;  %v23848_v43 = vld [vmem:[%s34453_s3 + $0x788] ss:$16 sps:$4 sm:$0xff]   ;;  %v27818_v59 = vcombine.high %v2136_v52, %v2136_v52 }
 0x1b1   :  { %3125 = vmatprep.subr.bf16.mxu0 %v23811_v2  ;;  %3247 = vmatprep.subr.bf16.mxu1 %v23814_v6  ;;  %v27726_v3 = vor.u32 %v5453_v61, %v5452_v49  ;;  %v23832_v2 = vld [vmem:[%s34453_s3 + $0x72c] ss:$16 sps:$4 sm:$0xff]   ;;  %v27736_v6 = vsel %vm1158_vm8, %v5463_v62, %v27716_v1  ;;  %v23854_v49 = vld [vmem:[%s34453_s3 + $0x7a8] ss:$16 sps:$4 sm:$0xff]   ;;  %v23865_v61 = vld [vmem:[%s34453_s3 + $0x7e4] ss:$16 sps:$4 sm:$0xff]  }
 0x1b2   :  { %v5451_v22 = vor.u32 %v5450_v60, %v5447_v56  ;;  %v23857_v56 = vld [vmem:[%s34453_s3 + $0x7c0] ss:$16 sps:$4 sm:$0xff]   ;;  %v23860_v60 = vld [vmem:[%s34453_s3 + $0x7c8] ss:$16 sps:$4 sm:$0xff]   ;;  %v23868_v62 = vld [vmem:[%s34453_s3 + $0x7ec] ss:$16 sps:$4 sm:$0xff]  }
 0x1b4   :  { %3126 = vmatpush1.bf16.msra.mxu0 %v23809_v15  ;;  %3248 = vmatpush1.bf16.msra.mxu1 %v23812_v38  ;;  %v27740_v14 = vsel %vm1158_vm8, %v5451_v22, %v27726_v3  ;;  %v23835_v15 = vld [vmem:[%s34453_s3 + $0x744] ss:$16 sps:$4 sm:$0xff]   ;;  %v23838_v38 = vld [vmem:[%s34453_s3 + $0x74c] ss:$16 sps:$4 sm:$0xff]   ;;  %v23866_v22 = vld [vmem:[%s34453_s3 + $0x7e8] ss:$16 sps:$4 sm:$0xff]  }
 0x1b5   :  { %3127 = vmatprep.subr.bf16.mxu0 %v23817_v10  ;;  %3249 = vmatprep.subr.bf16.mxu1 %v23820_v51  ;;  %v23836_v10 = vld [vmem:[%s34453_s3 + $0x748] ss:$16 sps:$4 sm:$0xff]   ;;  %v23841_v51 = vld [vmem:[%s34453_s3 + $0x764] ss:$16 sps:$4 sm:$0xff]  }
 0x1b8   :  { %3128 = vmatpush1.bf16.msra.mxu0 %v23815_v47  ;;  %3250 = vmatpush1.bf16.msra.mxu1 %v23818_v5  ;;  %v23856_v47 = vld [vmem:[%s34453_s3 + $0x7ac] ss:$16 sps:$4 sm:$0xff]   ;;  %v23851_v5 = vld [vmem:[%s34453_s3 + $0x7a0] ss:$16 sps:$4 sm:$0xff]  }
 0x1b9   :  { %3129 = vmatprep.subr.bf16.mxu0 %v23823_v50  ;;  %3251 = vmatprep.subr.bf16.mxu1 %v23826_v28  ;;  %v23859_v50 = vld [vmem:[%s34453_s3 + $0x7c4] ss:$16 sps:$4 sm:$0xff]   ;;  %v23862_v28 = vld [vmem:[%s34453_s3 + $0x7cc] ss:$16 sps:$4 sm:$0xff]  }
 0x1bc   :  { %3130 = vmatpush1.bf16.msra.mxu0 %v23821_v7  ;;  %3252 = vmatpush1.bf16.msra.mxu1 %v23824_v9  ;;  %v2335_v7 = vshll.u32 %v27804_v55, 16  ;;  %v23863_v9 = vld [vmem:[%s34453_s3 + $0x7e0] ss:$16 sps:$4 sm:$0xff]  }
 0x1bd   :  { %3131 = vmatprep.subr.bf16.mxu0 %v23829_v39  ;;  %3253 = vmatprep.subr.bf16.mxu1 %v23832_v2  ;;  %v23871_v39 = vld [vmem:[%s34453_s3 + $0x4] ss:$16 sps:$4 sm:$0xff]   ;;  %v23874_v2 = vld [vmem:[%s34453_s3 + $0xc] ss:$16 sps:$4 sm:$0xff]  }
 0x1c0   :  { %3132 = vmatpush1.bf16.msra.mxu0 %v23827_v26  ;;  %3254 = vmatpush1.bf16.msra.mxu1 %v23830_v27  ;;  %v2384_v26 = vshll.u32 %v27818_v59, 16  ;;  %v2337_v27 = vrot.slane %v2335_v7, 1  ;;  %v23892_v7 = vld [vmem:[%s34453_s3 + $0x68] ss:$16 sps:$4 sm:$0xff]  }
 0x1c1   :  { %3133 = vmatprep.subr.bf16.mxu0 %v23835_v15  ;;  %3255 = vmatprep.subr.bf16.mxu1 %v23838_v38  ;;  %v2333_v15 = vshrl.u32 %v27804_v55, 16  ;;  %v2342_v38 = vrot.slane %v2340_v20, 1  ;;  %v23881_v20 = vld [vmem:[%s34453_s3 + $0x2c] ss:$16 sps:$4 sm:$0xff]  }
 0x1c4   :  { %3134 = vmatpush1.bf16.msra.mxu0 %v23833_v19  ;;  %3256 = vmatpush1.bf16.msra.mxu1 %v23836_v10  ;;  %v27837_v19 = vcombine.low %v2136_v52, %v2136_v52  ;;  %v23869_v10 = vld [vmem:[%s34453_s3] ss:$16 sps:$4 sm:$0xff]   ;;  %v2397_v52 = vshrl.u32 %v27818_v59, 16 }
 0x1c5   :  { %3135 = vmatprep.subr.bf16.mxu0 %v23841_v51  ;;  %3257 = vmatprep.subr.bf16.mxu1 %v23844_v23  ;;  %v23872_v51 = vld [vmem:[%s34453_s3 + $0x8] ss:$16 sps:$4 sm:$0xff]   ;;  %v2386_v23 = vrot.slane %v2384_v26, 1 }
 0x1c6   :  { %v23898_v26 = vld [vmem:[%s34453_s3 + $0x88] ss:$16 sps:$4 sm:$0xff]  }
 0x1c8   :  { %3136 = vmatpush1.bf16.msra.mxu0 %v23839_v24  ;;  %3258 = vmatpush1.bf16.msra.mxu1 %v23842_v25  ;;  %v2338_v24 = vor.u32 %v2337_v27, %v2333_v15  ;;  %v23878_v25 = vld [vmem:[%s34453_s3 + $0x24] ss:$16 sps:$4 sm:$0xff]  }
 0x1c9   :  { %3137 = vmatprep.subr.bf16.mxu0 %v23847_v4  ;;  %3259 = vmatprep.subr.bf16.mxu1 %v23850_v41  ;;  %v2382_v4 = vor.u32 %v2380_v58, %v27628_v48  ;;  %v23879_v48 = vld [vmem:[%s34453_s3 + $0x28] ss:$16 sps:$4 sm:$0xff]   ;;  %v23885_v58 = vld [vmem:[%s34453_s3 + $0x44] ss:$16 sps:$4 sm:$0xff]  }
 0x1ca   :  { %v2343_v41 = vsel %vm176_vm6, %v2338_v24, %v2342_v38  ;;  %v23903_v27 = vld [vmem:[%s34453_s3 + $0xa4] ss:$16 sps:$4 sm:$0xff]   ;;  %v23907_v24 = vld [vmem:[%s34453_s3 + $0xc0] ss:$16 sps:$4 sm:$0xff]  }
 0x1cc   :  { %3138 = vmatpush1.bf16.msra.mxu0 %v23845_v42  ;;  %3260 = vmatpush1.bf16.msra.mxu1 %v23848_v43  ;;  %v2376_v42 = vshll.u32 %v27837_v19, 16  ;;  %v2387_v43 = vsel %vm176_vm6, %v2382_v4, %v2386_v23  ;;  %v23918_v4 = vld [vmem:[%s34453_s3 + $0xec] ss:$16 sps:$4 sm:$0xff]  }
 0x1cd   :  { %3139 = vmatprep.subr.bf16.mxu0 %v23853_v45  ;;  %3261 = vmatprep.subr.bf16.mxu1 %v23856_v47  ;;  %v23876_v45 = vld [vmem:[%s34453_s3 + $0x20] ss:$16 sps:$4 sm:$0xff]  }
 0x1ce   :  { %v2378_v47 = vrot.slane %v2376_v42, 1  ;;  %v23916_v42 = vld [vmem:[%s34453_s3 + $0xe8] ss:$16 sps:$4 sm:$0xff]  }
 0x1d0   :  { %3140 = vmatpush1.bf16.msra.mxu0 %v23851_v5  ;;  %3262 = vmatpush1.bf16.msra.mxu1 %v23854_v49  ;;  %v23888_v5 = vld [vmem:[%s34453_s3 + $0x4c] ss:$16 sps:$4 sm:$0xff]   ;;  %v23883_v49 = vld [vmem:[%s34453_s3 + $0x40] ss:$16 sps:$4 sm:$0xff]  }
 0x1d1   :  { %3141 = vmatprep.subr.bf16.mxu0 %v23859_v50  ;;  %3263 = vmatprep.subr.bf16.mxu1 %v23862_v28  ;;  %v23886_v50 = vld [vmem:[%s34453_s3 + $0x48] ss:$16 sps:$4 sm:$0xff]   ;;  %v2374_v28 = vor.u32 %v2372_v18, %v2342_v38  ;;  %v23889_v18 = vld [vmem:[%s34453_s3 + $0x60] ss:$16 sps:$4 sm:$0xff]   ;;  %v23906_v38 = vld [vmem:[%s34453_s3 + $0xac] ss:$16 sps:$4 sm:$0xff]  }
 0x1d4   :  { %3142 = vmatpush1.bf16.msra.mxu0 %v23857_v56  ;;  %3264 = vmatpush1.bf16.msra.mxu1 %v23860_v60  ;;  %v23891_v56 = vld [vmem:[%s34453_s3 + $0x64] ss:$16 sps:$4 sm:$0xff]   ;;  %v23894_v60 = vld [vmem:[%s34453_s3 + $0x6c] ss:$16 sps:$4 sm:$0xff]  }
 0x1d5   :  { %3143 = vmatprep.subr.bf16.mxu0 %v23865_v61  ;;  %3265 = vmatprep.subr.bf16.mxu1 %v23868_v62  ;;  %v2379_v61 = vsel %vm176_vm6, %v2374_v28, %v2378_v47  ;;  %v2399_v62 = vor.u32 %v2397_v52, %v2386_v23  ;;  %v23909_v23 = vld [vmem:[%s34453_s3 + $0xc4] ss:$16 sps:$4 sm:$0xff]   ;;  %v23936_v52 = vld [vmem:[%s34453_s3 + $0x14c] ss:$16 sps:$4 sm:$0xff]  }
 0x1d6   :  { %v23933_v28 = vld [vmem:[%s34453_s3 + $0x144] ss:$16 sps:$4 sm:$0xff]  }
 0x1d8   :  { %3144 = vmatpush1.bf16.msra.mxu0 %v23863_v9  ;;  %3266 = vmatpush1.bf16.msra.mxu1 %v23866_v22  ;;  %v23897_v9 = vld [vmem:[%s34453_s3 + $0x84] ss:$16 sps:$4 sm:$0xff]   ;;  %v23900_v22 = vld [vmem:[%s34453_s3 + $0x8c] ss:$16 sps:$4 sm:$0xff]  }
 0x1d9   :  { %3958 = vmatprep.subr.bf16.mxu0 %v23871_v39  ;;  %4080 = vmatprep.subr.bf16.mxu1 %v23874_v2  ;;  %v2394_v39 = vshrl.u32 %v27837_v19, 16  ;;  %v23895_v2 = vld [vmem:[%s34453_s3 + $0x80] ss:$16 sps:$4 sm:$0xff]  }
 0x1db   :  { %3146 = vmatmul.mubr.bf16.vlgmr.msra.gmra.mrb[28].mxu0 %v2343_v41  ;;  %3268 = vmatmul.mubr.bf16.vlgmr.msra.gmra.mrb[28].mxu1 %v2343_v41  ;;  %v2396_v15 = vor.u32 %v2394_v39, %v2378_v47  ;;  %v23913_v41 = vld [vmem:[%s34453_s3 + $0xe0] ss:$16 sps:$4 sm:$0xff]   ;;  %v23927_v47 = vld [vmem:[%s34453_s3 + $0x124] ss:$16 sps:$4 sm:$0xff]  }
 0x1dc   :  { %3155 = vmatprep.mubr.bf16.mxu0 %v2387_v43  ;;  %3277 = vmatprep.mubr.bf16.mxu1 %v2387_v43  ;;  %v23921_v43 = vld [vmem:[%s34453_s3 + $0x104] ss:$16 sps:$4 sm:$0xff]   ;;  %v23943_v39 = vld [vmem:[%s34453_s3 + $0x180] ss:$16 sps:$4 sm:$0xff]  }
 0x1dd   :  { %3959 = vmatpush1.bf16.msra.mxu0 %v23869_v10  ;;  %4081 = vmatpush1.bf16.msra.mxu1 %v23872_v51  ;;  %v23901_v10 = vld [vmem:[%s34453_s3 + $0xa0] ss:$16 sps:$4 sm:$0xff]   ;;  %v23904_v51 = vld [vmem:[%s34453_s3 + $0xa8] ss:$16 sps:$4 sm:$0xff]  }
 0x1de   :  { %3960 = vmatprep.subr.bf16.mxu0 %v23878_v25  ;;  %4082 = vmatprep.subr.bf16.mxu1 %v23881_v20  ;;  %v23910_v25 = vld [vmem:[%s34453_s3 + $0xc8] ss:$16 sps:$4 sm:$0xff]   ;;  %v23915_v20 = vld [vmem:[%s34453_s3 + $0xe4] ss:$16 sps:$4 sm:$0xff]  }
 0x1e1   :  { %3961 = vmatpush1.bf16.msra.mxu0 %v23876_v45  ;;  %4083 = vmatpush1.bf16.msra.mxu1 %v23879_v48  ;;  %v23924_v45 = vld [vmem:[%s34453_s3 + $0x10c] ss:$16 sps:$4 sm:$0xff]   ;;  %v23919_v48 = vld [vmem:[%s34453_s3 + $0x100] ss:$16 sps:$4 sm:$0xff]  }
 0x1e2   :  { %3962 = vmatprep.subr.bf16.mxu0 %v23885_v58  ;;  %4084 = vmatprep.subr.bf16.mxu1 %v23888_v5  ;;  %v23922_v58 = vld [vmem:[%s34453_s3 + $0x108] ss:$16 sps:$4 sm:$0xff]   ;;  %v23930_v5 = vld [vmem:[%s34453_s3 + $0x12c] ss:$16 sps:$4 sm:$0xff]  }
 0x1e3   :  { %3156 = vmatmul.mubr.bf16.gmra.mrb[32].mxu0 %v2379_v61  ;;  %3278 = vmatmul.mubr.bf16.gmra.mrb[32].mxu1 %v2379_v61  ;;  %v23939_v61 = vld [vmem:[%s34453_s3 + $0x164] ss:$16 sps:$4 sm:$0xff]  }
 0x1e4   :  { %3165 = vmatprep.mubr.bf16.mxu0 %v2399_v62  ;;  %3287 = vmatprep.mubr.bf16.mxu1 %v2399_v62  ;;  %v23942_v62 = vld [vmem:[%s34453_s3 + $0x16c] ss:$16 sps:$4 sm:$0xff]  }
 0x1e5   :  { %3963 = vmatpush1.bf16.msra.mxu0 %v23883_v49  ;;  %4085 = vmatpush1.bf16.msra.mxu1 %v23886_v50  ;;  %v23925_v49 = vld [vmem:[%s34453_s3 + $0x120] ss:$16 sps:$4 sm:$0xff]   ;;  %v23928_v50 = vld [vmem:[%s34453_s3 + $0x128] ss:$16 sps:$4 sm:$0xff]  }
 0x1e6   :  { %3964 = vmatprep.subr.bf16.mxu0 %v23891_v56  ;;  %4086 = vmatprep.subr.bf16.mxu1 %v23894_v60  ;;  %v23931_v56 = vld [vmem:[%s34453_s3 + $0x140] ss:$16 sps:$4 sm:$0xff]   ;;  %v23934_v60 = vld [vmem:[%s34453_s3 + $0x148] ss:$16 sps:$4 sm:$0xff]  }
 0x1e9   :  { %3965 = vmatpush1.bf16.msra.mxu0 %v23889_v18  ;;  %4087 = vmatpush1.bf16.msra.mxu1 %v23892_v7  ;;  %v23937_v18 = vld [vmem:[%s34453_s3 + $0x160] ss:$16 sps:$4 sm:$0xff]   ;;  %v23940_v7 = vld [vmem:[%s34453_s3 + $0x168] ss:$16 sps:$4 sm:$0xff]  }
 0x1ea   :  { %3966 = vmatprep.subr.bf16.mxu0 %v23897_v9  ;;  %4088 = vmatprep.subr.bf16.mxu1 %v23900_v22  ;;  %v23945_v9 = vld [vmem:[%s34453_s3 + $0x184] ss:$16 sps:$4 sm:$0xff]   ;;  %v23948_v22 = vld [vmem:[%s34453_s3 + $0x18c] ss:$16 sps:$4 sm:$0xff]  }
 0x1eb   :  { %3166 = vmatmul.mubr.bf16.gmra.mrb[40].mxu0 %v2396_v15  ;;  %3288 = vmatmul.mubr.bf16.gmra.mrb[40].mxu1 %v2396_v15  ;;  %v23949_v15 = vld [vmem:[%s34453_s3 + $0x1a0] ss:$16 sps:$4 sm:$0xff]  }
 0x1ec   :  { %3990 = vmatprep.mubr.bf16.mxu0 %v27511_v16  ;;  %4112 = vmatprep.mubr.bf16.mxu1 %v27511_v16  ;;  %v23912_v16 = vld [vmem:[%s34453_s3 + $0xcc] ss:$16 sps:$4 sm:$0xff]  }
 0x1ed   :  { %3967 = vmatpush1.bf16.msra.mxu0 %v23895_v2  ;;  %4089 = vmatpush1.bf16.msra.mxu1 %v23898_v26  ;;  %v23946_v2 = vld [vmem:[%s34453_s3 + $0x188] ss:$16 sps:$4 sm:$0xff]   ;;  %v23951_v26 = vld [vmem:[%s34453_s3 + $0x1a4] ss:$16 sps:$4 sm:$0xff]  }
 0x1ee   :  { %3968 = vmatprep.subr.bf16.mxu0 %v23903_v27  ;;  %4090 = vmatprep.subr.bf16.mxu1 %v23906_v38  ;;  %v23954_v27 = vld [vmem:[%s34453_s3 + $0x1ac] ss:$16 sps:$4 sm:$0xff]   ;;  %v23952_v38 = vld [vmem:[%s34453_s3 + $0x1a8] ss:$16 sps:$4 sm:$0xff]  }
 0x1f1   :  { %3969 = vmatpush1.bf16.msra.mxu0 %v23901_v10  ;;  %4091 = vmatpush1.bf16.msra.mxu1 %v23904_v51  ;;  %v23957_v10 = vld [vmem:[%s34453_s3 + $0x1c4] ss:$16 sps:$4 sm:$0xff]   ;;  %v23960_v51 = vld [vmem:[%s34453_s3 + $0x1cc] ss:$16 sps:$4 sm:$0xff]  }
 0x1f2   :  { %3970 = vmatprep.subr.bf16.mxu0 %v23909_v23  ;;  %4092 = vmatprep.subr.bf16.mxu1 %v23912_v16  ;;  %v23955_v23 = vld [vmem:[%s34453_s3 + $0x1c0] ss:$16 sps:$4 sm:$0xff]   ;;  %v23958_v16 = vld [vmem:[%s34453_s3 + $0x1c8] ss:$16 sps:$4 sm:$0xff]  }
 0x1f5   :  { %3971 = vmatpush1.bf16.msra.mxu0 %v23907_v24  ;;  %4093 = vmatpush1.bf16.msra.mxu1 %v23910_v25  ;;  %v23963_v24 = vld [vmem:[%s34453_s3 + $0x1e4] ss:$16 sps:$4 sm:$0xff]   ;;  %v23966_v25 = vld [vmem:[%s34453_s3 + $0x1ec] ss:$16 sps:$4 sm:$0xff]  }
 0x1f6   :  { %3972 = vmatprep.subr.bf16.mxu0 %v23915_v20  ;;  %4094 = vmatprep.subr.bf16.mxu1 %v23918_v4  ;;  %v23961_v20 = vld [vmem:[%s34453_s3 + $0x1e0] ss:$16 sps:$4 sm:$0xff]   ;;  %v23964_v4 = vld [vmem:[%s34453_s3 + $0x1e8] ss:$16 sps:$4 sm:$0xff]  }
 0x1f9   :  { %3973 = vmatpush1.bf16.msra.mxu0 %v23913_v41  ;;  %4095 = vmatpush1.bf16.msra.mxu1 %v23916_v42  ;;  %v23969_v41 = vld [vmem:[%s34453_s3 + $0x204] ss:$16 sps:$4 sm:$0xff]   ;;  %v23972_v42 = vld [vmem:[%s34453_s3 + $0x20c] ss:$16 sps:$4 sm:$0xff]  }
 0x1fa   :  { %3974 = vmatprep.subr.bf16.mxu0 %v23921_v43  ;;  %4096 = vmatprep.subr.bf16.mxu1 %v23924_v45  ;;  %v23967_v43 = vld [vmem:[%s34453_s3 + $0x200] ss:$16 sps:$4 sm:$0xff]   ;;  %v23970_v45 = vld [vmem:[%s34453_s3 + $0x208] ss:$16 sps:$4 sm:$0xff]  }
 0x1fd   :  { %3975 = vmatpush1.bf16.msra.mxu0 %v23919_v48  ;;  %4097 = vmatpush1.bf16.msra.mxu1 %v23922_v58  ;;  %v23975_v48 = vld [vmem:[%s34453_s3 + $0x224] ss:$16 sps:$4 sm:$0xff]   ;;  %v23978_v58 = vld [vmem:[%s34453_s3 + $0x22c] ss:$16 sps:$4 sm:$0xff]  }
 0x1fe   :  { %3976 = vmatprep.subr.bf16.mxu0 %v23927_v47  ;;  %4098 = vmatprep.subr.bf16.mxu1 %v23930_v5  ;;  %v23973_v47 = vld [vmem:[%s34453_s3 + $0x220] ss:$16 sps:$4 sm:$0xff]   ;;  %v23976_v5 = vld [vmem:[%s34453_s3 + $0x228] ss:$16 sps:$4 sm:$0xff]  }
 0x201   :  { %3977 = vmatpush1.bf16.msra.mxu0 %v23925_v49  ;;  %4099 = vmatpush1.bf16.msra.mxu1 %v23928_v50  ;;  %v23981_v49 = vld [vmem:[%s34453_s3 + $0x244] ss:$16 sps:$4 sm:$0xff]  }
 0x202   :  { %3978 = vmatprep.subr.bf16.mxu0 %v23933_v28  ;;  %4100 = vmatprep.subr.bf16.mxu1 %v23936_v52  ;;  %v2005_v50 = vld [vmem:[#allocation3 + $0x40] sm:$0x33]  ;;  %v23979_v28 = vld [vmem:[%s34453_s3 + $0x240] ss:$16 sps:$4 sm:$0xff]  }
 0x203   :  { %v23982_v52 = vld [vmem:[%s34453_s3 + $0x248] ss:$16 sps:$4 sm:$0xff]  }
 0x205   :  { %3979 = vmatpush1.bf16.msra.mxu0 %v23931_v56  ;;  %4101 = vmatpush1.bf16.msra.mxu1 %v23934_v60  ;;  %v19594_v56 = vcombine.high %v2005_v50, %v2005_v50  ;;  %v23988_v60 = vld [vmem:[%s34453_s3 + $0x264] ss:$16 sps:$4 sm:$0xff]  }
 0x206   :  { %3980 = vmatprep.subr.bf16.mxu0 %v23939_v61  ;;  %4102 = vmatprep.subr.bf16.mxu1 %v23942_v62  ;;  %v23991_v61 = vld [vmem:[%s34453_s3 + $0x26c] ss:$16 sps:$4 sm:$0xff]   ;;  %v23986_v62 = vld [vmem:[%s34453_s3 + $0x260] ss:$16 sps:$4 sm:$0xff]  }
 0x209   :  { %3981 = vmatpush1.bf16.msra.mxu0 %v23937_v18  ;;  %4103 = vmatpush1.bf16.msra.mxu1 %v23940_v7  ;;  %v23989_v18 = vld [vmem:[%s34453_s3 + $0x268] ss:$16 sps:$4 sm:$0xff]   ;;  %v23995_v7 = vld [vmem:[%s34453_s3 + $0x284] ss:$16 sps:$4 sm:$0xff]  }
 0x20a   :  { %3982 = vmatprep.subr.bf16.mxu0 %v23945_v9  ;;  %4104 = vmatprep.subr.bf16.mxu1 %v23948_v22  ;;  %v23998_v9 = vld [vmem:[%s34453_s3 + $0x28c] ss:$16 sps:$4 sm:$0xff]   ;;  %v23993_v22 = vld [vmem:[%s34453_s3 + $0x280] ss:$16 sps:$4 sm:$0xff]  }
 0x20d   :  { %3983 = vmatpush1.bf16.msra.mxu0 %v23943_v39  ;;  %4105 = vmatpush1.bf16.msra.mxu1 %v23946_v2  ;;  %v19593_v39 = vcombine.low %v2005_v50, %v2005_v50  ;;  %v23996_v2 = vld [vmem:[%s34453_s3 + $0x288] ss:$16 sps:$4 sm:$0xff]  }
 0x20e   :  { %3984 = vmatprep.subr.bf16.mxu0 %v23951_v26  ;;  %4106 = vmatprep.subr.bf16.mxu1 %v23954_v27  ;;  %v24001_v26 = vld [vmem:[%s34453_s3 + $0x2a4] ss:$16 sps:$4 sm:$0xff]   ;;  %v24004_v27 = vld [vmem:[%s34453_s3 + $0x2ac] ss:$16 sps:$4 sm:$0xff]   ;;  %v24032_v50 = vld [vmem:[%s34453_s3 + $0x348] ss:$16 sps:$4 sm:$0xff]  }
 0x211   :  { %3985 = vmatpush1.bf16.msra.mxu0 %v23949_v15  ;;  %4107 = vmatpush1.bf16.msra.mxu1 %v23952_v38  ;;  %v23999_v15 = vld [vmem:[%s34453_s3 + $0x2a0] ss:$16 sps:$4 sm:$0xff]   ;;  %v24002_v38 = vld [vmem:[%s34453_s3 + $0x2a8] ss:$16 sps:$4 sm:$0xff]  }
 0x212   :  { %3986 = vmatprep.subr.bf16.mxu0 %v23957_v10  ;;  %4108 = vmatprep.subr.bf16.mxu1 %v23960_v51  ;;  %v24007_v10 = vld [vmem:[%s34453_s3 + $0x2c4] ss:$16 sps:$4 sm:$0xff]   ;;  %v24010_v51 = vld [vmem:[%s34453_s3 + $0x2cc] ss:$16 sps:$4 sm:$0xff]  }
 0x215   :  { %3987 = vmatpush1.bf16.msra.mxu0 %v23955_v23  ;;  %4109 = vmatpush1.bf16.msra.mxu1 %v23958_v16  ;;  %v24005_v23 = vld [vmem:[%s34453_s3 + $0x2c0] ss:$16 sps:$4 sm:$0xff]   ;;  %v24013_v16 = vld [vmem:[%s34453_s3 + $0x2e4] ss:$16 sps:$4 sm:$0xff]  }
 0x216   :  { %3988 = vmatprep.subr.bf16.mxu0 %v23963_v24  ;;  %4110 = vmatprep.subr.bf16.mxu1 %v23966_v25  ;;  %v24016_v24 = vld [vmem:[%s34453_s3 + $0x2ec] ss:$16 sps:$4 sm:$0xff]   ;;  %v24011_v25 = vld [vmem:[%s34453_s3 + $0x2e0] ss:$16 sps:$4 sm:$0xff]  }
 0x219   :  { %3989 = vmatpush1.bf16.msra.mxu0 %v23961_v20  ;;  %4111 = vmatpush1.bf16.msra.mxu1 %v23964_v4  ;;  %v24014_v20 = vld [vmem:[%s34453_s3 + $0x2e8] ss:$16 sps:$4 sm:$0xff]   ;;  %v24019_v4 = vld [vmem:[%s34453_s3 + $0x304] ss:$16 sps:$4 sm:$0xff]  }
 0x21a   :  { %4019 = vmatprep.subr.bf16.mxu0 %v23969_v41  ;;  %4141 = vmatprep.subr.bf16.mxu1 %v23972_v42  ;;  %v24022_v41 = vld [vmem:[%s34453_s3 + $0x30c] ss:$16 sps:$4 sm:$0xff]   ;;  %v24017_v42 = vld [vmem:[%s34453_s3 + $0x300] ss:$16 sps:$4 sm:$0xff]  }
 0x21c   :  { %3991 = vmatmul.mubr.bf16.vlgmr.msra.gmra.mrb[28].mxu0 %v27514_v17  ;;  %4113 = vmatmul.mubr.bf16.vlgmr.msra.gmra.mrb[28].mxu1 %v27514_v17  ;;  %v23984_v17 = vld [vmem:[%s34453_s3 + $0x24c] ss:$16 sps:$4 sm:$0xff]  }
 0x21d   :  { %4000 = vmatprep.mubr.bf16.mxu0 %v27524_v29  ;;  %4020 = vmatpush1.bf16.msra.mxu0 %v23967_v43  ;;  %v24020_v43 = vld [vmem:[%s34453_s3 + $0x308] ss:$16 sps:$4 sm:$0xff]  }
 0x21e   :  { %4122 = vmatprep.mubr.bf16.mxu1 %v27524_v29  ;;  %4142 = vmatpush1.bf16.msra.mxu1 %v23970_v45  ;;  %v24025_v45 = vld [vmem:[%s34453_s3 + $0x324] ss:$16 sps:$4 sm:$0xff]  }
 0x21f   :  { %4021 = vmatprep.subr.bf16.mxu0 %v23975_v48  ;;  %4143 = vmatprep.subr.bf16.mxu1 %v23978_v58  ;;  %v24028_v48 = vld [vmem:[%s34453_s3 + $0x32c] ss:$16 sps:$4 sm:$0xff]   ;;  %v24023_v58 = vld [vmem:[%s34453_s3 + $0x320] ss:$16 sps:$4 sm:$0xff]  }
 0x221   :  { %4022 = vmatpush1.bf16.msra.mxu0 %v23973_v47  ;;  %v24026_v47 = vld [vmem:[%s34453_s3 + $0x328] ss:$16 sps:$4 sm:$0xff]  }
 0x222   :  { %4144 = vmatpush1.bf16.msra.mxu1 %v23976_v5  ;;  %4023 = vmatprep.subr.bf16.mxu0 %v23981_v49  ;;  %v24031_v5 = vld [vmem:[%s34453_s3 + $0x344] ss:$16 sps:$4 sm:$0xff]   ;;  %v24034_v49 = vld [vmem:[%s34453_s3 + $0x34c] ss:$16 sps:$4 sm:$0xff]  }
 0x223   :  { %4145 = vmatprep.subr.bf16.mxu1 %v23984_v17  ;;  %v24029_v17 = vld [vmem:[%s34453_s3 + $0x340] ss:$16 sps:$4 sm:$0xff]  }
 0x224   :  { %4001 = vmatmul.mubr.bf16.gmra.mrb[32].mxu0 %v27526_v40  ;;  %4123 = vmatmul.mubr.bf16.gmra.mrb[32].mxu1 %v27526_v40 }
 0x225   :  { %4010 = vmatprep.mubr.bf16.mxu0 %v19594_v56  ;;  %4024 = vmatpush1.bf16.msra.mxu0 %v23979_v28  ;;  %v24037_v28 = vld [vmem:[%s34453_s3 + $0x364] ss:$16 sps:$4 sm:$0xff]  }
 0x226   :  { %4132 = vmatprep.mubr.bf16.mxu1 %v19594_v56  ;;  %4146 = vmatpush1.bf16.msra.mxu1 %v23982_v52  ;;  %v24040_v52 = vld [vmem:[%s34453_s3 + $0x36c] ss:$16 sps:$4 sm:$0xff]   ;;  %v24035_v56 = vld [vmem:[%s34453_s3 + $0x360] ss:$16 sps:$4 sm:$0xff]  }
 0x227   :  { %4025 = vmatprep.subr.bf16.mxu0 %v23988_v60  ;;  %4147 = vmatprep.subr.bf16.mxu1 %v23991_v61  ;;  %v24038_v60 = vld [vmem:[%s34453_s3 + $0x368] ss:$16 sps:$4 sm:$0xff]   ;;  %v24043_v61 = vld [vmem:[%s34453_s3 + $0x384] ss:$16 sps:$4 sm:$0xff]  }
 0x229   :  { %4026 = vmatpush1.bf16.msra.mxu0 %v23986_v62  ;;  %v24046_v62 = vld [vmem:[%s34453_s3 + $0x38c] ss:$16 sps:$4 sm:$0xff]  }
 0x22a   :  { %4148 = vmatpush1.bf16.msra.mxu1 %v23989_v18  ;;  %4027 = vmatprep.subr.bf16.mxu0 %v23995_v7  ;;  %v24041_v18 = vld [vmem:[%s34453_s3 + $0x380] ss:$16 sps:$4 sm:$0xff]   ;;  %v24044_v7 = vld [vmem:[%s34453_s3 + $0x388] ss:$16 sps:$4 sm:$0xff]  }
 0x22b   :  { %4149 = vmatprep.subr.bf16.mxu1 %v23998_v9  ;;  %v24049_v9 = vld [vmem:[%s34453_s3 + $0x3a4] ss:$16 sps:$4 sm:$0xff]  }
 0x22c   :  { %4011 = vmatmul.mubr.bf16.gmra.mrb[44].mxu0 %v19593_v39  ;;  %4133 = vmatmul.mubr.bf16.gmra.mrb[44].mxu1 %v19593_v39  ;;  %v24047_v39 = vld [vmem:[%s34453_s3 + $0x3a0] ss:$16 sps:$4 sm:$0xff]  }
 0x22d   :  { %4028 = vmatpush1.bf16.msra.mxu0 %v23993_v22  ;;  %4051 = vmatprep.mubr.bf16.mxu0 %v27578_v8  ;;  %v24052_v22 = vld [vmem:[%s34453_s3 + $0x3ac] ss:$16 sps:$4 sm:$0xff]  }
 0x22e   :  { %4150 = vmatpush1.bf16.msra.mxu1 %v23996_v2  ;;  %4173 = vmatprep.mubr.bf16.mxu1 %v27578_v8  ;;  %v24008_v8 = vld [vmem:[%s34453_s3 + $0x2c8] ss:$16 sps:$4 sm:$0xff]  }
 0x22f   :  { %4029 = vmatprep.subr.bf16.mxu0 %v24001_v26  ;;  %4151 = vmatprep.subr.bf16.mxu1 %v24004_v27  ;;  %v24050_v2 = vld [vmem:[%s34453_s3 + $0x3a8] ss:$16 sps:$4 sm:$0xff]   ;;  %v24055_v26 = vld [vmem:[%s34453_s3 + $0x3c4] ss:$16 sps:$4 sm:$0xff]   ;;  %v24058_v27 = vld [vmem:[%s34453_s3 + $0x3cc] ss:$16 sps:$4 sm:$0xff]  }
 0x231   :  { %4030 = vmatpush1.bf16.msra.mxu0 %v23999_v15  ;;  %v24053_v15 = vld [vmem:[%s34453_s3 + $0x3c0] ss:$16 sps:$4 sm:$0xff]  }
 0x232   :  { %4152 = vmatpush1.bf16.msra.mxu1 %v24002_v38  ;;  %4031 = vmatprep.subr.bf16.mxu0 %v24007_v10  ;;  %v24056_v38 = vld [vmem:[%s34453_s3 + $0x3c8] ss:$16 sps:$4 sm:$0xff]   ;;  %v24061_v10 = vld [vmem:[%s34453_s3 + $0x3e4] ss:$16 sps:$4 sm:$0xff]  }
 0x233   :  { %4153 = vmatprep.subr.bf16.mxu1 %v24010_v51  ;;  %v24064_v51 = vld [vmem:[%s34453_s3 + $0x3ec] ss:$16 sps:$4 sm:$0xff]  }
 0x235   :  { %4032 = vmatpush1.bf16.msra.mxu0 %v24005_v23  ;;  %v24059_v23 = vld [vmem:[%s34453_s3 + $0x3e0] ss:$16 sps:$4 sm:$0xff]  }
 0x236   :  { %4154 = vmatpush1.bf16.msra.mxu1 %v24008_v8  ;;  %4033 = vmatprep.subr.bf16.mxu0 %v24013_v16  ;;  %v24062_v8 = vld [vmem:[%s34453_s3 + $0x3e8] ss:$16 sps:$4 sm:$0xff]   ;;  %v24067_v16 = vld [vmem:[%s34453_s3 + $0x804] ss:$16 sps:$4 sm:$0xff]  }
 0x237   :  { %4155 = vmatprep.subr.bf16.mxu1 %v24016_v24  ;;  %v24070_v24 = vld [vmem:[%s34453_s3 + $0x80c] ss:$16 sps:$4 sm:$0xff]  }
 0x239   :  { %4034 = vmatpush1.bf16.msra.mxu0 %v24011_v25  ;;  %v24065_v25 = vld [vmem:[%s34453_s3 + $0x800] ss:$16 sps:$4 sm:$0xff]  }
 0x23a   :  { %4156 = vmatpush1.bf16.msra.mxu1 %v24014_v20  ;;  %4035 = vmatprep.subr.bf16.mxu0 %v24019_v4  ;;  %v24068_v20 = vld [vmem:[%s34453_s3 + $0x808] ss:$16 sps:$4 sm:$0xff]   ;;  %v24073_v4 = vld [vmem:[%s34453_s3 + $0x824] ss:$16 sps:$4 sm:$0xff]  }
 0x23b   :  { %4157 = vmatprep.subr.bf16.mxu1 %v24022_v41  ;;  %v24076_v41 = vld [vmem:[%s34453_s3 + $0x82c] ss:$16 sps:$4 sm:$0xff]  }
 0x23d   :  { %4036 = vmatpush1.bf16.msra.mxu0 %v24017_v42  ;;  %v24071_v42 = vld [vmem:[%s34453_s3 + $0x820] ss:$16 sps:$4 sm:$0xff]  }
 0x23e   :  { %4158 = vmatpush1.bf16.msra.mxu1 %v24020_v43  ;;  %4037 = vmatprep.subr.bf16.mxu0 %v24025_v45  ;;  %v24074_v43 = vld [vmem:[%s34453_s3 + $0x828] ss:$16 sps:$4 sm:$0xff]   ;;  %v24079_v45 = vld [vmem:[%s34453_s3 + $0x844] ss:$16 sps:$4 sm:$0xff]  }
 0x23f   :  { %4159 = vmatprep.subr.bf16.mxu1 %v24028_v48  ;;  %v2006_v48 = vld [vmem:[#allocation3 + $0x48] sm:$0x33] }
 0x241   :  { %4038 = vmatpush1.bf16.msra.mxu0 %v24023_v58  ;;  %v24077_v58 = vld [vmem:[%s34453_s3 + $0x840] ss:$16 sps:$4 sm:$0xff]  }
 0x242   :  { %4160 = vmatpush1.bf16.msra.mxu1 %v24026_v47  ;;  %4039 = vmatprep.subr.bf16.mxu0 %v24031_v5  ;;  %v24080_v47 = vld [vmem:[%s34453_s3 + $0x848] ss:$16 sps:$4 sm:$0xff]   ;;  %v19596_v5 = vcombine.high %v2006_v48, %v2006_v48 }
 0x243   :  { %4161 = vmatprep.subr.bf16.mxu1 %v24034_v49  ;;  %v24086_v49 = vld [vmem:[%s34453_s3 + $0x864] ss:$16 sps:$4 sm:$0xff]  }
 0x245   :  { %4040 = vmatpush1.bf16.msra.mxu0 %v24029_v17  ;;  %v24089_v17 = vld [vmem:[%s34453_s3 + $0x86c] ss:$16 sps:$4 sm:$0xff]  }
 0x246   :  { %4162 = vmatpush1.bf16.msra.mxu1 %v24032_v50  ;;  %4041 = vmatprep.subr.bf16.mxu0 %v24037_v28  ;;  %v24084_v50 = vld [vmem:[%s34453_s3 + $0x860] ss:$16 sps:$4 sm:$0xff]   ;;  %v24087_v28 = vld [vmem:[%s34453_s3 + $0x868] ss:$16 sps:$4 sm:$0xff]  }
 0x247   :  { %4163 = vmatprep.subr.bf16.mxu1 %v24040_v52  ;;  %v24093_v52 = vld [vmem:[%s34453_s3 + $0x884] ss:$16 sps:$4 sm:$0xff]  }
 0x249   :  { %4042 = vmatpush1.bf16.msra.mxu0 %v24035_v56  ;;  %v24096_v56 = vld [vmem:[%s34453_s3 + $0x88c] ss:$16 sps:$4 sm:$0xff]  }
 0x24a   :  { %4164 = vmatpush1.bf16.msra.mxu1 %v24038_v60  ;;  %4043 = vmatprep.subr.bf16.mxu0 %v24043_v61  ;;  %v4347_v60 = vrot.slane %v27524_v29, 1  ;;  %v19595_v61 = vcombine.low %v2006_v48, %v2006_v48 }
 0x24b   :  { %4165 = vmatprep.subr.bf16.mxu1 %v24046_v62  ;;  %v24091_v62 = vld [vmem:[%s34453_s3 + $0x880] ss:$16 sps:$4 sm:$0xff]  }
 0x24d   :  { %4044 = vmatpush1.bf16.msra.mxu0 %v24041_v18  ;;  %v4346_v18 = vrot.slane %v27613_v31, 1  ;;  %v24102_v31 = vld [vmem:[%s34453_s3 + $0x8ac] ss:$16 sps:$4 sm:$0xff]  }
 0x24e   :  { %4166 = vmatpush1.bf16.msra.mxu1 %v24044_v7  ;;  %4045 = vmatprep.subr.bf16.mxu0 %v24049_v9  ;;  %v24094_v7 = vld [vmem:[%s34453_s3 + $0x888] ss:$16 sps:$4 sm:$0xff]   ;;  %v24099_v9 = vld [vmem:[%s34453_s3 + $0x8a4] ss:$16 sps:$4 sm:$0xff]  }
 0x24f   :  { %4167 = vmatprep.subr.bf16.mxu1 %v24052_v22  ;;  %v4348_v22 = vsel %vm810_vm7, %v4346_v18, %v4347_v60  ;;  %v24133_v18 = vld [vmem:[%s34453_s3 + $0x960] ss:$16 sps:$4 sm:$0xff]  }
 0x251   :  { %4046 = vmatpush1.bf16.msra.mxu0 %v24047_v39  ;;  %v24097_v39 = vld [vmem:[%s34453_s3 + $0x8a0] ss:$16 sps:$4 sm:$0xff]  }
 0x252   :  { %4168 = vmatpush1.bf16.msra.mxu1 %v24050_v2  ;;  %4047 = vmatprep.subr.bf16.mxu0 %v24055_v26  ;;  %v24100_v2 = vld [vmem:[%s34453_s3 + $0x8a8] ss:$16 sps:$4 sm:$0xff]   ;;  %v24105_v26 = vld [vmem:[%s34453_s3 + $0x8c4] ss:$16 sps:$4 sm:$0xff]  }
 0x253   :  { %4169 = vmatprep.subr.bf16.mxu1 %v24058_v27  ;;  %v24108_v27 = vld [vmem:[%s34453_s3 + $0x8cc] ss:$16 sps:$4 sm:$0xff]  }
 0x255   :  { %4048 = vmatpush1.bf16.msra.mxu0 %v24053_v15  ;;  %v24103_v15 = vld [vmem:[%s34453_s3 + $0x8c0] ss:$16 sps:$4 sm:$0xff]  }
 0x256   :  { %4170 = vmatpush1.bf16.msra.mxu1 %v24056_v38  ;;  %4049 = vmatprep.subr.bf16.mxu0 %v24061_v10  ;;  %v24106_v38 = vld [vmem:[%s34453_s3 + $0x8c8] ss:$16 sps:$4 sm:$0xff]   ;;  %v24111_v10 = vld [vmem:[%s34453_s3 + $0x8e4] ss:$16 sps:$4 sm:$0xff]  }
 0x257   :  { %4171 = vmatprep.subr.bf16.mxu1 %v24064_v51  ;;  %v24114_v51 = vld [vmem:[%s34453_s3 + $0x8ec] ss:$16 sps:$4 sm:$0xff]  }
 0x259   :  { %4050 = vmatpush1.bf16.msra.mxu0 %v24059_v23  ;;  %v24109_v23 = vld [vmem:[%s34453_s3 + $0x8e0] ss:$16 sps:$4 sm:$0xff]  }
 0x25a   :  { %4172 = vmatpush1.bf16.msra.mxu1 %v24062_v8  ;;  %5015 = vmatprep.subr.bf16.mxu0 %v24067_v16  ;;  %v24112_v8 = vld [vmem:[%s34453_s3 + $0x8e8] ss:$16 sps:$4 sm:$0xff]   ;;  %v24117_v16 = vld [vmem:[%s34453_s3 + $0x904] ss:$16 sps:$4 sm:$0xff]  }
 0x25b   :  { %5137 = vmatprep.subr.bf16.mxu1 %v24070_v24  ;;  %v24120_v24 = vld [vmem:[%s34453_s3 + $0x90c] ss:$16 sps:$4 sm:$0xff]  }
 0x25c   :  { %4052 = vmatmul.mubr.bf16.vlgmr.msra.gmra.mrb[28].mxu0 %v27804_v55 }
 0x25d   :  { %4174 = vmatmul.mubr.bf16.vlgmr.msra.gmra.mrb[28].mxu1 %v27804_v55  ;;  %4061 = vmatprep.mubr.bf16.mxu0 %v27587_v13  ;;  %v24082_v55 = vld [vmem:[%s34453_s3 + $0x84c] ss:$16 sps:$4 sm:$0xff]  }
 0x25e   :  { %4183 = vmatprep.mubr.bf16.mxu1 %v27587_v13  ;;  %5016 = vmatpush1.bf16.msra.mxu0 %v24065_v25  ;;  %v24115_v25 = vld [vmem:[%s34453_s3 + $0x900] ss:$16 sps:$4 sm:$0xff]  }
 0x25f   :  { %5138 = vmatpush1.bf16.msra.mxu1 %v24068_v20  ;;  %5017 = vmatprep.subr.bf16.mxu0 %v24073_v4  ;;  %v24118_v20 = vld [vmem:[%s34453_s3 + $0x908] ss:$16 sps:$4 sm:$0xff]   ;;  %v24123_v4 = vld [vmem:[%s34453_s3 + $0x924] ss:$16 sps:$4 sm:$0xff]  }
 0x260   :  { %5139 = vmatprep.subr.bf16.mxu1 %v24076_v41  ;;  %v24126_v41 = vld [vmem:[%s34453_s3 + $0x92c] ss:$16 sps:$4 sm:$0xff]  }
 0x262   :  { %5018 = vmatpush1.bf16.msra.mxu0 %v24071_v42  ;;  %v24121_v42 = vld [vmem:[%s34453_s3 + $0x920] ss:$16 sps:$4 sm:$0xff]  }
 0x263   :  { %5140 = vmatpush1.bf16.msra.mxu1 %v24074_v43  ;;  %5019 = vmatprep.subr.bf16.mxu0 %v24079_v45  ;;  %v24124_v43 = vld [vmem:[%s34453_s3 + $0x928] ss:$16 sps:$4 sm:$0xff]   ;;  %v24129_v45 = vld [vmem:[%s34453_s3 + $0x944] ss:$16 sps:$4 sm:$0xff]  }
 0x264   :  { %4062 = vmatmul.mubr.bf16.gmra.mrb[32].mxu0 %v27642_v57  ;;  %5141 = vmatprep.subr.bf16.mxu1 %v24082_v55 }
 0x265   :  { %4184 = vmatmul.mubr.bf16.gmra.mrb[32].mxu1 %v27642_v57  ;;  %4071 = vmatprep.mubr.bf16.mxu0 %v19596_v5 }
 0x266   :  { %4193 = vmatprep.mubr.bf16.mxu1 %v19596_v5  ;;  %5020 = vmatpush1.bf16.msra.mxu0 %v24077_v58  ;;  %v24132_v58 = vld [vmem:[%s34453_s3 + $0x94c] ss:$16 sps:$4 sm:$0xff]  }
 0x267   :  { %5142 = vmatpush1.bf16.msra.mxu1 %v24080_v47  ;;  %5021 = vmatprep.subr.bf16.mxu0 %v24086_v49 }
 0x268   :  { %5143 = vmatprep.subr.bf16.mxu1 %v24089_v17 }
 0x26a   :  { %5022 = vmatpush1.bf16.msra.mxu0 %v24084_v50  ;;  %v24127_v50 = vld [vmem:[%s34453_s3 + $0x940] ss:$16 sps:$4 sm:$0xff]  }
 0x26b   :  { %5144 = vmatpush1.bf16.msra.mxu1 %v24087_v28  ;;  %5023 = vmatprep.subr.bf16.mxu0 %v24093_v52 }
 0x26c   :  { %4072 = vmatmul.mubr.bf16.gmra.mrb[48].mxu0 %v19595_v61  ;;  %5145 = vmatprep.subr.bf16.mxu1 %v24096_v56  ;;  %v24130_v56 = vld [vmem:[%s34453_s3 + $0x948] ss:$16 sps:$4 sm:$0xff]  }
 0x26d   :  { %4194 = vmatmul.mubr.bf16.gmra.mrb[48].mxu1 %v19595_v61  ;;  %5047 = vmatprep.mubr.bf16.mxu0 %v4348_v22  ;;  %v24135_v61 = vld [vmem:[%s34453_s3 + $0x964] ss:$16 sps:$4 sm:$0xff]  }
 0x26e   :  { %5024 = vmatpush1.bf16.msra.mxu0 %v24091_v62  ;;  %5169 = vmatprep.mubr.bf16.mxu1 %v4348_v22  ;;  %v24138_v62 = vld [vmem:[%s34453_s3 + $0x96c] ss:$16 sps:$4 sm:$0xff]  }
 0x26f   :  { %5146 = vmatpush1.bf16.msra.mxu1 %v24094_v7  ;;  %5025 = vmatprep.subr.bf16.mxu0 %v24099_v9  ;;  %v24136_v7 = vld [vmem:[%s34453_s3 + $0x968] ss:$16 sps:$4 sm:$0xff]   ;;  %v24141_v9 = vld [vmem:[%s34453_s3 + $0x984] ss:$16 sps:$4 sm:$0xff]   ;;  %v24144_v22 = vld [vmem:[%s34453_s3 + $0x98c] ss:$16 sps:$4 sm:$0xff]  }
 0x270   :  { %5147 = vmatprep.subr.bf16.mxu1 %v24102_v31  ;;  %v24139_v31 = vld [vmem:[%s34453_s3 + $0x980] ss:$16 sps:$4 sm:$0xff]  }
 0x272   :  { %5026 = vmatpush1.bf16.msra.mxu0 %v24097_v39  ;;  %v24142_v39 = vld [vmem:[%s34453_s3 + $0x988] ss:$16 sps:$4 sm:$0xff]  }
 0x273   :  { %5148 = vmatpush1.bf16.msra.mxu1 %v24100_v2  ;;  %5027 = vmatprep.subr.bf16.mxu0 %v24105_v26  ;;  %v24147_v2 = vld [vmem:[%s34453_s3 + $0x9a4] ss:$16 sps:$4 sm:$0xff]   ;;  %v24150_v26 = vld [vmem:[%s34453_s3 + $0x9ac] ss:$16 sps:$4 sm:$0xff]  }
 0x274   :  { %5149 = vmatprep.subr.bf16.mxu1 %v24108_v27  ;;  %v24145_v27 = vld [vmem:[%s34453_s3 + $0x9a0] ss:$16 sps:$4 sm:$0xff]  }
 0x276   :  { %5028 = vmatpush1.bf16.msra.mxu0 %v24103_v15  ;;  %v24148_v15 = vld [vmem:[%s34453_s3 + $0x9a8] ss:$16 sps:$4 sm:$0xff]  }
 0x277   :  { %5150 = vmatpush1.bf16.msra.mxu1 %v24106_v38  ;;  %5029 = vmatprep.subr.bf16.mxu0 %v24111_v10  ;;  %v24153_v38 = vld [vmem:[%s34453_s3 + $0x9c4] ss:$16 sps:$4 sm:$0xff]   ;;  %v24156_v10 = vld [vmem:[%s34453_s3 + $0x9cc] ss:$16 sps:$4 sm:$0xff]  }
 0x278   :  { %5151 = vmatprep.subr.bf16.mxu1 %v24114_v51  ;;  %v24151_v51 = vld [vmem:[%s34453_s3 + $0x9c0] ss:$16 sps:$4 sm:$0xff]  }
 0x27a   :  { %5030 = vmatpush1.bf16.msra.mxu0 %v24109_v23  ;;  %v24154_v23 = vld [vmem:[%s34453_s3 + $0x9c8] ss:$16 sps:$4 sm:$0xff]  }
 0x27b   :  { %5152 = vmatpush1.bf16.msra.mxu1 %v24112_v8  ;;  %5031 = vmatprep.subr.bf16.mxu0 %v24117_v16  ;;  %v24159_v8 = vld [vmem:[%s34453_s3 + $0x9e4] ss:$16 sps:$4 sm:$0xff]   ;;  %v24162_v16 = vld [vmem:[%s34453_s3 + $0x9ec] ss:$16 sps:$4 sm:$0xff]  }
 0x27c   :  { %5153 = vmatprep.subr.bf16.mxu1 %v24120_v24  ;;  %v24157_v24 = vld [vmem:[%s34453_s3 + $0x9e0] ss:$16 sps:$4 sm:$0xff]  }
 0x27e   :  { %5032 = vmatpush1.bf16.msra.mxu0 %v24115_v25  ;;  %v24160_v25 = vld [vmem:[%s34453_s3 + $0x9e8] ss:$16 sps:$4 sm:$0xff]  }
 0x27f   :  { %5154 = vmatpush1.bf16.msra.mxu1 %v24118_v20  ;;  %5033 = vmatprep.subr.bf16.mxu0 %v24123_v4  ;;  %v24165_v20 = vld [vmem:[%s34453_s3 + $0xa04] ss:$16 sps:$4 sm:$0xff]   ;;  %v4344_v4 = vrot.slane %v27526_v40, 1 }
 0x280   :  { %v28372_v55 = vpop.f32.mrb[36].mxu0  ;;  %v28374_v48 = vpop.f32.mrb[36].mxu1  ;;  %5155 = vmatprep.subr.bf16.mxu1 %v24126_v41  ;;  %v24168_v41 = vld [vmem:[%s34453_s3 + $0xa0c] ss:$16 sps:$4 sm:$0xff]  }
 0x281   :  { %v28379_v47 = vpop.f32.mrb[37].mxu0  ;;  %v28381_v5 = vpop.f32.mrb[37].mxu1 }
 0x282   :  { %5034 = vmatpush1.bf16.msra.mxu0 %v24121_v42  ;;  %v3110_v49 = vpop.f32.mrb[38].mxu0  ;;  %v3232_v17 = vpop.f32.mrb[38].mxu1  ;;  %v4357_v42 = vrot.slane %v27568_v63, 1  ;;  %v24171_v63 = vld [vmem:[%s34453_s3 + $0xa24] ss:$16 sps:$4 sm:$0xff]  }
 0x283   :  { %5156 = vmatpush1.bf16.msra.mxu1 %v24124_v43  ;;  %v3111_v28 = vpop.f32.mrb[39].mxu0  ;;  %v3233_v52 = vpop.f32.mrb[39].mxu1  ;;  %5035 = vmatprep.subr.bf16.mxu0 %v24129_v45  ;;  %v4343_v43 = vrot.slane %v27622_v44, 1  ;;  %v24163_v45 = vld [vmem:[%s34453_s3 + $0xa00] ss:$16 sps:$4 sm:$0xff]  }
 0x284   :  { %5157 = vmatprep.subr.bf16.mxu1 %v24132_v58  ;;  %v24166_v49 = vld [vmem:[%s34453_s3 + $0xa08] ss:$16 sps:$4 sm:$0xff]   ;;  %v4358_v44 = vsel %vm810_vm7, %v4347_v60, %v4357_v42  ;;  %v24174_v17 = vld [vmem:[%s34453_s3 + $0xa2c] ss:$16 sps:$4 sm:$0xff]   ;;  %v4355_v60 = vrot.slane %v27570_v0, 1 }
 0x285   :  { %v4345_v58 = vsel %vm810_vm7, %v4343_v43, %v4344_v4  ;;  %v24172_v28 = vld [vmem:[%s34453_s3 + $0xa28] ss:$16 sps:$4 sm:$0xff]   ;;  %v24177_v52 = vld [vmem:[%s34453_s3 + $0xa44] ss:$16 sps:$4 sm:$0xff]  }
 0x286   :  { %5036 = vmatpush1.bf16.msra.mxu0 %v24127_v50  ;;  %v24169_v50 = vld [vmem:[%s34453_s3 + $0xa20] ss:$16 sps:$4 sm:$0xff]   ;;  %v24178_v0 = vld [vmem:[%s34453_s3 + $0xa48] ss:$16 sps:$4 sm:$0xff]   ;;  %v24213_v43 = vld [vmem:[%s34453_s3 + $0xb04] ss:$16 sps:$4 sm:$0xff]  }
 0x287   :  { %5158 = vmatpush1.bf16.msra.mxu1 %v24130_v56  ;;  %5037 = vmatprep.subr.bf16.mxu0 %v24135_v61  ;;  %v24180_v56 = vld [vmem:[%s34453_s3 + $0xa4c] ss:$16 sps:$4 sm:$0xff]   ;;  %v24175_v61 = vld [vmem:[%s34453_s3 + $0xa40] ss:$16 sps:$4 sm:$0xff]  }
 0x288   :  { %5159 = vmatprep.subr.bf16.mxu1 %v24138_v62  ;;  %v4356_v62 = vsel %vm810_vm7, %v4344_v4, %v4355_v60  ;;  %v24210_v4 = vld [vmem:[%s34453_s3 + $0xaec] ss:$16 sps:$4 sm:$0xff]  }
 0x28a   :  { %5038 = vmatpush1.bf16.msra.mxu0 %v24133_v18  ;;  %v24183_v18 = vld [vmem:[%s34453_s3 + $0xa64] ss:$16 sps:$4 sm:$0xff]  }
 0x28b   :  { %5160 = vmatpush1.bf16.msra.mxu1 %v24136_v7  ;;  %5039 = vmatprep.subr.bf16.mxu0 %v24141_v9  ;;  %v24186_v7 = vld [vmem:[%s34453_s3 + $0xa6c] ss:$16 sps:$4 sm:$0xff]   ;;  %v24181_v9 = vld [vmem:[%s34453_s3 + $0xa60] ss:$16 sps:$4 sm:$0xff]  }
 0x28c   :  { %5161 = vmatprep.subr.bf16.mxu1 %v24144_v22  ;;  %v24184_v22 = vld [vmem:[%s34453_s3 + $0xa68] ss:$16 sps:$4 sm:$0xff]  }
 0x28e   :  { %5040 = vmatpush1.bf16.msra.mxu0 %v24139_v31  ;;  %v24189_v31 = vld [vmem:[%s34453_s3 + $0xa84] ss:$16 sps:$4 sm:$0xff]  }
 0x28f   :  { %5162 = vmatpush1.bf16.msra.mxu1 %v24142_v39  ;;  %5041 = vmatprep.subr.bf16.mxu0 %v24147_v2  ;;  %v24192_v39 = vld [vmem:[%s34453_s3 + $0xa8c] ss:$16 sps:$4 sm:$0xff]   ;;  %v4353_v2 = vrot.slane %v27587_v13, 1 }
 0x290   :  { %5163 = vmatprep.subr.bf16.mxu1 %v24150_v26  ;;  %v24187_v26 = vld [vmem:[%s34453_s3 + $0xa80] ss:$16 sps:$4 sm:$0xff]  }
 0x292   :  { %5042 = vmatpush1.bf16.msra.mxu0 %v24145_v27  ;;  %v4352_v27 = vrot.slane %v27657_v53, 1  ;;  %v24198_v53 = vld [vmem:[%s34453_s3 + $0xaac] ss:$16 sps:$4 sm:$0xff]  }
 0x293   :  { %5164 = vmatpush1.bf16.msra.mxu1 %v24148_v15  ;;  %5043 = vmatprep.subr.bf16.mxu0 %v24153_v38  ;;  %v24190_v15 = vld [vmem:[%s34453_s3 + $0xa88] ss:$16 sps:$4 sm:$0xff]   ;;  %v24195_v38 = vld [vmem:[%s34453_s3 + $0xaa4] ss:$16 sps:$4 sm:$0xff]  }
 0x294   :  { %5165 = vmatprep.subr.bf16.mxu1 %v24156_v10  ;;  %v4354_v10 = vsel %vm810_vm7, %v4352_v27, %v4353_v2  ;;  %v24229_v27 = vld [vmem:[%s34453_s3 + $0xb60] ss:$16 sps:$4 sm:$0xff]  }
 0x296   :  { %5044 = vmatpush1.bf16.msra.mxu0 %v24151_v51  ;;  %v24193_v51 = vld [vmem:[%s34453_s3 + $0xaa0] ss:$16 sps:$4 sm:$0xff]  }
 0x297   :  { %5166 = vmatpush1.bf16.msra.mxu1 %v24154_v23  ;;  %5045 = vmatprep.subr.bf16.mxu0 %v24159_v8  ;;  %v24196_v23 = vld [vmem:[%s34453_s3 + $0xaa8] ss:$16 sps:$4 sm:$0xff]   ;;  %v24201_v8 = vld [vmem:[%s34453_s3 + $0xac4] ss:$16 sps:$4 sm:$0xff]  }
 0x298   :  { %5167 = vmatprep.subr.bf16.mxu1 %v24162_v16  ;;  %v24204_v16 = vld [vmem:[%s34453_s3 + $0xacc] ss:$16 sps:$4 sm:$0xff]  }
 0x29a   :  { %5046 = vmatpush1.bf16.msra.mxu0 %v24157_v24  ;;  %v24199_v24 = vld [vmem:[%s34453_s3 + $0xac0] ss:$16 sps:$4 sm:$0xff]  }
 0x29b   :  { %5168 = vmatpush1.bf16.msra.mxu1 %v24160_v25  ;;  %5076 = vmatprep.subr.bf16.mxu0 %v24165_v20  ;;  %v24202_v25 = vld [vmem:[%s34453_s3 + $0xac8] ss:$16 sps:$4 sm:$0xff]   ;;  %v24207_v20 = vld [vmem:[%s34453_s3 + $0xae4] ss:$16 sps:$4 sm:$0xff]  }
 0x29c   :  { %5198 = vmatprep.subr.bf16.mxu1 %v24168_v41  ;;  %v24205_v41 = vld [vmem:[%s34453_s3 + $0xae0] ss:$16 sps:$4 sm:$0xff]  }
 0x29d   :  { %5048 = vmatmul.mubr.bf16.vlgmr.msra.gmra.mrb[28].mxu0 %v4345_v58 }
 0x29e   :  { %5170 = vmatmul.mubr.bf16.vlgmr.msra.gmra.mrb[28].mxu1 %v4345_v58  ;;  %5057 = vmatprep.mubr.bf16.mxu0 %v4358_v44  ;;  %v24211_v58 = vld [vmem:[%s34453_s3 + $0xb00] ss:$16 sps:$4 sm:$0xff]  }
 0x29f   :  { %5077 = vmatpush1.bf16.msra.mxu0 %v24163_v45  ;;  %5179 = vmatprep.mubr.bf16.mxu1 %v4358_v44  ;;  %v24216_v45 = vld [vmem:[%s34453_s3 + $0xb0c] ss:$16 sps:$4 sm:$0xff]  }
 0x2a0   :  { %5199 = vmatpush1.bf16.msra.mxu1 %v24166_v49  ;;  %5078 = vmatprep.subr.bf16.mxu0 %v24171_v63  ;;  %v24214_v49 = vld [vmem:[%s34453_s3 + $0xb08] ss:$16 sps:$4 sm:$0xff]   ;;  %v24219_v63 = vld [vmem:[%s34453_s3 + $0xb24] ss:$16 sps:$4 sm:$0xff]   ;;  %v24222_v44 = vld [vmem:[%s34453_s3 + $0xb2c] ss:$16 sps:$4 sm:$0xff]  }
 0x2a1   :  { %5200 = vmatprep.subr.bf16.mxu1 %v24174_v17 }
 0x2a3   :  { %5079 = vmatpush1.bf16.msra.mxu0 %v24169_v50 }
 0x2a4   :  { %5201 = vmatpush1.bf16.msra.mxu1 %v24172_v28  ;;  %5080 = vmatprep.subr.bf16.mxu0 %v24177_v52 }
 0x2a5   :  { %5058 = vmatmul.mubr.bf16.gmra.mrb[32].mxu0 %v4356_v62  ;;  %5202 = vmatprep.subr.bf16.mxu1 %v24180_v56 }
 0x2a6   :  { %5180 = vmatmul.mubr.bf16.gmra.mrb[32].mxu1 %v4356_v62  ;;  %5067 = vmatprep.mubr.bf16.mxu0 %v4357_v42 }
 0x2a7   :  { %5081 = vmatpush1.bf16.msra.mxu0 %v24175_v61  ;;  %5189 = vmatprep.mubr.bf16.mxu1 %v4357_v42  ;;  %v24208_v42 = vld [vmem:[%s34453_s3 + $0xae8] ss:$16 sps:$4 sm:$0xff]   ;;  %v24217_v61 = vld [vmem:[%s34453_s3 + $0xb20] ss:$16 sps:$4 sm:$0xff]  }
 0x2a8   :  { %5203 = vmatpush1.bf16.msra.mxu1 %v24178_v0  ;;  %5082 = vmatprep.subr.bf16.mxu0 %v24183_v18 }
 0x2a9   :  { %5204 = vmatprep.subr.bf16.mxu1 %v24186_v7  ;;  %v24225_v7 = vld [vmem:[%s34453_s3 + $0xb44] ss:$16 sps:$4 sm:$0xff]  }
 0x2ab   :  { %5083 = vmatpush1.bf16.msra.mxu0 %v24181_v9 }
 0x2ac   :  { %5205 = vmatpush1.bf16.msra.mxu1 %v24184_v22  ;;  %5084 = vmatprep.subr.bf16.mxu0 %v24189_v31  ;;  %v24226_v31 = vld [vmem:[%s34453_s3 + $0xb48] ss:$16 sps:$4 sm:$0xff]  }
 0x2ad   :  { %5068 = vmatmul.mubr.bf16.gmra.mrb[52].mxu0 %v4355_v60  ;;  %5206 = vmatprep.subr.bf16.mxu1 %v24192_v39  ;;  %v24231_v39 = vld [vmem:[%s34453_s3 + $0xb64] ss:$16 sps:$4 sm:$0xff]  }
 0x2ae   :  { %5190 = vmatmul.mubr.bf16.gmra.mrb[52].mxu1 %v4355_v60  ;;  %5108 = vmatprep.mubr.bf16.mxu0 %v4354_v10 }
 0x2af   :  { %5085 = vmatpush1.bf16.msra.mxu0 %v24187_v26  ;;  %5230 = vmatprep.mubr.bf16.mxu1 %v4354_v10  ;;  %v24234_v26 = vld [vmem:[%s34453_s3 + $0xb6c] ss:$16 sps:$4 sm:$0xff]  }
 0x2b0   :  { %5207 = vmatpush1.bf16.msra.mxu1 %v24190_v15  ;;  %5086 = vmatprep.subr.bf16.mxu0 %v24195_v38  ;;  %v24232_v15 = vld [vmem:[%s34453_s3 + $0xb68] ss:$16 sps:$4 sm:$0xff]   ;;  %v24237_v38 = vld [vmem:[%s34453_s3 + $0xb84] ss:$16 sps:$4 sm:$0xff]   ;;  %v24240_v10 = vld [vmem:[%s34453_s3 + $0xb8c] ss:$16 sps:$4 sm:$0xff]  }
 0x2b1   :  { %5208 = vmatprep.subr.bf16.mxu1 %v24198_v53  ;;  %v24235_v53 = vld [vmem:[%s34453_s3 + $0xb80] ss:$16 sps:$4 sm:$0xff]  }
 0x2b3   :  { %5087 = vmatpush1.bf16.msra.mxu0 %v24193_v51  ;;  %v24238_v51 = vld [vmem:[%s34453_s3 + $0xb88] ss:$16 sps:$4 sm:$0xff]  }
 0x2b4   :  { %5209 = vmatpush1.bf16.msra.mxu1 %v24196_v23  ;;  %5088 = vmatprep.subr.bf16.mxu0 %v24201_v8  ;;  %v24243_v23 = vld [vmem:[%s34453_s3 + $0xba4] ss:$16 sps:$4 sm:$0xff]   ;;  %v24246_v8 = vld [vmem:[%s34453_s3 + $0xbac] ss:$16 sps:$4 sm:$0xff]  }
 0x2b5   :  { %5210 = vmatprep.subr.bf16.mxu1 %v24204_v16  ;;  %v24241_v16 = vld [vmem:[%s34453_s3 + $0xba0] ss:$16 sps:$4 sm:$0xff]  }
 0x2b7   :  { %5089 = vmatpush1.bf16.msra.mxu0 %v24199_v24  ;;  %v24244_v24 = vld [vmem:[%s34453_s3 + $0xba8] ss:$16 sps:$4 sm:$0xff]  }
 0x2b8   :  { %5211 = vmatpush1.bf16.msra.mxu1 %v24202_v25  ;;  %5090 = vmatprep.subr.bf16.mxu0 %v24207_v20  ;;  %v24249_v25 = vld [vmem:[%s34453_s3 + $0xbc4] ss:$16 sps:$4 sm:$0xff]   ;;  %v24252_v20 = vld [vmem:[%s34453_s3 + $0xbcc] ss:$16 sps:$4 sm:$0xff]  }
 0x2b9   :  { %5212 = vmatprep.subr.bf16.mxu1 %v24210_v4  ;;  %v24247_v4 = vld [vmem:[%s34453_s3 + $0xbc0] ss:$16 sps:$4 sm:$0xff]  }
 0x2bb   :  { %5091 = vmatpush1.bf16.msra.mxu0 %v24205_v41  ;;  %v24250_v41 = vld [vmem:[%s34453_s3 + $0xbc8] ss:$16 sps:$4 sm:$0xff]  }
 0x2bc   :  { %5213 = vmatpush1.bf16.msra.mxu1 %v24208_v42  ;;  %5092 = vmatprep.subr.bf16.mxu0 %v24213_v43  ;;  %v24255_v42 = vld [vmem:[%s34453_s3 + $0xbe4] ss:$16 sps:$4 sm:$0xff]   ;;  %v24258_v43 = vld [vmem:[%s34453_s3 + $0xbec] ss:$16 sps:$4 sm:$0xff]  }
 0x2bd   :  { %5214 = vmatprep.subr.bf16.mxu1 %v24216_v45  ;;  %v24253_v45 = vld [vmem:[%s34453_s3 + $0xbe0] ss:$16 sps:$4 sm:$0xff]  }
 0x2be   :  { %v3167_v17 = vpop.f32.mrb[40].mxu0  ;;  %v3289_v50 = vpop.f32.mrb[40].mxu1 }
 0x2bf   :  { %5093 = vmatpush1.bf16.msra.mxu0 %v24211_v58  ;;  %v28578_v28 = vadd.f32 %v3167_v17, %v28372_v55  ;;  %v28581_v60 = vadd.f32 %v3289_v50, %v28374_v48  ;;  %v3169_v52 = vpop.f32.mrb[41].mxu0  ;;  %v3291_v56 = vpop.f32.mrb[41].mxu1  ;;  %v24220_v55 = vld [vmem:[%s34453_s3 + $0xb28] ss:$16 sps:$4 sm:$0xff]   ;;  %v4361_v17 = vrot.slane %v27818_v59, 1  ;;  %v4349_v50 = vrot.slane %v27665_v12, 1 }
 0x2c0   :  { %5215 = vmatpush1.bf16.msra.mxu1 %v24214_v49  ;;  %v28587_v62 = vadd.f32 %v3169_v52, %v28379_v47  ;;  %v28590_v0 = vadd.f32 %v3291_v56, %v28381_v5  ;;  %5094 = vmatprep.subr.bf16.mxu0 %v24219_v63  ;;  %v3171_v48 = vpop.f32.mrb[42].mxu0  ;;  %v3293_v18 = vpop.f32.mrb[42].mxu1  ;;  %v24228_v47 = vld [vmem:[%s34453_s3 + $0xb4c] ss:$16 sps:$4 sm:$0xff]   ;;  %v24223_v5 = vld [vmem:[%s34453_s3 + $0xb40] ss:$16 sps:$4 sm:$0xff]  }
 0x2c1   :  { %5216 = vmatprep.subr.bf16.mxu1 %v24222_v44  ;;  %v3172_v9 = vpop.f32.mrb[43].mxu0  ;;  %v3294_v22 = vpop.f32.mrb[43].mxu1  ;;  %v24256_v58 = vld [vmem:[%s34453_s3 + $0xbe8] ss:$16 sps:$4 sm:$0xff]   ;;  %v24261_v49 = vld [vmem:[%s34453_s3 + $0xc04] ss:$16 sps:$4 sm:$0xff]   ;;  %v4362_v12 = vsel %vm810_vm7, %v4353_v2, %v4361_v17 }
 0x2c2   :  { %v4350_v63 = vrot.slane %v27642_v57, 1  ;;  %v24264_v44 = vld [vmem:[%s34453_s3 + $0xc0c] ss:$16 sps:$4 sm:$0xff]   ;;  %v24259_v52 = vld [vmem:[%s34453_s3 + $0xc00] ss:$16 sps:$4 sm:$0xff]   ;;  %v4359_v2 = vrot.slane %v27837_v19, 1 }
 0x2c3   :  { %5095 = vmatpush1.bf16.msra.mxu0 %v24217_v61  ;;  %v24262_v61 = vld [vmem:[%s34453_s3 + $0xc08] ss:$16 sps:$4 sm:$0xff]   ;;  %v24267_v59 = vld [vmem:[%s34453_s3 + $0xc24] ss:$16 sps:$4 sm:$0xff]   ;;  %v24265_v48 = vld [vmem:[%s34453_s3 + $0xc20] ss:$16 sps:$4 sm:$0xff]  }
 0x2c4   :  { %5217 = vmatpush1.bf16.msra.mxu1 %v24220_v55  ;;  %5096 = vmatprep.subr.bf16.mxu0 %v24225_v7  ;;  %v4351_v56 = vsel %vm810_vm7, %v4349_v50, %v4350_v63  ;;  %v24270_v55 = vld [vmem:[%s34453_s3 + $0xc2c] ss:$16 sps:$4 sm:$0xff]   ;;  %v24268_v18 = vld [vmem:[%s34453_s3 + $0xc28] ss:$16 sps:$4 sm:$0xff]   ;;  %v24273_v7 = vld [vmem:[%s34453_s3 + $0xc44] ss:$16 sps:$4 sm:$0xff]  }
 0x2c5   :  { %5218 = vmatprep.subr.bf16.mxu1 %v24228_v47  ;;  %v24276_v9 = vld [vmem:[%s34453_s3 + $0xc4c] ss:$16 sps:$4 sm:$0xff]   ;;  %v24271_v22 = vld [vmem:[%s34453_s3 + $0xc40] ss:$16 sps:$4 sm:$0xff]   ;;  %v4360_v47 = vsel %vm810_vm7, %v4350_v63, %v4359_v2  ;;  %v24274_v19 = vld [vmem:[%s34453_s3 + $0xc48] ss:$16 sps:$4 sm:$0xff]  }
 0x2c6   :  { %v24315_v63 = vld [vmem:[%s34453_s3 + $0xd24] ss:$16 sps:$4 sm:$0xff]  }
 0x2c7   :  { %5097 = vmatpush1.bf16.msra.mxu0 %v24223_v5  ;;  %v24279_v5 = vld [vmem:[%s34453_s3 + $0xc64] ss:$16 sps:$4 sm:$0xff]  }
 0x2c8   :  { %5219 = vmatpush1.bf16.msra.mxu1 %v24226_v31  ;;  %5098 = vmatprep.subr.bf16.mxu0 %v24231_v39  ;;  %v24282_v31 = vld [vmem:[%s34453_s3 + $0xc6c] ss:$16 sps:$4 sm:$0xff]   ;;  %v24277_v39 = vld [vmem:[%s34453_s3 + $0xc60] ss:$16 sps:$4 sm:$0xff]  }
 0x2c9   :  { %5220 = vmatprep.subr.bf16.mxu1 %v24234_v26  ;;  %v24280_v26 = vld [vmem:[%s34453_s3 + $0xc68] ss:$16 sps:$4 sm:$0xff]  }
 0x2cb   :  { %5099 = vmatpush1.bf16.msra.mxu0 %v24229_v27  ;;  %v24285_v27 = vld [vmem:[%s34453_s3 + $0xc84] ss:$16 sps:$4 sm:$0xff]  }
 0x2cc   :  { %5221 = vmatpush1.bf16.msra.mxu1 %v24232_v15  ;;  %5100 = vmatprep.subr.bf16.mxu0 %v24237_v38  ;;  %v24288_v15 = vld [vmem:[%s34453_s3 + $0xc8c] ss:$16 sps:$4 sm:$0xff]   ;;  %v24283_v38 = vld [vmem:[%s34453_s3 + $0xc80] ss:$16 sps:$4 sm:$0xff]  }
 0x2cd   :  { %5222 = vmatprep.subr.bf16.mxu1 %v24240_v10  ;;  %v24286_v10 = vld [vmem:[%s34453_s3 + $0xc88] ss:$16 sps:$4 sm:$0xff]  }
 0x2cf   :  { %5101 = vmatpush1.bf16.msra.mxu0 %v24235_v53  ;;  %v24291_v53 = vld [vmem:[%s34453_s3 + $0xca4] ss:$16 sps:$4 sm:$0xff]  }
 0x2d0   :  { %5223 = vmatpush1.bf16.msra.mxu1 %v24238_v51  ;;  %5102 = vmatprep.subr.bf16.mxu0 %v24243_v23  ;;  %v24294_v51 = vld [vmem:[%s34453_s3 + $0xcac] ss:$16 sps:$4 sm:$0xff]   ;;  %v24289_v23 = vld [vmem:[%s34453_s3 + $0xca0] ss:$16 sps:$4 sm:$0xff]  }
 0x2d1   :  { %5224 = vmatprep.subr.bf16.mxu1 %v24246_v8  ;;  %v24292_v8 = vld [vmem:[%s34453_s3 + $0xca8] ss:$16 sps:$4 sm:$0xff]  }
 0x2d3   :  { %5103 = vmatpush1.bf16.msra.mxu0 %v24241_v16  ;;  %v24297_v16 = vld [vmem:[%s34453_s3 + $0xcc4] ss:$16 sps:$4 sm:$0xff]  }
 0x2d4   :  { %5225 = vmatpush1.bf16.msra.mxu1 %v24244_v24  ;;  %5104 = vmatprep.subr.bf16.mxu0 %v24249_v25  ;;  %v24300_v24 = vld [vmem:[%s34453_s3 + $0xccc] ss:$16 sps:$4 sm:$0xff]   ;;  %v24298_v25 = vld [vmem:[%s34453_s3 + $0xcc8] ss:$16 sps:$4 sm:$0xff]  }
 0x2d5   :  { %5226 = vmatprep.subr.bf16.mxu1 %v24252_v20  ;;  %v24303_v20 = vld [vmem:[%s34453_s3 + $0xce4] ss:$16 sps:$4 sm:$0xff]  }
 0x2d7   :  { %5105 = vmatpush1.bf16.msra.mxu0 %v24247_v4  ;;  %v24306_v4 = vld [vmem:[%s34453_s3 + $0xcec] ss:$16 sps:$4 sm:$0xff]  }
 0x2d8   :  { %5227 = vmatpush1.bf16.msra.mxu1 %v24250_v41  ;;  %5106 = vmatprep.subr.bf16.mxu0 %v24255_v42  ;;  %v24301_v41 = vld [vmem:[%s34453_s3 + $0xce0] ss:$16 sps:$4 sm:$0xff]   ;;  %v24304_v42 = vld [vmem:[%s34453_s3 + $0xce8] ss:$16 sps:$4 sm:$0xff]  }
 0x2d9   :  { %5228 = vmatprep.subr.bf16.mxu1 %v24258_v43  ;;  %v24309_v43 = vld [vmem:[%s34453_s3 + $0xd04] ss:$16 sps:$4 sm:$0xff]  }
 0x2db   :  { %5107 = vmatpush1.bf16.msra.mxu0 %v24253_v45  ;;  %v24312_v45 = vld [vmem:[%s34453_s3 + $0xd0c] ss:$16 sps:$4 sm:$0xff]  }
 0x2dc   :  { %5229 = vmatpush1.bf16.msra.mxu1 %v24256_v58  ;;  %6156 = vmatprep.subr.bf16.mxu0 %v24261_v49  ;;  %v24307_v58 = vld [vmem:[%s34453_s3 + $0xd00] ss:$16 sps:$4 sm:$0xff]   ;;  %v24310_v49 = vld [vmem:[%s34453_s3 + $0xd08] ss:$16 sps:$4 sm:$0xff]  }
 0x2dd   :  { %6278 = vmatprep.subr.bf16.mxu1 %v24264_v44  ;;  %v24318_v44 = vld [vmem:[%s34453_s3 + $0xd2c] ss:$16 sps:$4 sm:$0xff]  }
 0x2de   :  { %5109 = vmatmul.mubr.bf16.vlgmr.msra.gmra.mrb[28].mxu0 %v4351_v56 }
 0x2df   :  { %5231 = vmatmul.mubr.bf16.vlgmr.msra.gmra.mrb[28].mxu1 %v4351_v56  ;;  %5118 = vmatprep.mubr.bf16.mxu0 %v4362_v12 }
 0x2e0   :  { %5240 = vmatprep.mubr.bf16.mxu1 %v4362_v12  ;;  %6157 = vmatpush1.bf16.msra.mxu0 %v24259_v52  ;;  %v24313_v12 = vld [vmem:[%s34453_s3 + $0xd20] ss:$16 sps:$4 sm:$0xff]  }
 0x2e1   :  { %6279 = vmatpush1.bf16.msra.mxu1 %v24262_v61  ;;  %6158 = vmatprep.subr.bf16.mxu0 %v24267_v59 }
 0x2e2   :  { %6280 = vmatprep.subr.bf16.mxu1 %v24270_v55 }
 0x2e4   :  { %6159 = vmatpush1.bf16.msra.mxu0 %v24265_v48 }
 0x2e5   :  { %6281 = vmatpush1.bf16.msra.mxu1 %v24268_v18  ;;  %6160 = vmatprep.subr.bf16.mxu0 %v24273_v7 }
 0x2e6   :  { %5119 = vmatmul.mubr.bf16.gmra.mrb[32].mxu0 %v4360_v47  ;;  %6282 = vmatprep.subr.bf16.mxu1 %v24276_v9 }
 0x2e7   :  { %5241 = vmatmul.mubr.bf16.gmra.mrb[32].mxu1 %v4360_v47  ;;  %5128 = vmatprep.mubr.bf16.mxu0 %v4361_v17  ;;  %v24327_v47 = vld [vmem:[%s34453_s3 + $0xd64] ss:$16 sps:$4 sm:$0xff]  }
 0x2e8   :  { %5250 = vmatprep.mubr.bf16.mxu1 %v4361_v17  ;;  %6161 = vmatpush1.bf16.msra.mxu0 %v24271_v22  ;;  %v24322_v22 = vld [vmem:[%s34453_s3 + $0xd48] ss:$16 sps:$4 sm:$0xff]  }
 0x2e9   :  { %6283 = vmatpush1.bf16.msra.mxu1 %v24274_v19  ;;  %6162 = vmatprep.subr.bf16.mxu0 %v24279_v5  ;;  %v24330_v19 = vld [vmem:[%s34453_s3 + $0xd6c] ss:$16 sps:$4 sm:$0xff]   ;;  %v24325_v5 = vld [vmem:[%s34453_s3 + $0xd60] ss:$16 sps:$4 sm:$0xff]  }
 0x2ea   :  { %6284 = vmatprep.subr.bf16.mxu1 %v24282_v31  ;;  %v24328_v31 = vld [vmem:[%s34453_s3 + $0xd68] ss:$16 sps:$4 sm:$0xff]  }
 0x2ec   :  { %6163 = vmatpush1.bf16.msra.mxu0 %v24277_v39  ;;  %v24333_v39 = vld [vmem:[%s34453_s3 + $0xd84] ss:$16 sps:$4 sm:$0xff]  }
 0x2ed   :  { %6285 = vmatpush1.bf16.msra.mxu1 %v24280_v26  ;;  %6164 = vmatprep.subr.bf16.mxu0 %v24285_v27  ;;  %v24336_v26 = vld [vmem:[%s34453_s3 + $0xd8c] ss:$16 sps:$4 sm:$0xff]   ;;  %v24331_v27 = vld [vmem:[%s34453_s3 + $0xd80] ss:$16 sps:$4 sm:$0xff]  }
 0x2ee   :  { %5129 = vmatmul.mubr.bf16.gmra.mrb[56].mxu0 %v4359_v2  ;;  %6286 = vmatprep.subr.bf16.mxu1 %v24288_v15  ;;  %v5279_v15 = vld [vmem:[#allocation3 + $0x40] sm:$0xff] }
 0x2ef   :  { %5251 = vmatmul.mubr.bf16.gmra.mrb[56].mxu1 %v4359_v2  ;;  %6188 = vmatprep.mubr.bf16.mxu0 %v27686_v21  ;;  %v24321_v2 = vld [vmem:[%s34453_s3 + $0xd44] ss:$16 sps:$4 sm:$0xff]  }
 0x2f0   :  { %6165 = vmatpush1.bf16.msra.mxu0 %v24283_v38  ;;  %6310 = vmatprep.mubr.bf16.mxu1 %v27686_v21  ;;  %v24295_v21 = vld [vmem:[%s34453_s3 + $0xcc0] ss:$16 sps:$4 sm:$0xff]   ;;  %v24334_v38 = vld [vmem:[%s34453_s3 + $0xd88] ss:$16 sps:$4 sm:$0xff]  }
 0x2f1   :  { %6287 = vmatpush1.bf16.msra.mxu1 %v24286_v10  ;;  %6166 = vmatprep.subr.bf16.mxu0 %v24291_v53  ;;  %v24339_v10 = vld [vmem:[%s34453_s3 + $0xda4] ss:$16 sps:$4 sm:$0xff]   ;;  %v24342_v53 = vld [vmem:[%s34453_s3 + $0xdac] ss:$16 sps:$4 sm:$0xff]  }
 0x2f2   :  { %6288 = vmatprep.subr.bf16.mxu1 %v24294_v51  ;;  %v28852_v51 = vcombine.high %v5279_v15, %v5279_v15 }
 0x2f4   :  { %6167 = vmatpush1.bf16.msra.mxu0 %v24289_v23  ;;  %v24337_v23 = vld [vmem:[%s34453_s3 + $0xda0] ss:$16 sps:$4 sm:$0xff]  }
 0x2f5   :  { %6289 = vmatpush1.bf16.msra.mxu1 %v24292_v8  ;;  %6168 = vmatprep.subr.bf16.mxu0 %v24297_v16  ;;  %v24340_v8 = vld [vmem:[%s34453_s3 + $0xda8] ss:$16 sps:$4 sm:$0xff]   ;;  %v24345_v16 = vld [vmem:[%s34453_s3 + $0xdc4] ss:$16 sps:$4 sm:$0xff]  }
 0x2f6   :  { %6290 = vmatprep.subr.bf16.mxu1 %v24300_v24  ;;  %v24348_v24 = vld [vmem:[%s34453_s3 + $0xdcc] ss:$16 sps:$4 sm:$0xff]  }
 0x2f8   :  { %6169 = vmatpush1.bf16.msra.mxu0 %v24295_v21  ;;  %v5478_v21 = vshrl.u32 %v28852_v51, 16 }
 0x2f9   :  { %6291 = vmatpush1.bf16.msra.mxu1 %v24298_v25  ;;  %6170 = vmatprep.subr.bf16.mxu0 %v24303_v20  ;;  %v5481_v25 = vshll.u32 %v28852_v51, 16  ;;  %v24343_v20 = vld [vmem:[%s34453_s3 + $0xdc0] ss:$16 sps:$4 sm:$0xff]  }
 0x2fa   :  { %6292 = vmatprep.subr.bf16.mxu1 %v24306_v4  ;;  %v24346_v4 = vld [vmem:[%s34453_s3 + $0xdc8] ss:$16 sps:$4 sm:$0xff]  }
 0x2fc   :  { %6171 = vmatpush1.bf16.msra.mxu0 %v24301_v41  ;;  %v24351_v41 = vld [vmem:[%s34453_s3 + $0xde4] ss:$16 sps:$4 sm:$0xff]  }
 0x2fd   :  { %6293 = vmatpush1.bf16.msra.mxu1 %v24304_v42  ;;  %6172 = vmatprep.subr.bf16.mxu0 %v24309_v43  ;;  %v24354_v42 = vld [vmem:[%s34453_s3 + $0xdec] ss:$16 sps:$4 sm:$0xff]   ;;  %v28880_v43 = vcombine.low %v5279_v15, %v5279_v15 }
 0x2fe   :  { %6294 = vmatprep.subr.bf16.mxu1 %v24312_v45  ;;  %v5480_v45 = vrot.slane %v5478_v21, 1  ;;  %v24386_v15 = vld [vmem:[%s34453_s3 + $0xe8c] ss:$16 sps:$4 sm:$0xff]  }
 0x2ff   :  { %v4012_v17 = vpop.f32.mrb[44].mxu0  ;;  %v4134_v50 = vpop.f32.mrb[44].mxu1  ;;  %v24398_v21 = vld [vmem:[%s34453_s3 + $0xecc] ss:$16 sps:$4 sm:$0xff]  }
 0x300   :  { %6173 = vmatpush1.bf16.msra.mxu0 %v24307_v58  ;;  %v28793_v52 = vadd.f32 %v4012_v17, %v28578_v28  ;;  %v28796_v56 = vadd.f32 %v4134_v50, %v28581_v60  ;;  %v4014_v61 = vpop.f32.mrb[45].mxu0  ;;  %v4136_v59 = vpop.f32.mrb[45].mxu1  ;;  %v24316_v28 = vld [vmem:[%s34453_s3 + $0xd28] ss:$16 sps:$4 sm:$0xff]   ;;  %v5483_v58 = vrot.slane %v5481_v25, 2  ;;  %v5469_v50 = vshrl.u32 %v28880_v43, 16 }
 0x301   :  { %6295 = vmatpush1.bf16.msra.mxu1 %v24310_v49  ;;  %v28802_v55 = vadd.f32 %v4014_v61, %v28587_v62  ;;  %v28805_v48 = vadd.f32 %v4136_v59, %v28590_v0  ;;  %6174 = vmatprep.subr.bf16.mxu0 %v24315_v63  ;;  %v4016_v60 = vpop.f32.mrb[46].mxu0  ;;  %v4138_v18 = vpop.f32.mrb[46].mxu1  ;;  %v24324_v62 = vld [vmem:[%s34453_s3 + $0xd4c] ss:$16 sps:$4 sm:$0xff]   ;;  %v24319_v0 = vld [vmem:[%s34453_s3 + $0xd40] ss:$16 sps:$4 sm:$0xff]  }
 0x302   :  { %6296 = vmatprep.subr.bf16.mxu1 %v24318_v44  ;;  %v4017_v7 = vpop.f32.mrb[47].mxu0  ;;  %v4139_v9 = vpop.f32.mrb[47].mxu1  ;;  %v24349_v49 = vld [vmem:[%s34453_s3 + $0xde0] ss:$16 sps:$4 sm:$0xff]   ;;  %v24352_v63 = vld [vmem:[%s34453_s3 + $0xde8] ss:$16 sps:$4 sm:$0xff]   ;;  %v5484_v59 = vor.u32 %v5483_v58, %v5480_v45 }
 0x303   :  { %v24357_v44 = vld [vmem:[%s34453_s3 + $0xe04] ss:$16 sps:$4 sm:$0xff]   ;;  %v24360_v17 = vld [vmem:[%s34453_s3 + $0xe0c] ss:$16 sps:$4 sm:$0xff]   ;;  %v5472_v61 = vshll.u32 %v28880_v43, 16  ;;  %v5471_v18 = vrot.slane %v5469_v50, 1 }
 0x304   :  { %6175 = vmatpush1.bf16.msra.mxu0 %v24313_v12  ;;  %v24355_v12 = vld [vmem:[%s34453_s3 + $0xe00] ss:$16 sps:$4 sm:$0xff]   ;;  %v24364_v60 = vld [vmem:[%s34453_s3 + $0xe24] ss:$16 sps:$4 sm:$0xff]   ;;  %v5485_v7 = vsel %vm1158_vm8, %v27659_v11, %v5484_v59  ;;  %v24367_v9 = vld [vmem:[%s34453_s3 + $0xe2c] ss:$16 sps:$4 sm:$0xff]  }
 0x305   :  { %6297 = vmatpush1.bf16.msra.mxu1 %v24316_v28  ;;  %6176 = vmatprep.subr.bf16.mxu0 %v24321_v2  ;;  %v24358_v28 = vld [vmem:[%s34453_s3 + $0xe08] ss:$16 sps:$4 sm:$0xff]   ;;  %v5474_v2 = vrot.slane %v5472_v61, 2  ;;  %v24407_v45 = vld [vmem:[%s34453_s3 + $0xf04] ss:$16 sps:$4 sm:$0xff]  }
 0x306   :  { %6298 = vmatprep.subr.bf16.mxu1 %v24324_v62  ;;  %v24362_v62 = vld [vmem:[%s34453_s3 + $0xe20] ss:$16 sps:$4 sm:$0xff]   ;;  %v24396_v25 = vld [vmem:[%s34453_s3 + $0xec8] ss:$16 sps:$4 sm:$0xff]   ;;  %v24410_v58 = vld [vmem:[%s34453_s3 + $0xf0c] ss:$16 sps:$4 sm:$0xff]  }
 0x307   :  { %v5475_v11 = vor.u32 %v5474_v2, %v5471_v18  ;;  %v24416_v50 = vld [vmem:[%s34453_s3 + $0xf2c] ss:$16 sps:$4 sm:$0xff]   ;;  %v24411_v2 = vld [vmem:[%s34453_s3 + $0xf20] ss:$16 sps:$4 sm:$0xff]  }
 0x308   :  { %6177 = vmatpush1.bf16.msra.mxu0 %v24319_v0  ;;  %v24365_v0 = vld [vmem:[%s34453_s3 + $0xe28] ss:$16 sps:$4 sm:$0xff]  }
 0x309   :  { %6299 = vmatpush1.bf16.msra.mxu1 %v24322_v22  ;;  %6178 = vmatprep.subr.bf16.mxu0 %v24327_v47  ;;  %v24371_v22 = vld [vmem:[%s34453_s3 + $0xe44] ss:$16 sps:$4 sm:$0xff]   ;;  %v24369_v47 = vld [vmem:[%s34453_s3 + $0xe40] ss:$16 sps:$4 sm:$0xff]  }
 0x30a   :  { %6300 = vmatprep.subr.bf16.mxu1 %v24330_v19  ;;  %v5476_v19 = vsel %vm1158_vm8, %v27688_v46, %v5475_v11  ;;  %v24375_v46 = vld [vmem:[%s34453_s3 + $0xe60] ss:$16 sps:$4 sm:$0xff]  }
 0x30c   :  { %6179 = vmatpush1.bf16.msra.mxu0 %v24325_v5  ;;  %v24372_v5 = vld [vmem:[%s34453_s3 + $0xe48] ss:$16 sps:$4 sm:$0xff]  }
 0x30d   :  { %6301 = vmatpush1.bf16.msra.mxu1 %v24328_v31  ;;  %6180 = vmatprep.subr.bf16.mxu0 %v24333_v39  ;;  %v24377_v31 = vld [vmem:[%s34453_s3 + $0xe64] ss:$16 sps:$4 sm:$0xff]   ;;  %v24380_v39 = vld [vmem:[%s34453_s3 + $0xe6c] ss:$16 sps:$4 sm:$0xff]  }
 0x30e   :  { %6302 = vmatprep.subr.bf16.mxu1 %v24336_v26  ;;  %v24378_v26 = vld [vmem:[%s34453_s3 + $0xe68] ss:$16 sps:$4 sm:$0xff]  }
 0x310   :  { %6181 = vmatpush1.bf16.msra.mxu0 %v24331_v27  ;;  %v24383_v27 = vld [vmem:[%s34453_s3 + $0xe84] ss:$16 sps:$4 sm:$0xff]  }
 0x311   :  { %6303 = vmatpush1.bf16.msra.mxu1 %v24334_v38  ;;  %6182 = vmatprep.subr.bf16.mxu0 %v24339_v10  ;;  %v24381_v38 = vld [vmem:[%s34453_s3 + $0xe80] ss:$16 sps:$4 sm:$0xff]   ;;  %v24384_v10 = vld [vmem:[%s34453_s3 + $0xe88] ss:$16 sps:$4 sm:$0xff]  }
 0x312   :  { %6304 = vmatprep.subr.bf16.mxu1 %v24342_v53  ;;  %v24389_v53 = vld [vmem:[%s34453_s3 + $0xea4] ss:$16 sps:$4 sm:$0xff]  }
 0x314   :  { %6183 = vmatpush1.bf16.msra.mxu0 %v24337_v23  ;;  %v24392_v23 = vld [vmem:[%s34453_s3 + $0xeac] ss:$16 sps:$4 sm:$0xff]  }
 0x315   :  { %6305 = vmatpush1.bf16.msra.mxu1 %v24340_v8  ;;  %6184 = vmatprep.subr.bf16.mxu0 %v24345_v16  ;;  %v24387_v8 = vld [vmem:[%s34453_s3 + $0xea0] ss:$16 sps:$4 sm:$0xff]   ;;  %v24390_v16 = vld [vmem:[%s34453_s3 + $0xea8] ss:$16 sps:$4 sm:$0xff]  }
 0x316   :  { %6306 = vmatprep.subr.bf16.mxu1 %v24348_v24  ;;  %v24395_v24 = vld [vmem:[%s34453_s3 + $0xec4] ss:$16 sps:$4 sm:$0xff]  }
 0x318   :  { %6185 = vmatpush1.bf16.msra.mxu0 %v24343_v20  ;;  %v24401_v20 = vld [vmem:[%s34453_s3 + $0xee4] ss:$16 sps:$4 sm:$0xff]  }
 0x319   :  { %6307 = vmatpush1.bf16.msra.mxu1 %v24346_v4  ;;  %6186 = vmatprep.subr.bf16.mxu0 %v24351_v41  ;;  %v24404_v4 = vld [vmem:[%s34453_s3 + $0xeec] ss:$16 sps:$4 sm:$0xff]   ;;  %v24399_v41 = vld [vmem:[%s34453_s3 + $0xee0] ss:$16 sps:$4 sm:$0xff]  }
 0x31a   :  { %6308 = vmatprep.subr.bf16.mxu1 %v24354_v42  ;;  %v24402_v42 = vld [vmem:[%s34453_s3 + $0xee8] ss:$16 sps:$4 sm:$0xff]  }
 0x31c   :  { %6187 = vmatpush1.bf16.msra.mxu0 %v24349_v49  ;;  %v24405_v49 = vld [vmem:[%s34453_s3 + $0xf00] ss:$16 sps:$4 sm:$0xff]  }
 0x31d   :  { %6309 = vmatpush1.bf16.msra.mxu1 %v24352_v63  ;;  %6217 = vmatprep.subr.bf16.mxu0 %v24357_v44  ;;  %v24408_v63 = vld [vmem:[%s34453_s3 + $0xf08] ss:$16 sps:$4 sm:$0xff]   ;;  %v24413_v44 = vld [vmem:[%s34453_s3 + $0xf24] ss:$16 sps:$4 sm:$0xff]  }
 0x31e   :  { %6339 = vmatprep.subr.bf16.mxu1 %v24360_v17 }
 0x31f   :  { %6189 = vmatmul.mubr.bf16.vlgmr.msra.gmra.mrb[28].mxu0 %v27714_v54 }
 0x320   :  { %6311 = vmatmul.mubr.bf16.vlgmr.msra.gmra.mrb[28].mxu1 %v27714_v54  ;;  %6198 = vmatprep.mubr.bf16.mxu0 %v5485_v7  ;;  %v24374_v54 = vld [vmem:[%s34453_s3 + $0xe4c] ss:$16 sps:$4 sm:$0xff]  }
 0x321   :  { %6218 = vmatpush1.bf16.msra.mxu0 %v24355_v12  ;;  %6320 = vmatprep.mubr.bf16.mxu1 %v5485_v7 }
 0x322   :  { %6340 = vmatpush1.bf16.msra.mxu1 %v24358_v28  ;;  %6219 = vmatprep.subr.bf16.mxu0 %v24364_v60 }
 0x323   :  { %6341 = vmatprep.subr.bf16.mxu1 %v24367_v9 }
 0x325   :  { %6220 = vmatpush1.bf16.msra.mxu0 %v24362_v62 }
 0x326   :  { %6342 = vmatpush1.bf16.msra.mxu1 %v24365_v0  ;;  %6221 = vmatprep.subr.bf16.mxu0 %v24371_v22  ;;  %v24420_v22 = vld [vmem:[%s34453_s3 + $0xf48] ss:$16 sps:$4 sm:$0xff]  }
 0x327   :  { %6199 = vmatmul.mubr.bf16.gmra.mrb[32].mxu0 %v5476_v19  ;;  %6343 = vmatprep.subr.bf16.mxu1 %v24374_v54  ;;  %v24425_v54 = vld [vmem:[%s34453_s3 + $0xf64] ss:$16 sps:$4 sm:$0xff]  }
 0x328   :  { %6321 = vmatmul.mubr.bf16.gmra.mrb[32].mxu1 %v5476_v19  ;;  %6208 = vmatprep.mubr.bf16.mxu0 %v5484_v59  ;;  %v24423_v19 = vld [vmem:[%s34453_s3 + $0xf60] ss:$16 sps:$4 sm:$0xff]  }
 0x329   :  { %6222 = vmatpush1.bf16.msra.mxu0 %v24369_v47  ;;  %6330 = vmatprep.mubr.bf16.mxu1 %v5484_v59  ;;  %v24428_v47 = vld [vmem:[%s34453_s3 + $0xf6c] ss:$16 sps:$4 sm:$0xff]  }
 0x32a   :  { %6344 = vmatpush1.bf16.msra.mxu1 %v24372_v5  ;;  %6223 = vmatprep.subr.bf16.mxu0 %v24377_v31  ;;  %v24426_v5 = vld [vmem:[%s34453_s3 + $0xf68] ss:$16 sps:$4 sm:$0xff]   ;;  %v24431_v31 = vld [vmem:[%s34453_s3 + $0xf84] ss:$16 sps:$4 sm:$0xff]  }
 0x32b   :  { %6345 = vmatprep.subr.bf16.mxu1 %v24380_v39  ;;  %v24434_v39 = vld [vmem:[%s34453_s3 + $0xf8c] ss:$16 sps:$4 sm:$0xff]  }
 0x32d   :  { %6224 = vmatpush1.bf16.msra.mxu0 %v24375_v46  ;;  %v24429_v46 = vld [vmem:[%s34453_s3 + $0xf80] ss:$16 sps:$4 sm:$0xff]  }
 0x32e   :  { %6346 = vmatpush1.bf16.msra.mxu1 %v24378_v26  ;;  %6225 = vmatprep.subr.bf16.mxu0 %v24383_v27  ;;  %v5280_v26 = vld [vmem:[#allocation3 + $0x48] sm:$0xff]  ;;  %v24432_v27 = vld [vmem:[%s34453_s3 + $0xf88] ss:$16 sps:$4 sm:$0xff]  }
 0x32f   :  { %6209 = vmatmul.mubr.bf16.gmra.mrb[60].mxu0 %v5475_v11  ;;  %6347 = vmatprep.subr.bf16.mxu1 %v24386_v15  ;;  %v24437_v15 = vld [vmem:[%s34453_s3 + $0xfa4] ss:$16 sps:$4 sm:$0xff]  }
 0x330   :  { %6331 = vmatmul.mubr.bf16.gmra.mrb[60].mxu1 %v5475_v11  ;;  %6249 = vmatprep.mubr.bf16.mxu0 %v27736_v6  ;;  %v24422_v11 = vld [vmem:[%s34453_s3 + $0xf4c] ss:$16 sps:$4 sm:$0xff]  }
 0x331   :  { %6226 = vmatpush1.bf16.msra.mxu0 %v24381_v38  ;;  %6371 = vmatprep.mubr.bf16.mxu1 %v27736_v6  ;;  %v24393_v6 = vld [vmem:[%s34453_s3 + $0xec0] ss:$16 sps:$4 sm:$0xff]   ;;  %v24440_v38 = vld [vmem:[%s34453_s3 + $0xfac] ss:$16 sps:$4 sm:$0xff]  }
 0x332   :  { %6348 = vmatpush1.bf16.msra.mxu1 %v24384_v10  ;;  %6227 = vmatprep.subr.bf16.mxu0 %v24389_v53  ;;  %v29072_v10 = vcombine.high %v5280_v26, %v5280_v26  ;;  %v24435_v53 = vld [vmem:[%s34453_s3 + $0xfa0] ss:$16 sps:$4 sm:$0xff]  }
 0x333   :  { %6349 = vmatprep.subr.bf16.mxu1 %v24392_v23  ;;  %v24438_v23 = vld [vmem:[%s34453_s3 + $0xfa8] ss:$16 sps:$4 sm:$0xff]  }
 0x335   :  { %6228 = vmatpush1.bf16.msra.mxu0 %v24387_v8  ;;  %v24443_v8 = vld [vmem:[%s34453_s3 + $0xfc4] ss:$16 sps:$4 sm:$0xff]  }
 0x336   :  { %6350 = vmatpush1.bf16.msra.mxu1 %v24390_v16  ;;  %6229 = vmatprep.subr.bf16.mxu0 %v24395_v24  ;;  %v24446_v16 = vld [vmem:[%s34453_s3 + $0xfcc] ss:$16 sps:$4 sm:$0xff]   ;;  %v5496_v24 = vshrl.u32 %v29072_v10, 16 }
 0x337   :  { %6351 = vmatprep.subr.bf16.mxu1 %v24398_v21  ;;  %v5499_v21 = vshll.u32 %v29072_v10, 16 }
 0x339   :  { %6230 = vmatpush1.bf16.msra.mxu0 %v24393_v6  ;;  %v24441_v6 = vld [vmem:[%s34453_s3 + $0xfc0] ss:$16 sps:$4 sm:$0xff]  }
 0x33a   :  { %6352 = vmatpush1.bf16.msra.mxu1 %v24396_v25  ;;  %6231 = vmatprep.subr.bf16.mxu0 %v24401_v20  ;;  %v24444_v25 = vld [vmem:[%s34453_s3 + $0xfc8] ss:$16 sps:$4 sm:$0xff]   ;;  %v24449_v20 = vld [vmem:[%s34453_s3 + $0xfe4] ss:$16 sps:$4 sm:$0xff]  }
 0x33b   :  { %6353 = vmatprep.subr.bf16.mxu1 %v24404_v4  ;;  %v24452_v4 = vld [vmem:[%s34453_s3 + $0xfec] ss:$16 sps:$4 sm:$0xff]  }
 0x33d   :  { %6232 = vmatpush1.bf16.msra.mxu0 %v24399_v41  ;;  %v29100_v41 = vcombine.low %v5280_v26, %v5280_v26  ;;  %v24484_v26 = vld [vmem:[%s34453_s3 + $0x108c] ss:$16 sps:$4 sm:$0xff]  }
 0x33e   :  { %6354 = vmatpush1.bf16.msra.mxu1 %v24402_v42  ;;  %6233 = vmatprep.subr.bf16.mxu0 %v24407_v45  ;;  %v5498_v42 = vrot.slane %v5496_v24, 1  ;;  %v5501_v45 = vrot.slane %v5499_v21, 2  ;;  %v24485_v24 = vld [vmem:[%s34453_s3 + $0x10a0] ss:$16 sps:$4 sm:$0xff]   ;;  %v24488_v21 = vld [vmem:[%s34453_s3 + $0x10a8] ss:$16 sps:$4 sm:$0xff]  }
 0x33f   :  { %6355 = vmatprep.subr.bf16.mxu1 %v24410_v58  ;;  %v4073_v17 = vpop.f32.mrb[48].mxu0  ;;  %v24447_v58 = vld [vmem:[%s34453_s3 + $0xfe0] ss:$16 sps:$4 sm:$0xff]  }
 0x340   :  { %v29013_v61 = vadd.f32 %v4073_v17, %v28793_v52  ;;  %v4195_v59 = vpop.f32.mrb[48].mxu1  ;;  %v4075_v12 = vpop.f32.mrb[49].mxu0  ;;  %v24414_v52 = vld [vmem:[%s34453_s3 + $0xf28] ss:$16 sps:$4 sm:$0xff]   ;;  %v5487_v17 = vshrl.u32 %v29100_v41, 16 }
 0x341   :  { %6234 = vmatpush1.bf16.msra.mxu0 %v24405_v49  ;;  %v29016_v28 = vadd.f32 %v4195_v59, %v28796_v56  ;;  %v29019_v60 = vadd.f32 %v4075_v12, %v28802_v55  ;;  %v4197_v18 = vpop.f32.mrb[49].mxu1  ;;  %v4077_v7 = vpop.f32.mrb[50].mxu0  ;;  %v24419_v55 = vld [vmem:[%s34453_s3 + $0xf44] ss:$16 sps:$4 sm:$0xff]   ;;  %v24450_v49 = vld [vmem:[%s34453_s3 + $0xfe8] ss:$16 sps:$4 sm:$0xff]   ;;  %v5502_v59 = vor.u32 %v5501_v45, %v5498_v42 }
 0x342   :  { %6356 = vmatpush1.bf16.msra.mxu1 %v24408_v63  ;;  %v29025_v9 = vadd.f32 %v4197_v18, %v28805_v48  ;;  %6235 = vmatprep.subr.bf16.mxu0 %v24413_v44  ;;  %v4199_v56 = vpop.f32.mrb[50].mxu1  ;;  %v4078_v62 = vpop.f32.mrb[51].mxu0  ;;  %v24417_v48 = vld [vmem:[%s34453_s3 + $0xf40] ss:$16 sps:$4 sm:$0xff]   ;;  %v24455_v63 = vld [vmem:[%s34453_s3 + $0x1004] ss:$16 sps:$4 sm:$0xff]  }
 0x343   :  { %6357 = vmatprep.subr.bf16.mxu1 %v24416_v50  ;;  %v4200_v0 = vpop.f32.mrb[51].mxu1  ;;  %v24458_v44 = vld [vmem:[%s34453_s3 + $0x100c] ss:$16 sps:$4 sm:$0xff]   ;;  %v5490_v50 = vshll.u32 %v29100_v41, 16  ;;  %v24453_v12 = vld [vmem:[%s34453_s3 + $0x1000] ss:$16 sps:$4 sm:$0xff]   ;;  %v5503_v56 = vsel %vm1158_vm8, %v27716_v1, %v5502_v59 }
 0x344   :  { %v24456_v18 = vld [vmem:[%s34453_s3 + $0x1008] ss:$16 sps:$4 sm:$0xff]   ;;  %v5489_v7 = vrot.slane %v5487_v17, 1  ;;  %v24465_v62 = vld [vmem:[%s34453_s3 + $0x102c] ss:$16 sps:$4 sm:$0xff]  }
 0x345   :  { %6236 = vmatpush1.bf16.msra.mxu0 %v24411_v2  ;;  %v24462_v2 = vld [vmem:[%s34453_s3 + $0x1024] ss:$16 sps:$4 sm:$0xff]   ;;  %v24463_v0 = vld [vmem:[%s34453_s3 + $0x1028] ss:$16 sps:$4 sm:$0xff]   ;;  %v24502_v45 = vld [vmem:[%s34453_s3 + $0x10ec] ss:$16 sps:$4 sm:$0xff]  }
 0x346   :  { %6358 = vmatpush1.bf16.msra.mxu1 %v24414_v52  ;;  %6237 = vmatprep.subr.bf16.mxu0 %v24419_v55  ;;  %v5492_v52 = vrot.slane %v5490_v50, 2  ;;  %v24460_v55 = vld [vmem:[%s34453_s3 + $0x1020] ss:$16 sps:$4 sm:$0xff]   ;;  %v24499_v42 = vld [vmem:[%s34453_s3 + $0x10e4] ss:$16 sps:$4 sm:$0xff]  }
 0x347   :  { %6359 = vmatprep.subr.bf16.mxu1 %v24422_v11  ;;  %v24469_v11 = vld [vmem:[%s34453_s3 + $0x1044] ss:$16 sps:$4 sm:$0xff]   ;;  %v24503_v17 = vld [vmem:[%s34453_s3 + $0x1100] ss:$16 sps:$4 sm:$0xff]   ;;  %v24506_v50 = vld [vmem:[%s34453_s3 + $0x1108] ss:$16 sps:$4 sm:$0xff]  }
 0x348   :  { %v5493_v1 = vor.u32 %v5492_v52, %v5489_v7 }
 0x349   :  { %6238 = vmatpush1.bf16.msra.mxu0 %v24417_v48  ;;  %v24467_v48 = vld [vmem:[%s34453_s3 + $0x1040] ss:$16 sps:$4 sm:$0xff]  }
 0x34a   :  { %6360 = vmatpush1.bf16.msra.mxu1 %v24420_v22  ;;  %6239 = vmatprep.subr.bf16.mxu0 %v24425_v54  ;;  %v5494_v22 = vsel %vm1158_vm8, %v27726_v3, %v5493_v1  ;;  %v24470_v54 = vld [vmem:[%s34453_s3 + $0x1048] ss:$16 sps:$4 sm:$0xff]   ;;  %v24473_v3 = vld [vmem:[%s34453_s3 + $0x1060] ss:$16 sps:$4 sm:$0xff]  }
 0x34b   :  { %6361 = vmatprep.subr.bf16.mxu1 %v24428_v47  ;;  %v24475_v47 = vld [vmem:[%s34453_s3 + $0x1064] ss:$16 sps:$4 sm:$0xff]  }
 0x34d   :  { %6240 = vmatpush1.bf16.msra.mxu0 %v24423_v19  ;;  %v29155_v19 = vld [vmem:[#allocation3] sm:$0xcc] }
 0x34e   :  { %6362 = vmatpush1.bf16.msra.mxu1 %v24426_v5  ;;  %6241 = vmatprep.subr.bf16.mxu0 %v24431_v31  ;;  %v24478_v5 = vld [vmem:[%s34453_s3 + $0x106c] ss:$16 sps:$4 sm:$0xff]   ;;  %v20374_v31 = vcombine.high %v29155_v19, %v27492_v30 }
 0x34f   :  { %6363 = vmatprep.subr.bf16.mxu1 %v24434_v39  ;;  %v24476_v39 = vld [vmem:[%s34453_s3 + $0x1068] ss:$16 sps:$4 sm:$0xff]  }
 0x351   :  { %6242 = vmatpush1.bf16.msra.mxu0 %v24429_v46  ;;  %v24481_v46 = vld [vmem:[%s34453_s3 + $0x1084] ss:$16 sps:$4 sm:$0xff]  }
 0x352   :  { %6364 = vmatpush1.bf16.msra.mxu1 %v24432_v27  ;;  %6243 = vmatprep.subr.bf16.mxu0 %v24437_v15  ;;  %v6565_v27 = vrot.slane %v27524_v29, 2  ;;  %v24479_v15 = vld [vmem:[%s34453_s3 + $0x1080] ss:$16 sps:$4 sm:$0xff]   ;;  %v24560_v29 = vld [vmem:[%s34453_s3 + $0x1228] ss:$16 sps:$4 sm:$0xff]  }
 0x353   :  { %6365 = vmatprep.subr.bf16.mxu1 %v24440_v38  ;;  %v6564_v38 = vrot.slane %v20374_v31, 2  ;;  %v24524_v31 = vld [vmem:[%s34453_s3 + $0x1168] ss:$16 sps:$4 sm:$0xff]  }
 0x355   :  { %6244 = vmatpush1.bf16.msra.mxu0 %v24435_v53  ;;  %v24482_v53 = vld [vmem:[%s34453_s3 + $0x1088] ss:$16 sps:$4 sm:$0xff]  }
 0x356   :  { %6366 = vmatpush1.bf16.msra.mxu1 %v24438_v23  ;;  %6245 = vmatprep.subr.bf16.mxu0 %v24443_v8  ;;  %v24487_v23 = vld [vmem:[%s34453_s3 + $0x10a4] ss:$16 sps:$4 sm:$0xff]   ;;  %v6566_v8 = vsel %vm1522_vm9, %v6564_v38, %v6565_v27 }
 0x357   :  { %6367 = vmatprep.subr.bf16.mxu1 %v24446_v16  ;;  %v24490_v16 = vld [vmem:[%s34453_s3 + $0x10ac] ss:$16 sps:$4 sm:$0xff]   ;;  %v24535_v38 = vld [vmem:[%s34453_s3 + $0x11a4] ss:$16 sps:$4 sm:$0xff]  }
 0x359   :  { %6246 = vmatpush1.bf16.msra.mxu0 %v24441_v6  ;;  %v24493_v6 = vld [vmem:[%s34453_s3 + $0x10c4] ss:$16 sps:$4 sm:$0xff]  }
 0x35a   :  { %6368 = vmatpush1.bf16.msra.mxu1 %v24444_v25  ;;  %6247 = vmatprep.subr.bf16.mxu0 %v24449_v20  ;;  %v24496_v25 = vld [vmem:[%s34453_s3 + $0x10cc] ss:$16 sps:$4 sm:$0xff]   ;;  %v24491_v20 = vld [vmem:[%s34453_s3 + $0x10c0] ss:$16 sps:$4 sm:$0xff]  }
 0x35b   :  { %6369 = vmatprep.subr.bf16.mxu1 %v24452_v4  ;;  %v24494_v4 = vld [vmem:[%s34453_s3 + $0x10c8] ss:$16 sps:$4 sm:$0xff]  }
 0x35d   :  { %6248 = vmatpush1.bf16.msra.mxu0 %v24447_v58  ;;  %v24497_v58 = vld [vmem:[%s34453_s3 + $0x10e0] ss:$16 sps:$4 sm:$0xff]  }
 0x35e   :  { %6370 = vmatpush1.bf16.msra.mxu1 %v24450_v49  ;;  %7233 = vmatprep.subr.bf16.mxu0 %v24455_v63  ;;  %v24500_v49 = vld [vmem:[%s34453_s3 + $0x10e8] ss:$16 sps:$4 sm:$0xff]   ;;  %v24505_v63 = vld [vmem:[%s34453_s3 + $0x1104] ss:$16 sps:$4 sm:$0xff]  }
 0x35f   :  { %7355 = vmatprep.subr.bf16.mxu1 %v24458_v44  ;;  %v24508_v44 = vld [vmem:[%s34453_s3 + $0x110c] ss:$16 sps:$4 sm:$0xff]  }
 0x360   :  { %6250 = vmatmul.mubr.bf16.vlgmr.msra.gmra.mrb[28].mxu0 %v27740_v14 }
 0x361   :  { %6372 = vmatmul.mubr.bf16.vlgmr.msra.gmra.mrb[28].mxu1 %v27740_v14  ;;  %6259 = vmatprep.mubr.bf16.mxu0 %v5503_v56  ;;  %v24472_v14 = vld [vmem:[%s34453_s3 + $0x104c] ss:$16 sps:$4 sm:$0xff]  }
 0x362   :  { %6381 = vmatprep.mubr.bf16.mxu1 %v5503_v56  ;;  %7234 = vmatpush1.bf16.msra.mxu0 %v24453_v12  ;;  %v24509_v56 = vld [vmem:[%s34453_s3 + $0x1120] ss:$16 sps:$4 sm:$0xff]  }
 0x363   :  { %7356 = vmatpush1.bf16.msra.mxu1 %v24456_v18  ;;  %7235 = vmatprep.subr.bf16.mxu0 %v24462_v2  ;;  %v24514_v18 = vld [vmem:[%s34453_s3 + $0x112c] ss:$16 sps:$4 sm:$0xff]  }
 0x364   :  { %7357 = vmatprep.subr.bf16.mxu1 %v24465_v62 }
 0x366   :  { %7236 = vmatpush1.bf16.msra.mxu0 %v24460_v55  ;;  %v24512_v55 = vld [vmem:[%s34453_s3 + $0x1128] ss:$16 sps:$4 sm:$0xff]  }
 0x367   :  { %7358 = vmatpush1.bf16.msra.mxu1 %v24463_v0  ;;  %7237 = vmatprep.subr.bf16.mxu0 %v24469_v11  ;;  %v24517_v11 = vld [vmem:[%s34453_s3 + $0x1144] ss:$16 sps:$4 sm:$0xff]  }
 0x368   :  { %6260 = vmatmul.mubr.bf16.gmra.mrb[32].mxu0 %v5494_v22  ;;  %7359 = vmatprep.subr.bf16.mxu1 %v24472_v14 }
 0x369   :  { %6382 = vmatmul.mubr.bf16.gmra.mrb[32].mxu1 %v5494_v22  ;;  %6269 = vmatprep.mubr.bf16.mxu0 %v5502_v59  ;;  %v24515_v22 = vld [vmem:[%s34453_s3 + $0x1140] ss:$16 sps:$4 sm:$0xff]  }
 0x36a   :  { %6391 = vmatprep.mubr.bf16.mxu1 %v5502_v59  ;;  %7238 = vmatpush1.bf16.msra.mxu0 %v24467_v48  ;;  %v24511_v59 = vld [vmem:[%s34453_s3 + $0x1124] ss:$16 sps:$4 sm:$0xff]   ;;  %v24520_v48 = vld [vmem:[%s34453_s3 + $0x114c] ss:$16 sps:$4 sm:$0xff]  }
 0x36b   :  { %7360 = vmatpush1.bf16.msra.mxu1 %v24470_v54  ;;  %7239 = vmatprep.subr.bf16.mxu0 %v24475_v47  ;;  %v24518_v54 = vld [vmem:[%s34453_s3 + $0x1148] ss:$16 sps:$4 sm:$0xff]   ;;  %v24523_v47 = vld [vmem:[%s34453_s3 + $0x1164] ss:$16 sps:$4 sm:$0xff]  }
 0x36c   :  { %7361 = vmatprep.subr.bf16.mxu1 %v24478_v5  ;;  %v24526_v5 = vld [vmem:[%s34453_s3 + $0x116c] ss:$16 sps:$4 sm:$0xff]  }
 0x36e   :  { %7240 = vmatpush1.bf16.msra.mxu0 %v24473_v3  ;;  %v24521_v3 = vld [vmem:[%s34453_s3 + $0x1160] ss:$16 sps:$4 sm:$0xff]  }
 0x36f   :  { %7362 = vmatpush1.bf16.msra.mxu1 %v24476_v39  ;;  %7241 = vmatprep.subr.bf16.mxu0 %v24481_v46  ;;  %v24529_v39 = vld [vmem:[%s34453_s3 + $0x1184] ss:$16 sps:$4 sm:$0xff]   ;;  %v24532_v46 = vld [vmem:[%s34453_s3 + $0x118c] ss:$16 sps:$4 sm:$0xff]  }
 0x370   :  { %6270 = vmatmul.mubr.bf16.gmra.mrb[64].mxu0 %v5493_v1  ;;  %7363 = vmatprep.subr.bf16.mxu1 %v24484_v26  ;;  %v24527_v26 = vld [vmem:[%s34453_s3 + $0x1180] ss:$16 sps:$4 sm:$0xff]  }
 0x371   :  { %6392 = vmatmul.mubr.bf16.gmra.mrb[64].mxu1 %v5493_v1  ;;  %7265 = vmatprep.mubr.bf16.mxu0 %v6566_v8 }
 0x372   :  { %7242 = vmatpush1.bf16.msra.mxu0 %v24479_v15  ;;  %7387 = vmatprep.mubr.bf16.mxu1 %v6566_v8  ;;  %v24530_v15 = vld [vmem:[%s34453_s3 + $0x1188] ss:$16 sps:$4 sm:$0xff]  }
 0x373   :  { %7364 = vmatpush1.bf16.msra.mxu1 %v24482_v53  ;;  %7243 = vmatprep.subr.bf16.mxu0 %v24487_v23  ;;  %v24538_v53 = vld [vmem:[%s34453_s3 + $0x11ac] ss:$16 sps:$4 sm:$0xff]   ;;  %v24533_v23 = vld [vmem:[%s34453_s3 + $0x11a0] ss:$16 sps:$4 sm:$0xff]   ;;  %v24536_v8 = vld [vmem:[%s34453_s3 + $0x11a8] ss:$16 sps:$4 sm:$0xff]  }
 0x374   :  { %7365 = vmatprep.subr.bf16.mxu1 %v24490_v16  ;;  %v24541_v16 = vld [vmem:[%s34453_s3 + $0x11c4] ss:$16 sps:$4 sm:$0xff]  }
 0x376   :  { %7244 = vmatpush1.bf16.msra.mxu0 %v24485_v24  ;;  %v24544_v24 = vld [vmem:[%s34453_s3 + $0x11cc] ss:$16 sps:$4 sm:$0xff]  }
 0x377   :  { %7366 = vmatpush1.bf16.msra.mxu1 %v24488_v21  ;;  %7245 = vmatprep.subr.bf16.mxu0 %v24493_v6  ;;  %v24539_v21 = vld [vmem:[%s34453_s3 + $0x11c0] ss:$16 sps:$4 sm:$0xff]   ;;  %v24542_v6 = vld [vmem:[%s34453_s3 + $0x11c8] ss:$16 sps:$4 sm:$0xff]  }
 0x378   :  { %7367 = vmatprep.subr.bf16.mxu1 %v24496_v25  ;;  %v24547_v25 = vld [vmem:[%s34453_s3 + $0x11e4] ss:$16 sps:$4 sm:$0xff]  }
 0x37a   :  { %7246 = vmatpush1.bf16.msra.mxu0 %v24491_v20  ;;  %v24550_v20 = vld [vmem:[%s34453_s3 + $0x11ec] ss:$16 sps:$4 sm:$0xff]  }
 0x37b   :  { %7368 = vmatpush1.bf16.msra.mxu1 %v24494_v4  ;;  %7247 = vmatprep.subr.bf16.mxu0 %v24499_v42  ;;  %v24545_v4 = vld [vmem:[%s34453_s3 + $0x11e0] ss:$16 sps:$4 sm:$0xff]   ;;  %v20373_v42 = vcombine.low %v29155_v19, %v27492_v30 }
 0x37c   :  { %7369 = vmatprep.subr.bf16.mxu1 %v24502_v45  ;;  %v24548_v45 = vld [vmem:[%s34453_s3 + $0x11e8] ss:$16 sps:$4 sm:$0xff]   ;;  %v24551_v19 = vld [vmem:[%s34453_s3 + $0x1200] ss:$16 sps:$4 sm:$0xff]  }
 0x37d   :  { %v6561_v30 = vrot.slane %v20373_v42, 2  ;;  %v24601_v42 = vld [vmem:[%s34453_s3 + $0x1304] ss:$16 sps:$4 sm:$0xff]  }
 0x37e   :  { %7248 = vmatpush1.bf16.msra.mxu0 %v24497_v58  ;;  %v24553_v58 = vld [vmem:[%s34453_s3 + $0x1204] ss:$16 sps:$4 sm:$0xff]  }
 0x37f   :  { %7370 = vmatpush1.bf16.msra.mxu1 %v24500_v49  ;;  %7249 = vmatprep.subr.bf16.mxu0 %v24505_v63  ;;  %v6562_v49 = vrot.slane %v27526_v40, 2  ;;  %v24556_v63 = vld [vmem:[%s34453_s3 + $0x120c] ss:$16 sps:$4 sm:$0xff]   ;;  %v24554_v40 = vld [vmem:[%s34453_s3 + $0x1208] ss:$16 sps:$4 sm:$0xff]  }
 0x380   :  { %7371 = vmatprep.subr.bf16.mxu1 %v24508_v44  ;;  %v29235_v12 = vpop.f32.mrb[52].mxu0  ;;  %v6575_v44 = vrot.slane %v28852_v51, 2 }
 0x381   :  { %v29240_v2 = vpop.f32.mrb[52].mxu1  ;;  %v29242_v7 = vpop.f32.mrb[53].mxu0 }
 0x382   :  { %7250 = vmatpush1.bf16.msra.mxu0 %v24503_v17  ;;  %v29244_v52 = vpop.f32.mrb[53].mxu1  ;;  %v5073_v62 = vpop.f32.mrb[54].mxu0  ;;  %v6563_v17 = vsel %vm1522_vm9, %v6561_v30, %v6562_v49  ;;  %v6576_v51 = vsel %vm1522_vm9, %v6565_v27, %v6575_v44  ;;  %v6573_v27 = vrot.slane %v28880_v43, 2  ;;  %v24566_v43 = vld [vmem:[%s34453_s3 + $0x1248] ss:$16 sps:$4 sm:$0xff]  }
 0x383   :  { %7372 = vmatpush1.bf16.msra.mxu1 %v24506_v50  ;;  %7251 = vmatprep.subr.bf16.mxu0 %v24511_v59  ;;  %v5195_v0 = vpop.f32.mrb[54].mxu1  ;;  %v5074_v1 = vpop.f32.mrb[55].mxu0  ;;  %v24559_v50 = vld [vmem:[%s34453_s3 + $0x1224] ss:$16 sps:$4 sm:$0xff]   ;;  %v24562_v59 = vld [vmem:[%s34453_s3 + $0x122c] ss:$16 sps:$4 sm:$0xff]  }
 0x384   :  { %7373 = vmatprep.subr.bf16.mxu1 %v24514_v18  ;;  %v5196_v14 = vpop.f32.mrb[55].mxu1  ;;  %v24557_v18 = vld [vmem:[%s34453_s3 + $0x1220] ss:$16 sps:$4 sm:$0xff]   ;;  %v24568_v62 = vld [vmem:[%s34453_s3 + $0x124c] ss:$16 sps:$4 sm:$0xff]   ;;  %v6574_v0 = vsel %vm1522_vm9, %v6562_v49, %v6573_v27 }
 0x385   :  { %v24571_v1 = vld [vmem:[%s34453_s3 + $0x1264] ss:$16 sps:$4 sm:$0xff]   ;;  %v24574_v14 = vld [vmem:[%s34453_s3 + $0x126c] ss:$16 sps:$4 sm:$0xff]   ;;  %v24602_v49 = vld [vmem:[%s34453_s3 + $0x1308] ss:$16 sps:$4 sm:$0xff]  }
 0x386   :  { %7252 = vmatpush1.bf16.msra.mxu0 %v24509_v56  ;;  %v24565_v56 = vld [vmem:[%s34453_s3 + $0x1244] ss:$16 sps:$4 sm:$0xff]   ;;  %v24610_v30 = vld [vmem:[%s34453_s3 + $0x132c] ss:$16 sps:$4 sm:$0xff]  }
 0x387   :  { %7374 = vmatpush1.bf16.msra.mxu1 %v24512_v55  ;;  %7253 = vmatprep.subr.bf16.mxu0 %v24517_v11  ;;  %v24563_v55 = vld [vmem:[%s34453_s3 + $0x1240] ss:$16 sps:$4 sm:$0xff]  }
 0x388   :  { %7375 = vmatprep.subr.bf16.mxu1 %v24520_v48  ;;  %v29373_v11 = vld [vmem:[#allocation3 + $0x8] sm:$0xcc] }
 0x389   :  { %v24569_v48 = vld [vmem:[%s34453_s3 + $0x1260] ss:$16 sps:$4 sm:$0xff]  }
 0x38a   :  { %7254 = vmatpush1.bf16.msra.mxu0 %v24515_v22  ;;  %v20376_v22 = vcombine.high %v29373_v11, %v27496_v34 }
 0x38b   :  { %7376 = vmatpush1.bf16.msra.mxu1 %v24518_v54  ;;  %7255 = vmatprep.subr.bf16.mxu0 %v24523_v47  ;;  %v24572_v54 = vld [vmem:[%s34453_s3 + $0x1268] ss:$16 sps:$4 sm:$0xff]   ;;  %v24577_v47 = vld [vmem:[%s34453_s3 + $0x1284] ss:$16 sps:$4 sm:$0xff]  }
 0x38c   :  { %7377 = vmatprep.subr.bf16.mxu1 %v24526_v5  ;;  %v24580_v5 = vld [vmem:[%s34453_s3 + $0x128c] ss:$16 sps:$4 sm:$0xff]  }
 0x38e   :  { %7256 = vmatpush1.bf16.msra.mxu0 %v24521_v3  ;;  %v6571_v3 = vrot.slane %v27587_v13, 2 }
 0x38f   :  { %7378 = vmatpush1.bf16.msra.mxu1 %v24524_v31  ;;  %7257 = vmatprep.subr.bf16.mxu0 %v24529_v39  ;;  %v24575_v31 = vld [vmem:[%s34453_s3 + $0x1280] ss:$16 sps:$4 sm:$0xff]   ;;  %v6570_v39 = vrot.slane %v20376_v22, 2  ;;  %v24625_v22 = vld [vmem:[%s34453_s3 + $0x1384] ss:$16 sps:$4 sm:$0xff]  }
 0x390   :  { %7379 = vmatprep.subr.bf16.mxu1 %v24532_v46  ;;  %v24578_v46 = vld [vmem:[%s34453_s3 + $0x1288] ss:$16 sps:$4 sm:$0xff]  }
 0x392   :  { %7258 = vmatpush1.bf16.msra.mxu0 %v24527_v26  ;;  %v24583_v26 = vld [vmem:[%s34453_s3 + $0x12a4] ss:$16 sps:$4 sm:$0xff]  }
 0x393   :  { %7380 = vmatpush1.bf16.msra.mxu1 %v24530_v15  ;;  %7259 = vmatprep.subr.bf16.mxu0 %v24535_v38  ;;  %v6572_v15 = vsel %vm1522_vm9, %v6570_v39, %v6571_v3  ;;  %v24586_v38 = vld [vmem:[%s34453_s3 + $0x12ac] ss:$16 sps:$4 sm:$0xff]  }
 0x394   :  { %7381 = vmatprep.subr.bf16.mxu1 %v24538_v53  ;;  %v24581_v53 = vld [vmem:[%s34453_s3 + $0x12a0] ss:$16 sps:$4 sm:$0xff]   ;;  %v24634_v39 = vld [vmem:[%s34453_s3 + $0x13ac] ss:$16 sps:$4 sm:$0xff]  }
 0x396   :  { %7260 = vmatpush1.bf16.msra.mxu0 %v24533_v23  ;;  %v24584_v23 = vld [vmem:[%s34453_s3 + $0x12a8] ss:$16 sps:$4 sm:$0xff]  }
 0x397   :  { %7382 = vmatpush1.bf16.msra.mxu1 %v24536_v8  ;;  %7261 = vmatprep.subr.bf16.mxu0 %v24541_v16  ;;  %v24589_v8 = vld [vmem:[%s34453_s3 + $0x12c4] ss:$16 sps:$4 sm:$0xff]   ;;  %v24592_v16 = vld [vmem:[%s34453_s3 + $0x12cc] ss:$16 sps:$4 sm:$0xff]  }
 0x398   :  { %7383 = vmatprep.subr.bf16.mxu1 %v24544_v24  ;;  %v24587_v24 = vld [vmem:[%s34453_s3 + $0x12c0] ss:$16 sps:$4 sm:$0xff]  }
 0x39a   :  { %7262 = vmatpush1.bf16.msra.mxu0 %v24539_v21  ;;  %v24590_v21 = vld [vmem:[%s34453_s3 + $0x12c8] ss:$16 sps:$4 sm:$0xff]  }
 0x39b   :  { %7384 = vmatpush1.bf16.msra.mxu1 %v24542_v6  ;;  %7263 = vmatprep.subr.bf16.mxu0 %v24547_v25  ;;  %v24595_v6 = vld [vmem:[%s34453_s3 + $0x12e4] ss:$16 sps:$4 sm:$0xff]   ;;  %v24598_v25 = vld [vmem:[%s34453_s3 + $0x12ec] ss:$16 sps:$4 sm:$0xff]  }
 0x39c   :  { %7385 = vmatprep.subr.bf16.mxu1 %v24550_v20  ;;  %v24593_v20 = vld [vmem:[%s34453_s3 + $0x12e0] ss:$16 sps:$4 sm:$0xff]  }
 0x39e   :  { %7264 = vmatpush1.bf16.msra.mxu0 %v24545_v4  ;;  %v24596_v4 = vld [vmem:[%s34453_s3 + $0x12e8] ss:$16 sps:$4 sm:$0xff]  }
 0x39f   :  { %7386 = vmatpush1.bf16.msra.mxu1 %v24548_v45  ;;  %7294 = vmatprep.subr.bf16.mxu0 %v24553_v58  ;;  %v24604_v45 = vld [vmem:[%s34453_s3 + $0x130c] ss:$16 sps:$4 sm:$0xff]   ;;  %v24599_v58 = vld [vmem:[%s34453_s3 + $0x1300] ss:$16 sps:$4 sm:$0xff]  }
 0x3a0   :  { %7416 = vmatprep.subr.bf16.mxu1 %v24556_v63  ;;  %v24607_v63 = vld [vmem:[%s34453_s3 + $0x1324] ss:$16 sps:$4 sm:$0xff]  }
 0x3a1   :  { %7266 = vmatmul.mubr.bf16.vlgmr.msra.gmra.mrb[28].mxu0 %v6563_v17 }
 0x3a2   :  { %7388 = vmatmul.mubr.bf16.vlgmr.msra.gmra.mrb[28].mxu1 %v6563_v17  ;;  %7275 = vmatprep.mubr.bf16.mxu0 %v6576_v51 }
 0x3a3   :  { %7295 = vmatpush1.bf16.msra.mxu0 %v24551_v19  ;;  %7397 = vmatprep.mubr.bf16.mxu1 %v6576_v51 }
 0x3a4   :  { %7417 = vmatpush1.bf16.msra.mxu1 %v24554_v40  ;;  %7296 = vmatprep.subr.bf16.mxu0 %v24559_v50 }
 0x3a5   :  { %7418 = vmatprep.subr.bf16.mxu1 %v24562_v59 }
 0x3a7   :  { %7297 = vmatpush1.bf16.msra.mxu0 %v24557_v18  ;;  %v24605_v18 = vld [vmem:[%s34453_s3 + $0x1320] ss:$16 sps:$4 sm:$0xff]  }
 0x3a8   :  { %7419 = vmatpush1.bf16.msra.mxu1 %v24560_v29  ;;  %7298 = vmatprep.subr.bf16.mxu0 %v24565_v56 }
 0x3a9   :  { %7276 = vmatmul.mubr.bf16.gmra.mrb[32].mxu0 %v6574_v0  ;;  %7420 = vmatprep.subr.bf16.mxu1 %v24568_v62 }
 0x3aa   :  { %7398 = vmatmul.mubr.bf16.gmra.mrb[32].mxu1 %v6574_v0  ;;  %7285 = vmatprep.mubr.bf16.mxu0 %v6575_v44 }
 0x3ab   :  { %7299 = vmatpush1.bf16.msra.mxu0 %v24563_v55  ;;  %7407 = vmatprep.mubr.bf16.mxu1 %v6575_v44 }
 0x3ac   :  { %7421 = vmatpush1.bf16.msra.mxu1 %v24566_v43  ;;  %7300 = vmatprep.subr.bf16.mxu0 %v24571_v1  ;;  %v24611_v1 = vld [vmem:[%s34453_s3 + $0x1340] ss:$16 sps:$4 sm:$0xff]  }
 0x3ad   :  { %7422 = vmatprep.subr.bf16.mxu1 %v24574_v14  ;;  %v24617_v14 = vld [vmem:[%s34453_s3 + $0x1360] ss:$16 sps:$4 sm:$0xff]  }
 0x3af   :  { %7301 = vmatpush1.bf16.msra.mxu0 %v24569_v48  ;;  %v24620_v48 = vld [vmem:[%s34453_s3 + $0x1368] ss:$16 sps:$4 sm:$0xff]  }
 0x3b0   :  { %7423 = vmatpush1.bf16.msra.mxu1 %v24572_v54  ;;  %7302 = vmatprep.subr.bf16.mxu0 %v24577_v47  ;;  %v24628_v54 = vld [vmem:[%s34453_s3 + $0x138c] ss:$16 sps:$4 sm:$0xff]   ;;  %v24623_v47 = vld [vmem:[%s34453_s3 + $0x1380] ss:$16 sps:$4 sm:$0xff]  }
 0x3b1   :  { %7286 = vmatmul.mubr.bf16.gmra.mrb[68].mxu0 %v6573_v27  ;;  %7424 = vmatprep.subr.bf16.mxu1 %v24580_v5  ;;  %v24626_v5 = vld [vmem:[%s34453_s3 + $0x1388] ss:$16 sps:$4 sm:$0xff]  }
 0x3b2   :  { %7408 = vmatmul.mubr.bf16.gmra.mrb[68].mxu1 %v6573_v27  ;;  %7326 = vmatprep.mubr.bf16.mxu0 %v6572_v15 }
 0x3b3   :  { %7303 = vmatpush1.bf16.msra.mxu0 %v24575_v31  ;;  %7448 = vmatprep.mubr.bf16.mxu1 %v6572_v15  ;;  %v24631_v31 = vld [vmem:[%s34453_s3 + $0x13a4] ss:$16 sps:$4 sm:$0xff]  }
 0x3b4   :  { %7425 = vmatpush1.bf16.msra.mxu1 %v24578_v46  ;;  %7304 = vmatprep.subr.bf16.mxu0 %v24583_v26  ;;  %v24629_v46 = vld [vmem:[%s34453_s3 + $0x13a0] ss:$16 sps:$4 sm:$0xff]   ;;  %v24632_v26 = vld [vmem:[%s34453_s3 + $0x13a8] ss:$16 sps:$4 sm:$0xff]   ;;  %v24637_v15 = vld [vmem:[%s34453_s3 + $0x13c4] ss:$16 sps:$4 sm:$0xff]  }
 0x3b5   :  { %7426 = vmatprep.subr.bf16.mxu1 %v24586_v38  ;;  %v24640_v38 = vld [vmem:[%s34453_s3 + $0x13cc] ss:$16 sps:$4 sm:$0xff]  }
 0x3b7   :  { %7305 = vmatpush1.bf16.msra.mxu0 %v24581_v53  ;;  %v24635_v53 = vld [vmem:[%s34453_s3 + $0x13c0] ss:$16 sps:$4 sm:$0xff]  }
 0x3b8   :  { %7427 = vmatpush1.bf16.msra.mxu1 %v24584_v23  ;;  %7306 = vmatprep.subr.bf16.mxu0 %v24589_v8  ;;  %v24638_v23 = vld [vmem:[%s34453_s3 + $0x13c8] ss:$16 sps:$4 sm:$0xff]   ;;  %v24643_v8 = vld [vmem:[%s34453_s3 + $0x13e4] ss:$16 sps:$4 sm:$0xff]  }
 0x3b9   :  { %7428 = vmatprep.subr.bf16.mxu1 %v24592_v16  ;;  %v24646_v16 = vld [vmem:[%s34453_s3 + $0x13ec] ss:$16 sps:$4 sm:$0xff]  }
 0x3bb   :  { %7307 = vmatpush1.bf16.msra.mxu0 %v24587_v24  ;;  %v24641_v24 = vld [vmem:[%s34453_s3 + $0x13e0] ss:$16 sps:$4 sm:$0xff]  }
 0x3bc   :  { %7429 = vmatpush1.bf16.msra.mxu1 %v24590_v21  ;;  %7308 = vmatprep.subr.bf16.mxu0 %v24595_v6  ;;  %v20375_v21 = vcombine.low %v29373_v11, %v27496_v34  ;;  %v24644_v6 = vld [vmem:[%s34453_s3 + $0x13e8] ss:$16 sps:$4 sm:$0xff]   ;;  %v6577_v11 = vrot.slane %v29100_v41, 2 }
 0x3bd   :  { %7430 = vmatprep.subr.bf16.mxu1 %v24598_v25  ;;  %v6568_v25 = vrot.slane %v27642_v57, 2 }
 0x3bf   :  { %7309 = vmatpush1.bf16.msra.mxu0 %v24593_v20  ;;  %v6579_v20 = vrot.slane %v29072_v10, 2 }
 0x3c0   :  { %7431 = vmatpush1.bf16.msra.mxu1 %v24596_v4  ;;  %7310 = vmatprep.subr.bf16.mxu0 %v24601_v42  ;;  %v6567_v4 = vrot.slane %v20375_v21, 2 }
 0x3c1   :  { %7432 = vmatprep.subr.bf16.mxu1 %v24604_v45  ;;  %v5130_v44 = vpop.f32.mrb[56].mxu0  ;;  %v6580_v34 = vsel %vm1522_vm9, %v6571_v3, %v6579_v20  ;;  %v6578_v45 = vsel %vm1522_vm9, %v6568_v25, %v6577_v11 }
 0x3c2   :  { %v5131_v19 = vadd.f32 %v5130_v44, %v29235_v12  ;;  %v5252_v17 = vpop.f32.mrb[56].mxu1  ;;  %v5132_v40 = vpop.f32.mrb[57].mxu0  ;;  %v24608_v12 = vld [vmem:[%s34453_s3 + $0x1328] ss:$16 sps:$4 sm:$0xff]   ;;  %v6569_v42 = vsel %vm1522_vm9, %v6567_v4, %v6568_v25  ;;  %v24647_v44 = vld [vmem:[%s34455_s5 + $0x400] ss:$16 sps:$4 sm:$0xff]  }
 0x3c3   :  { %7311 = vmatpush1.bf16.msra.mxu0 %v24599_v58  ;;  %v5253_v50 = vadd.f32 %v5252_v17, %v29240_v2  ;;  %v5133_v51 = vadd.f32 %v5132_v40, %v29242_v7  ;;  %v5254_v59 = vpop.f32.mrb[57].mxu1  ;;  %v5134_v29 = vpop.f32.mrb[58].mxu0  ;;  %v24613_v7 = vld [vmem:[%s34453_s3 + $0x1344] ss:$16 sps:$4 sm:$0xff]   ;;  %v24652_v17 = vld [vmem:[%s34455_s5 + $0x40c] ss:$16 sps:$4 sm:$0xff]  }
 0x3c4   :  { %7433 = vmatpush1.bf16.msra.mxu1 %v24602_v49  ;;  %v29463_v27 = vadd.f32 %v5131_v19, %v29013_v61  ;;  %v5255_v56 = vadd.f32 %v5254_v59, %v29244_v52  ;;  %7312 = vmatprep.subr.bf16.mxu0 %v24607_v63  ;;  %v5256_v2 = vpop.f32.mrb[58].mxu1  ;;  %v5135_v62 = vpop.f32.mrb[59].mxu0  ;;  %v24616_v52 = vld [vmem:[%s34453_s3 + $0x134c] ss:$16 sps:$4 sm:$0xff]   ;;  %v24650_v19 = vld [vmem:[%s34455_s5 + $0x408] ss:$16 sps:$4 sm:$0xff]  }
 0x3c5   :  { %v29473_v55 = vadd.f32 %v5253_v50, %v29016_v28  ;;  %v29476_v0 = vadd.f32 %v5133_v51, %v29019_v60  ;;  %7434 = vmatprep.subr.bf16.mxu1 %v24610_v30  ;;  %v5257_v61 = vpop.f32.mrb[59].mxu1  ;;  %v24614_v28 = vld [vmem:[%s34453_s3 + $0x1348] ss:$16 sps:$4 sm:$0xff]   ;;  %v24619_v60 = vld [vmem:[%s34453_s3 + $0x1364] ss:$16 sps:$4 sm:$0xff]  }
 0x3c6   :  { %v29482_v43 = vadd.f32 %v5255_v56, %v29025_v9  ;;  %v24622_v9 = vld [vmem:[%s34453_s3 + $0x136c] ss:$16 sps:$4 sm:$0xff]   ;;  %v24649_v30 = vld [vmem:[%s34455_s5 + $0x404] ss:$16 sps:$4 sm:$0xff]   ;;  %v24653_v40 = vld [vmem:[%s34455_s5 + $0x420] ss:$16 sps:$4 sm:$0xff]  }
 0x3c7   :  { %7313 = vmatpush1.bf16.msra.mxu0 %v24605_v18  ;;  %v24655_v50 = vld [vmem:[%s34455_s5 + $0x424] ss:$16 sps:$4 sm:$0xff]   ;;  %v24656_v51 = vld [vmem:[%s34455_s5 + $0x428] ss:$16 sps:$4 sm:$0xff]   ;;  %v24658_v59 = vld [vmem:[%s34455_s5 + $0x42c] ss:$16 sps:$4 sm:$0xff]  }
 0x3c8   :  { %7435 = vmatpush1.bf16.msra.mxu1 %v24608_v12  ;;  %7314 = vmatprep.subr.bf16.mxu0 %v24613_v7  ;;  %v24661_v18 = vld [vmem:[%s34455_s5 + $0x444] ss:$16 sps:$4 sm:$0xff]   ;;  %v24659_v29 = vld [vmem:[%s34455_s5 + $0x440] ss:$16 sps:$4 sm:$0xff]   ;;  %v24664_v56 = vld [vmem:[%s34455_s5 + $0x44c] ss:$16 sps:$4 sm:$0xff]  }
 0x3c9   :  { %7436 = vmatprep.subr.bf16.mxu1 %v24616_v52  ;;  %v24662_v12 = vld [vmem:[%s34455_s5 + $0x448] ss:$16 sps:$4 sm:$0xff]   ;;  %v24667_v2 = vld [vmem:[%s34455_s5 + $0x464] ss:$16 sps:$4 sm:$0xff]   ;;  %v24670_v62 = vld [vmem:[%s34455_s5 + $0x46c] ss:$16 sps:$4 sm:$0xff]  }
 0x3ca   :  { %v24665_v7 = vld [vmem:[%s34455_s5 + $0x460] ss:$16 sps:$4 sm:$0xff]   ;;  %v24668_v61 = vld [vmem:[%s34455_s5 + $0x468] ss:$16 sps:$4 sm:$0xff]   ;;  %v24673_v52 = vld [vmem:[%s34455_s5 + $0x484] ss:$16 sps:$4 sm:$0xff]  }
 0x3cb   :  { %7315 = vmatpush1.bf16.msra.mxu0 %v24611_v1  ;;  %v24676_v1 = vld [vmem:[%s34455_s5 + $0x48c] ss:$16 sps:$4 sm:$0xff]   ;;  %v24698_v4 = vld [vmem:[%s34455_s5 + $0x508] ss:$16 sps:$4 sm:$0xff]  }
 0x3cc   :  { %7437 = vmatpush1.bf16.msra.mxu1 %v24614_v28  ;;  %7316 = vmatprep.subr.bf16.mxu0 %v24619_v60  ;;  %v24671_v28 = vld [vmem:[%s34455_s5 + $0x480] ss:$16 sps:$4 sm:$0xff]   ;;  %v24674_v60 = vld [vmem:[%s34455_s5 + $0x488] ss:$16 sps:$4 sm:$0xff]  }
 0x3cd   :  { %7438 = vmatprep.subr.bf16.mxu1 %v24622_v9  ;;  %v24679_v9 = vld [vmem:[%s34455_s5 + $0x4a4] ss:$16 sps:$4 sm:$0xff]  }
 0x3cf   :  { %7317 = vmatpush1.bf16.msra.mxu0 %v24617_v14  ;;  %v24677_v14 = vld [vmem:[%s34455_s5 + $0x4a0] ss:$16 sps:$4 sm:$0xff]  }
 0x3d0   :  { %7439 = vmatpush1.bf16.msra.mxu1 %v24620_v48  ;;  %7318 = vmatprep.subr.bf16.mxu0 %v24625_v22  ;;  %v24682_v48 = vld [vmem:[%s34455_s5 + $0x4ac] ss:$16 sps:$4 sm:$0xff]   ;;  %v24680_v22 = vld [vmem:[%s34455_s5 + $0x4a8] ss:$16 sps:$4 sm:$0xff]  }
 0x3d1   :  { %7440 = vmatprep.subr.bf16.mxu1 %v24628_v54  ;;  %v24685_v54 = vld [vmem:[%s34455_s5 + $0x4c4] ss:$16 sps:$4 sm:$0xff]  }
 0x3d3   :  { %7319 = vmatpush1.bf16.msra.mxu0 %v24623_v47  ;;  %v24688_v47 = vld [vmem:[%s34455_s5 + $0x4cc] ss:$16 sps:$4 sm:$0xff]  }
 0x3d4   :  { %7441 = vmatpush1.bf16.msra.mxu1 %v24626_v5  ;;  %7320 = vmatprep.subr.bf16.mxu0 %v24631_v31  ;;  %v24683_v5 = vld [vmem:[%s34455_s5 + $0x4c0] ss:$16 sps:$4 sm:$0xff]   ;;  %v24686_v31 = vld [vmem:[%s34455_s5 + $0x4c8] ss:$16 sps:$4 sm:$0xff]  }
 0x3d5   :  { %7442 = vmatprep.subr.bf16.mxu1 %v24634_v39  ;;  %v24689_v39 = vld [vmem:[%s34455_s5 + $0x4e0] ss:$16 sps:$4 sm:$0xff]  }
 0x3d7   :  { %7321 = vmatpush1.bf16.msra.mxu0 %v24629_v46  ;;  %v24691_v46 = vld [vmem:[%s34455_s5 + $0x4e4] ss:$16 sps:$4 sm:$0xff]  }
 0x3d8   :  { %7443 = vmatpush1.bf16.msra.mxu1 %v24632_v26  ;;  %7322 = vmatprep.subr.bf16.mxu0 %v24637_v15  ;;  %v24692_v26 = vld [vmem:[%s34455_s5 + $0x4e8] ss:$16 sps:$4 sm:$0xff]   ;;  %v24694_v15 = vld [vmem:[%s34455_s5 + $0x4ec] ss:$16 sps:$4 sm:$0xff]  }
 0x3d9   :  { %7444 = vmatprep.subr.bf16.mxu1 %v24640_v38 }
 0x3db   :  { %7323 = vmatpush1.bf16.msra.mxu0 %v24635_v53 }
 0x3dc   :  { %7445 = vmatpush1.bf16.msra.mxu1 %v24638_v23  ;;  %7324 = vmatprep.subr.bf16.mxu0 %v24643_v8 }
 0x3dd   :  { %7446 = vmatprep.subr.bf16.mxu1 %v24646_v16  ;;  %v24695_v16 = vld [vmem:[%s34455_s5 + $0x500] ss:$16 sps:$4 sm:$0xff]  }
 0x3df   :  { %7325 = vmatpush1.bf16.msra.mxu0 %v24641_v24  ;;  %v24697_v24 = vld [vmem:[%s34455_s5 + $0x504] ss:$16 sps:$4 sm:$0xff]  }
 0x3e0   :  { %7447 = vmatpush1.bf16.msra.mxu1 %v24644_v6  ;;  %8716 = vmatprep.subr.bf16.mxu0 %v24649_v30  ;;  %v24713_v30 = vld [vmem:[%s34455_s5 + $0x560] ss:$16 sps:$4 sm:$0xff]  }
 0x3e1   :  { %8838 = vmatprep.subr.bf16.mxu1 %v24652_v17  ;;  %v24716_v17 = vld [vmem:[%s34455_s5 + $0x568] ss:$16 sps:$4 sm:$0xff]  }
 0x3e2   :  { %7327 = vmatmul.mubr.bf16.vlgmr.msra.gmra.mrb[28].mxu0 %v6569_v42 }
 0x3e3   :  { %7449 = vmatmul.mubr.bf16.vlgmr.msra.gmra.mrb[28].mxu1 %v6569_v42  ;;  %7336 = vmatprep.mubr.bf16.mxu0 %v6580_v34  ;;  %v24700_v42 = vld [vmem:[%s34455_s5 + $0x50c] ss:$16 sps:$4 sm:$0xff]  }
 0x3e4   :  { %7458 = vmatprep.mubr.bf16.mxu1 %v6580_v34  ;;  %8717 = vmatpush1.bf16.msra.mxu0 %v24647_v44  ;;  %v24710_v44 = vld [vmem:[%s34455_s5 + $0x548] ss:$16 sps:$4 sm:$0xff]  }
 0x3e5   :  { %8839 = vmatpush1.bf16.msra.mxu1 %v24650_v19  ;;  %8718 = vmatprep.subr.bf16.mxu0 %v24655_v50  ;;  %v24715_v19 = vld [vmem:[%s34455_s5 + $0x564] ss:$16 sps:$4 sm:$0xff]   ;;  %v24719_v50 = vld [vmem:[%s34455_s5 + $0x580] ss:$16 sps:$4 sm:$0xff]  }
 0x3e6   :  { %8840 = vmatprep.subr.bf16.mxu1 %v24658_v59  ;;  %v24722_v59 = vld [vmem:[%s34455_s5 + $0x588] ss:$16 sps:$4 sm:$0xff]  }
 0x3e8   :  { %8719 = vmatpush1.bf16.msra.mxu0 %v24653_v40  ;;  %v24718_v40 = vld [vmem:[%s34455_s5 + $0x56c] ss:$16 sps:$4 sm:$0xff]  }
 0x3e9   :  { %8841 = vmatpush1.bf16.msra.mxu1 %v24656_v51  ;;  %8720 = vmatprep.subr.bf16.mxu0 %v24661_v18  ;;  %v24721_v51 = vld [vmem:[%s34455_s5 + $0x584] ss:$16 sps:$4 sm:$0xff]   ;;  %v24724_v18 = vld [vmem:[%s34455_s5 + $0x58c] ss:$16 sps:$4 sm:$0xff]  }
 0x3ea   :  { %7337 = vmatmul.mubr.bf16.gmra.mrb[32].mxu0 %v6578_v45  ;;  %8842 = vmatprep.subr.bf16.mxu1 %v24664_v56  ;;  %v24730_v56 = vld [vmem:[%s34455_s5 + $0x5ac] ss:$16 sps:$4 sm:$0xff]  }
 0x3eb   :  { %7459 = vmatmul.mubr.bf16.gmra.mrb[32].mxu1 %v6578_v45  ;;  %7346 = vmatprep.mubr.bf16.mxu0 %v6579_v20 }
 0x3ec   :  { %7468 = vmatprep.mubr.bf16.mxu1 %v6579_v20  ;;  %8721 = vmatpush1.bf16.msra.mxu0 %v24659_v29  ;;  %v24727_v29 = vld [vmem:[%s34455_s5 + $0x5a4] ss:$16 sps:$4 sm:$0xff]  }
 0x3ed   :  { %8843 = vmatpush1.bf16.msra.mxu1 %v24662_v12  ;;  %8722 = vmatprep.subr.bf16.mxu0 %v24667_v2  ;;  %v24725_v12 = vld [vmem:[%s34455_s5 + $0x5a0] ss:$16 sps:$4 sm:$0xff]   ;;  %v24728_v2 = vld [vmem:[%s34455_s5 + $0x5a8] ss:$16 sps:$4 sm:$0xff]  }
 0x3ee   :  { %8844 = vmatprep.subr.bf16.mxu1 %v24670_v62  ;;  %v24733_v62 = vld [vmem:[%s34455_s5 + $0x5c4] ss:$16 sps:$4 sm:$0xff]  }
 0x3f0   :  { %8723 = vmatpush1.bf16.msra.mxu0 %v24665_v7  ;;  %v24736_v7 = vld [vmem:[%s34455_s5 + $0x5cc] ss:$16 sps:$4 sm:$0xff]  }
 0x3f1   :  { %8845 = vmatpush1.bf16.msra.mxu1 %v24668_v61  ;;  %8724 = vmatprep.subr.bf16.mxu0 %v24673_v52  ;;  %v24731_v61 = vld [vmem:[%s34455_s5 + $0x5c0] ss:$16 sps:$4 sm:$0xff]   ;;  %v24734_v52 = vld [vmem:[%s34455_s5 + $0x5c8] ss:$16 sps:$4 sm:$0xff]  }
 0x3f2   :  { %7347 = vmatmul.mubr.bf16.gmra.mrb[72].mxu0 %v6577_v11  ;;  %8846 = vmatprep.subr.bf16.mxu1 %v24676_v1  ;;  %v24739_v1 = vld [vmem:[%s34455_s5 + $0x5e4] ss:$16 sps:$4 sm:$0xff]  }
 0x3f3   :  { %7469 = vmatmul.mubr.bf16.gmra.mrb[72].mxu1 %v6577_v11 }
 0x3f4   :  { %8725 = vmatpush1.bf16.msra.mxu0 %v24671_v28  ;;  %v24737_v28 = vld [vmem:[%s34455_s5 + $0x5e0] ss:$16 sps:$4 sm:$0xff]  }
 0x3f5   :  { %8847 = vmatpush1.bf16.msra.mxu1 %v24674_v60  ;;  %8726 = vmatprep.subr.bf16.mxu0 %v24679_v9  ;;  %v24742_v60 = vld [vmem:[%s34455_s5 + $0x5ec] ss:$16 sps:$4 sm:$0xff]   ;;  %v24740_v9 = vld [vmem:[%s34455_s5 + $0x5e8] ss:$16 sps:$4 sm:$0xff]  }
 0x3f6   :  { %8848 = vmatprep.subr.bf16.mxu1 %v24682_v48  ;;  %v24748_v48 = vld [vmem:[%s34455_s5 + $0x60c] ss:$16 sps:$4 sm:$0xff]  }
 0x3f8   :  { %8727 = vmatpush1.bf16.msra.mxu0 %v24677_v14  ;;  %v24745_v14 = vld [vmem:[%s34455_s5 + $0x604] ss:$16 sps:$4 sm:$0xff]  }
 0x3f9   :  { %8849 = vmatpush1.bf16.msra.mxu1 %v24680_v22  ;;  %8728 = vmatprep.subr.bf16.mxu0 %v24685_v54 }
 0x3fa   :  { %8850 = vmatprep.subr.bf16.mxu1 %v24688_v47 }
 0x3fc   :  { %8729 = vmatpush1.bf16.msra.mxu0 %v24683_v5 }
 0x3fd   :  { %8851 = vmatpush1.bf16.msra.mxu1 %v24686_v31  ;;  %8730 = vmatprep.subr.bf16.mxu0 %v24691_v46 }
 0x3fe   :  { %8852 = vmatprep.subr.bf16.mxu1 %v24694_v15  ;;  %v7497_v15 = vld [vmem:[%s34456_s4] sm:$0xf] }
 0x400   :  { %8731 = vmatpush1.bf16.msra.mxu0 %v24689_v39 }
 0x401   :  { %8853 = vmatpush1.bf16.msra.mxu1 %v24692_v26  ;;  %8732 = vmatprep.subr.bf16.mxu0 %v24697_v24 }
 0x402   :  { %v29560_v57 = vpop.f32.mrb[60].mxu0  ;;  %8854 = vmatprep.subr.bf16.mxu1 %v24700_v42 }
 0x403   :  { %v29562_v10 = vpop.f32.mrb[60].mxu1  ;;  %v29564_v13 = vpop.f32.mrb[61].mxu0 }
 0x404   :  { %v29566_v3 = vpop.f32.mrb[61].mxu1  ;;  %v6214_v58 = vpop.f32.mrb[62].mxu0  ;;  %8733 = vmatpush1.bf16.msra.mxu0 %v24695_v16 }
 0x405   :  { %v6336_v49 = vpop.f32.mrb[62].mxu1  ;;  %v6215_v63 = vpop.f32.mrb[63].mxu0  ;;  %8855 = vmatpush1.bf16.msra.mxu1 %v24698_v4 }
 0x406   :  { %v6337_v41 = vpop.f32.mrb[63].mxu1  ;;  %v24706_v63 = vld [vmem:[%s34455_s5 + $0x52c] ss:$16 sps:$4 sm:$0xff]  }
 0x407   :  { %8856 = vmatprep.subr.bf16.mxu1 %v24706_v63 }
 0x443   :  { %v6271_v38 = vpop.f32.mrb[64].mxu0 }
 0x444   :  { %v6272_v53 = vadd.f32 %v6271_v38, %v29560_v57  ;;  %v6393_v23 = vpop.f32.mrb[64].mxu1  ;;  %v6273_v8 = vpop.f32.mrb[65].mxu0  ;;  %v29794_v38 = vrot.slane %v7497_v15, %v27455_v32 }
 0x445   :  { %v6394_v21 = vadd.f32 %v6393_v23, %v29562_v10  ;;  %v6274_v6 = vadd.f32 %v6273_v8, %v29564_v13  ;;  %v6395_v25 = vpop.f32.mrb[65].mxu1  ;;  %v6275_v20 = vpop.f32.mrb[66].mxu0  ;;  %v24701_v10 = vld [vmem:[%s34455_s5 + $0x520] ss:$16 sps:$4 sm:$0xff]   ;;  %v24703_v13 = vld [vmem:[%s34455_s5 + $0x524] ss:$16 sps:$4 sm:$0xff]   ;;  %v29800_v23 = vrot.slane %v7497_v15, %v27462_v35  ;;  %v29803_v8 = vrot.slane %v7497_v15, %v27464_v36 }
 0x446   :  { %v29680_v34 = vadd.f32 %v6272_v53, %v29463_v27  ;;  %v6396_v11 = vadd.f32 %v6395_v25, %v29566_v3  ;;  %v6397_v45 = vpop.f32.mrb[66].mxu1  ;;  %v6276_v57 = vpop.f32.mrb[67].mxu0  ;;  %v24704_v3 = vld [vmem:[%s34455_s5 + $0x528] ss:$16 sps:$4 sm:$0xff]   ;;  %8734 = vmatprep.subr.bf16.mxu0 %v24703_v13  ;;  %v29797_v53 = vrot.slane %v7497_v15, %v27457_v33 }
 0x447   :  { %v29690_v58 = vadd.f32 %v6394_v21, %v29473_v55  ;;  %v29693_v49 = vadd.f32 %v6274_v6, %v29476_v0  ;;  %v6398_v27 = vpop.f32.mrb[67].mxu1  ;;  %8735 = vmatpush1.bf16.msra.mxu0 %v24701_v10  ;;  %v24707_v55 = vld [vmem:[%s34455_s5 + $0x540] ss:$16 sps:$4 sm:$0xff]   ;;  %v24709_v0 = vld [vmem:[%s34455_s5 + $0x544] ss:$16 sps:$4 sm:$0xff]   ;;  %8857 = vmatpush1.bf16.msra.mxu1 %v24704_v3 }
 0x448   :  { %v29702_v41 = vadd.f32 %v6396_v11, %v29482_v43  ;;  %v24712_v43 = vld [vmem:[%s34455_s5 + $0x54c] ss:$16 sps:$4 sm:$0xff]   ;;  %8736 = vmatprep.subr.bf16.mxu0 %v24709_v0 }
 0x449   :  { %8858 = vmatprep.subr.bf16.mxu1 %v24712_v43 }
 0x44b   :  { %8737 = vmatpush1.bf16.msra.mxu0 %v24707_v55  ;;  %8859 = vmatpush1.bf16.msra.mxu1 %v24710_v44 }
 0x44c   :  { %8738 = vmatprep.subr.bf16.mxu0 %v24715_v19  ;;  %8860 = vmatprep.subr.bf16.mxu1 %v24718_v40 }
 0x44f   :  { %8739 = vmatpush1.bf16.msra.mxu0 %v24713_v30  ;;  %8861 = vmatpush1.bf16.msra.mxu1 %v24716_v17 }
 0x450   :  { %8740 = vmatprep.subr.bf16.mxu0 %v24721_v51  ;;  %8862 = vmatprep.subr.bf16.mxu1 %v24724_v18 }
 0x453   :  { %8741 = vmatpush1.bf16.msra.mxu0 %v24719_v50  ;;  %8863 = vmatpush1.bf16.msra.mxu1 %v24722_v59 }
 0x454   :  { %8742 = vmatprep.subr.bf16.mxu0 %v24727_v29  ;;  %8864 = vmatprep.subr.bf16.mxu1 %v24730_v56 }
 0x457   :  { %8743 = vmatpush1.bf16.msra.mxu0 %v24725_v12  ;;  %8865 = vmatpush1.bf16.msra.mxu1 %v24728_v2 }
 0x458   :  { %8744 = vmatprep.subr.bf16.mxu0 %v24733_v62  ;;  %8866 = vmatprep.subr.bf16.mxu1 %v24736_v7 }
 0x45b   :  { %8745 = vmatpush1.bf16.msra.mxu0 %v24731_v61  ;;  %8867 = vmatpush1.bf16.msra.mxu1 %v24734_v52 }
 0x45c   :  { %8746 = vmatprep.subr.bf16.mxu0 %v24739_v1  ;;  %8868 = vmatprep.subr.bf16.mxu1 %v24742_v60 }
 0x45f   :  { %8747 = vmatpush1.bf16.msra.mxu0 %v24737_v28  ;;  %8869 = vmatpush1.bf16.msra.mxu1 %v24740_v9 }
 0x460   :  { %8777 = vmatprep.subr.bf16.mxu0 %v24745_v14  ;;  %8899 = vmatprep.subr.bf16.mxu1 %v24748_v48 }
 0x484   :  { %v29782_v22 = vpop.f32.mrb[68].mxu0 }
 0x485   :  { %v29784_v54 = vpop.f32.mrb[68].mxu1  ;;  %v29786_v47 = vpop.f32.mrb[69].mxu0 }
 0x486   :  { %v29788_v5 = vpop.f32.mrb[69].mxu1  ;;  %v7291_v31 = vpop.f32.mrb[70].mxu0 }
 0x487   :  { %v7413_v39 = vpop.f32.mrb[70].mxu1  ;;  %v7292_v46 = vpop.f32.mrb[71].mxu0 }
 0x488   :  { %v7414_v26 = vpop.f32.mrb[71].mxu1 }
 0x4b5   :  { %v7328_v16 = vpop.f32.mrb[28].mxu0 }
 0x4b6   :  { %v7519_v24 = vadd.f32 %v29794_v38, %v7328_v16  ;;  %v7450_v21 = vpop.f32.mrb[28].mxu1  ;;  %v7330_v6 = vpop.f32.mrb[29].mxu0 }
 0x4b7   :  { %v7521_v25 = vadd.f32 %v29797_v53, %v7450_v21  ;;  %v7520_v20 = vadd.f32 %v29800_v23, %v7330_v6  ;;  %v7452_v4 = vpop.f32.mrb[29].mxu1  ;;  %v7332_v42 = vpop.f32.mrb[30].mxu0 }
 0x4b8   :  { %v7539_v11 = vmax.f32 %v7519_v24, 0.0  ;;  %v7522_v45 = vadd.f32 %v29803_v8, %v7452_v4  ;;  %v7523_v57 = vadd.f32 %v29794_v38, %v7332_v42  ;;  %v7454_v10 = vpop.f32.mrb[30].mxu1  ;;  %v7334_v13 = vpop.f32.mrb[31].mxu0 }
 0x4b9   :  { %v7541_v27 = vmax.f32 %v7521_v25, 0.0  ;;  %v7540_v3 = vmax.f32 %v7520_v20, 0.0  ;;  %v7525_v63 = vadd.f32 %v29797_v53, %v7454_v10  ;;  %v7524_v55 = vadd.f32 %v29800_v23, %v7334_v13  ;;  %v7456_v0 = vpop.f32.mrb[31].mxu1 }
 0x4ba   :  { %v7542_v44 = vmax.f32 %v7522_v45, 0.0  ;;  %v7543_v43 = vmax.f32 %v7523_v57, 0.0  ;;  %v7526_v30 = vadd.f32 %v29803_v8, %v7456_v0 }
 0x4bb   :  { %v22911_v19 = vpack.c.bf16 %v7540_v3, %v7539_v11  ;;  %v7545_v17 = vmax.f32 %v7525_v63, 0.0  ;;  %v7544_v40 = vmax.f32 %v7524_v55, 0.0 }
 0x4bc   :  { %v22912_v50 = vpack.c.bf16 %v7542_v44, %v7541_v27  ;;  %v7546_v51 = vmax.f32 %v7526_v30, 0.0 }
 0x4bd   :  { %v7587_v59 = vrot.slane %v22911_v19, 7  ;;  %v22913_v18 = vpack.c.bf16 %v7544_v40, %v7543_v43  ;;  %v7338_v29 = vpop.f32.mrb[32].mxu0 }
 0x4be   :  { %v7588_v56 = vrot.slane %v22912_v50, 7  ;;  %v22914_v12 = vpack.c.bf16 %v7546_v51, %v7545_v17  ;;  %v7527_v2 = vadd.f32 %v29794_v38, %v7338_v29  ;;  %v7460_v62 = vpop.f32.mrb[32].mxu1  ;;  %v7340_v7 = vpop.f32.mrb[33].mxu0 }
 0x4bf   :  { %v7589_v61 = vrot.slane %v7587_v59, 4  ;;  %7603 = vst [vmem:[#allocation3] sm:$0xee] %v7587_v59  ;;  %v7590_v52 = vrot.slane %v22913_v18, 7  ;;  %v7529_v1 = vadd.f32 %v29797_v53, %v7460_v62  ;;  %v7528_v28 = vadd.f32 %v29800_v23, %v7340_v7  ;;  %v7462_v60 = vpop.f32.mrb[33].mxu1  ;;  %v7342_v9 = vpop.f32.mrb[34].mxu0 }
 0x4c0   :  { %v7592_v14 = vrot.slane %v7588_v56, 4  ;;  %7604 = vst [vmem:[#allocation3 + $0x8] sm:$0xee] %v7588_v56  ;;  %v7593_v48 = vrot.slane %v22914_v12, 7  ;;  %v7547_v31 = vmax.f32 %v7527_v2, 0.0  ;;  %v7530_v39 = vadd.f32 %v29803_v8, %v7462_v60  ;;  %v7464_v46 = vpop.f32.mrb[34].mxu1 }
 0x4c1   :  { %v7344_v26 = vpop.f32.mrb[35].mxu0  ;;  %v29819_v15 = vsel %vm26767_vm4, %v7589_v61, %v7590_v52  ;;  %v7595_v16 = vrot.slane %v7590_v52, 4  ;;  %v7549_v24 = vmax.f32 %v7529_v1, 0.0  ;;  %v7548_v21 = vmax.f32 %v7528_v28, 0.0  ;;  %v7466_v6 = vpop.f32.mrb[35].mxu1 }
 0x4c2   :  { %v29823_v25 = vsel %vm26767_vm4, %v7592_v14, %v7593_v48  ;;  %v7596_v20 = vrot.slane %v7593_v48, 4  ;;  %v7550_v4 = vmax.f32 %v7530_v39, 0.0  ;;  %v7531_v42 = vadd.f32 %v29794_v38, %v7342_v9 }
 0x4c3   :  { %7607 = vst [vmem:[#allocation3 + $0x20] sm:$0x11] %v7595_v16  ;;  %v22915_v11 = vpack.c.bf16 %v7548_v21, %v7547_v31  ;;  %v7533_v45 = vadd.f32 %v29797_v53, %v7464_v46  ;;  %v7532_v57 = vadd.f32 %v29800_v23, %v7344_v26  ;;  %v7534_v10 = vadd.f32 %v29803_v8, %v7466_v6 }
 0x4c4   :  { %7608 = vst [vmem:[#allocation3 + $0x28] sm:$0x11] %v7596_v20  ;;  %v22916_v13 = vpack.c.bf16 %v7550_v4, %v7549_v24  ;;  %v7551_v27 = vmax.f32 %v7531_v42, 0.0 }
 0x4c5   :  { %v7635_v3 = vrot.slane %v22915_v11, 7  ;;  %v7553_v63 = vmax.f32 %v7533_v45, 0.0  ;;  %v7552_v55 = vmax.f32 %v7532_v57, 0.0  ;;  %v7554_v0 = vmax.f32 %v7534_v10, 0.0  ;;  %v7348_v44 = vpop.f32.mrb[72].mxu0 }
 0x4c6   :  { %v7636_v43 = vrot.slane %v22916_v13, 7  ;;  %v7349_v30 = vadd.f32 %v7348_v44, %v29782_v22  ;;  %v7470_v19 = vpop.f32.mrb[72].mxu1  ;;  %v7350_v17 = vpop.f32.mrb[73].mxu0  ;;  %v7661_v40 = vld [vmem:[#allocation3] sm:$0xff] }
 0x4c7   :  { %v7637_v50 = vrot.slane %v7635_v3, 4  ;;  %7655 = vst [vmem:[#allocation3 + $0x20] sm:$0x88] %v7635_v3  ;;  %v22917_v51 = vpack.c.bf16 %v7552_v55, %v7551_v27  ;;  %v22918_v59 = vpack.c.bf16 %v7554_v0, %v7553_v63  ;;  %v7471_v18 = vadd.f32 %v7470_v19, %v29784_v54  ;;  %v7472_v29 = vpop.f32.mrb[73].mxu1  ;;  %v7352_v56 = vpop.f32.mrb[74].mxu0 }
 0x4c8   :  { %v7640_v12 = vrot.slane %v7636_v43, 4  ;;  %7656 = vst [vmem:[#allocation3 + $0x28] sm:$0x88] %v7636_v43  ;;  %v7493_v2 = vadd.f32 %v7349_v30, %v29680_v34  ;;  %v7351_v62 = vadd.f32 %v7350_v17, %v29786_v47  ;;  %v7473_v7 = vadd.f32 %v7472_v29, %v29788_v5  ;;  %v7474_v22 = vpop.f32.mrb[74].mxu1  ;;  %v7353_v61 = vpop.f32.mrb[75].mxu0 }
 0x4c9   :  { %v7638_v52 = vrot.slane %v22917_v51, 7  ;;  %v7641_v1 = vrot.slane %v22918_v59, 7  ;;  %v7495_v28 = vadd.f32 %v7471_v18, %v29690_v58  ;;  %v7475_v60 = vpop.f32.mrb[75].mxu1  ;;  %v29836_v9 = vcombine.high %v7661_v40, %v29819_v15  ;;  %v24743_v30 = vld [vmem:[%s34455_s5 + $0x600] ss:$16 sps:$4 sm:$0xff]  }
 0x4ca   :  { %v7535_v54 = vadd.f32 %v29794_v38, %v7493_v2  ;;  %v7494_v14 = vadd.f32 %v7351_v62, %v29693_v49  ;;  %v7496_v34 = vadd.f32 %v7473_v7, %v29702_v41  ;;  %v29842_v47 = vcombine.low %v7661_v40, %v29819_v15  ;;  %v24746_v19 = vld [vmem:[%s34455_s5 + $0x608] ss:$16 sps:$4 sm:$0xff]   ;;  %v24754_v51 = vld [vmem:[%s34455_s5 + $0x62c] ss:$16 sps:$4 sm:$0xff]   ;;  %v24749_v59 = vld [vmem:[%s34455_s5 + $0x620] ss:$16 sps:$4 sm:$0xff]  }
 0x4cb   :  { %v7639_v5 = vsel %vm26767_vm4, %v7637_v50, %v7638_v52  ;;  %v29848_v48 = vsel %vm26767_vm4, %v7640_v12, %v7641_v1  ;;  %v7537_v31 = vadd.f32 %v29797_v53, %v7495_v28  ;;  %v7987_v49 = vshll.u32 %v29836_v9, 16  ;;  %v24751_v50 = vld [vmem:[%s34455_s5 + $0x624] ss:$16 sps:$4 sm:$0xff]   ;;  %v24752_v18 = vld [vmem:[%s34455_s5 + $0x628] ss:$16 sps:$4 sm:$0xff]   ;;  %v29897_v12 = vld [vmem:[#allocation3 + $0x8] sm:$0xff] }
 0x4cc   :  { %v7555_v58 = vmax.f32 %v7535_v54, 0.0  ;;  %v7536_v39 = vadd.f32 %v29800_v23, %v7494_v14  ;;  %v7538_v38 = vadd.f32 %v29803_v8, %v7496_v34  ;;  %v7975_v41 = vshll.u32 %v29842_v47, 16  ;;  %v24757_v29 = vld [vmem:[%s34455_s5 + $0x644] ss:$16 sps:$4 sm:$0xff]   ;;  %v24760_v56 = vld [vmem:[%s34455_s5 + $0x64c] ss:$16 sps:$4 sm:$0xff]  }
 0x4cd   :  { %v7557_v46 = vmax.f32 %v7537_v31, 0.0  ;;  %v7989_v6 = vrot.slane %v7987_v49, 1  ;;  %v7985_v23 = vshrl.u32 %v29836_v9, 16  ;;  %v7973_v11 = vshrl.u32 %v29842_v47, 16  ;;  %v24755_v62 = vld [vmem:[%s34455_s5 + $0x640] ss:$16 sps:$4 sm:$0xff]  }
 0x4ce   :  { %v7556_v26 = vmax.f32 %v7536_v39, 0.0  ;;  %v7558_v16 = vmax.f32 %v7538_v38, 0.0  ;;  %v7665_v24 = vld [vmem:[#allocation3 + $0x20] sm:$0xff]  ;;  %v7977_v4 = vrot.slane %v7975_v41, 1  ;;  %v7643_v57 = vrot.slane %v7638_v52, 4 }
 0x4cf   :  { %v29855_v21 = vcombine.high %v7665_v24, %v7639_v5  ;;  %v29857_v20 = vcombine.low %v7665_v24, %v7639_v5  ;;  %v7646_v10 = vrot.slane %v7641_v1, 4  ;;  %v7990_v3 = vor.u32 %v7989_v6, %v7985_v23  ;;  %v7666_v2 = vld [vmem:[#allocation3 + $0x28] sm:$0xff]  ;;  %v24758_v7 = vld [vmem:[%s34455_s5 + $0x648] ss:$16 sps:$4 sm:$0xff]   ;;  %v24765_v1 = vld [vmem:[%s34455_s5 + $0x664] ss:$16 sps:$4 sm:$0xff]  }
 0x4d0   :  { %v22919_v42 = vpack.c.bf16 %v7556_v26, %v7555_v58  ;;  %v22920_v53 = vpack.c.bf16 %v7558_v16, %v7557_v46  ;;  %v7978_v55 = vor.u32 %v7977_v4, %v7973_v11  ;;  %v24768_v28 = vld [vmem:[%s34455_s5 + $0x66c] ss:$16 sps:$4 sm:$0xff]   ;;  %v29918_v54 = vcombine.high %v29897_v12, %v29823_v25  ;;  %v9866_v39 = vld [vmem:[#allocation3] sm:$0xee] }
 0x4d1   :  { %v7992_v8 = vshll.u32 %v29855_v21, 16  ;;  %v7980_v45 = vshll.u32 %v29857_v20, 16  ;;  %v8028_v60 = vshrl.u32 %v29855_v21, 16  ;;  %v29921_v14 = vcombine.high %v7666_v2, %v29848_v48  ;;  %v24771_v23 = vld [vmem:[%s34455_s5 + $0x684] ss:$16 sps:$4 sm:$0xff]  }
 0x4d2   :  { %v7644_v13 = vrot.slane %v22919_v42, 7  ;;  %v7647_v27 = vrot.slane %v22920_v53, 7  ;;  %v8020_v5 = vshrl.u32 %v29857_v20, 16  ;;  %v8011_v26 = vshll.u32 %v29918_v54, 16  ;;  %v24763_v42 = vld [vmem:[%s34455_s5 + $0x660] ss:$16 sps:$4 sm:$0xff]  }
 0x4d3   :  { %v7994_v63 = vrot.slane %v7992_v8, 1  ;;  %v7982_v0 = vrot.slane %v7980_v45, 1  ;;  %v8016_v16 = vshll.u32 %v29921_v14, 16  ;;  %v24766_v53 = vld [vmem:[%s34455_s5 + $0x668] ss:$16 sps:$4 sm:$0xff]   ;;  %v29941_v11 = vcombine.high %v9866_v39, %v29819_v15 }
 0x4d4   :  { %v7645_v44 = vsel %vm26767_vm4, %v7643_v57, %v7644_v13  ;;  %v7648_v43 = vsel %vm26767_vm4, %v7646_v10, %v7647_v27  ;;  %v24774_v57 = vld [vmem:[%s34455_s5 + $0x68c] ss:$16 sps:$4 sm:$0xff]   ;;  %v24769_v10 = vld [vmem:[%s34455_s5 + $0x680] ss:$16 sps:$4 sm:$0xff]   ;;  %v24772_v13 = vld [vmem:[%s34455_s5 + $0x688] ss:$16 sps:$4 sm:$0xff]   ;;  %v29953_v27 = vcombine.low %v9866_v39, %v29819_v15 }
 0x4d5   :  { %7659 = vst [vmem:[#allocation3 + $0x40] sm:$0x77] %v7645_v44  ;;  %7660 = vst [vmem:[#allocation3 + $0x48] sm:$0x77] %v7648_v43  ;;  %v7995_v17 = vsel %vm176_vm6, %v7990_v3, %v7994_v63  ;;  %v7983_v40 = vsel %vm176_vm6, %v7978_v55, %v7982_v0  ;;  %v8030_v31 = vor.u32 %v8028_v60, %v7994_v63  ;;  %v11092_v3 = vrot.slane %v8020_v5, 1 }
 0x4d6   :  { %8748 = vmatprep.mubr.bf16.mxu0 %v7995_v17  ;;  %8870 = vmatprep.mubr.bf16.mxu1 %v7995_v17  ;;  %v8022_v49 = vor.u32 %v8020_v5, %v7982_v0  ;;  %v24777_v63 = vld [vmem:[%s34455_s5 + $0x6a4] ss:$16 sps:$4 sm:$0xff]   ;;  %v8009_v55 = vshrl.u32 %v29918_v54, 16  ;;  %v24780_v0 = vld [vmem:[%s34455_s5 + $0x6ac] ss:$16 sps:$4 sm:$0xff]   ;;  %v8013_v43 = vrot.slane %v8011_v26, 1  ;;  %v29968_v17 = vcombine.low %v7666_v2, %v29848_v48 }
 0x4d7   :  { %8749 = vmatmul.mubr.bf16.vlgmr.msra.gmra.mrb[76].mxu0 %v7983_v40  ;;  %8871 = vmatmul.mubr.bf16.vlgmr.msra.gmra.mrb[76].mxu1 %v7983_v40  ;;  %v9867_v44 = vld [vmem:[#allocation3 + $0x8] sm:$0xee]  ;;  %v11100_v40 = vshll.u32 %v29941_v11, 16 }
 0x4d8   :  { %8778 = vmatpush1.bf16.msra.mxu0 %v24743_v30  ;;  %8900 = vmatpush1.bf16.msra.mxu1 %v24746_v19  ;;  %v29964_v30 = vrot.slane %v8016_v16, 1  ;;  %v11097_v19 = vshrl.u32 %v29941_v11, 16  ;;  %v29994_v5 = vcombine.low %v9867_v44, %v29823_v25  ;;  %v8036_v26 = vshrl.u32 %v29968_v17, 16 }
 0x4d9   :  { %8779 = vmatprep.subr.bf16.mxu0 %v24751_v50  ;;  %8901 = vmatprep.subr.bf16.mxu1 %v24754_v51  ;;  %v11104_v50 = vrot.slane %v8028_v60, 1  ;;  %v11105_v51 = vrot.slane %v7992_v8, 2  ;;  %v11102_v48 = vrot.slane %v11100_v40, 2  ;;  %v11093_v8 = vrot.slane %v7980_v45, 2  ;;  %v24783_v60 = vld [vmem:[%s34455_s5 + $0x6c4] ss:$16 sps:$4 sm:$0xff]  }
 0x4da   :  { %v24786_v45 = vld [vmem:[%s34455_s5 + $0x6cc] ss:$16 sps:$4 sm:$0xff]  }
 0x4db   :  { %v29981_v2 = vor.u32 %v11105_v51, %v11104_v50  ;;  %v24795_v50 = vld [vmem:[%s34455_s5 + $0x704] ss:$16 sps:$4 sm:$0xff]   ;;  %v24798_v51 = vld [vmem:[%s34455_s5 + $0x70c] ss:$16 sps:$4 sm:$0xff]  }
 0x4dc   :  { %8780 = vmatpush1.bf16.msra.mxu0 %v24749_v59  ;;  %8902 = vmatpush1.bf16.msra.mxu1 %v24752_v18  ;;  %v7799_v22 = vld [vmem:[#allocation3 + $0x40] sm:$0x77]  ;;  %v24775_v18 = vld [vmem:[%s34455_s5 + $0x6a0] ss:$16 sps:$4 sm:$0xff]  }
 0x4dd   :  { %8781 = vmatprep.subr.bf16.mxu0 %v24757_v29  ;;  %8903 = vmatprep.subr.bf16.mxu1 %v24760_v56  ;;  %v29905_v61 = vcombine.high %v7799_v22, %v7799_v22  ;;  %v29907_v52 = vcombine.low %v7799_v22, %v7799_v22  ;;  %v29978_v29 = vcombine.high %v9867_v44, %v29823_v25  ;;  %v11099_v56 = vrot.slane %v11097_v19, 1  ;;  %v24790_v19 = vld [vmem:[%s34455_s5 + $0x6e8] ss:$16 sps:$4 sm:$0xff]  }
 0x4de   :  { %v11112_v44 = vshll.u32 %v29994_v5, 16 }
 0x4df   :  { %v8032_v34 = vshll.u32 %v29905_v61, 16  ;;  %v8024_v58 = vshll.u32 %v29907_v52, 16  ;;  %v8055_v46 = vshrl.u32 %v29905_v61, 16  ;;  %v8052_v59 = vshrl.u32 %v29907_v52, 16 }
 0x4e0   :  { %8782 = vmatpush1.bf16.msra.mxu0 %v24755_v62  ;;  %8904 = vmatpush1.bf16.msra.mxu1 %v24758_v7  ;;  %v11085_v62 = vshrl.u32 %v29953_v27, 16  ;;  %v11088_v7 = vshll.u32 %v29953_v27, 16 }
 0x4e1   :  { %v8034_v38 = vrot.slane %v8032_v34, 1  ;;  %v8026_v41 = vrot.slane %v8024_v58, 1  ;;  %8783 = vmatprep.subr.bf16.mxu0 %v24765_v1  ;;  %8905 = vmatprep.subr.bf16.mxu1 %v24768_v28  ;;  %v8014_v1 = vor.u32 %v8013_v43, %v8009_v55  ;;  %v24778_v28 = vld [vmem:[%s34455_s5 + $0x6a8] ss:$16 sps:$4 sm:$0xff]   ;;  %v8044_v34 = vshrl.u32 %v29921_v14, 16 }
 0x4e2   :  { %v11103_v58 = vor.u32 %v11102_v48, %v11099_v56  ;;  %v11090_v39 = vrot.slane %v11088_v7, 2  ;;  %v24787_v43 = vld [vmem:[%s34455_s5 + $0x6e0] ss:$16 sps:$4 sm:$0xff]   ;;  %v11114_v56 = vrot.slane %v11112_v44, 2 }
 0x4e3   :  { %v8035_v24 = vsel %vm176_vm6, %v8030_v31, %v8034_v38  ;;  %v8027_v6 = vsel %vm176_vm6, %v8022_v49, %v8026_v41  ;;  %v8057_v4 = vor.u32 %v8055_v46, %v8034_v38  ;;  %v8054_v22 = vor.u32 %v8052_v59, %v8026_v41  ;;  %v24781_v41 = vld [vmem:[%s34455_s5 + $0x6c0] ss:$16 sps:$4 sm:$0xff]   ;;  %v24784_v46 = vld [vmem:[%s34455_s5 + $0x6c8] ss:$16 sps:$4 sm:$0xff]  }
 0x4e4   :  { %8758 = vmatprep.mubr.bf16.mxu0 %v8035_v24  ;;  %8880 = vmatprep.mubr.bf16.mxu1 %v8035_v24  ;;  %v11087_v31 = vrot.slane %v11085_v62, 1  ;;  %v29999_v38 = vor.u32 %v11093_v8, %v11092_v3  ;;  %v8019_v49 = vsel %vm176_vm6, %v8014_v1, %v29964_v30  ;;  %v11121_v24 = vshrl.u32 %v29978_v29, 16  ;;  %v24793_v7 = vld [vmem:[%s34455_s5 + $0x700] ss:$16 sps:$4 sm:$0xff]   ;;  %v24796_v8 = vld [vmem:[%s34455_s5 + $0x708] ss:$16 sps:$4 sm:$0xff]  }
 0x4e5   :  { %8759 = vmatmul.mubr.bf16.gmra.mrb[80].mxu0 %v8027_v6  ;;  %8881 = vmatmul.mubr.bf16.gmra.mrb[80].mxu1 %v8027_v6  ;;  %v24789_v6 = vld [vmem:[%s34455_s5 + $0x6e4] ss:$16 sps:$4 sm:$0xff]   ;;  %v11129_v3 = vrot.slane %v8016_v16, 2  ;;  %v11116_v16 = vrot.slane %v8036_v26, 1  ;;  %v24823_v44 = vld [vmem:[%s34455_s5 + $0x7a0] ss:$16 sps:$4 sm:$0xff]  }
 0x4e6   :  { %8768 = vmatprep.mubr.bf16.mxu0 %v8057_v4  ;;  %8890 = vmatprep.mubr.bf16.mxu1 %v8057_v4  ;;  %v24792_v4 = vld [vmem:[%s34455_s5 + $0x6ec] ss:$16 sps:$4 sm:$0xff]  }
 0x4e7   :  { %8784 = vmatpush1.bf16.msra.mxu0 %v24763_v42  ;;  %8906 = vmatpush1.bf16.msra.mxu1 %v24766_v53  ;;  %v8004_v42 = vshll.u32 %v29968_v17, 16  ;;  %v30020_v53 = vsel %vm1158_vm8, %v11103_v58, %v29981_v2  ;;  %v24799_v58 = vld [vmem:[%s34455_s5 + $0x720] ss:$16 sps:$4 sm:$0xff]  }
 0x4e8   :  { %8785 = vmatprep.subr.bf16.mxu0 %v24771_v23  ;;  %8907 = vmatprep.subr.bf16.mxu1 %v24774_v57  ;;  %v11091_v23 = vor.u32 %v11090_v39, %v11087_v31  ;;  %v11124_v57 = vshll.u32 %v29978_v29, 16  ;;  %v24802_v31 = vld [vmem:[%s34455_s5 + $0x728] ss:$16 sps:$4 sm:$0xff]   ;;  %v24807_v39 = vld [vmem:[%s34455_s5 + $0x744] ss:$16 sps:$4 sm:$0xff]  }
 0x4e9   :  { %v11117_v62 = vrot.slane %v8004_v42, 2 }
 0x4ea   :  { %v11126_v55 = vrot.slane %v11124_v57, 2  ;;  %v24819_v57 = vld [vmem:[%s34455_s5 + $0x784] ss:$16 sps:$4 sm:$0xff]  }
 0x4eb   :  { %8786 = vmatpush1.bf16.msra.mxu0 %v24769_v10  ;;  %8908 = vmatpush1.bf16.msra.mxu1 %v24772_v13  ;;  %v11123_v10 = vrot.slane %v11121_v24, 1  ;;  %v11128_v13 = vrot.slane %v8044_v34, 1  ;;  %v30061_v1 = vor.u32 %v11117_v62, %v11116_v16  ;;  %v24813_v24 = vld [vmem:[%s34455_s5 + $0x764] ss:$16 sps:$4 sm:$0xff]   ;;  %v24834_v16 = vld [vmem:[%s34455_s5 + $0x7cc] ss:$16 sps:$4 sm:$0xff]  }
 0x4ec   :  { %8787 = vmatprep.subr.bf16.mxu0 %v24777_v63  ;;  %8909 = vmatprep.subr.bf16.mxu1 %v24780_v0  ;;  %v30029_v63 = vsel %vm1158_vm8, %v11091_v23, %v29999_v38  ;;  %v11109_v0 = vshrl.u32 %v29994_v5, 16  ;;  %v24814_v23 = vld [vmem:[%s34455_s5 + $0x768] ss:$16 sps:$4 sm:$0xff]   ;;  %v24840_v62 = vld [vmem:[%s34455_s5 + $0x7ec] ss:$16 sps:$4 sm:$0xff]  }
 0x4ed   :  { %8769 = vmatmul.mubr.bf16.gmra.mrb[84].mxu0 %v8054_v22  ;;  %8891 = vmatmul.mubr.bf16.gmra.mrb[84].mxu1 %v8054_v22  ;;  %v30041_v40 = vor.u32 %v11129_v3, %v11128_v13  ;;  %v11127_v59 = vor.u32 %v11126_v55, %v11123_v10  ;;  %v24822_v10 = vld [vmem:[%s34455_s5 + $0x78c] ss:$16 sps:$4 sm:$0xff]   ;;  %v24817_v13 = vld [vmem:[%s34455_s5 + $0x780] ss:$16 sps:$4 sm:$0xff]   ;;  %v24820_v3 = vld [vmem:[%s34455_s5 + $0x788] ss:$16 sps:$4 sm:$0xff]  }
 0x4ee   :  { %8809 = vmatprep.mubr.bf16.mxu0 %v8019_v49  ;;  %8931 = vmatprep.mubr.bf16.mxu1 %v8019_v49  ;;  %v24810_v49 = vld [vmem:[%s34455_s5 + $0x74c] ss:$16 sps:$4 sm:$0xff]   ;;  %v24825_v55 = vld [vmem:[%s34455_s5 + $0x7a4] ss:$16 sps:$4 sm:$0xff]  }
 0x4ef   :  { %8788 = vmatpush1.bf16.msra.mxu0 %v24775_v18  ;;  %8910 = vmatpush1.bf16.msra.mxu1 %v24778_v28  ;;  %v11111_v18 = vrot.slane %v11109_v0, 1  ;;  %v30053_v48 = vsel %vm1158_vm8, %v11127_v59, %v30041_v40  ;;  %v24801_v28 = vld [vmem:[%s34455_s5 + $0x724] ss:$16 sps:$4 sm:$0xff]   ;;  %v24828_v0 = vld [vmem:[%s34455_s5 + $0x7ac] ss:$16 sps:$4 sm:$0xff]  }
 0x4f0   :  { %8789 = vmatprep.subr.bf16.mxu0 %v24783_v60  ;;  %8911 = vmatprep.subr.bf16.mxu1 %v24786_v45  ;;  %v24804_v45 = vld [vmem:[%s34455_s5 + $0x72c] ss:$16 sps:$4 sm:$0xff]   ;;  %v24829_v59 = vld [vmem:[%s34455_s5 + $0x7c0] ss:$16 sps:$4 sm:$0xff]  }
 0x4f1   :  { %v11115_v22 = vor.u32 %v11114_v56, %v11111_v18  ;;  %v24832_v18 = vld [vmem:[%s34455_s5 + $0x7c8] ss:$16 sps:$4 sm:$0xff]   ;;  %v24837_v56 = vld [vmem:[%s34455_s5 + $0x7e4] ss:$16 sps:$4 sm:$0xff]  }
 0x4f3   :  { %8790 = vmatpush1.bf16.msra.mxu0 %v24781_v41  ;;  %8912 = vmatpush1.bf16.msra.mxu1 %v24784_v46  ;;  %v30068_v60 = vsel %vm1158_vm8, %v11115_v22, %v30061_v1  ;;  %v24805_v41 = vld [vmem:[%s34455_s5 + $0x740] ss:$16 sps:$4 sm:$0xff]   ;;  %v24808_v46 = vld [vmem:[%s34455_s5 + $0x748] ss:$16 sps:$4 sm:$0xff]  }
 0x4f4   :  { %8791 = vmatprep.subr.bf16.mxu0 %v24789_v6  ;;  %8913 = vmatprep.subr.bf16.mxu1 %v24792_v4  ;;  %v24816_v6 = vld [vmem:[%s34455_s5 + $0x76c] ss:$16 sps:$4 sm:$0xff]   ;;  %v24811_v4 = vld [vmem:[%s34455_s5 + $0x760] ss:$16 sps:$4 sm:$0xff]   ;;  %v24838_v22 = vld [vmem:[%s34455_s5 + $0x7e8] ss:$16 sps:$4 sm:$0xff]  }
 0x4f7   :  { %8792 = vmatpush1.bf16.msra.mxu0 %v24787_v43  ;;  %8914 = vmatpush1.bf16.msra.mxu1 %v24790_v19  ;;  %v24826_v43 = vld [vmem:[%s34455_s5 + $0x7a8] ss:$16 sps:$4 sm:$0xff]   ;;  %v24831_v19 = vld [vmem:[%s34455_s5 + $0x7c4] ss:$16 sps:$4 sm:$0xff]  }
 0x4f8   :  { %8793 = vmatprep.subr.bf16.mxu0 %v24795_v50  ;;  %8915 = vmatprep.subr.bf16.mxu1 %v24798_v51  ;;  %v7800_v50 = vld [vmem:[#allocation3 + $0x48] sm:$0x77]  ;;  %v30135_v51 = vcombine.low %v29897_v12, %v29823_v25 }
 0x4f9   :  { %v30149_v12 = vcombine.high %v7800_v50, %v7800_v50 }
 0x4fb   :  { %8794 = vmatpush1.bf16.msra.mxu0 %v24793_v7  ;;  %8916 = vmatpush1.bf16.msra.mxu1 %v24796_v8  ;;  %v7999_v7 = vshll.u32 %v30135_v51, 16  ;;  %v24835_v8 = vld [vmem:[%s34455_s5 + $0x7e0] ss:$16 sps:$4 sm:$0xff]  }
 0x4fc   :  { %8795 = vmatprep.subr.bf16.mxu0 %v24801_v28  ;;  %8917 = vmatprep.subr.bf16.mxu1 %v24804_v45  ;;  %v24843_v28 = vld [vmem:[%s34455_s5 + $0x4] ss:$16 sps:$4 sm:$0xff]   ;;  %v24846_v45 = vld [vmem:[%s34455_s5 + $0xc] ss:$16 sps:$4 sm:$0xff]  }
 0x4ff   :  { %8796 = vmatpush1.bf16.msra.mxu0 %v24799_v58  ;;  %8918 = vmatpush1.bf16.msra.mxu1 %v24802_v31  ;;  %v8048_v58 = vshll.u32 %v30149_v12, 16  ;;  %v8001_v31 = vrot.slane %v7999_v7, 1  ;;  %v24864_v7 = vld [vmem:[%s34455_s5 + $0x68] ss:$16 sps:$4 sm:$0xff]  }
 0x500   :  { %8797 = vmatprep.subr.bf16.mxu0 %v24807_v39  ;;  %8919 = vmatprep.subr.bf16.mxu1 %v24810_v49  ;;  %v7997_v39 = vshrl.u32 %v30135_v51, 16  ;;  %v8006_v49 = vrot.slane %v8004_v42, 1  ;;  %v8046_v42 = vor.u32 %v8044_v34, %v29964_v30  ;;  %v24848_v30 = vld [vmem:[%s34455_s5 + $0x20] ss:$16 sps:$4 sm:$0xff]   ;;  %v24851_v34 = vld [vmem:[%s34455_s5 + $0x28] ss:$16 sps:$4 sm:$0xff]  }
 0x503   :  { %8798 = vmatpush1.bf16.msra.mxu0 %v24805_v41  ;;  %8920 = vmatpush1.bf16.msra.mxu1 %v24808_v46  ;;  %v30168_v41 = vcombine.low %v7800_v50, %v7800_v50  ;;  %v24841_v46 = vld [vmem:[%s34455_s5] ss:$16 sps:$4 sm:$0xff]   ;;  %v8061_v50 = vshrl.u32 %v30149_v12, 16 }
 0x504   :  { %8799 = vmatprep.subr.bf16.mxu0 %v24813_v24  ;;  %8921 = vmatprep.subr.bf16.mxu1 %v24816_v6  ;;  %v24844_v24 = vld [vmem:[%s34455_s5 + $0x8] ss:$16 sps:$4 sm:$0xff]   ;;  %v8050_v6 = vrot.slane %v8048_v58, 1 }
 0x505   :  { %v24870_v58 = vld [vmem:[%s34455_s5 + $0x88] ss:$16 sps:$4 sm:$0xff]  }
 0x507   :  { %8800 = vmatpush1.bf16.msra.mxu0 %v24811_v4  ;;  %8922 = vmatpush1.bf16.msra.mxu1 %v24814_v23  ;;  %v8002_v4 = vor.u32 %v8001_v31, %v7997_v39  ;;  %v24850_v23 = vld [vmem:[%s34455_s5 + $0x24] ss:$16 sps:$4 sm:$0xff]   ;;  %v24878_v39 = vld [vmem:[%s34455_s5 + $0xac] ss:$16 sps:$4 sm:$0xff]  }
 0x508   :  { %8801 = vmatprep.subr.bf16.mxu0 %v24819_v57  ;;  %8923 = vmatprep.subr.bf16.mxu1 %v24822_v10  ;;  %v24853_v10 = vld [vmem:[%s34455_s5 + $0x2c] ss:$16 sps:$4 sm:$0xff]   ;;  %v24875_v31 = vld [vmem:[%s34455_s5 + $0xa4] ss:$16 sps:$4 sm:$0xff]  }
 0x509   :  { %v8007_v57 = vsel %vm176_vm6, %v8002_v4, %v8006_v49  ;;  %v24879_v4 = vld [vmem:[%s34455_s5 + $0xc0] ss:$16 sps:$4 sm:$0xff]  }
 0x50b   :  { %8802 = vmatpush1.bf16.msra.mxu0 %v24817_v13  ;;  %8924 = vmatpush1.bf16.msra.mxu1 %v24820_v3  ;;  %v8040_v13 = vshll.u32 %v30168_v41, 16  ;;  %v8051_v3 = vsel %vm176_vm6, %v8046_v42, %v8050_v6  ;;  %v24887_v42 = vld [vmem:[%s34455_s5 + $0xe4] ss:$16 sps:$4 sm:$0xff]  }
 0x50c   :  { %8803 = vmatprep.subr.bf16.mxu0 %v24825_v55  ;;  %8925 = vmatprep.subr.bf16.mxu1 %v24828_v0  ;;  %v24857_v0 = vld [vmem:[%s34455_s5 + $0x44] ss:$16 sps:$4 sm:$0xff]  }
 0x50d   :  { %v8042_v55 = vrot.slane %v8040_v13, 1  ;;  %v24888_v13 = vld [vmem:[%s34455_s5 + $0xe8] ss:$16 sps:$4 sm:$0xff]  }
 0x50f   :  { %8804 = vmatpush1.bf16.msra.mxu0 %v24823_v44  ;;  %8926 = vmatpush1.bf16.msra.mxu1 %v24826_v43  ;;  %v24860_v44 = vld [vmem:[%s34455_s5 + $0x4c] ss:$16 sps:$4 sm:$0xff]   ;;  %v24855_v43 = vld [vmem:[%s34455_s5 + $0x40] ss:$16 sps:$4 sm:$0xff]  }
 0x510   :  { %8805 = vmatprep.subr.bf16.mxu0 %v24831_v19  ;;  %8927 = vmatprep.subr.bf16.mxu1 %v24834_v16  ;;  %v24858_v19 = vld [vmem:[%s34455_s5 + $0x48] ss:$16 sps:$4 sm:$0xff]   ;;  %v8038_v16 = vor.u32 %v8036_v26, %v8006_v49  ;;  %v24861_v26 = vld [vmem:[%s34455_s5 + $0x60] ss:$16 sps:$4 sm:$0xff]  }
 0x513   :  { %8806 = vmatpush1.bf16.msra.mxu0 %v24829_v59  ;;  %8928 = vmatpush1.bf16.msra.mxu1 %v24832_v18  ;;  %v24863_v59 = vld [vmem:[%s34455_s5 + $0x64] ss:$16 sps:$4 sm:$0xff]   ;;  %v24866_v18 = vld [vmem:[%s34455_s5 + $0x6c] ss:$16 sps:$4 sm:$0xff]  }
 0x514   :  { %8807 = vmatprep.subr.bf16.mxu0 %v24837_v56  ;;  %8929 = vmatprep.subr.bf16.mxu1 %v24840_v62  ;;  %v8043_v56 = vsel %vm176_vm6, %v8038_v16, %v8042_v55  ;;  %v8063_v62 = vor.u32 %v8061_v50, %v8050_v6  ;;  %v24881_v6 = vld [vmem:[%s34455_s5 + $0xc4] ss:$16 sps:$4 sm:$0xff]   ;;  %v24908_v50 = vld [vmem:[%s34455_s5 + $0x14c] ss:$16 sps:$4 sm:$0xff]  }
 0x515   :  { %v24905_v16 = vld [vmem:[%s34455_s5 + $0x144] ss:$16 sps:$4 sm:$0xff]  }
 0x517   :  { %8808 = vmatpush1.bf16.msra.mxu0 %v24835_v8  ;;  %8930 = vmatpush1.bf16.msra.mxu1 %v24838_v22  ;;  %v24869_v8 = vld [vmem:[%s34455_s5 + $0x84] ss:$16 sps:$4 sm:$0xff]   ;;  %v24872_v22 = vld [vmem:[%s34455_s5 + $0x8c] ss:$16 sps:$4 sm:$0xff]  }
 0x518   :  { %9622 = vmatprep.subr.bf16.mxu0 %v24843_v28  ;;  %9744 = vmatprep.subr.bf16.mxu1 %v24846_v45  ;;  %v8058_v28 = vshrl.u32 %v30168_v41, 16  ;;  %v24867_v45 = vld [vmem:[%s34455_s5 + $0x80] ss:$16 sps:$4 sm:$0xff]  }
 0x51a   :  { %8810 = vmatmul.mubr.bf16.vlgmr.msra.gmra.mrb[76].mxu0 %v8007_v57  ;;  %8932 = vmatmul.mubr.bf16.vlgmr.msra.gmra.mrb[76].mxu1 %v8007_v57  ;;  %v8060_v49 = vor.u32 %v8058_v28, %v8042_v55  ;;  %v24890_v57 = vld [vmem:[%s34455_s5 + $0xec] ss:$16 sps:$4 sm:$0xff]   ;;  %v24894_v55 = vld [vmem:[%s34455_s5 + $0x108] ss:$16 sps:$4 sm:$0xff]   ;;  %v24915_v28 = vld [vmem:[%s34455_s5 + $0x180] ss:$16 sps:$4 sm:$0xff]  }
 0x51b   :  { %8819 = vmatprep.mubr.bf16.mxu0 %v8051_v3  ;;  %8941 = vmatprep.mubr.bf16.mxu1 %v8051_v3  ;;  %v24893_v3 = vld [vmem:[%s34455_s5 + $0x104] ss:$16 sps:$4 sm:$0xff]  }
 0x51c   :  { %9623 = vmatpush1.bf16.msra.mxu0 %v24841_v46  ;;  %9745 = vmatpush1.bf16.msra.mxu1 %v24844_v24  ;;  %v24873_v46 = vld [vmem:[%s34455_s5 + $0xa0] ss:$16 sps:$4 sm:$0xff]   ;;  %v24876_v24 = vld [vmem:[%s34455_s5 + $0xa8] ss:$16 sps:$4 sm:$0xff]  }
 0x51d   :  { %9624 = vmatprep.subr.bf16.mxu0 %v24850_v23  ;;  %9746 = vmatprep.subr.bf16.mxu1 %v24853_v10  ;;  %v24882_v23 = vld [vmem:[%s34455_s5 + $0xc8] ss:$16 sps:$4 sm:$0xff]   ;;  %v24885_v10 = vld [vmem:[%s34455_s5 + $0xe0] ss:$16 sps:$4 sm:$0xff]  }
 0x520   :  { %9625 = vmatpush1.bf16.msra.mxu0 %v24848_v30  ;;  %9747 = vmatpush1.bf16.msra.mxu1 %v24851_v34  ;;  %v24896_v30 = vld [vmem:[%s34455_s5 + $0x10c] ss:$16 sps:$4 sm:$0xff]   ;;  %v24891_v34 = vld [vmem:[%s34455_s5 + $0x100] ss:$16 sps:$4 sm:$0xff]  }
 0x521   :  { %9626 = vmatprep.subr.bf16.mxu0 %v24857_v0  ;;  %9748 = vmatprep.subr.bf16.mxu1 %v24860_v44  ;;  %v24899_v0 = vld [vmem:[%s34455_s5 + $0x124] ss:$16 sps:$4 sm:$0xff]   ;;  %v24902_v44 = vld [vmem:[%s34455_s5 + $0x12c] ss:$16 sps:$4 sm:$0xff]  }
 0x522   :  { %8820 = vmatmul.mubr.bf16.gmra.mrb[80].mxu0 %v8043_v56  ;;  %8942 = vmatmul.mubr.bf16.gmra.mrb[80].mxu1 %v8043_v56  ;;  %v24911_v56 = vld [vmem:[%s34455_s5 + $0x164] ss:$16 sps:$4 sm:$0xff]  }
 0x523   :  { %8829 = vmatprep.mubr.bf16.mxu0 %v8063_v62  ;;  %8951 = vmatprep.mubr.bf16.mxu1 %v8063_v62  ;;  %v24914_v62 = vld [vmem:[%s34455_s5 + $0x16c] ss:$16 sps:$4 sm:$0xff]  }
 0x524   :  { %9627 = vmatpush1.bf16.msra.mxu0 %v24855_v43  ;;  %9749 = vmatpush1.bf16.msra.mxu1 %v24858_v19  ;;  %v24897_v43 = vld [vmem:[%s34455_s5 + $0x120] ss:$16 sps:$4 sm:$0xff]   ;;  %v24900_v19 = vld [vmem:[%s34455_s5 + $0x128] ss:$16 sps:$4 sm:$0xff]  }
 0x525   :  { %9628 = vmatprep.subr.bf16.mxu0 %v24863_v59  ;;  %9750 = vmatprep.subr.bf16.mxu1 %v24866_v18  ;;  %v24903_v59 = vld [vmem:[%s34455_s5 + $0x140] ss:$16 sps:$4 sm:$0xff]   ;;  %v24906_v18 = vld [vmem:[%s34455_s5 + $0x148] ss:$16 sps:$4 sm:$0xff]  }
 0x528   :  { %9629 = vmatpush1.bf16.msra.mxu0 %v24861_v26  ;;  %9751 = vmatpush1.bf16.msra.mxu1 %v24864_v7  ;;  %v24909_v26 = vld [vmem:[%s34455_s5 + $0x160] ss:$16 sps:$4 sm:$0xff]   ;;  %v24912_v7 = vld [vmem:[%s34455_s5 + $0x168] ss:$16 sps:$4 sm:$0xff]  }
 0x529   :  { %9630 = vmatprep.subr.bf16.mxu0 %v24869_v8  ;;  %9752 = vmatprep.subr.bf16.mxu1 %v24872_v22  ;;  %v24917_v8 = vld [vmem:[%s34455_s5 + $0x184] ss:$16 sps:$4 sm:$0xff]   ;;  %v24920_v22 = vld [vmem:[%s34455_s5 + $0x18c] ss:$16 sps:$4 sm:$0xff]  }
 0x52a   :  { %8830 = vmatmul.mubr.bf16.gmra.mrb[88].mxu0 %v8060_v49  ;;  %8952 = vmatmul.mubr.bf16.gmra.mrb[88].mxu1 %v8060_v49  ;;  %v24924_v49 = vld [vmem:[%s34455_s5 + $0x1a8] ss:$16 sps:$4 sm:$0xff]  }
 0x52b   :  { %9654 = vmatprep.mubr.bf16.mxu0 %v29836_v9  ;;  %9776 = vmatprep.mubr.bf16.mxu1 %v29836_v9  ;;  %v24884_v9 = vld [vmem:[%s34455_s5 + $0xcc] ss:$16 sps:$4 sm:$0xff]  }
 0x52c   :  { %9631 = vmatpush1.bf16.msra.mxu0 %v24867_v45  ;;  %9753 = vmatpush1.bf16.msra.mxu1 %v24870_v58  ;;  %v24918_v45 = vld [vmem:[%s34455_s5 + $0x188] ss:$16 sps:$4 sm:$0xff]   ;;  %v24923_v58 = vld [vmem:[%s34455_s5 + $0x1a4] ss:$16 sps:$4 sm:$0xff]  }
 0x52d   :  { %9632 = vmatprep.subr.bf16.mxu0 %v24875_v31  ;;  %9754 = vmatprep.subr.bf16.mxu1 %v24878_v39  ;;  %v24926_v31 = vld [vmem:[%s34455_s5 + $0x1ac] ss:$16 sps:$4 sm:$0xff]   ;;  %v24921_v39 = vld [vmem:[%s34455_s5 + $0x1a0] ss:$16 sps:$4 sm:$0xff]  }
 0x530   :  { %9633 = vmatpush1.bf16.msra.mxu0 %v24873_v46  ;;  %9755 = vmatpush1.bf16.msra.mxu1 %v24876_v24  ;;  %v24929_v46 = vld [vmem:[%s34455_s5 + $0x1c4] ss:$16 sps:$4 sm:$0xff]   ;;  %v24932_v24 = vld [vmem:[%s34455_s5 + $0x1cc] ss:$16 sps:$4 sm:$0xff]  }
 0x531   :  { %9634 = vmatprep.subr.bf16.mxu0 %v24881_v6  ;;  %9756 = vmatprep.subr.bf16.mxu1 %v24884_v9  ;;  %v24927_v6 = vld [vmem:[%s34455_s5 + $0x1c0] ss:$16 sps:$4 sm:$0xff]   ;;  %v24930_v9 = vld [vmem:[%s34455_s5 + $0x1c8] ss:$16 sps:$4 sm:$0xff]  }
 0x534   :  { %9635 = vmatpush1.bf16.msra.mxu0 %v24879_v4  ;;  %9757 = vmatpush1.bf16.msra.mxu1 %v24882_v23  ;;  %v24935_v4 = vld [vmem:[%s34455_s5 + $0x1e4] ss:$16 sps:$4 sm:$0xff]   ;;  %v24938_v23 = vld [vmem:[%s34455_s5 + $0x1ec] ss:$16 sps:$4 sm:$0xff]  }
 0x535   :  { %9636 = vmatprep.subr.bf16.mxu0 %v24887_v42  ;;  %9758 = vmatprep.subr.bf16.mxu1 %v24890_v57  ;;  %v24933_v42 = vld [vmem:[%s34455_s5 + $0x1e0] ss:$16 sps:$4 sm:$0xff]   ;;  %v24936_v57 = vld [vmem:[%s34455_s5 + $0x1e8] ss:$16 sps:$4 sm:$0xff]  }
 0x538   :  { %9637 = vmatpush1.bf16.msra.mxu0 %v24885_v10  ;;  %9759 = vmatpush1.bf16.msra.mxu1 %v24888_v13  ;;  %v24941_v10 = vld [vmem:[%s34455_s5 + $0x204] ss:$16 sps:$4 sm:$0xff]   ;;  %v24944_v13 = vld [vmem:[%s34455_s5 + $0x20c] ss:$16 sps:$4 sm:$0xff]  }
 0x539   :  { %9638 = vmatprep.subr.bf16.mxu0 %v24893_v3  ;;  %9760 = vmatprep.subr.bf16.mxu1 %v24896_v30  ;;  %v24939_v3 = vld [vmem:[%s34455_s5 + $0x200] ss:$16 sps:$4 sm:$0xff]   ;;  %v24942_v30 = vld [vmem:[%s34455_s5 + $0x208] ss:$16 sps:$4 sm:$0xff]  }
 0x53c   :  { %9639 = vmatpush1.bf16.msra.mxu0 %v24891_v34  ;;  %9761 = vmatpush1.bf16.msra.mxu1 %v24894_v55  ;;  %v24947_v34 = vld [vmem:[%s34455_s5 + $0x224] ss:$16 sps:$4 sm:$0xff]   ;;  %v24950_v55 = vld [vmem:[%s34455_s5 + $0x22c] ss:$16 sps:$4 sm:$0xff]  }
 0x53d   :  { %9640 = vmatprep.subr.bf16.mxu0 %v24899_v0  ;;  %9762 = vmatprep.subr.bf16.mxu1 %v24902_v44  ;;  %v24945_v0 = vld [vmem:[%s34455_s5 + $0x220] ss:$16 sps:$4 sm:$0xff]   ;;  %v24948_v44 = vld [vmem:[%s34455_s5 + $0x228] ss:$16 sps:$4 sm:$0xff]  }
 0x540   :  { %9641 = vmatpush1.bf16.msra.mxu0 %v24897_v43  ;;  %9763 = vmatpush1.bf16.msra.mxu1 %v24900_v19  ;;  %v24953_v43 = vld [vmem:[%s34455_s5 + $0x244] ss:$16 sps:$4 sm:$0xff]  }
 0x541   :  { %9642 = vmatprep.subr.bf16.mxu0 %v24905_v16  ;;  %9764 = vmatprep.subr.bf16.mxu1 %v24908_v50  ;;  %v7669_v19 = vld [vmem:[#allocation3 + $0x40] sm:$0x33]  ;;  %v24951_v16 = vld [vmem:[%s34455_s5 + $0x240] ss:$16 sps:$4 sm:$0xff]  }
 0x542   :  { %v24954_v50 = vld [vmem:[%s34455_s5 + $0x248] ss:$16 sps:$4 sm:$0xff]  }
 0x544   :  { %9643 = vmatpush1.bf16.msra.mxu0 %v24903_v59  ;;  %9765 = vmatpush1.bf16.msra.mxu1 %v24906_v18  ;;  %v20784_v59 = vcombine.high %v7669_v19, %v7669_v19  ;;  %v24960_v18 = vld [vmem:[%s34455_s5 + $0x264] ss:$16 sps:$4 sm:$0xff]  }
 0x545   :  { %9644 = vmatprep.subr.bf16.mxu0 %v24911_v56  ;;  %9766 = vmatprep.subr.bf16.mxu1 %v24914_v62  ;;  %v24963_v56 = vld [vmem:[%s34455_s5 + $0x26c] ss:$16 sps:$4 sm:$0xff]   ;;  %v24958_v62 = vld [vmem:[%s34455_s5 + $0x260] ss:$16 sps:$4 sm:$0xff]  }
 0x548   :  { %9645 = vmatpush1.bf16.msra.mxu0 %v24909_v26  ;;  %9767 = vmatpush1.bf16.msra.mxu1 %v24912_v7  ;;  %v24961_v26 = vld [vmem:[%s34455_s5 + $0x268] ss:$16 sps:$4 sm:$0xff]   ;;  %v24967_v7 = vld [vmem:[%s34455_s5 + $0x284] ss:$16 sps:$4 sm:$0xff]  }
 0x549   :  { %9646 = vmatprep.subr.bf16.mxu0 %v24917_v8  ;;  %9768 = vmatprep.subr.bf16.mxu1 %v24920_v22  ;;  %v24970_v8 = vld [vmem:[%s34455_s5 + $0x28c] ss:$16 sps:$4 sm:$0xff]   ;;  %v24965_v22 = vld [vmem:[%s34455_s5 + $0x280] ss:$16 sps:$4 sm:$0xff]  }
 0x54c   :  { %9647 = vmatpush1.bf16.msra.mxu0 %v24915_v28  ;;  %9769 = vmatpush1.bf16.msra.mxu1 %v24918_v45  ;;  %v20783_v28 = vcombine.low %v7669_v19, %v7669_v19  ;;  %v24968_v45 = vld [vmem:[%s34455_s5 + $0x288] ss:$16 sps:$4 sm:$0xff]  }
 0x54d   :  { %9648 = vmatprep.subr.bf16.mxu0 %v24923_v58  ;;  %9770 = vmatprep.subr.bf16.mxu1 %v24926_v31  ;;  %v24973_v58 = vld [vmem:[%s34455_s5 + $0x2a4] ss:$16 sps:$4 sm:$0xff]   ;;  %v24976_v31 = vld [vmem:[%s34455_s5 + $0x2ac] ss:$16 sps:$4 sm:$0xff]   ;;  %v25004_v19 = vld [vmem:[%s34455_s5 + $0x348] ss:$16 sps:$4 sm:$0xff]  }
 0x550   :  { %9649 = vmatpush1.bf16.msra.mxu0 %v24921_v39  ;;  %9771 = vmatpush1.bf16.msra.mxu1 %v24924_v49  ;;  %v24971_v39 = vld [vmem:[%s34455_s5 + $0x2a0] ss:$16 sps:$4 sm:$0xff]   ;;  %v24974_v49 = vld [vmem:[%s34455_s5 + $0x2a8] ss:$16 sps:$4 sm:$0xff]  }
 0x551   :  { %9650 = vmatprep.subr.bf16.mxu0 %v24929_v46  ;;  %9772 = vmatprep.subr.bf16.mxu1 %v24932_v24  ;;  %v24979_v46 = vld [vmem:[%s34455_s5 + $0x2c4] ss:$16 sps:$4 sm:$0xff]   ;;  %v24982_v24 = vld [vmem:[%s34455_s5 + $0x2cc] ss:$16 sps:$4 sm:$0xff]  }
 0x554   :  { %9651 = vmatpush1.bf16.msra.mxu0 %v24927_v6  ;;  %9773 = vmatpush1.bf16.msra.mxu1 %v24930_v9  ;;  %v24977_v6 = vld [vmem:[%s34455_s5 + $0x2c0] ss:$16 sps:$4 sm:$0xff]   ;;  %v24985_v9 = vld [vmem:[%s34455_s5 + $0x2e4] ss:$16 sps:$4 sm:$0xff]  }
 0x555   :  { %9652 = vmatprep.subr.bf16.mxu0 %v24935_v4  ;;  %9774 = vmatprep.subr.bf16.mxu1 %v24938_v23  ;;  %v24988_v4 = vld [vmem:[%s34455_s5 + $0x2ec] ss:$16 sps:$4 sm:$0xff]   ;;  %v24983_v23 = vld [vmem:[%s34455_s5 + $0x2e0] ss:$16 sps:$4 sm:$0xff]  }
 0x558   :  { %9653 = vmatpush1.bf16.msra.mxu0 %v24933_v42  ;;  %9775 = vmatpush1.bf16.msra.mxu1 %v24936_v57  ;;  %v24986_v42 = vld [vmem:[%s34455_s5 + $0x2e8] ss:$16 sps:$4 sm:$0xff]   ;;  %v24991_v57 = vld [vmem:[%s34455_s5 + $0x304] ss:$16 sps:$4 sm:$0xff]  }
 0x559   :  { %9683 = vmatprep.subr.bf16.mxu0 %v24941_v10  ;;  %9805 = vmatprep.subr.bf16.mxu1 %v24944_v13  ;;  %v24994_v10 = vld [vmem:[%s34455_s5 + $0x30c] ss:$16 sps:$4 sm:$0xff]   ;;  %v24989_v13 = vld [vmem:[%s34455_s5 + $0x300] ss:$16 sps:$4 sm:$0xff]  }
 0x55b   :  { %9655 = vmatmul.mubr.bf16.vlgmr.msra.gmra.mrb[76].mxu0 %v29842_v47  ;;  %9777 = vmatmul.mubr.bf16.vlgmr.msra.gmra.mrb[76].mxu1 %v29842_v47  ;;  %v24956_v47 = vld [vmem:[%s34455_s5 + $0x24c] ss:$16 sps:$4 sm:$0xff]  }
 0x55c   :  { %9664 = vmatprep.mubr.bf16.mxu0 %v29855_v21  ;;  %9684 = vmatpush1.bf16.msra.mxu0 %v24939_v3  ;;  %v24992_v3 = vld [vmem:[%s34455_s5 + $0x308] ss:$16 sps:$4 sm:$0xff]  }
 0x55d   :  { %9786 = vmatprep.mubr.bf16.mxu1 %v29855_v21  ;;  %9806 = vmatpush1.bf16.msra.mxu1 %v24942_v30  ;;  %v24997_v30 = vld [vmem:[%s34455_s5 + $0x324] ss:$16 sps:$4 sm:$0xff]  }
 0x55e   :  { %9685 = vmatprep.subr.bf16.mxu0 %v24947_v34  ;;  %9807 = vmatprep.subr.bf16.mxu1 %v24950_v55  ;;  %v25000_v34 = vld [vmem:[%s34455_s5 + $0x32c] ss:$16 sps:$4 sm:$0xff]   ;;  %v24995_v55 = vld [vmem:[%s34455_s5 + $0x320] ss:$16 sps:$4 sm:$0xff]  }
 0x560   :  { %9686 = vmatpush1.bf16.msra.mxu0 %v24945_v0  ;;  %v24998_v0 = vld [vmem:[%s34455_s5 + $0x328] ss:$16 sps:$4 sm:$0xff]  }
 0x561   :  { %9808 = vmatpush1.bf16.msra.mxu1 %v24948_v44  ;;  %9687 = vmatprep.subr.bf16.mxu0 %v24953_v43  ;;  %v25003_v44 = vld [vmem:[%s34455_s5 + $0x344] ss:$16 sps:$4 sm:$0xff]   ;;  %v25006_v43 = vld [vmem:[%s34455_s5 + $0x34c] ss:$16 sps:$4 sm:$0xff]  }
 0x562   :  { %9809 = vmatprep.subr.bf16.mxu1 %v24956_v47  ;;  %v25001_v47 = vld [vmem:[%s34455_s5 + $0x340] ss:$16 sps:$4 sm:$0xff]  }
 0x563   :  { %9665 = vmatmul.mubr.bf16.gmra.mrb[80].mxu0 %v29857_v20  ;;  %9787 = vmatmul.mubr.bf16.gmra.mrb[80].mxu1 %v29857_v20 }
 0x564   :  { %9674 = vmatprep.mubr.bf16.mxu0 %v20784_v59  ;;  %9688 = vmatpush1.bf16.msra.mxu0 %v24951_v16  ;;  %v25009_v16 = vld [vmem:[%s34455_s5 + $0x364] ss:$16 sps:$4 sm:$0xff]  }
 0x565   :  { %9796 = vmatprep.mubr.bf16.mxu1 %v20784_v59  ;;  %9810 = vmatpush1.bf16.msra.mxu1 %v24954_v50  ;;  %v25012_v50 = vld [vmem:[%s34455_s5 + $0x36c] ss:$16 sps:$4 sm:$0xff]   ;;  %v25007_v59 = vld [vmem:[%s34455_s5 + $0x360] ss:$16 sps:$4 sm:$0xff]  }
 0x566   :  { %9689 = vmatprep.subr.bf16.mxu0 %v24960_v18  ;;  %9811 = vmatprep.subr.bf16.mxu1 %v24963_v56  ;;  %v25010_v18 = vld [vmem:[%s34455_s5 + $0x368] ss:$16 sps:$4 sm:$0xff]   ;;  %v25015_v56 = vld [vmem:[%s34455_s5 + $0x384] ss:$16 sps:$4 sm:$0xff]  }
 0x568   :  { %9690 = vmatpush1.bf16.msra.mxu0 %v24958_v62  ;;  %v25018_v62 = vld [vmem:[%s34455_s5 + $0x38c] ss:$16 sps:$4 sm:$0xff]  }
 0x569   :  { %9812 = vmatpush1.bf16.msra.mxu1 %v24961_v26  ;;  %9691 = vmatprep.subr.bf16.mxu0 %v24967_v7  ;;  %v25013_v26 = vld [vmem:[%s34455_s5 + $0x380] ss:$16 sps:$4 sm:$0xff]   ;;  %v25016_v7 = vld [vmem:[%s34455_s5 + $0x388] ss:$16 sps:$4 sm:$0xff]  }
 0x56a   :  { %9813 = vmatprep.subr.bf16.mxu1 %v24970_v8  ;;  %v25021_v8 = vld [vmem:[%s34455_s5 + $0x3a4] ss:$16 sps:$4 sm:$0xff]  }
 0x56b   :  { %9675 = vmatmul.mubr.bf16.gmra.mrb[92].mxu0 %v20783_v28  ;;  %9797 = vmatmul.mubr.bf16.gmra.mrb[92].mxu1 %v20783_v28  ;;  %v25019_v28 = vld [vmem:[%s34455_s5 + $0x3a0] ss:$16 sps:$4 sm:$0xff]  }
 0x56c   :  { %9692 = vmatpush1.bf16.msra.mxu0 %v24965_v22  ;;  %9715 = vmatprep.mubr.bf16.mxu0 %v29918_v54  ;;  %v25024_v22 = vld [vmem:[%s34455_s5 + $0x3ac] ss:$16 sps:$4 sm:$0xff]  }
 0x56d   :  { %9814 = vmatpush1.bf16.msra.mxu1 %v24968_v45  ;;  %9837 = vmatprep.mubr.bf16.mxu1 %v29918_v54  ;;  %v24980_v54 = vld [vmem:[%s34455_s5 + $0x2c8] ss:$16 sps:$4 sm:$0xff]  }
 0x56e   :  { %9693 = vmatprep.subr.bf16.mxu0 %v24973_v58  ;;  %9815 = vmatprep.subr.bf16.mxu1 %v24976_v31  ;;  %v25022_v45 = vld [vmem:[%s34455_s5 + $0x3a8] ss:$16 sps:$4 sm:$0xff]   ;;  %v25027_v58 = vld [vmem:[%s34455_s5 + $0x3c4] ss:$16 sps:$4 sm:$0xff]   ;;  %v25030_v31 = vld [vmem:[%s34455_s5 + $0x3cc] ss:$16 sps:$4 sm:$0xff]  }
 0x570   :  { %9694 = vmatpush1.bf16.msra.mxu0 %v24971_v39  ;;  %v25025_v39 = vld [vmem:[%s34455_s5 + $0x3c0] ss:$16 sps:$4 sm:$0xff]  }
 0x571   :  { %9816 = vmatpush1.bf16.msra.mxu1 %v24974_v49  ;;  %9695 = vmatprep.subr.bf16.mxu0 %v24979_v46  ;;  %v25028_v49 = vld [vmem:[%s34455_s5 + $0x3c8] ss:$16 sps:$4 sm:$0xff]   ;;  %v25033_v46 = vld [vmem:[%s34455_s5 + $0x3e4] ss:$16 sps:$4 sm:$0xff]  }
 0x572   :  { %9817 = vmatprep.subr.bf16.mxu1 %v24982_v24  ;;  %v25036_v24 = vld [vmem:[%s34455_s5 + $0x3ec] ss:$16 sps:$4 sm:$0xff]  }
 0x574   :  { %9696 = vmatpush1.bf16.msra.mxu0 %v24977_v6  ;;  %v25031_v6 = vld [vmem:[%s34455_s5 + $0x3e0] ss:$16 sps:$4 sm:$0xff]  }
 0x575   :  { %9818 = vmatpush1.bf16.msra.mxu1 %v24980_v54  ;;  %9697 = vmatprep.subr.bf16.mxu0 %v24985_v9  ;;  %v25034_v54 = vld [vmem:[%s34455_s5 + $0x3e8] ss:$16 sps:$4 sm:$0xff]   ;;  %v25039_v9 = vld [vmem:[%s34455_s5 + $0x804] ss:$16 sps:$4 sm:$0xff]  }
 0x576   :  { %9819 = vmatprep.subr.bf16.mxu1 %v24988_v4  ;;  %v25042_v4 = vld [vmem:[%s34455_s5 + $0x80c] ss:$16 sps:$4 sm:$0xff]  }
 0x578   :  { %9698 = vmatpush1.bf16.msra.mxu0 %v24983_v23  ;;  %v25037_v23 = vld [vmem:[%s34455_s5 + $0x800] ss:$16 sps:$4 sm:$0xff]  }
 0x579   :  { %9820 = vmatpush1.bf16.msra.mxu1 %v24986_v42  ;;  %9699 = vmatprep.subr.bf16.mxu0 %v24991_v57  ;;  %v25040_v42 = vld [vmem:[%s34455_s5 + $0x808] ss:$16 sps:$4 sm:$0xff]   ;;  %v25045_v57 = vld [vmem:[%s34455_s5 + $0x824] ss:$16 sps:$4 sm:$0xff]  }
 0x57a   :  { %9821 = vmatprep.subr.bf16.mxu1 %v24994_v10  ;;  %v25048_v10 = vld [vmem:[%s34455_s5 + $0x82c] ss:$16 sps:$4 sm:$0xff]  }
 0x57c   :  { %9700 = vmatpush1.bf16.msra.mxu0 %v24989_v13  ;;  %v25043_v13 = vld [vmem:[%s34455_s5 + $0x820] ss:$16 sps:$4 sm:$0xff]  }
 0x57d   :  { %9822 = vmatpush1.bf16.msra.mxu1 %v24992_v3  ;;  %9701 = vmatprep.subr.bf16.mxu0 %v24997_v30  ;;  %v25046_v3 = vld [vmem:[%s34455_s5 + $0x828] ss:$16 sps:$4 sm:$0xff]   ;;  %v25051_v30 = vld [vmem:[%s34455_s5 + $0x844] ss:$16 sps:$4 sm:$0xff]  }
 0x57e   :  { %9823 = vmatprep.subr.bf16.mxu1 %v25000_v34  ;;  %v7670_v34 = vld [vmem:[#allocation3 + $0x48] sm:$0x33] }
 0x580   :  { %9702 = vmatpush1.bf16.msra.mxu0 %v24995_v55  ;;  %v25049_v55 = vld [vmem:[%s34455_s5 + $0x840] ss:$16 sps:$4 sm:$0xff]  }
 0x581   :  { %9824 = vmatpush1.bf16.msra.mxu1 %v24998_v0  ;;  %9703 = vmatprep.subr.bf16.mxu0 %v25003_v44  ;;  %v25052_v0 = vld [vmem:[%s34455_s5 + $0x848] ss:$16 sps:$4 sm:$0xff]   ;;  %v20786_v44 = vcombine.high %v7670_v34, %v7670_v34 }
 0x582   :  { %9825 = vmatprep.subr.bf16.mxu1 %v25006_v43  ;;  %v25058_v43 = vld [vmem:[%s34455_s5 + $0x864] ss:$16 sps:$4 sm:$0xff]  }
 0x584   :  { %9704 = vmatpush1.bf16.msra.mxu0 %v25001_v47  ;;  %v25061_v47 = vld [vmem:[%s34455_s5 + $0x86c] ss:$16 sps:$4 sm:$0xff]  }
 0x585   :  { %9826 = vmatpush1.bf16.msra.mxu1 %v25004_v19  ;;  %9705 = vmatprep.subr.bf16.mxu0 %v25009_v16  ;;  %v25056_v19 = vld [vmem:[%s34455_s5 + $0x860] ss:$16 sps:$4 sm:$0xff]   ;;  %v25059_v16 = vld [vmem:[%s34455_s5 + $0x868] ss:$16 sps:$4 sm:$0xff]  }
 0x586   :  { %9827 = vmatprep.subr.bf16.mxu1 %v25012_v50  ;;  %v25065_v50 = vld [vmem:[%s34455_s5 + $0x884] ss:$16 sps:$4 sm:$0xff]  }
 0x588   :  { %9706 = vmatpush1.bf16.msra.mxu0 %v25007_v59  ;;  %v25068_v59 = vld [vmem:[%s34455_s5 + $0x88c] ss:$16 sps:$4 sm:$0xff]  }
 0x589   :  { %9828 = vmatpush1.bf16.msra.mxu1 %v25010_v18  ;;  %9707 = vmatprep.subr.bf16.mxu0 %v25015_v56  ;;  %v10011_v18 = vrot.slane %v29855_v21, 1  ;;  %v20785_v56 = vcombine.low %v7670_v34, %v7670_v34 }
 0x58a   :  { %9829 = vmatprep.subr.bf16.mxu1 %v25018_v62  ;;  %v25063_v62 = vld [vmem:[%s34455_s5 + $0x880] ss:$16 sps:$4 sm:$0xff]  }
 0x58c   :  { %9708 = vmatpush1.bf16.msra.mxu0 %v25013_v26  ;;  %v10010_v26 = vrot.slane %v29941_v11, 1  ;;  %v25074_v11 = vld [vmem:[%s34455_s5 + $0x8ac] ss:$16 sps:$4 sm:$0xff]  }
 0x58d   :  { %9830 = vmatpush1.bf16.msra.mxu1 %v25016_v7  ;;  %9709 = vmatprep.subr.bf16.mxu0 %v25021_v8  ;;  %v25066_v7 = vld [vmem:[%s34455_s5 + $0x888] ss:$16 sps:$4 sm:$0xff]   ;;  %v25071_v8 = vld [vmem:[%s34455_s5 + $0x8a4] ss:$16 sps:$4 sm:$0xff]  }
 0x58e   :  { %9831 = vmatprep.subr.bf16.mxu1 %v25024_v22  ;;  %v10012_v22 = vsel %vm810_vm7, %v10010_v26, %v10011_v18  ;;  %v25105_v26 = vld [vmem:[%s34455_s5 + $0x960] ss:$16 sps:$4 sm:$0xff]  }
 0x590   :  { %9710 = vmatpush1.bf16.msra.mxu0 %v25019_v28  ;;  %v25069_v28 = vld [vmem:[%s34455_s5 + $0x8a0] ss:$16 sps:$4 sm:$0xff]  }
 0x591   :  { %9832 = vmatpush1.bf16.msra.mxu1 %v25022_v45  ;;  %9711 = vmatprep.subr.bf16.mxu0 %v25027_v58  ;;  %v25072_v45 = vld [vmem:[%s34455_s5 + $0x8a8] ss:$16 sps:$4 sm:$0xff]   ;;  %v25077_v58 = vld [vmem:[%s34455_s5 + $0x8c4] ss:$16 sps:$4 sm:$0xff]  }
 0x592   :  { %9833 = vmatprep.subr.bf16.mxu1 %v25030_v31  ;;  %v25080_v31 = vld [vmem:[%s34455_s5 + $0x8cc] ss:$16 sps:$4 sm:$0xff]  }
 0x594   :  { %9712 = vmatpush1.bf16.msra.mxu0 %v25025_v39  ;;  %v25075_v39 = vld [vmem:[%s34455_s5 + $0x8c0] ss:$16 sps:$4 sm:$0xff]  }
 0x595   :  { %9834 = vmatpush1.bf16.msra.mxu1 %v25028_v49  ;;  %9713 = vmatprep.subr.bf16.mxu0 %v25033_v46  ;;  %v25078_v49 = vld [vmem:[%s34455_s5 + $0x8c8] ss:$16 sps:$4 sm:$0xff]   ;;  %v25083_v46 = vld [vmem:[%s34455_s5 + $0x8e4] ss:$16 sps:$4 sm:$0xff]  }
 0x596   :  { %9835 = vmatprep.subr.bf16.mxu1 %v25036_v24  ;;  %v25086_v24 = vld [vmem:[%s34455_s5 + $0x8ec] ss:$16 sps:$4 sm:$0xff]  }
 0x598   :  { %9714 = vmatpush1.bf16.msra.mxu0 %v25031_v6  ;;  %v25081_v6 = vld [vmem:[%s34455_s5 + $0x8e0] ss:$16 sps:$4 sm:$0xff]  }
 0x599   :  { %9836 = vmatpush1.bf16.msra.mxu1 %v25034_v54  ;;  %10679 = vmatprep.subr.bf16.mxu0 %v25039_v9  ;;  %v25084_v54 = vld [vmem:[%s34455_s5 + $0x8e8] ss:$16 sps:$4 sm:$0xff]   ;;  %v25089_v9 = vld [vmem:[%s34455_s5 + $0x904] ss:$16 sps:$4 sm:$0xff]  }
 0x59a   :  { %10801 = vmatprep.subr.bf16.mxu1 %v25042_v4  ;;  %v25092_v4 = vld [vmem:[%s34455_s5 + $0x90c] ss:$16 sps:$4 sm:$0xff]  }
 0x59b   :  { %9716 = vmatmul.mubr.bf16.vlgmr.msra.gmra.mrb[76].mxu0 %v30135_v51 }
 0x59c   :  { %9838 = vmatmul.mubr.bf16.vlgmr.msra.gmra.mrb[76].mxu1 %v30135_v51  ;;  %9725 = vmatprep.mubr.bf16.mxu0 %v29921_v14  ;;  %v25054_v51 = vld [vmem:[%s34455_s5 + $0x84c] ss:$16 sps:$4 sm:$0xff]  }
 0x59d   :  { %9847 = vmatprep.mubr.bf16.mxu1 %v29921_v14  ;;  %10680 = vmatpush1.bf16.msra.mxu0 %v25037_v23  ;;  %v25087_v23 = vld [vmem:[%s34455_s5 + $0x900] ss:$16 sps:$4 sm:$0xff]  }
 0x59e   :  { %10802 = vmatpush1.bf16.msra.mxu1 %v25040_v42  ;;  %10681 = vmatprep.subr.bf16.mxu0 %v25045_v57  ;;  %v25090_v42 = vld [vmem:[%s34455_s5 + $0x908] ss:$16 sps:$4 sm:$0xff]   ;;  %v25095_v57 = vld [vmem:[%s34455_s5 + $0x924] ss:$16 sps:$4 sm:$0xff]  }
 0x59f   :  { %10803 = vmatprep.subr.bf16.mxu1 %v25048_v10  ;;  %v25098_v10 = vld [vmem:[%s34455_s5 + $0x92c] ss:$16 sps:$4 sm:$0xff]  }
 0x5a1   :  { %10682 = vmatpush1.bf16.msra.mxu0 %v25043_v13  ;;  %v25093_v13 = vld [vmem:[%s34455_s5 + $0x920] ss:$16 sps:$4 sm:$0xff]  }
 0x5a2   :  { %10804 = vmatpush1.bf16.msra.mxu1 %v25046_v3  ;;  %10683 = vmatprep.subr.bf16.mxu0 %v25051_v30  ;;  %v25096_v3 = vld [vmem:[%s34455_s5 + $0x928] ss:$16 sps:$4 sm:$0xff]   ;;  %v25101_v30 = vld [vmem:[%s34455_s5 + $0x944] ss:$16 sps:$4 sm:$0xff]  }
 0x5a3   :  { %9726 = vmatmul.mubr.bf16.gmra.mrb[80].mxu0 %v29968_v17  ;;  %10805 = vmatprep.subr.bf16.mxu1 %v25054_v51  ;;  %v25104_v51 = vld [vmem:[%s34455_s5 + $0x94c] ss:$16 sps:$4 sm:$0xff]  }
 0x5a4   :  { %9848 = vmatmul.mubr.bf16.gmra.mrb[80].mxu1 %v29968_v17  ;;  %9735 = vmatprep.mubr.bf16.mxu0 %v20786_v44 }
 0x5a5   :  { %9857 = vmatprep.mubr.bf16.mxu1 %v20786_v44  ;;  %10684 = vmatpush1.bf16.msra.mxu0 %v25049_v55 }
 0x5a6   :  { %10806 = vmatpush1.bf16.msra.mxu1 %v25052_v0  ;;  %10685 = vmatprep.subr.bf16.mxu0 %v25058_v43  ;;  %v25099_v43 = vld [vmem:[%s34455_s5 + $0x940] ss:$16 sps:$4 sm:$0xff]  }
 0x5a7   :  { %10807 = vmatprep.subr.bf16.mxu1 %v25061_v47 }
 0x5a9   :  { %10686 = vmatpush1.bf16.msra.mxu0 %v25056_v19 }
 0x5aa   :  { %10808 = vmatpush1.bf16.msra.mxu1 %v25059_v16  ;;  %10687 = vmatprep.subr.bf16.mxu0 %v25065_v50  ;;  %v25102_v16 = vld [vmem:[%s34455_s5 + $0x948] ss:$16 sps:$4 sm:$0xff]   ;;  %v25107_v50 = vld [vmem:[%s34455_s5 + $0x964] ss:$16 sps:$4 sm:$0xff]  }
 0x5ab   :  { %9736 = vmatmul.mubr.bf16.gmra.mrb[96].mxu0 %v20785_v56  ;;  %10809 = vmatprep.subr.bf16.mxu1 %v25068_v59 }
 0x5ac   :  { %9858 = vmatmul.mubr.bf16.gmra.mrb[96].mxu1 %v20785_v56  ;;  %10711 = vmatprep.mubr.bf16.mxu0 %v10012_v22 }
 0x5ad   :  { %10688 = vmatpush1.bf16.msra.mxu0 %v25063_v62  ;;  %10833 = vmatprep.mubr.bf16.mxu1 %v10012_v22  ;;  %v25110_v62 = vld [vmem:[%s34455_s5 + $0x96c] ss:$16 sps:$4 sm:$0xff]  }
 0x5ae   :  { %10810 = vmatpush1.bf16.msra.mxu1 %v25066_v7  ;;  %10689 = vmatprep.subr.bf16.mxu0 %v25071_v8  ;;  %v25108_v7 = vld [vmem:[%s34455_s5 + $0x968] ss:$16 sps:$4 sm:$0xff]   ;;  %v25113_v8 = vld [vmem:[%s34455_s5 + $0x984] ss:$16 sps:$4 sm:$0xff]   ;;  %v25116_v22 = vld [vmem:[%s34455_s5 + $0x98c] ss:$16 sps:$4 sm:$0xff]  }
 0x5af   :  { %10811 = vmatprep.subr.bf16.mxu1 %v25074_v11  ;;  %v25111_v11 = vld [vmem:[%s34455_s5 + $0x980] ss:$16 sps:$4 sm:$0xff]  }
 0x5b1   :  { %10690 = vmatpush1.bf16.msra.mxu0 %v25069_v28  ;;  %v25114_v28 = vld [vmem:[%s34455_s5 + $0x988] ss:$16 sps:$4 sm:$0xff]  }
 0x5b2   :  { %10812 = vmatpush1.bf16.msra.mxu1 %v25072_v45  ;;  %10691 = vmatprep.subr.bf16.mxu0 %v25077_v58  ;;  %v25119_v45 = vld [vmem:[%s34455_s5 + $0x9a4] ss:$16 sps:$4 sm:$0xff]   ;;  %v25122_v58 = vld [vmem:[%s34455_s5 + $0x9ac] ss:$16 sps:$4 sm:$0xff]  }
 0x5b3   :  { %10813 = vmatprep.subr.bf16.mxu1 %v25080_v31  ;;  %v25117_v31 = vld [vmem:[%s34455_s5 + $0x9a0] ss:$16 sps:$4 sm:$0xff]  }
 0x5b5   :  { %10692 = vmatpush1.bf16.msra.mxu0 %v25075_v39  ;;  %v25120_v39 = vld [vmem:[%s34455_s5 + $0x9a8] ss:$16 sps:$4 sm:$0xff]  }
 0x5b6   :  { %10814 = vmatpush1.bf16.msra.mxu1 %v25078_v49  ;;  %10693 = vmatprep.subr.bf16.mxu0 %v25083_v46  ;;  %v25125_v49 = vld [vmem:[%s34455_s5 + $0x9c4] ss:$16 sps:$4 sm:$0xff]   ;;  %v25128_v46 = vld [vmem:[%s34455_s5 + $0x9cc] ss:$16 sps:$4 sm:$0xff]  }
 0x5b7   :  { %10815 = vmatprep.subr.bf16.mxu1 %v25086_v24  ;;  %v25123_v24 = vld [vmem:[%s34455_s5 + $0x9c0] ss:$16 sps:$4 sm:$0xff]  }
 0x5b9   :  { %10694 = vmatpush1.bf16.msra.mxu0 %v25081_v6  ;;  %v25126_v6 = vld [vmem:[%s34455_s5 + $0x9c8] ss:$16 sps:$4 sm:$0xff]  }
 0x5ba   :  { %10816 = vmatpush1.bf16.msra.mxu1 %v25084_v54  ;;  %10695 = vmatprep.subr.bf16.mxu0 %v25089_v9  ;;  %v25131_v54 = vld [vmem:[%s34455_s5 + $0x9e4] ss:$16 sps:$4 sm:$0xff]   ;;  %v25134_v9 = vld [vmem:[%s34455_s5 + $0x9ec] ss:$16 sps:$4 sm:$0xff]  }
 0x5bb   :  { %10817 = vmatprep.subr.bf16.mxu1 %v25092_v4  ;;  %v25129_v4 = vld [vmem:[%s34455_s5 + $0x9e0] ss:$16 sps:$4 sm:$0xff]  }
 0x5bd   :  { %10696 = vmatpush1.bf16.msra.mxu0 %v25087_v23  ;;  %v25132_v23 = vld [vmem:[%s34455_s5 + $0x9e8] ss:$16 sps:$4 sm:$0xff]  }
 0x5be   :  { %10818 = vmatpush1.bf16.msra.mxu1 %v25090_v42  ;;  %10697 = vmatprep.subr.bf16.mxu0 %v25095_v57  ;;  %v25137_v42 = vld [vmem:[%s34455_s5 + $0xa04] ss:$16 sps:$4 sm:$0xff]   ;;  %v10008_v57 = vrot.slane %v29857_v20, 1 }
 0x5bf   :  { %10819 = vmatprep.subr.bf16.mxu1 %v25098_v10  ;;  %v25140_v10 = vld [vmem:[%s34455_s5 + $0xa0c] ss:$16 sps:$4 sm:$0xff]  }
 0x5c0   :  { %v30706_v34 = vpop.f32.mrb[84].mxu0  ;;  %v30708_v55 = vpop.f32.mrb[84].mxu1 }
 0x5c1   :  { %10698 = vmatpush1.bf16.msra.mxu0 %v25093_v13  ;;  %v30710_v0 = vpop.f32.mrb[85].mxu0  ;;  %v30712_v44 = vpop.f32.mrb[85].mxu1  ;;  %v10021_v13 = vrot.slane %v29905_v61, 1  ;;  %v25143_v61 = vld [vmem:[%s34455_s5 + $0xa24] ss:$16 sps:$4 sm:$0xff]  }
 0x5c2   :  { %10820 = vmatpush1.bf16.msra.mxu1 %v25096_v3  ;;  %v8774_v47 = vpop.f32.mrb[86].mxu0  ;;  %v8896_v19 = vpop.f32.mrb[86].mxu1  ;;  %10699 = vmatprep.subr.bf16.mxu0 %v25101_v30  ;;  %v10007_v3 = vrot.slane %v29953_v27, 1  ;;  %v25135_v30 = vld [vmem:[%s34455_s5 + $0xa00] ss:$16 sps:$4 sm:$0xff]  }
 0x5c3   :  { %10821 = vmatprep.subr.bf16.mxu1 %v25104_v51  ;;  %v8775_v59 = vpop.f32.mrb[87].mxu0  ;;  %v8897_v56 = vpop.f32.mrb[87].mxu1  ;;  %v10022_v27 = vsel %vm810_vm7, %v10011_v18, %v10021_v13  ;;  %v25146_v47 = vld [vmem:[%s34455_s5 + $0xa2c] ss:$16 sps:$4 sm:$0xff]   ;;  %v25141_v19 = vld [vmem:[%s34455_s5 + $0xa20] ss:$16 sps:$4 sm:$0xff]  }
 0x5c4   :  { %v10009_v51 = vsel %vm810_vm7, %v10007_v3, %v10008_v57  ;;  %v10019_v18 = vrot.slane %v29907_v52, 1  ;;  %v25152_v59 = vld [vmem:[%s34455_s5 + $0xa4c] ss:$16 sps:$4 sm:$0xff]   ;;  %v25147_v56 = vld [vmem:[%s34455_s5 + $0xa40] ss:$16 sps:$4 sm:$0xff]  }
 0x5c5   :  { %10700 = vmatpush1.bf16.msra.mxu0 %v25099_v43  ;;  %v25138_v43 = vld [vmem:[%s34455_s5 + $0xa08] ss:$16 sps:$4 sm:$0xff]   ;;  %v25185_v3 = vld [vmem:[%s34455_s5 + $0xb04] ss:$16 sps:$4 sm:$0xff]  }
 0x5c6   :  { %10822 = vmatpush1.bf16.msra.mxu1 %v25102_v16  ;;  %10701 = vmatprep.subr.bf16.mxu0 %v25107_v50  ;;  %v25144_v16 = vld [vmem:[%s34455_s5 + $0xa28] ss:$16 sps:$4 sm:$0xff]   ;;  %v25149_v50 = vld [vmem:[%s34455_s5 + $0xa44] ss:$16 sps:$4 sm:$0xff]  }
 0x5c7   :  { %10823 = vmatprep.subr.bf16.mxu1 %v25110_v62  ;;  %v10020_v62 = vsel %vm810_vm7, %v10008_v57, %v10019_v18  ;;  %v25150_v52 = vld [vmem:[%s34455_s5 + $0xa48] ss:$16 sps:$4 sm:$0xff]   ;;  %v25182_v57 = vld [vmem:[%s34455_s5 + $0xaec] ss:$16 sps:$4 sm:$0xff]  }
 0x5c9   :  { %10702 = vmatpush1.bf16.msra.mxu0 %v25105_v26  ;;  %v25155_v26 = vld [vmem:[%s34455_s5 + $0xa64] ss:$16 sps:$4 sm:$0xff]  }
 0x5ca   :  { %10824 = vmatpush1.bf16.msra.mxu1 %v25108_v7  ;;  %10703 = vmatprep.subr.bf16.mxu0 %v25113_v8  ;;  %v25158_v7 = vld [vmem:[%s34455_s5 + $0xa6c] ss:$16 sps:$4 sm:$0xff]   ;;  %v25153_v8 = vld [vmem:[%s34455_s5 + $0xa60] ss:$16 sps:$4 sm:$0xff]  }
 0x5cb   :  { %10825 = vmatprep.subr.bf16.mxu1 %v25116_v22  ;;  %v25156_v22 = vld [vmem:[%s34455_s5 + $0xa68] ss:$16 sps:$4 sm:$0xff]  }
 0x5cd   :  { %10704 = vmatpush1.bf16.msra.mxu0 %v25111_v11  ;;  %v25161_v11 = vld [vmem:[%s34455_s5 + $0xa84] ss:$16 sps:$4 sm:$0xff]  }
 0x5ce   :  { %10826 = vmatpush1.bf16.msra.mxu1 %v25114_v28  ;;  %10705 = vmatprep.subr.bf16.mxu0 %v25119_v45  ;;  %v25164_v28 = vld [vmem:[%s34455_s5 + $0xa8c] ss:$16 sps:$4 sm:$0xff]   ;;  %v10017_v45 = vrot.slane %v29921_v14, 1 }
 0x5cf   :  { %10827 = vmatprep.subr.bf16.mxu1 %v25122_v58  ;;  %v25159_v58 = vld [vmem:[%s34455_s5 + $0xa80] ss:$16 sps:$4 sm:$0xff]  }
 0x5d1   :  { %10706 = vmatpush1.bf16.msra.mxu0 %v25117_v31  ;;  %v10016_v31 = vrot.slane %v29978_v29, 1  ;;  %v25170_v29 = vld [vmem:[%s34455_s5 + $0xaac] ss:$16 sps:$4 sm:$0xff]  }
 0x5d2   :  { %10828 = vmatpush1.bf16.msra.mxu1 %v25120_v39  ;;  %10707 = vmatprep.subr.bf16.mxu0 %v25125_v49  ;;  %v25162_v39 = vld [vmem:[%s34455_s5 + $0xa88] ss:$16 sps:$4 sm:$0xff]   ;;  %v25167_v49 = vld [vmem:[%s34455_s5 + $0xaa4] ss:$16 sps:$4 sm:$0xff]  }
 0x5d3   :  { %10829 = vmatprep.subr.bf16.mxu1 %v25128_v46  ;;  %v10018_v46 = vsel %vm810_vm7, %v10016_v31, %v10017_v45  ;;  %v25201_v31 = vld [vmem:[%s34455_s5 + $0xb60] ss:$16 sps:$4 sm:$0xff]  }
 0x5d5   :  { %10708 = vmatpush1.bf16.msra.mxu0 %v25123_v24  ;;  %v25165_v24 = vld [vmem:[%s34455_s5 + $0xaa0] ss:$16 sps:$4 sm:$0xff]  }
 0x5d6   :  { %10830 = vmatpush1.bf16.msra.mxu1 %v25126_v6  ;;  %10709 = vmatprep.subr.bf16.mxu0 %v25131_v54  ;;  %v25168_v6 = vld [vmem:[%s34455_s5 + $0xaa8] ss:$16 sps:$4 sm:$0xff]   ;;  %v25173_v54 = vld [vmem:[%s34455_s5 + $0xac4] ss:$16 sps:$4 sm:$0xff]  }
 0x5d7   :  { %10831 = vmatprep.subr.bf16.mxu1 %v25134_v9  ;;  %v25176_v9 = vld [vmem:[%s34455_s5 + $0xacc] ss:$16 sps:$4 sm:$0xff]  }
 0x5d9   :  { %10710 = vmatpush1.bf16.msra.mxu0 %v25129_v4  ;;  %v25171_v4 = vld [vmem:[%s34455_s5 + $0xac0] ss:$16 sps:$4 sm:$0xff]  }
 0x5da   :  { %10832 = vmatpush1.bf16.msra.mxu1 %v25132_v23  ;;  %10740 = vmatprep.subr.bf16.mxu0 %v25137_v42  ;;  %v25174_v23 = vld [vmem:[%s34455_s5 + $0xac8] ss:$16 sps:$4 sm:$0xff]   ;;  %v25179_v42 = vld [vmem:[%s34455_s5 + $0xae4] ss:$16 sps:$4 sm:$0xff]  }
 0x5db   :  { %10862 = vmatprep.subr.bf16.mxu1 %v25140_v10  ;;  %v25177_v10 = vld [vmem:[%s34455_s5 + $0xae0] ss:$16 sps:$4 sm:$0xff]  }
 0x5dc   :  { %10712 = vmatmul.mubr.bf16.vlgmr.msra.gmra.mrb[76].mxu0 %v10009_v51 }
 0x5dd   :  { %10834 = vmatmul.mubr.bf16.vlgmr.msra.gmra.mrb[76].mxu1 %v10009_v51  ;;  %10721 = vmatprep.mubr.bf16.mxu0 %v10022_v27  ;;  %v25183_v51 = vld [vmem:[%s34455_s5 + $0xb00] ss:$16 sps:$4 sm:$0xff]  }
 0x5de   :  { %10741 = vmatpush1.bf16.msra.mxu0 %v25135_v30  ;;  %10843 = vmatprep.mubr.bf16.mxu1 %v10022_v27  ;;  %v25188_v30 = vld [vmem:[%s34455_s5 + $0xb0c] ss:$16 sps:$4 sm:$0xff]  }
 0x5df   :  { %10863 = vmatpush1.bf16.msra.mxu1 %v25138_v43  ;;  %10742 = vmatprep.subr.bf16.mxu0 %v25143_v61  ;;  %v25186_v43 = vld [vmem:[%s34455_s5 + $0xb08] ss:$16 sps:$4 sm:$0xff]   ;;  %v25191_v61 = vld [vmem:[%s34455_s5 + $0xb24] ss:$16 sps:$4 sm:$0xff]   ;;  %v25194_v27 = vld [vmem:[%s34455_s5 + $0xb2c] ss:$16 sps:$4 sm:$0xff]  }
 0x5e0   :  { %10864 = vmatprep.subr.bf16.mxu1 %v25146_v47 }
 0x5e2   :  { %10743 = vmatpush1.bf16.msra.mxu0 %v25141_v19 }
 0x5e3   :  { %10865 = vmatpush1.bf16.msra.mxu1 %v25144_v16  ;;  %10744 = vmatprep.subr.bf16.mxu0 %v25149_v50 }
 0x5e4   :  { %10722 = vmatmul.mubr.bf16.gmra.mrb[80].mxu0 %v10020_v62  ;;  %10866 = vmatprep.subr.bf16.mxu1 %v25152_v59 }
 0x5e5   :  { %10844 = vmatmul.mubr.bf16.gmra.mrb[80].mxu1 %v10020_v62  ;;  %10731 = vmatprep.mubr.bf16.mxu0 %v10021_v13 }
 0x5e6   :  { %10745 = vmatpush1.bf16.msra.mxu0 %v25147_v56  ;;  %10853 = vmatprep.mubr.bf16.mxu1 %v10021_v13  ;;  %v25180_v13 = vld [vmem:[%s34455_s5 + $0xae8] ss:$16 sps:$4 sm:$0xff]   ;;  %v25189_v56 = vld [vmem:[%s34455_s5 + $0xb20] ss:$16 sps:$4 sm:$0xff]  }
 0x5e7   :  { %10867 = vmatpush1.bf16.msra.mxu1 %v25150_v52  ;;  %10746 = vmatprep.subr.bf16.mxu0 %v25155_v26 }
 0x5e8   :  { %10868 = vmatprep.subr.bf16.mxu1 %v25158_v7  ;;  %v25197_v7 = vld [vmem:[%s34455_s5 + $0xb44] ss:$16 sps:$4 sm:$0xff]  }
 0x5ea   :  { %10747 = vmatpush1.bf16.msra.mxu0 %v25153_v8 }
 0x5eb   :  { %10869 = vmatpush1.bf16.msra.mxu1 %v25156_v22  ;;  %10748 = vmatprep.subr.bf16.mxu0 %v25161_v11  ;;  %v25198_v11 = vld [vmem:[%s34455_s5 + $0xb48] ss:$16 sps:$4 sm:$0xff]  }
 0x5ec   :  { %10732 = vmatmul.mubr.bf16.gmra.mrb[100].mxu0 %v10019_v18  ;;  %10870 = vmatprep.subr.bf16.mxu1 %v25164_v28  ;;  %v25203_v28 = vld [vmem:[%s34455_s5 + $0xb64] ss:$16 sps:$4 sm:$0xff]  }
 0x5ed   :  { %10854 = vmatmul.mubr.bf16.gmra.mrb[100].mxu1 %v10019_v18  ;;  %10772 = vmatprep.mubr.bf16.mxu0 %v10018_v46 }
 0x5ee   :  { %10749 = vmatpush1.bf16.msra.mxu0 %v25159_v58  ;;  %10894 = vmatprep.mubr.bf16.mxu1 %v10018_v46  ;;  %v25206_v58 = vld [vmem:[%s34455_s5 + $0xb6c] ss:$16 sps:$4 sm:$0xff]  }
 0x5ef   :  { %10871 = vmatpush1.bf16.msra.mxu1 %v25162_v39  ;;  %10750 = vmatprep.subr.bf16.mxu0 %v25167_v49  ;;  %v25204_v39 = vld [vmem:[%s34455_s5 + $0xb68] ss:$16 sps:$4 sm:$0xff]   ;;  %v25209_v49 = vld [vmem:[%s34455_s5 + $0xb84] ss:$16 sps:$4 sm:$0xff]   ;;  %v25212_v46 = vld [vmem:[%s34455_s5 + $0xb8c] ss:$16 sps:$4 sm:$0xff]  }
 0x5f0   :  { %10872 = vmatprep.subr.bf16.mxu1 %v25170_v29  ;;  %v25207_v29 = vld [vmem:[%s34455_s5 + $0xb80] ss:$16 sps:$4 sm:$0xff]  }
 0x5f2   :  { %10751 = vmatpush1.bf16.msra.mxu0 %v25165_v24  ;;  %v25210_v24 = vld [vmem:[%s34455_s5 + $0xb88] ss:$16 sps:$4 sm:$0xff]  }
 0x5f3   :  { %10873 = vmatpush1.bf16.msra.mxu1 %v25168_v6  ;;  %10752 = vmatprep.subr.bf16.mxu0 %v25173_v54  ;;  %v25215_v6 = vld [vmem:[%s34455_s5 + $0xba4] ss:$16 sps:$4 sm:$0xff]   ;;  %v25218_v54 = vld [vmem:[%s34455_s5 + $0xbac] ss:$16 sps:$4 sm:$0xff]  }
 0x5f4   :  { %10874 = vmatprep.subr.bf16.mxu1 %v25176_v9  ;;  %v25213_v9 = vld [vmem:[%s34455_s5 + $0xba0] ss:$16 sps:$4 sm:$0xff]  }
 0x5f6   :  { %10753 = vmatpush1.bf16.msra.mxu0 %v25171_v4  ;;  %v25216_v4 = vld [vmem:[%s34455_s5 + $0xba8] ss:$16 sps:$4 sm:$0xff]  }
 0x5f7   :  { %10875 = vmatpush1.bf16.msra.mxu1 %v25174_v23  ;;  %10754 = vmatprep.subr.bf16.mxu0 %v25179_v42  ;;  %v25221_v23 = vld [vmem:[%s34455_s5 + $0xbc4] ss:$16 sps:$4 sm:$0xff]   ;;  %v25224_v42 = vld [vmem:[%s34455_s5 + $0xbcc] ss:$16 sps:$4 sm:$0xff]  }
 0x5f8   :  { %10876 = vmatprep.subr.bf16.mxu1 %v25182_v57  ;;  %v25219_v57 = vld [vmem:[%s34455_s5 + $0xbc0] ss:$16 sps:$4 sm:$0xff]  }
 0x5fa   :  { %10755 = vmatpush1.bf16.msra.mxu0 %v25177_v10  ;;  %v25222_v10 = vld [vmem:[%s34455_s5 + $0xbc8] ss:$16 sps:$4 sm:$0xff]  }
 0x5fb   :  { %10877 = vmatpush1.bf16.msra.mxu1 %v25180_v13  ;;  %10756 = vmatprep.subr.bf16.mxu0 %v25185_v3  ;;  %v25227_v13 = vld [vmem:[%s34455_s5 + $0xbe4] ss:$16 sps:$4 sm:$0xff]   ;;  %v25230_v3 = vld [vmem:[%s34455_s5 + $0xbec] ss:$16 sps:$4 sm:$0xff]  }
 0x5fc   :  { %10878 = vmatprep.subr.bf16.mxu1 %v25188_v30  ;;  %v25225_v30 = vld [vmem:[%s34455_s5 + $0xbe0] ss:$16 sps:$4 sm:$0xff]  }
 0x5fd   :  { %v8831_v47 = vpop.f32.mrb[88].mxu0  ;;  %v8953_v19 = vpop.f32.mrb[88].mxu1 }
 0x5fe   :  { %10757 = vmatpush1.bf16.msra.mxu0 %v25183_v51  ;;  %v30909_v16 = vadd.f32 %v8831_v47, %v30706_v34  ;;  %v30912_v18 = vadd.f32 %v8953_v19, %v30708_v55  ;;  %v8833_v50 = vpop.f32.mrb[89].mxu0  ;;  %v8955_v59 = vpop.f32.mrb[89].mxu1  ;;  %v25192_v34 = vld [vmem:[%s34455_s5 + $0xb28] ss:$16 sps:$4 sm:$0xff]   ;;  %v10025_v47 = vrot.slane %v30149_v12, 1  ;;  %v10013_v19 = vrot.slane %v29994_v5, 1 }
 0x5ff   :  { %10879 = vmatpush1.bf16.msra.mxu1 %v25186_v43  ;;  %v30918_v62 = vadd.f32 %v8833_v50, %v30710_v0  ;;  %v30921_v52 = vadd.f32 %v8955_v59, %v30712_v44  ;;  %10758 = vmatprep.subr.bf16.mxu0 %v25191_v61  ;;  %v8835_v55 = vpop.f32.mrb[90].mxu0  ;;  %v8957_v26 = vpop.f32.mrb[90].mxu1  ;;  %v25200_v0 = vld [vmem:[%s34455_s5 + $0xb4c] ss:$16 sps:$4 sm:$0xff]   ;;  %v25195_v44 = vld [vmem:[%s34455_s5 + $0xb40] ss:$16 sps:$4 sm:$0xff]  }
 0x600   :  { %10880 = vmatprep.subr.bf16.mxu1 %v25194_v27  ;;  %v8836_v8 = vpop.f32.mrb[91].mxu0  ;;  %v8958_v22 = vpop.f32.mrb[91].mxu1  ;;  %v25228_v51 = vld [vmem:[%s34455_s5 + $0xbe8] ss:$16 sps:$4 sm:$0xff]   ;;  %v25233_v43 = vld [vmem:[%s34455_s5 + $0xc04] ss:$16 sps:$4 sm:$0xff]   ;;  %v10026_v5 = vsel %vm810_vm7, %v10017_v45, %v10025_v47 }
 0x601   :  { %v10014_v61 = vrot.slane %v29968_v17, 1  ;;  %v25236_v27 = vld [vmem:[%s34455_s5 + $0xc0c] ss:$16 sps:$4 sm:$0xff]   ;;  %v25231_v50 = vld [vmem:[%s34455_s5 + $0xc00] ss:$16 sps:$4 sm:$0xff]   ;;  %v10023_v45 = vrot.slane %v30168_v41, 1 }
 0x602   :  { %10759 = vmatpush1.bf16.msra.mxu0 %v25189_v56  ;;  %v25234_v56 = vld [vmem:[%s34455_s5 + $0xc08] ss:$16 sps:$4 sm:$0xff]   ;;  %v25239_v12 = vld [vmem:[%s34455_s5 + $0xc24] ss:$16 sps:$4 sm:$0xff]   ;;  %v25237_v55 = vld [vmem:[%s34455_s5 + $0xc20] ss:$16 sps:$4 sm:$0xff]  }
 0x603   :  { %10881 = vmatpush1.bf16.msra.mxu1 %v25192_v34  ;;  %10760 = vmatprep.subr.bf16.mxu0 %v25197_v7  ;;  %v10015_v59 = vsel %vm810_vm7, %v10013_v19, %v10014_v61  ;;  %v25242_v34 = vld [vmem:[%s34455_s5 + $0xc2c] ss:$16 sps:$4 sm:$0xff]   ;;  %v25240_v26 = vld [vmem:[%s34455_s5 + $0xc28] ss:$16 sps:$4 sm:$0xff]   ;;  %v25245_v7 = vld [vmem:[%s34455_s5 + $0xc44] ss:$16 sps:$4 sm:$0xff]  }
 0x604   :  { %10882 = vmatprep.subr.bf16.mxu1 %v25200_v0  ;;  %v25248_v8 = vld [vmem:[%s34455_s5 + $0xc4c] ss:$16 sps:$4 sm:$0xff]   ;;  %v25243_v22 = vld [vmem:[%s34455_s5 + $0xc40] ss:$16 sps:$4 sm:$0xff]   ;;  %v10024_v0 = vsel %vm810_vm7, %v10014_v61, %v10023_v45  ;;  %v25246_v41 = vld [vmem:[%s34455_s5 + $0xc48] ss:$16 sps:$4 sm:$0xff]  }
 0x605   :  { %v25287_v61 = vld [vmem:[%s34455_s5 + $0xd24] ss:$16 sps:$4 sm:$0xff]  }
 0x606   :  { %10761 = vmatpush1.bf16.msra.mxu0 %v25195_v44  ;;  %v25251_v44 = vld [vmem:[%s34455_s5 + $0xc64] ss:$16 sps:$4 sm:$0xff]  }
 0x607   :  { %10883 = vmatpush1.bf16.msra.mxu1 %v25198_v11  ;;  %10762 = vmatprep.subr.bf16.mxu0 %v25203_v28  ;;  %v25254_v11 = vld [vmem:[%s34455_s5 + $0xc6c] ss:$16 sps:$4 sm:$0xff]   ;;  %v25249_v28 = vld [vmem:[%s34455_s5 + $0xc60] ss:$16 sps:$4 sm:$0xff]  }
 0x608   :  { %10884 = vmatprep.subr.bf16.mxu1 %v25206_v58  ;;  %v25252_v58 = vld [vmem:[%s34455_s5 + $0xc68] ss:$16 sps:$4 sm:$0xff]  }
 0x60a   :  { %10763 = vmatpush1.bf16.msra.mxu0 %v25201_v31  ;;  %v25257_v31 = vld [vmem:[%s34455_s5 + $0xc84] ss:$16 sps:$4 sm:$0xff]  }
 0x60b   :  { %10885 = vmatpush1.bf16.msra.mxu1 %v25204_v39  ;;  %10764 = vmatprep.subr.bf16.mxu0 %v25209_v49  ;;  %v25260_v39 = vld [vmem:[%s34455_s5 + $0xc8c] ss:$16 sps:$4 sm:$0xff]   ;;  %v25255_v49 = vld [vmem:[%s34455_s5 + $0xc80] ss:$16 sps:$4 sm:$0xff]  }
 0x60c   :  { %10886 = vmatprep.subr.bf16.mxu1 %v25212_v46  ;;  %v25258_v46 = vld [vmem:[%s34455_s5 + $0xc88] ss:$16 sps:$4 sm:$0xff]  }
 0x60e   :  { %10765 = vmatpush1.bf16.msra.mxu0 %v25207_v29  ;;  %v25263_v29 = vld [vmem:[%s34455_s5 + $0xca4] ss:$16 sps:$4 sm:$0xff]  }
 0x60f   :  { %10887 = vmatpush1.bf16.msra.mxu1 %v25210_v24  ;;  %10766 = vmatprep.subr.bf16.mxu0 %v25215_v6  ;;  %v25266_v24 = vld [vmem:[%s34455_s5 + $0xcac] ss:$16 sps:$4 sm:$0xff]   ;;  %v25261_v6 = vld [vmem:[%s34455_s5 + $0xca0] ss:$16 sps:$4 sm:$0xff]  }
 0x610   :  { %10888 = vmatprep.subr.bf16.mxu1 %v25218_v54  ;;  %v25264_v54 = vld [vmem:[%s34455_s5 + $0xca8] ss:$16 sps:$4 sm:$0xff]  }
 0x612   :  { %10767 = vmatpush1.bf16.msra.mxu0 %v25213_v9  ;;  %v25269_v9 = vld [vmem:[%s34455_s5 + $0xcc4] ss:$16 sps:$4 sm:$0xff]  }
 0x613   :  { %10889 = vmatpush1.bf16.msra.mxu1 %v25216_v4  ;;  %10768 = vmatprep.subr.bf16.mxu0 %v25221_v23  ;;  %v25272_v4 = vld [vmem:[%s34455_s5 + $0xccc] ss:$16 sps:$4 sm:$0xff]   ;;  %v25270_v23 = vld [vmem:[%s34455_s5 + $0xcc8] ss:$16 sps:$4 sm:$0xff]  }
 0x614   :  { %10890 = vmatprep.subr.bf16.mxu1 %v25224_v42  ;;  %v25275_v42 = vld [vmem:[%s34455_s5 + $0xce4] ss:$16 sps:$4 sm:$0xff]  }
 0x616   :  { %10769 = vmatpush1.bf16.msra.mxu0 %v25219_v57  ;;  %v25278_v57 = vld [vmem:[%s34455_s5 + $0xcec] ss:$16 sps:$4 sm:$0xff]  }
 0x617   :  { %10891 = vmatpush1.bf16.msra.mxu1 %v25222_v10  ;;  %10770 = vmatprep.subr.bf16.mxu0 %v25227_v13  ;;  %v25273_v10 = vld [vmem:[%s34455_s5 + $0xce0] ss:$16 sps:$4 sm:$0xff]   ;;  %v25276_v13 = vld [vmem:[%s34455_s5 + $0xce8] ss:$16 sps:$4 sm:$0xff]  }
 0x618   :  { %10892 = vmatprep.subr.bf16.mxu1 %v25230_v3  ;;  %v25281_v3 = vld [vmem:[%s34455_s5 + $0xd04] ss:$16 sps:$4 sm:$0xff]  }
 0x61a   :  { %10771 = vmatpush1.bf16.msra.mxu0 %v25225_v30  ;;  %v25284_v30 = vld [vmem:[%s34455_s5 + $0xd0c] ss:$16 sps:$4 sm:$0xff]  }
 0x61b   :  { %10893 = vmatpush1.bf16.msra.mxu1 %v25228_v51  ;;  %11820 = vmatprep.subr.bf16.mxu0 %v25233_v43  ;;  %v25279_v51 = vld [vmem:[%s34455_s5 + $0xd00] ss:$16 sps:$4 sm:$0xff]   ;;  %v25282_v43 = vld [vmem:[%s34455_s5 + $0xd08] ss:$16 sps:$4 sm:$0xff]  }
 0x61c   :  { %11942 = vmatprep.subr.bf16.mxu1 %v25236_v27  ;;  %v25290_v27 = vld [vmem:[%s34455_s5 + $0xd2c] ss:$16 sps:$4 sm:$0xff]  }
 0x61d   :  { %10773 = vmatmul.mubr.bf16.vlgmr.msra.gmra.mrb[76].mxu0 %v10015_v59 }
 0x61e   :  { %10895 = vmatmul.mubr.bf16.vlgmr.msra.gmra.mrb[76].mxu1 %v10015_v59  ;;  %10782 = vmatprep.mubr.bf16.mxu0 %v10026_v5 }
 0x61f   :  { %10904 = vmatprep.mubr.bf16.mxu1 %v10026_v5  ;;  %11821 = vmatpush1.bf16.msra.mxu0 %v25231_v50  ;;  %v25285_v5 = vld [vmem:[%s34455_s5 + $0xd20] ss:$16 sps:$4 sm:$0xff]  }
 0x620   :  { %11943 = vmatpush1.bf16.msra.mxu1 %v25234_v56  ;;  %11822 = vmatprep.subr.bf16.mxu0 %v25239_v12 }
 0x621   :  { %11944 = vmatprep.subr.bf16.mxu1 %v25242_v34 }
 0x623   :  { %11823 = vmatpush1.bf16.msra.mxu0 %v25237_v55 }
 0x624   :  { %11945 = vmatpush1.bf16.msra.mxu1 %v25240_v26  ;;  %11824 = vmatprep.subr.bf16.mxu0 %v25245_v7 }
 0x625   :  { %10783 = vmatmul.mubr.bf16.gmra.mrb[80].mxu0 %v10024_v0  ;;  %11946 = vmatprep.subr.bf16.mxu1 %v25248_v8 }
 0x626   :  { %10905 = vmatmul.mubr.bf16.gmra.mrb[80].mxu1 %v10024_v0  ;;  %10792 = vmatprep.mubr.bf16.mxu0 %v10025_v47  ;;  %v25299_v0 = vld [vmem:[%s34455_s5 + $0xd64] ss:$16 sps:$4 sm:$0xff]  }
 0x627   :  { %10914 = vmatprep.mubr.bf16.mxu1 %v10025_v47  ;;  %11825 = vmatpush1.bf16.msra.mxu0 %v25243_v22  ;;  %v25294_v22 = vld [vmem:[%s34455_s5 + $0xd48] ss:$16 sps:$4 sm:$0xff]  }
 0x628   :  { %11947 = vmatpush1.bf16.msra.mxu1 %v25246_v41  ;;  %11826 = vmatprep.subr.bf16.mxu0 %v25251_v44  ;;  %v25302_v41 = vld [vmem:[%s34455_s5 + $0xd6c] ss:$16 sps:$4 sm:$0xff]   ;;  %v25297_v44 = vld [vmem:[%s34455_s5 + $0xd60] ss:$16 sps:$4 sm:$0xff]  }
 0x629   :  { %11948 = vmatprep.subr.bf16.mxu1 %v25254_v11  ;;  %v25300_v11 = vld [vmem:[%s34455_s5 + $0xd68] ss:$16 sps:$4 sm:$0xff]  }
 0x62b   :  { %11827 = vmatpush1.bf16.msra.mxu0 %v25249_v28  ;;  %v25305_v28 = vld [vmem:[%s34455_s5 + $0xd84] ss:$16 sps:$4 sm:$0xff]  }
 0x62c   :  { %11949 = vmatpush1.bf16.msra.mxu1 %v25252_v58  ;;  %11828 = vmatprep.subr.bf16.mxu0 %v25257_v31  ;;  %v25308_v58 = vld [vmem:[%s34455_s5 + $0xd8c] ss:$16 sps:$4 sm:$0xff]   ;;  %v25303_v31 = vld [vmem:[%s34455_s5 + $0xd80] ss:$16 sps:$4 sm:$0xff]  }
 0x62d   :  { %10793 = vmatmul.mubr.bf16.gmra.mrb[104].mxu0 %v10023_v45  ;;  %11950 = vmatprep.subr.bf16.mxu1 %v25260_v39  ;;  %v10943_v39 = vld [vmem:[#allocation3 + $0x40] sm:$0xff] }
 0x62e   :  { %10915 = vmatmul.mubr.bf16.gmra.mrb[104].mxu1 %v10023_v45  ;;  %11852 = vmatprep.mubr.bf16.mxu0 %v30020_v53  ;;  %v25293_v45 = vld [vmem:[%s34455_s5 + $0xd44] ss:$16 sps:$4 sm:$0xff]  }
 0x62f   :  { %11829 = vmatpush1.bf16.msra.mxu0 %v25255_v49  ;;  %11974 = vmatprep.mubr.bf16.mxu1 %v30020_v53  ;;  %v25267_v53 = vld [vmem:[%s34455_s5 + $0xcc0] ss:$16 sps:$4 sm:$0xff]   ;;  %v25306_v49 = vld [vmem:[%s34455_s5 + $0xd88] ss:$16 sps:$4 sm:$0xff]  }
 0x630   :  { %11951 = vmatpush1.bf16.msra.mxu1 %v25258_v46  ;;  %11830 = vmatprep.subr.bf16.mxu0 %v25263_v29  ;;  %v25311_v46 = vld [vmem:[%s34455_s5 + $0xda4] ss:$16 sps:$4 sm:$0xff]   ;;  %v25314_v29 = vld [vmem:[%s34455_s5 + $0xdac] ss:$16 sps:$4 sm:$0xff]  }
 0x631   :  { %11952 = vmatprep.subr.bf16.mxu1 %v25266_v24  ;;  %v31183_v24 = vcombine.high %v10943_v39, %v10943_v39 }
 0x633   :  { %11831 = vmatpush1.bf16.msra.mxu0 %v25261_v6  ;;  %v25309_v6 = vld [vmem:[%s34455_s5 + $0xda0] ss:$16 sps:$4 sm:$0xff]  }
 0x634   :  { %11953 = vmatpush1.bf16.msra.mxu1 %v25264_v54  ;;  %11832 = vmatprep.subr.bf16.mxu0 %v25269_v9  ;;  %v25312_v54 = vld [vmem:[%s34455_s5 + $0xda8] ss:$16 sps:$4 sm:$0xff]   ;;  %v25317_v9 = vld [vmem:[%s34455_s5 + $0xdc4] ss:$16 sps:$4 sm:$0xff]  }
 0x635   :  { %11954 = vmatprep.subr.bf16.mxu1 %v25272_v4  ;;  %v25320_v4 = vld [vmem:[%s34455_s5 + $0xdcc] ss:$16 sps:$4 sm:$0xff]  }
 0x637   :  { %11833 = vmatpush1.bf16.msra.mxu0 %v25267_v53  ;;  %v11142_v53 = vshrl.u32 %v31183_v24, 16 }
 0x638   :  { %11955 = vmatpush1.bf16.msra.mxu1 %v25270_v23  ;;  %11834 = vmatprep.subr.bf16.mxu0 %v25275_v42  ;;  %v11145_v23 = vshll.u32 %v31183_v24, 16  ;;  %v25315_v42 = vld [vmem:[%s34455_s5 + $0xdc0] ss:$16 sps:$4 sm:$0xff]  }
 0x639   :  { %11956 = vmatprep.subr.bf16.mxu1 %v25278_v57  ;;  %v25318_v57 = vld [vmem:[%s34455_s5 + $0xdc8] ss:$16 sps:$4 sm:$0xff]  }
 0x63b   :  { %11835 = vmatpush1.bf16.msra.mxu0 %v25273_v10  ;;  %v25323_v10 = vld [vmem:[%s34455_s5 + $0xde4] ss:$16 sps:$4 sm:$0xff]  }
 0x63c   :  { %11957 = vmatpush1.bf16.msra.mxu1 %v25276_v13  ;;  %11836 = vmatprep.subr.bf16.mxu0 %v25281_v3  ;;  %v25326_v13 = vld [vmem:[%s34455_s5 + $0xdec] ss:$16 sps:$4 sm:$0xff]   ;;  %v31211_v3 = vcombine.low %v10943_v39, %v10943_v39 }
 0x63d   :  { %11958 = vmatprep.subr.bf16.mxu1 %v25284_v30  ;;  %v11144_v30 = vrot.slane %v11142_v53, 1  ;;  %v25358_v39 = vld [vmem:[%s34455_s5 + $0xe8c] ss:$16 sps:$4 sm:$0xff]  }
 0x63e   :  { %v9676_v47 = vpop.f32.mrb[92].mxu0  ;;  %v9798_v19 = vpop.f32.mrb[92].mxu1  ;;  %v25370_v53 = vld [vmem:[%s34455_s5 + $0xecc] ss:$16 sps:$4 sm:$0xff]  }
 0x63f   :  { %11837 = vmatpush1.bf16.msra.mxu0 %v25279_v51  ;;  %v31124_v50 = vadd.f32 %v9676_v47, %v30909_v16  ;;  %v31127_v59 = vadd.f32 %v9798_v19, %v30912_v18  ;;  %v9678_v56 = vpop.f32.mrb[93].mxu0  ;;  %v9800_v12 = vpop.f32.mrb[93].mxu1  ;;  %v25288_v16 = vld [vmem:[%s34455_s5 + $0xd28] ss:$16 sps:$4 sm:$0xff]   ;;  %v11147_v51 = vrot.slane %v11145_v23, 2  ;;  %v11133_v19 = vshrl.u32 %v31211_v3, 16 }
 0x640   :  { %11959 = vmatpush1.bf16.msra.mxu1 %v25282_v43  ;;  %v31133_v34 = vadd.f32 %v9678_v56, %v30918_v62  ;;  %v31136_v55 = vadd.f32 %v9800_v12, %v30921_v52  ;;  %11838 = vmatprep.subr.bf16.mxu0 %v25287_v61  ;;  %v9680_v18 = vpop.f32.mrb[94].mxu0  ;;  %v9802_v26 = vpop.f32.mrb[94].mxu1  ;;  %v25296_v62 = vld [vmem:[%s34455_s5 + $0xd4c] ss:$16 sps:$4 sm:$0xff]   ;;  %v25291_v52 = vld [vmem:[%s34455_s5 + $0xd40] ss:$16 sps:$4 sm:$0xff]  }
 0x641   :  { %11960 = vmatprep.subr.bf16.mxu1 %v25290_v27  ;;  %v9681_v7 = vpop.f32.mrb[95].mxu0  ;;  %v9803_v8 = vpop.f32.mrb[95].mxu1  ;;  %v25321_v43 = vld [vmem:[%s34455_s5 + $0xde0] ss:$16 sps:$4 sm:$0xff]   ;;  %v25324_v61 = vld [vmem:[%s34455_s5 + $0xde8] ss:$16 sps:$4 sm:$0xff]   ;;  %v11148_v12 = vor.u32 %v11147_v51, %v11144_v30 }
 0x642   :  { %v25329_v27 = vld [vmem:[%s34455_s5 + $0xe04] ss:$16 sps:$4 sm:$0xff]   ;;  %v25332_v47 = vld [vmem:[%s34455_s5 + $0xe0c] ss:$16 sps:$4 sm:$0xff]   ;;  %v11136_v56 = vshll.u32 %v31211_v3, 16  ;;  %v11135_v26 = vrot.slane %v11133_v19, 1 }
 0x643   :  { %11839 = vmatpush1.bf16.msra.mxu0 %v25285_v5  ;;  %v25327_v5 = vld [vmem:[%s34455_s5 + $0xe00] ss:$16 sps:$4 sm:$0xff]   ;;  %v25336_v18 = vld [vmem:[%s34455_s5 + $0xe24] ss:$16 sps:$4 sm:$0xff]   ;;  %v11149_v7 = vsel %vm1158_vm8, %v29981_v2, %v11148_v12  ;;  %v25339_v8 = vld [vmem:[%s34455_s5 + $0xe2c] ss:$16 sps:$4 sm:$0xff]  }
 0x644   :  { %11961 = vmatpush1.bf16.msra.mxu1 %v25288_v16  ;;  %11840 = vmatprep.subr.bf16.mxu0 %v25293_v45  ;;  %v25330_v16 = vld [vmem:[%s34455_s5 + $0xe08] ss:$16 sps:$4 sm:$0xff]   ;;  %v11138_v45 = vrot.slane %v11136_v56, 2  ;;  %v25379_v30 = vld [vmem:[%s34455_s5 + $0xf04] ss:$16 sps:$4 sm:$0xff]  }
 0x645   :  { %11962 = vmatprep.subr.bf16.mxu1 %v25296_v62  ;;  %v25334_v62 = vld [vmem:[%s34455_s5 + $0xe20] ss:$16 sps:$4 sm:$0xff]   ;;  %v25368_v23 = vld [vmem:[%s34455_s5 + $0xec8] ss:$16 sps:$4 sm:$0xff]   ;;  %v25382_v51 = vld [vmem:[%s34455_s5 + $0xf0c] ss:$16 sps:$4 sm:$0xff]  }
 0x646   :  { %v11139_v2 = vor.u32 %v11138_v45, %v11135_v26  ;;  %v25388_v19 = vld [vmem:[%s34455_s5 + $0xf2c] ss:$16 sps:$4 sm:$0xff]   ;;  %v25383_v45 = vld [vmem:[%s34455_s5 + $0xf20] ss:$16 sps:$4 sm:$0xff]  }
 0x647   :  { %11841 = vmatpush1.bf16.msra.mxu0 %v25291_v52  ;;  %v25337_v52 = vld [vmem:[%s34455_s5 + $0xe28] ss:$16 sps:$4 sm:$0xff]  }
 0x648   :  { %11963 = vmatpush1.bf16.msra.mxu1 %v25294_v22  ;;  %11842 = vmatprep.subr.bf16.mxu0 %v25299_v0  ;;  %v25343_v22 = vld [vmem:[%s34455_s5 + $0xe44] ss:$16 sps:$4 sm:$0xff]   ;;  %v25341_v0 = vld [vmem:[%s34455_s5 + $0xe40] ss:$16 sps:$4 sm:$0xff]  }
 0x649   :  { %11964 = vmatprep.subr.bf16.mxu1 %v25302_v41  ;;  %v11140_v41 = vsel %vm1158_vm8, %v29999_v38, %v11139_v2  ;;  %v25347_v38 = vld [vmem:[%s34455_s5 + $0xe60] ss:$16 sps:$4 sm:$0xff]  }
 0x64b   :  { %11843 = vmatpush1.bf16.msra.mxu0 %v25297_v44  ;;  %v25344_v44 = vld [vmem:[%s34455_s5 + $0xe48] ss:$16 sps:$4 sm:$0xff]  }
 0x64c   :  { %11965 = vmatpush1.bf16.msra.mxu1 %v25300_v11  ;;  %11844 = vmatprep.subr.bf16.mxu0 %v25305_v28  ;;  %v25349_v11 = vld [vmem:[%s34455_s5 + $0xe64] ss:$16 sps:$4 sm:$0xff]   ;;  %v25352_v28 = vld [vmem:[%s34455_s5 + $0xe6c] ss:$16 sps:$4 sm:$0xff]  }
 0x64d   :  { %11966 = vmatprep.subr.bf16.mxu1 %v25308_v58  ;;  %v25350_v58 = vld [vmem:[%s34455_s5 + $0xe68] ss:$16 sps:$4 sm:$0xff]  }
 0x64f   :  { %11845 = vmatpush1.bf16.msra.mxu0 %v25303_v31  ;;  %v25355_v31 = vld [vmem:[%s34455_s5 + $0xe84] ss:$16 sps:$4 sm:$0xff]  }
 0x650   :  { %11967 = vmatpush1.bf16.msra.mxu1 %v25306_v49  ;;  %11846 = vmatprep.subr.bf16.mxu0 %v25311_v46  ;;  %v25353_v49 = vld [vmem:[%s34455_s5 + $0xe80] ss:$16 sps:$4 sm:$0xff]   ;;  %v25356_v46 = vld [vmem:[%s34455_s5 + $0xe88] ss:$16 sps:$4 sm:$0xff]  }
 0x651   :  { %11968 = vmatprep.subr.bf16.mxu1 %v25314_v29  ;;  %v25361_v29 = vld [vmem:[%s34455_s5 + $0xea4] ss:$16 sps:$4 sm:$0xff]  }
 0x653   :  { %11847 = vmatpush1.bf16.msra.mxu0 %v25309_v6  ;;  %v25364_v6 = vld [vmem:[%s34455_s5 + $0xeac] ss:$16 sps:$4 sm:$0xff]  }
 0x654   :  { %11969 = vmatpush1.bf16.msra.mxu1 %v25312_v54  ;;  %11848 = vmatprep.subr.bf16.mxu0 %v25317_v9  ;;  %v25359_v54 = vld [vmem:[%s34455_s5 + $0xea0] ss:$16 sps:$4 sm:$0xff]   ;;  %v25362_v9 = vld [vmem:[%s34455_s5 + $0xea8] ss:$16 sps:$4 sm:$0xff]  }
 0x655   :  { %11970 = vmatprep.subr.bf16.mxu1 %v25320_v4  ;;  %v25367_v4 = vld [vmem:[%s34455_s5 + $0xec4] ss:$16 sps:$4 sm:$0xff]  }
 0x657   :  { %11849 = vmatpush1.bf16.msra.mxu0 %v25315_v42  ;;  %v25373_v42 = vld [vmem:[%s34455_s5 + $0xee4] ss:$16 sps:$4 sm:$0xff]  }
 0x658   :  { %11971 = vmatpush1.bf16.msra.mxu1 %v25318_v57  ;;  %11850 = vmatprep.subr.bf16.mxu0 %v25323_v10  ;;  %v25376_v57 = vld [vmem:[%s34455_s5 + $0xeec] ss:$16 sps:$4 sm:$0xff]   ;;  %v25371_v10 = vld [vmem:[%s34455_s5 + $0xee0] ss:$16 sps:$4 sm:$0xff]  }
 0x659   :  { %11972 = vmatprep.subr.bf16.mxu1 %v25326_v13  ;;  %v25374_v13 = vld [vmem:[%s34455_s5 + $0xee8] ss:$16 sps:$4 sm:$0xff]  }
 0x65b   :  { %11851 = vmatpush1.bf16.msra.mxu0 %v25321_v43  ;;  %v25377_v43 = vld [vmem:[%s34455_s5 + $0xf00] ss:$16 sps:$4 sm:$0xff]  }
 0x65c   :  { %11973 = vmatpush1.bf16.msra.mxu1 %v25324_v61  ;;  %11881 = vmatprep.subr.bf16.mxu0 %v25329_v27  ;;  %v25380_v61 = vld [vmem:[%s34455_s5 + $0xf08] ss:$16 sps:$4 sm:$0xff]   ;;  %v25385_v27 = vld [vmem:[%s34455_s5 + $0xf24] ss:$16 sps:$4 sm:$0xff]  }
 0x65d   :  { %12003 = vmatprep.subr.bf16.mxu1 %v25332_v47 }
 0x65e   :  { %11853 = vmatmul.mubr.bf16.vlgmr.msra.gmra.mrb[76].mxu0 %v30029_v63 }
 0x65f   :  { %11975 = vmatmul.mubr.bf16.vlgmr.msra.gmra.mrb[76].mxu1 %v30029_v63  ;;  %11862 = vmatprep.mubr.bf16.mxu0 %v11149_v7  ;;  %v25346_v63 = vld [vmem:[%s34455_s5 + $0xe4c] ss:$16 sps:$4 sm:$0xff]  }
 0x660   :  { %11882 = vmatpush1.bf16.msra.mxu0 %v25327_v5  ;;  %11984 = vmatprep.mubr.bf16.mxu1 %v11149_v7 }
 0x661   :  { %12004 = vmatpush1.bf16.msra.mxu1 %v25330_v16  ;;  %11883 = vmatprep.subr.bf16.mxu0 %v25336_v18 }
 0x662   :  { %12005 = vmatprep.subr.bf16.mxu1 %v25339_v8 }
 0x664   :  { %11884 = vmatpush1.bf16.msra.mxu0 %v25334_v62 }
 0x665   :  { %12006 = vmatpush1.bf16.msra.mxu1 %v25337_v52  ;;  %11885 = vmatprep.subr.bf16.mxu0 %v25343_v22  ;;  %v25392_v22 = vld [vmem:[%s34455_s5 + $0xf48] ss:$16 sps:$4 sm:$0xff]  }
 0x666   :  { %11863 = vmatmul.mubr.bf16.gmra.mrb[80].mxu0 %v11140_v41  ;;  %12007 = vmatprep.subr.bf16.mxu1 %v25346_v63  ;;  %v25397_v63 = vld [vmem:[%s34455_s5 + $0xf64] ss:$16 sps:$4 sm:$0xff]  }
 0x667   :  { %11985 = vmatmul.mubr.bf16.gmra.mrb[80].mxu1 %v11140_v41  ;;  %11872 = vmatprep.mubr.bf16.mxu0 %v11148_v12  ;;  %v25395_v41 = vld [vmem:[%s34455_s5 + $0xf60] ss:$16 sps:$4 sm:$0xff]  }
 0x668   :  { %11886 = vmatpush1.bf16.msra.mxu0 %v25341_v0  ;;  %11994 = vmatprep.mubr.bf16.mxu1 %v11148_v12  ;;  %v25400_v0 = vld [vmem:[%s34455_s5 + $0xf6c] ss:$16 sps:$4 sm:$0xff]  }
 0x669   :  { %12008 = vmatpush1.bf16.msra.mxu1 %v25344_v44  ;;  %11887 = vmatprep.subr.bf16.mxu0 %v25349_v11  ;;  %v25398_v44 = vld [vmem:[%s34455_s5 + $0xf68] ss:$16 sps:$4 sm:$0xff]   ;;  %v25403_v11 = vld [vmem:[%s34455_s5 + $0xf84] ss:$16 sps:$4 sm:$0xff]  }
 0x66a   :  { %12009 = vmatprep.subr.bf16.mxu1 %v25352_v28  ;;  %v25406_v28 = vld [vmem:[%s34455_s5 + $0xf8c] ss:$16 sps:$4 sm:$0xff]  }
 0x66c   :  { %11888 = vmatpush1.bf16.msra.mxu0 %v25347_v38  ;;  %v25401_v38 = vld [vmem:[%s34455_s5 + $0xf80] ss:$16 sps:$4 sm:$0xff]  }
 0x66d   :  { %12010 = vmatpush1.bf16.msra.mxu1 %v25350_v58  ;;  %11889 = vmatprep.subr.bf16.mxu0 %v25355_v31  ;;  %v10944_v58 = vld [vmem:[#allocation3 + $0x48] sm:$0xff]  ;;  %v25404_v31 = vld [vmem:[%s34455_s5 + $0xf88] ss:$16 sps:$4 sm:$0xff]  }
 0x66e   :  { %11873 = vmatmul.mubr.bf16.gmra.mrb[108].mxu0 %v11139_v2  ;;  %12011 = vmatprep.subr.bf16.mxu1 %v25358_v39  ;;  %v25409_v39 = vld [vmem:[%s34455_s5 + $0xfa4] ss:$16 sps:$4 sm:$0xff]  }
 0x66f   :  { %11995 = vmatmul.mubr.bf16.gmra.mrb[108].mxu1 %v11139_v2  ;;  %11913 = vmatprep.mubr.bf16.mxu0 %v30053_v48  ;;  %v25394_v2 = vld [vmem:[%s34455_s5 + $0xf4c] ss:$16 sps:$4 sm:$0xff]  }
 0x670   :  { %11890 = vmatpush1.bf16.msra.mxu0 %v25353_v49  ;;  %12035 = vmatprep.mubr.bf16.mxu1 %v30053_v48  ;;  %v25365_v48 = vld [vmem:[%s34455_s5 + $0xec0] ss:$16 sps:$4 sm:$0xff]   ;;  %v25412_v49 = vld [vmem:[%s34455_s5 + $0xfac] ss:$16 sps:$4 sm:$0xff]  }
 0x671   :  { %12012 = vmatpush1.bf16.msra.mxu1 %v25356_v46  ;;  %11891 = vmatprep.subr.bf16.mxu0 %v25361_v29  ;;  %v31403_v46 = vcombine.high %v10944_v58, %v10944_v58  ;;  %v25407_v29 = vld [vmem:[%s34455_s5 + $0xfa0] ss:$16 sps:$4 sm:$0xff]  }
 0x672   :  { %12013 = vmatprep.subr.bf16.mxu1 %v25364_v6  ;;  %v25410_v6 = vld [vmem:[%s34455_s5 + $0xfa8] ss:$16 sps:$4 sm:$0xff]  }
 0x674   :  { %11892 = vmatpush1.bf16.msra.mxu0 %v25359_v54  ;;  %v25415_v54 = vld [vmem:[%s34455_s5 + $0xfc4] ss:$16 sps:$4 sm:$0xff]  }
 0x675   :  { %12014 = vmatpush1.bf16.msra.mxu1 %v25362_v9  ;;  %11893 = vmatprep.subr.bf16.mxu0 %v25367_v4  ;;  %v25418_v9 = vld [vmem:[%s34455_s5 + $0xfcc] ss:$16 sps:$4 sm:$0xff]   ;;  %v11160_v4 = vshrl.u32 %v31403_v46, 16 }
 0x676   :  { %12015 = vmatprep.subr.bf16.mxu1 %v25370_v53  ;;  %v11163_v53 = vshll.u32 %v31403_v46, 16 }
 0x678   :  { %11894 = vmatpush1.bf16.msra.mxu0 %v25365_v48  ;;  %v25413_v48 = vld [vmem:[%s34455_s5 + $0xfc0] ss:$16 sps:$4 sm:$0xff]  }
 0x679   :  { %12016 = vmatpush1.bf16.msra.mxu1 %v25368_v23  ;;  %11895 = vmatprep.subr.bf16.mxu0 %v25373_v42  ;;  %v25416_v23 = vld [vmem:[%s34455_s5 + $0xfc8] ss:$16 sps:$4 sm:$0xff]   ;;  %v25421_v42 = vld [vmem:[%s34455_s5 + $0xfe4] ss:$16 sps:$4 sm:$0xff]  }
 0x67a   :  { %12017 = vmatprep.subr.bf16.mxu1 %v25376_v57  ;;  %v25424_v57 = vld [vmem:[%s34455_s5 + $0xfec] ss:$16 sps:$4 sm:$0xff]  }
 0x67c   :  { %11896 = vmatpush1.bf16.msra.mxu0 %v25371_v10  ;;  %v31431_v10 = vcombine.low %v10944_v58, %v10944_v58  ;;  %v25456_v58 = vld [vmem:[%s34455_s5 + $0x108c] ss:$16 sps:$4 sm:$0xff]  }
 0x67d   :  { %12018 = vmatpush1.bf16.msra.mxu1 %v25374_v13  ;;  %11897 = vmatprep.subr.bf16.mxu0 %v25379_v30  ;;  %v11162_v13 = vrot.slane %v11160_v4, 1  ;;  %v11165_v30 = vrot.slane %v11163_v53, 2  ;;  %v25457_v4 = vld [vmem:[%s34455_s5 + $0x10a0] ss:$16 sps:$4 sm:$0xff]   ;;  %v25460_v53 = vld [vmem:[%s34455_s5 + $0x10a8] ss:$16 sps:$4 sm:$0xff]  }
 0x67e   :  { %12019 = vmatprep.subr.bf16.mxu1 %v25382_v51  ;;  %v9737_v47 = vpop.f32.mrb[96].mxu0  ;;  %v25419_v51 = vld [vmem:[%s34455_s5 + $0xfe0] ss:$16 sps:$4 sm:$0xff]  }
 0x67f   :  { %v31344_v56 = vadd.f32 %v9737_v47, %v31124_v50  ;;  %v9859_v12 = vpop.f32.mrb[96].mxu1  ;;  %v9739_v5 = vpop.f32.mrb[97].mxu0  ;;  %v25386_v50 = vld [vmem:[%s34455_s5 + $0xf28] ss:$16 sps:$4 sm:$0xff]   ;;  %v11151_v47 = vshrl.u32 %v31431_v10, 16 }
 0x680   :  { %11898 = vmatpush1.bf16.msra.mxu0 %v25377_v43  ;;  %v31347_v16 = vadd.f32 %v9859_v12, %v31127_v59  ;;  %v31350_v18 = vadd.f32 %v9739_v5, %v31133_v34  ;;  %v9861_v26 = vpop.f32.mrb[97].mxu1  ;;  %v9741_v7 = vpop.f32.mrb[98].mxu0  ;;  %v25391_v34 = vld [vmem:[%s34455_s5 + $0xf44] ss:$16 sps:$4 sm:$0xff]   ;;  %v25422_v43 = vld [vmem:[%s34455_s5 + $0xfe8] ss:$16 sps:$4 sm:$0xff]   ;;  %v11166_v12 = vor.u32 %v11165_v30, %v11162_v13 }
 0x681   :  { %12020 = vmatpush1.bf16.msra.mxu1 %v25380_v61  ;;  %v31356_v8 = vadd.f32 %v9861_v26, %v31136_v55  ;;  %11899 = vmatprep.subr.bf16.mxu0 %v25385_v27  ;;  %v9863_v59 = vpop.f32.mrb[98].mxu1  ;;  %v9742_v62 = vpop.f32.mrb[99].mxu0  ;;  %v25389_v55 = vld [vmem:[%s34455_s5 + $0xf40] ss:$16 sps:$4 sm:$0xff]   ;;  %v25427_v61 = vld [vmem:[%s34455_s5 + $0x1004] ss:$16 sps:$4 sm:$0xff]  }
 0x682   :  { %12021 = vmatprep.subr.bf16.mxu1 %v25388_v19  ;;  %v9864_v52 = vpop.f32.mrb[99].mxu1  ;;  %v25430_v27 = vld [vmem:[%s34455_s5 + $0x100c] ss:$16 sps:$4 sm:$0xff]   ;;  %v11154_v19 = vshll.u32 %v31431_v10, 16  ;;  %v25425_v5 = vld [vmem:[%s34455_s5 + $0x1000] ss:$16 sps:$4 sm:$0xff]   ;;  %v11167_v59 = vsel %vm1158_vm8, %v30041_v40, %v11166_v12 }
 0x683   :  { %v25428_v26 = vld [vmem:[%s34455_s5 + $0x1008] ss:$16 sps:$4 sm:$0xff]   ;;  %v11153_v7 = vrot.slane %v11151_v47, 1  ;;  %v25437_v62 = vld [vmem:[%s34455_s5 + $0x102c] ss:$16 sps:$4 sm:$0xff]  }
 0x684   :  { %11900 = vmatpush1.bf16.msra.mxu0 %v25383_v45  ;;  %v25434_v45 = vld [vmem:[%s34455_s5 + $0x1024] ss:$16 sps:$4 sm:$0xff]   ;;  %v25435_v52 = vld [vmem:[%s34455_s5 + $0x1028] ss:$16 sps:$4 sm:$0xff]   ;;  %v25474_v30 = vld [vmem:[%s34455_s5 + $0x10ec] ss:$16 sps:$4 sm:$0xff]  }
 0x685   :  { %12022 = vmatpush1.bf16.msra.mxu1 %v25386_v50  ;;  %11901 = vmatprep.subr.bf16.mxu0 %v25391_v34  ;;  %v11156_v50 = vrot.slane %v11154_v19, 2  ;;  %v25432_v34 = vld [vmem:[%s34455_s5 + $0x1020] ss:$16 sps:$4 sm:$0xff]   ;;  %v25471_v13 = vld [vmem:[%s34455_s5 + $0x10e4] ss:$16 sps:$4 sm:$0xff]  }
 0x686   :  { %12023 = vmatprep.subr.bf16.mxu1 %v25394_v2  ;;  %v25441_v2 = vld [vmem:[%s34455_s5 + $0x1044] ss:$16 sps:$4 sm:$0xff]   ;;  %v25475_v47 = vld [vmem:[%s34455_s5 + $0x1100] ss:$16 sps:$4 sm:$0xff]   ;;  %v25478_v19 = vld [vmem:[%s34455_s5 + $0x1108] ss:$16 sps:$4 sm:$0xff]  }
 0x687   :  { %v11157_v40 = vor.u32 %v11156_v50, %v11153_v7 }
 0x688   :  { %11902 = vmatpush1.bf16.msra.mxu0 %v25389_v55  ;;  %v25439_v55 = vld [vmem:[%s34455_s5 + $0x1040] ss:$16 sps:$4 sm:$0xff]  }
 0x689   :  { %12024 = vmatpush1.bf16.msra.mxu1 %v25392_v22  ;;  %11903 = vmatprep.subr.bf16.mxu0 %v25397_v63  ;;  %v11158_v22 = vsel %vm1158_vm8, %v30061_v1, %v11157_v40  ;;  %v25442_v63 = vld [vmem:[%s34455_s5 + $0x1048] ss:$16 sps:$4 sm:$0xff]   ;;  %v25445_v1 = vld [vmem:[%s34455_s5 + $0x1060] ss:$16 sps:$4 sm:$0xff]  }
 0x68a   :  { %12025 = vmatprep.subr.bf16.mxu1 %v25400_v0  ;;  %v25447_v0 = vld [vmem:[%s34455_s5 + $0x1064] ss:$16 sps:$4 sm:$0xff]  }
 0x68c   :  { %11904 = vmatpush1.bf16.msra.mxu0 %v25395_v41  ;;  %v31486_v41 = vld [vmem:[#allocation3] sm:$0xcc] }
 0x68d   :  { %12026 = vmatpush1.bf16.msra.mxu1 %v25398_v44  ;;  %11905 = vmatprep.subr.bf16.mxu0 %v25403_v11  ;;  %v25450_v44 = vld [vmem:[%s34455_s5 + $0x106c] ss:$16 sps:$4 sm:$0xff]   ;;  %v21564_v11 = vcombine.high %v31486_v41, %v29819_v15 }
 0x68e   :  { %12027 = vmatprep.subr.bf16.mxu1 %v25406_v28  ;;  %v25448_v28 = vld [vmem:[%s34455_s5 + $0x1068] ss:$16 sps:$4 sm:$0xff]  }
 0x690   :  { %11906 = vmatpush1.bf16.msra.mxu0 %v25401_v38  ;;  %v25453_v38 = vld [vmem:[%s34455_s5 + $0x1084] ss:$16 sps:$4 sm:$0xff]  }
 0x691   :  { %12028 = vmatpush1.bf16.msra.mxu1 %v25404_v31  ;;  %11907 = vmatprep.subr.bf16.mxu0 %v25409_v39  ;;  %v12229_v31 = vrot.slane %v29855_v21, 2  ;;  %v25451_v39 = vld [vmem:[%s34455_s5 + $0x1080] ss:$16 sps:$4 sm:$0xff]   ;;  %v25532_v21 = vld [vmem:[%s34455_s5 + $0x1228] ss:$16 sps:$4 sm:$0xff]  }
 0x692   :  { %12029 = vmatprep.subr.bf16.mxu1 %v25412_v49  ;;  %v12228_v49 = vrot.slane %v21564_v11, 2  ;;  %v25496_v11 = vld [vmem:[%s34455_s5 + $0x1168] ss:$16 sps:$4 sm:$0xff]  }
 0x694   :  { %11908 = vmatpush1.bf16.msra.mxu0 %v25407_v29  ;;  %v25454_v29 = vld [vmem:[%s34455_s5 + $0x1088] ss:$16 sps:$4 sm:$0xff]  }
 0x695   :  { %12030 = vmatpush1.bf16.msra.mxu1 %v25410_v6  ;;  %11909 = vmatprep.subr.bf16.mxu0 %v25415_v54  ;;  %v25459_v6 = vld [vmem:[%s34455_s5 + $0x10a4] ss:$16 sps:$4 sm:$0xff]   ;;  %v12230_v54 = vsel %vm1522_vm9, %v12228_v49, %v12229_v31 }
 0x696   :  { %12031 = vmatprep.subr.bf16.mxu1 %v25418_v9  ;;  %v25462_v9 = vld [vmem:[%s34455_s5 + $0x10ac] ss:$16 sps:$4 sm:$0xff]   ;;  %v25507_v49 = vld [vmem:[%s34455_s5 + $0x11a4] ss:$16 sps:$4 sm:$0xff]  }
 0x698   :  { %11910 = vmatpush1.bf16.msra.mxu0 %v25413_v48  ;;  %v25465_v48 = vld [vmem:[%s34455_s5 + $0x10c4] ss:$16 sps:$4 sm:$0xff]  }
 0x699   :  { %12032 = vmatpush1.bf16.msra.mxu1 %v25416_v23  ;;  %11911 = vmatprep.subr.bf16.mxu0 %v25421_v42  ;;  %v25468_v23 = vld [vmem:[%s34455_s5 + $0x10cc] ss:$16 sps:$4 sm:$0xff]   ;;  %v25463_v42 = vld [vmem:[%s34455_s5 + $0x10c0] ss:$16 sps:$4 sm:$0xff]  }
 0x69a   :  { %12033 = vmatprep.subr.bf16.mxu1 %v25424_v57  ;;  %v25466_v57 = vld [vmem:[%s34455_s5 + $0x10c8] ss:$16 sps:$4 sm:$0xff]  }
 0x69c   :  { %11912 = vmatpush1.bf16.msra.mxu0 %v25419_v51  ;;  %v25469_v51 = vld [vmem:[%s34455_s5 + $0x10e0] ss:$16 sps:$4 sm:$0xff]  }
 0x69d   :  { %12034 = vmatpush1.bf16.msra.mxu1 %v25422_v43  ;;  %12897 = vmatprep.subr.bf16.mxu0 %v25427_v61  ;;  %v25472_v43 = vld [vmem:[%s34455_s5 + $0x10e8] ss:$16 sps:$4 sm:$0xff]   ;;  %v25477_v61 = vld [vmem:[%s34455_s5 + $0x1104] ss:$16 sps:$4 sm:$0xff]  }
 0x69e   :  { %13019 = vmatprep.subr.bf16.mxu1 %v25430_v27  ;;  %v25480_v27 = vld [vmem:[%s34455_s5 + $0x110c] ss:$16 sps:$4 sm:$0xff]  }
 0x69f   :  { %11914 = vmatmul.mubr.bf16.vlgmr.msra.gmra.mrb[76].mxu0 %v30068_v60 }
 0x6a0   :  { %12036 = vmatmul.mubr.bf16.vlgmr.msra.gmra.mrb[76].mxu1 %v30068_v60  ;;  %11923 = vmatprep.mubr.bf16.mxu0 %v11167_v59  ;;  %v25444_v60 = vld [vmem:[%s34455_s5 + $0x104c] ss:$16 sps:$4 sm:$0xff]  }
 0x6a1   :  { %12045 = vmatprep.mubr.bf16.mxu1 %v11167_v59  ;;  %12898 = vmatpush1.bf16.msra.mxu0 %v25425_v5  ;;  %v25481_v59 = vld [vmem:[%s34455_s5 + $0x1120] ss:$16 sps:$4 sm:$0xff]  }
 0x6a2   :  { %13020 = vmatpush1.bf16.msra.mxu1 %v25428_v26  ;;  %12899 = vmatprep.subr.bf16.mxu0 %v25434_v45  ;;  %v25486_v26 = vld [vmem:[%s34455_s5 + $0x112c] ss:$16 sps:$4 sm:$0xff]  }
 0x6a3   :  { %13021 = vmatprep.subr.bf16.mxu1 %v25437_v62 }
 0x6a5   :  { %12900 = vmatpush1.bf16.msra.mxu0 %v25432_v34  ;;  %v25484_v34 = vld [vmem:[%s34455_s5 + $0x1128] ss:$16 sps:$4 sm:$0xff]  }
 0x6a6   :  { %13022 = vmatpush1.bf16.msra.mxu1 %v25435_v52  ;;  %12901 = vmatprep.subr.bf16.mxu0 %v25441_v2  ;;  %v25489_v2 = vld [vmem:[%s34455_s5 + $0x1144] ss:$16 sps:$4 sm:$0xff]  }
 0x6a7   :  { %11924 = vmatmul.mubr.bf16.gmra.mrb[80].mxu0 %v11158_v22  ;;  %13023 = vmatprep.subr.bf16.mxu1 %v25444_v60 }
 0x6a8   :  { %12046 = vmatmul.mubr.bf16.gmra.mrb[80].mxu1 %v11158_v22  ;;  %11933 = vmatprep.mubr.bf16.mxu0 %v11166_v12  ;;  %v25487_v22 = vld [vmem:[%s34455_s5 + $0x1140] ss:$16 sps:$4 sm:$0xff]  }
 0x6a9   :  { %12055 = vmatprep.mubr.bf16.mxu1 %v11166_v12  ;;  %12902 = vmatpush1.bf16.msra.mxu0 %v25439_v55  ;;  %v25483_v12 = vld [vmem:[%s34455_s5 + $0x1124] ss:$16 sps:$4 sm:$0xff]   ;;  %v25492_v55 = vld [vmem:[%s34455_s5 + $0x114c] ss:$16 sps:$4 sm:$0xff]  }
 0x6aa   :  { %13024 = vmatpush1.bf16.msra.mxu1 %v25442_v63  ;;  %12903 = vmatprep.subr.bf16.mxu0 %v25447_v0  ;;  %v25490_v63 = vld [vmem:[%s34455_s5 + $0x1148] ss:$16 sps:$4 sm:$0xff]   ;;  %v25495_v0 = vld [vmem:[%s34455_s5 + $0x1164] ss:$16 sps:$4 sm:$0xff]  }
 0x6ab   :  { %13025 = vmatprep.subr.bf16.mxu1 %v25450_v44  ;;  %v25498_v44 = vld [vmem:[%s34455_s5 + $0x116c] ss:$16 sps:$4 sm:$0xff]  }
 0x6ad   :  { %12904 = vmatpush1.bf16.msra.mxu0 %v25445_v1  ;;  %v25493_v1 = vld [vmem:[%s34455_s5 + $0x1160] ss:$16 sps:$4 sm:$0xff]  }
 0x6ae   :  { %13026 = vmatpush1.bf16.msra.mxu1 %v25448_v28  ;;  %12905 = vmatprep.subr.bf16.mxu0 %v25453_v38  ;;  %v25501_v28 = vld [vmem:[%s34455_s5 + $0x1184] ss:$16 sps:$4 sm:$0xff]   ;;  %v25504_v38 = vld [vmem:[%s34455_s5 + $0x118c] ss:$16 sps:$4 sm:$0xff]  }
 0x6af   :  { %11934 = vmatmul.mubr.bf16.gmra.mrb[112].mxu0 %v11157_v40  ;;  %13027 = vmatprep.subr.bf16.mxu1 %v25456_v58  ;;  %v25499_v58 = vld [vmem:[%s34455_s5 + $0x1180] ss:$16 sps:$4 sm:$0xff]  }
 0x6b0   :  { %12056 = vmatmul.mubr.bf16.gmra.mrb[112].mxu1 %v11157_v40  ;;  %12929 = vmatprep.mubr.bf16.mxu0 %v12230_v54 }
 0x6b1   :  { %12906 = vmatpush1.bf16.msra.mxu0 %v25451_v39  ;;  %13051 = vmatprep.mubr.bf16.mxu1 %v12230_v54  ;;  %v25502_v39 = vld [vmem:[%s34455_s5 + $0x1188] ss:$16 sps:$4 sm:$0xff]  }
 0x6b2   :  { %13028 = vmatpush1.bf16.msra.mxu1 %v25454_v29  ;;  %12907 = vmatprep.subr.bf16.mxu0 %v25459_v6  ;;  %v25510_v29 = vld [vmem:[%s34455_s5 + $0x11ac] ss:$16 sps:$4 sm:$0xff]   ;;  %v25505_v6 = vld [vmem:[%s34455_s5 + $0x11a0] ss:$16 sps:$4 sm:$0xff]   ;;  %v25508_v54 = vld [vmem:[%s34455_s5 + $0x11a8] ss:$16 sps:$4 sm:$0xff]  }
 0x6b3   :  { %13029 = vmatprep.subr.bf16.mxu1 %v25462_v9  ;;  %v25513_v9 = vld [vmem:[%s34455_s5 + $0x11c4] ss:$16 sps:$4 sm:$0xff]  }
 0x6b5   :  { %12908 = vmatpush1.bf16.msra.mxu0 %v25457_v4  ;;  %v25516_v4 = vld [vmem:[%s34455_s5 + $0x11cc] ss:$16 sps:$4 sm:$0xff]  }
 0x6b6   :  { %13030 = vmatpush1.bf16.msra.mxu1 %v25460_v53  ;;  %12909 = vmatprep.subr.bf16.mxu0 %v25465_v48  ;;  %v25511_v53 = vld [vmem:[%s34455_s5 + $0x11c0] ss:$16 sps:$4 sm:$0xff]   ;;  %v25514_v48 = vld [vmem:[%s34455_s5 + $0x11c8] ss:$16 sps:$4 sm:$0xff]  }
 0x6b7   :  { %13031 = vmatprep.subr.bf16.mxu1 %v25468_v23  ;;  %v25519_v23 = vld [vmem:[%s34455_s5 + $0x11e4] ss:$16 sps:$4 sm:$0xff]  }
 0x6b9   :  { %12910 = vmatpush1.bf16.msra.mxu0 %v25463_v42  ;;  %v25522_v42 = vld [vmem:[%s34455_s5 + $0x11ec] ss:$16 sps:$4 sm:$0xff]  }
 0x6ba   :  { %13032 = vmatpush1.bf16.msra.mxu1 %v25466_v57  ;;  %12911 = vmatprep.subr.bf16.mxu0 %v25471_v13  ;;  %v25517_v57 = vld [vmem:[%s34455_s5 + $0x11e0] ss:$16 sps:$4 sm:$0xff]   ;;  %v21563_v13 = vcombine.low %v31486_v41, %v29819_v15 }
 0x6bb   :  { %13033 = vmatprep.subr.bf16.mxu1 %v25474_v30  ;;  %v25520_v30 = vld [vmem:[%s34455_s5 + $0x11e8] ss:$16 sps:$4 sm:$0xff]   ;;  %v25523_v41 = vld [vmem:[%s34455_s5 + $0x1200] ss:$16 sps:$4 sm:$0xff]  }
 0x6bc   :  { %v12225_v15 = vrot.slane %v21563_v13, 2  ;;  %v25573_v13 = vld [vmem:[%s34455_s5 + $0x1304] ss:$16 sps:$4 sm:$0xff]  }
 0x6bd   :  { %12912 = vmatpush1.bf16.msra.mxu0 %v25469_v51  ;;  %v25525_v51 = vld [vmem:[%s34455_s5 + $0x1204] ss:$16 sps:$4 sm:$0xff]  }
 0x6be   :  { %13034 = vmatpush1.bf16.msra.mxu1 %v25472_v43  ;;  %12913 = vmatprep.subr.bf16.mxu0 %v25477_v61  ;;  %v12226_v43 = vrot.slane %v29857_v20, 2  ;;  %v25528_v61 = vld [vmem:[%s34455_s5 + $0x120c] ss:$16 sps:$4 sm:$0xff]   ;;  %v25526_v20 = vld [vmem:[%s34455_s5 + $0x1208] ss:$16 sps:$4 sm:$0xff]  }
 0x6bf   :  { %13035 = vmatprep.subr.bf16.mxu1 %v25480_v27  ;;  %v31566_v5 = vpop.f32.mrb[100].mxu0  ;;  %v12239_v27 = vrot.slane %v31183_v24, 2 }
 0x6c0   :  { %v31571_v45 = vpop.f32.mrb[100].mxu1  ;;  %v31573_v7 = vpop.f32.mrb[101].mxu0 }
 0x6c1   :  { %12914 = vmatpush1.bf16.msra.mxu0 %v25475_v47  ;;  %v31575_v50 = vpop.f32.mrb[101].mxu1  ;;  %v10737_v62 = vpop.f32.mrb[102].mxu0  ;;  %v12227_v47 = vsel %vm1522_vm9, %v12225_v15, %v12226_v43  ;;  %v12240_v24 = vsel %vm1522_vm9, %v12229_v31, %v12239_v27  ;;  %v12237_v31 = vrot.slane %v31211_v3, 2  ;;  %v25538_v3 = vld [vmem:[%s34455_s5 + $0x1248] ss:$16 sps:$4 sm:$0xff]  }
 0x6c2   :  { %13036 = vmatpush1.bf16.msra.mxu1 %v25478_v19  ;;  %12915 = vmatprep.subr.bf16.mxu0 %v25483_v12  ;;  %v10859_v52 = vpop.f32.mrb[102].mxu1  ;;  %v10738_v40 = vpop.f32.mrb[103].mxu0  ;;  %v25531_v19 = vld [vmem:[%s34455_s5 + $0x1224] ss:$16 sps:$4 sm:$0xff]   ;;  %v25534_v12 = vld [vmem:[%s34455_s5 + $0x122c] ss:$16 sps:$4 sm:$0xff]  }
 0x6c3   :  { %13037 = vmatprep.subr.bf16.mxu1 %v25486_v26  ;;  %v10860_v60 = vpop.f32.mrb[103].mxu1  ;;  %v25529_v26 = vld [vmem:[%s34455_s5 + $0x1220] ss:$16 sps:$4 sm:$0xff]   ;;  %v25540_v62 = vld [vmem:[%s34455_s5 + $0x124c] ss:$16 sps:$4 sm:$0xff]   ;;  %v12238_v52 = vsel %vm1522_vm9, %v12226_v43, %v12237_v31 }
 0x6c4   :  { %v25543_v40 = vld [vmem:[%s34455_s5 + $0x1264] ss:$16 sps:$4 sm:$0xff]   ;;  %v25546_v60 = vld [vmem:[%s34455_s5 + $0x126c] ss:$16 sps:$4 sm:$0xff]   ;;  %v25574_v43 = vld [vmem:[%s34455_s5 + $0x1308] ss:$16 sps:$4 sm:$0xff]  }
 0x6c5   :  { %12916 = vmatpush1.bf16.msra.mxu0 %v25481_v59  ;;  %v25537_v59 = vld [vmem:[%s34455_s5 + $0x1244] ss:$16 sps:$4 sm:$0xff]   ;;  %v25582_v15 = vld [vmem:[%s34455_s5 + $0x132c] ss:$16 sps:$4 sm:$0xff]  }
 0x6c6   :  { %13038 = vmatpush1.bf16.msra.mxu1 %v25484_v34  ;;  %12917 = vmatprep.subr.bf16.mxu0 %v25489_v2  ;;  %v25535_v34 = vld [vmem:[%s34455_s5 + $0x1240] ss:$16 sps:$4 sm:$0xff]  }
 0x6c7   :  { %13039 = vmatprep.subr.bf16.mxu1 %v25492_v55  ;;  %v31704_v2 = vld [vmem:[#allocation3 + $0x8] sm:$0xcc] }
 0x6c8   :  { %v25541_v55 = vld [vmem:[%s34455_s5 + $0x1260] ss:$16 sps:$4 sm:$0xff]  }
 0x6c9   :  { %12918 = vmatpush1.bf16.msra.mxu0 %v25487_v22  ;;  %v21566_v22 = vcombine.high %v31704_v2, %v29823_v25 }
 0x6ca   :  { %13040 = vmatpush1.bf16.msra.mxu1 %v25490_v63  ;;  %12919 = vmatprep.subr.bf16.mxu0 %v25495_v0  ;;  %v25544_v63 = vld [vmem:[%s34455_s5 + $0x1268] ss:$16 sps:$4 sm:$0xff]   ;;  %v25549_v0 = vld [vmem:[%s34455_s5 + $0x1284] ss:$16 sps:$4 sm:$0xff]  }
 0x6cb   :  { %13041 = vmatprep.subr.bf16.mxu1 %v25498_v44  ;;  %v25552_v44 = vld [vmem:[%s34455_s5 + $0x128c] ss:$16 sps:$4 sm:$0xff]  }
 0x6cd   :  { %12920 = vmatpush1.bf16.msra.mxu0 %v25493_v1  ;;  %v12235_v1 = vrot.slane %v29921_v14, 2 }
 0x6ce   :  { %13042 = vmatpush1.bf16.msra.mxu1 %v25496_v11  ;;  %12921 = vmatprep.subr.bf16.mxu0 %v25501_v28  ;;  %v25547_v11 = vld [vmem:[%s34455_s5 + $0x1280] ss:$16 sps:$4 sm:$0xff]   ;;  %v12234_v28 = vrot.slane %v21566_v22, 2  ;;  %v25597_v22 = vld [vmem:[%s34455_s5 + $0x1384] ss:$16 sps:$4 sm:$0xff]  }
 0x6cf   :  { %13043 = vmatprep.subr.bf16.mxu1 %v25504_v38  ;;  %v25550_v38 = vld [vmem:[%s34455_s5 + $0x1288] ss:$16 sps:$4 sm:$0xff]  }
 0x6d1   :  { %12922 = vmatpush1.bf16.msra.mxu0 %v25499_v58  ;;  %v25555_v58 = vld [vmem:[%s34455_s5 + $0x12a4] ss:$16 sps:$4 sm:$0xff]  }
 0x6d2   :  { %13044 = vmatpush1.bf16.msra.mxu1 %v25502_v39  ;;  %12923 = vmatprep.subr.bf16.mxu0 %v25507_v49  ;;  %v12236_v39 = vsel %vm1522_vm9, %v12234_v28, %v12235_v1  ;;  %v25558_v49 = vld [vmem:[%s34455_s5 + $0x12ac] ss:$16 sps:$4 sm:$0xff]  }
 0x6d3   :  { %13045 = vmatprep.subr.bf16.mxu1 %v25510_v29  ;;  %v25553_v29 = vld [vmem:[%s34455_s5 + $0x12a0] ss:$16 sps:$4 sm:$0xff]   ;;  %v25606_v28 = vld [vmem:[%s34455_s5 + $0x13ac] ss:$16 sps:$4 sm:$0xff]  }
 0x6d5   :  { %12924 = vmatpush1.bf16.msra.mxu0 %v25505_v6  ;;  %v25556_v6 = vld [vmem:[%s34455_s5 + $0x12a8] ss:$16 sps:$4 sm:$0xff]  }
 0x6d6   :  { %13046 = vmatpush1.bf16.msra.mxu1 %v25508_v54  ;;  %12925 = vmatprep.subr.bf16.mxu0 %v25513_v9  ;;  %v25561_v54 = vld [vmem:[%s34455_s5 + $0x12c4] ss:$16 sps:$4 sm:$0xff]   ;;  %v25564_v9 = vld [vmem:[%s34455_s5 + $0x12cc] ss:$16 sps:$4 sm:$0xff]  }
 0x6d7   :  { %13047 = vmatprep.subr.bf16.mxu1 %v25516_v4  ;;  %v25559_v4 = vld [vmem:[%s34455_s5 + $0x12c0] ss:$16 sps:$4 sm:$0xff]  }
 0x6d9   :  { %12926 = vmatpush1.bf16.msra.mxu0 %v25511_v53  ;;  %v25562_v53 = vld [vmem:[%s34455_s5 + $0x12c8] ss:$16 sps:$4 sm:$0xff]  }
 0x6da   :  { %13048 = vmatpush1.bf16.msra.mxu1 %v25514_v48  ;;  %12927 = vmatprep.subr.bf16.mxu0 %v25519_v23  ;;  %v25567_v48 = vld [vmem:[%s34455_s5 + $0x12e4] ss:$16 sps:$4 sm:$0xff]   ;;  %v25570_v23 = vld [vmem:[%s34455_s5 + $0x12ec] ss:$16 sps:$4 sm:$0xff]  }
 0x6db   :  { %13049 = vmatprep.subr.bf16.mxu1 %v25522_v42  ;;  %v25565_v42 = vld [vmem:[%s34455_s5 + $0x12e0] ss:$16 sps:$4 sm:$0xff]  }
 0x6dd   :  { %12928 = vmatpush1.bf16.msra.mxu0 %v25517_v57  ;;  %v25568_v57 = vld [vmem:[%s34455_s5 + $0x12e8] ss:$16 sps:$4 sm:$0xff]  }
 0x6de   :  { %13050 = vmatpush1.bf16.msra.mxu1 %v25520_v30  ;;  %12958 = vmatprep.subr.bf16.mxu0 %v25525_v51  ;;  %v25576_v30 = vld [vmem:[%s34455_s5 + $0x130c] ss:$16 sps:$4 sm:$0xff]   ;;  %v25571_v51 = vld [vmem:[%s34455_s5 + $0x1300] ss:$16 sps:$4 sm:$0xff]  }
 0x6df   :  { %13080 = vmatprep.subr.bf16.mxu1 %v25528_v61  ;;  %v25579_v61 = vld [vmem:[%s34455_s5 + $0x1324] ss:$16 sps:$4 sm:$0xff]  }
 0x6e0   :  { %12930 = vmatmul.mubr.bf16.vlgmr.msra.gmra.mrb[76].mxu0 %v12227_v47 }
 0x6e1   :  { %13052 = vmatmul.mubr.bf16.vlgmr.msra.gmra.mrb[76].mxu1 %v12227_v47  ;;  %12939 = vmatprep.mubr.bf16.mxu0 %v12240_v24 }
 0x6e2   :  { %12959 = vmatpush1.bf16.msra.mxu0 %v25523_v41  ;;  %13061 = vmatprep.mubr.bf16.mxu1 %v12240_v24 }
 0x6e3   :  { %13081 = vmatpush1.bf16.msra.mxu1 %v25526_v20  ;;  %12960 = vmatprep.subr.bf16.mxu0 %v25531_v19 }
 0x6e4   :  { %13082 = vmatprep.subr.bf16.mxu1 %v25534_v12 }
 0x6e6   :  { %12961 = vmatpush1.bf16.msra.mxu0 %v25529_v26  ;;  %v25577_v26 = vld [vmem:[%s34455_s5 + $0x1320] ss:$16 sps:$4 sm:$0xff]  }
 0x6e7   :  { %13083 = vmatpush1.bf16.msra.mxu1 %v25532_v21  ;;  %12962 = vmatprep.subr.bf16.mxu0 %v25537_v59 }
 0x6e8   :  { %12940 = vmatmul.mubr.bf16.gmra.mrb[80].mxu0 %v12238_v52  ;;  %13084 = vmatprep.subr.bf16.mxu1 %v25540_v62 }
 0x6e9   :  { %13062 = vmatmul.mubr.bf16.gmra.mrb[80].mxu1 %v12238_v52  ;;  %12949 = vmatprep.mubr.bf16.mxu0 %v12239_v27 }
 0x6ea   :  { %12963 = vmatpush1.bf16.msra.mxu0 %v25535_v34  ;;  %13071 = vmatprep.mubr.bf16.mxu1 %v12239_v27 }
 0x6eb   :  { %13085 = vmatpush1.bf16.msra.mxu1 %v25538_v3  ;;  %12964 = vmatprep.subr.bf16.mxu0 %v25543_v40  ;;  %v25583_v40 = vld [vmem:[%s34455_s5 + $0x1340] ss:$16 sps:$4 sm:$0xff]  }
 0x6ec   :  { %13086 = vmatprep.subr.bf16.mxu1 %v25546_v60  ;;  %v25589_v60 = vld [vmem:[%s34455_s5 + $0x1360] ss:$16 sps:$4 sm:$0xff]  }
 0x6ee   :  { %12965 = vmatpush1.bf16.msra.mxu0 %v25541_v55  ;;  %v25592_v55 = vld [vmem:[%s34455_s5 + $0x1368] ss:$16 sps:$4 sm:$0xff]  }
 0x6ef   :  { %13087 = vmatpush1.bf16.msra.mxu1 %v25544_v63  ;;  %12966 = vmatprep.subr.bf16.mxu0 %v25549_v0  ;;  %v25600_v63 = vld [vmem:[%s34455_s5 + $0x138c] ss:$16 sps:$4 sm:$0xff]   ;;  %v25595_v0 = vld [vmem:[%s34455_s5 + $0x1380] ss:$16 sps:$4 sm:$0xff]  }
 0x6f0   :  { %12950 = vmatmul.mubr.bf16.gmra.mrb[116].mxu0 %v12237_v31  ;;  %13088 = vmatprep.subr.bf16.mxu1 %v25552_v44  ;;  %v25598_v44 = vld [vmem:[%s34455_s5 + $0x1388] ss:$16 sps:$4 sm:$0xff]  }
 0x6f1   :  { %13072 = vmatmul.mubr.bf16.gmra.mrb[116].mxu1 %v12237_v31  ;;  %12990 = vmatprep.mubr.bf16.mxu0 %v12236_v39 }
 0x6f2   :  { %12967 = vmatpush1.bf16.msra.mxu0 %v25547_v11  ;;  %13112 = vmatprep.mubr.bf16.mxu1 %v12236_v39  ;;  %v25603_v11 = vld [vmem:[%s34455_s5 + $0x13a4] ss:$16 sps:$4 sm:$0xff]  }
 0x6f3   :  { %13089 = vmatpush1.bf16.msra.mxu1 %v25550_v38  ;;  %12968 = vmatprep.subr.bf16.mxu0 %v25555_v58  ;;  %v25601_v38 = vld [vmem:[%s34455_s5 + $0x13a0] ss:$16 sps:$4 sm:$0xff]   ;;  %v25604_v58 = vld [vmem:[%s34455_s5 + $0x13a8] ss:$16 sps:$4 sm:$0xff]   ;;  %v25609_v39 = vld [vmem:[%s34455_s5 + $0x13c4] ss:$16 sps:$4 sm:$0xff]  }
 0x6f4   :  { %13090 = vmatprep.subr.bf16.mxu1 %v25558_v49  ;;  %v25612_v49 = vld [vmem:[%s34455_s5 + $0x13cc] ss:$16 sps:$4 sm:$0xff]  }
 0x6f6   :  { %12969 = vmatpush1.bf16.msra.mxu0 %v25553_v29  ;;  %v25607_v29 = vld [vmem:[%s34455_s5 + $0x13c0] ss:$16 sps:$4 sm:$0xff]  }
 0x6f7   :  { %13091 = vmatpush1.bf16.msra.mxu1 %v25556_v6  ;;  %12970 = vmatprep.subr.bf16.mxu0 %v25561_v54  ;;  %v25610_v6 = vld [vmem:[%s34455_s5 + $0x13c8] ss:$16 sps:$4 sm:$0xff]   ;;  %v25615_v54 = vld [vmem:[%s34455_s5 + $0x13e4] ss:$16 sps:$4 sm:$0xff]  }
 0x6f8   :  { %13092 = vmatprep.subr.bf16.mxu1 %v25564_v9  ;;  %v25618_v9 = vld [vmem:[%s34455_s5 + $0x13ec] ss:$16 sps:$4 sm:$0xff]  }
 0x6fa   :  { %12971 = vmatpush1.bf16.msra.mxu0 %v25559_v4  ;;  %v25613_v4 = vld [vmem:[%s34455_s5 + $0x13e0] ss:$16 sps:$4 sm:$0xff]  }
 0x6fb   :  { %13093 = vmatpush1.bf16.msra.mxu1 %v25562_v53  ;;  %12972 = vmatprep.subr.bf16.mxu0 %v25567_v48  ;;  %v21565_v53 = vcombine.low %v31704_v2, %v29823_v25  ;;  %v25616_v48 = vld [vmem:[%s34455_s5 + $0x13e8] ss:$16 sps:$4 sm:$0xff]   ;;  %v12241_v2 = vrot.slane %v31431_v10, 2 }
 0x6fc   :  { %13094 = vmatprep.subr.bf16.mxu1 %v25570_v23  ;;  %v12232_v23 = vrot.slane %v29968_v17, 2 }
 0x6fe   :  { %12973 = vmatpush1.bf16.msra.mxu0 %v25565_v42  ;;  %v12243_v42 = vrot.slane %v31403_v46, 2 }
 0x6ff   :  { %13095 = vmatpush1.bf16.msra.mxu1 %v25568_v57  ;;  %12974 = vmatprep.subr.bf16.mxu0 %v25573_v13  ;;  %v12231_v57 = vrot.slane %v21565_v53, 2 }
 0x700   :  { %13096 = vmatprep.subr.bf16.mxu1 %v25576_v30  ;;  %v10794_v27 = vpop.f32.mrb[104].mxu0  ;;  %v12244_v25 = vsel %vm1522_vm9, %v12235_v1, %v12243_v42  ;;  %v12242_v30 = vsel %vm1522_vm9, %v12232_v23, %v12241_v2 }
 0x701   :  { %v10795_v41 = vadd.f32 %v10794_v27, %v31566_v5  ;;  %v10916_v47 = vpop.f32.mrb[104].mxu1  ;;  %v10796_v20 = vpop.f32.mrb[105].mxu0  ;;  %v25580_v5 = vld [vmem:[%s34455_s5 + $0x1328] ss:$16 sps:$4 sm:$0xff]   ;;  %v12233_v13 = vsel %vm1522_vm9, %v12231_v57, %v12232_v23  ;;  %v25619_v27 = vld [vmem:[%s34457_s7 + $0x400] ss:$16 sps:$4 sm:$0xff]  }
 0x702   :  { %12975 = vmatpush1.bf16.msra.mxu0 %v25571_v51  ;;  %v10917_v19 = vadd.f32 %v10916_v47, %v31571_v45  ;;  %v10797_v24 = vadd.f32 %v10796_v20, %v31573_v7  ;;  %v10918_v12 = vpop.f32.mrb[105].mxu1  ;;  %v10798_v21 = vpop.f32.mrb[106].mxu0  ;;  %v25585_v7 = vld [vmem:[%s34455_s5 + $0x1344] ss:$16 sps:$4 sm:$0xff]   ;;  %v25624_v47 = vld [vmem:[%s34457_s7 + $0x40c] ss:$16 sps:$4 sm:$0xff]  }
 0x703   :  { %13097 = vmatpush1.bf16.msra.mxu1 %v25574_v43  ;;  %v31794_v31 = vadd.f32 %v10795_v41, %v31344_v56  ;;  %v10919_v59 = vadd.f32 %v10918_v12, %v31575_v50  ;;  %12976 = vmatprep.subr.bf16.mxu0 %v25579_v61  ;;  %v10920_v45 = vpop.f32.mrb[106].mxu1  ;;  %v10799_v62 = vpop.f32.mrb[107].mxu0  ;;  %v25588_v50 = vld [vmem:[%s34455_s5 + $0x134c] ss:$16 sps:$4 sm:$0xff]   ;;  %v25622_v41 = vld [vmem:[%s34457_s7 + $0x408] ss:$16 sps:$4 sm:$0xff]  }
 0x704   :  { %v31804_v34 = vadd.f32 %v10917_v19, %v31347_v16  ;;  %v31807_v52 = vadd.f32 %v10797_v24, %v31350_v18  ;;  %13098 = vmatprep.subr.bf16.mxu1 %v25582_v15  ;;  %v10921_v56 = vpop.f32.mrb[107].mxu1  ;;  %v25586_v16 = vld [vmem:[%s34455_s5 + $0x1348] ss:$16 sps:$4 sm:$0xff]   ;;  %v25591_v18 = vld [vmem:[%s34455_s5 + $0x1364] ss:$16 sps:$4 sm:$0xff]  }
 0x705   :  { %v31813_v3 = vadd.f32 %v10919_v59, %v31356_v8  ;;  %v25594_v8 = vld [vmem:[%s34455_s5 + $0x136c] ss:$16 sps:$4 sm:$0xff]   ;;  %v25621_v15 = vld [vmem:[%s34457_s7 + $0x404] ss:$16 sps:$4 sm:$0xff]   ;;  %v25625_v20 = vld [vmem:[%s34457_s7 + $0x420] ss:$16 sps:$4 sm:$0xff]  }
 0x706   :  { %12977 = vmatpush1.bf16.msra.mxu0 %v25577_v26  ;;  %v25627_v19 = vld [vmem:[%s34457_s7 + $0x424] ss:$16 sps:$4 sm:$0xff]   ;;  %v25628_v24 = vld [vmem:[%s34457_s7 + $0x428] ss:$16 sps:$4 sm:$0xff]   ;;  %v25630_v12 = vld [vmem:[%s34457_s7 + $0x42c] ss:$16 sps:$4 sm:$0xff]  }
 0x707   :  { %13099 = vmatpush1.bf16.msra.mxu1 %v25580_v5  ;;  %12978 = vmatprep.subr.bf16.mxu0 %v25585_v7  ;;  %v25633_v26 = vld [vmem:[%s34457_s7 + $0x444] ss:$16 sps:$4 sm:$0xff]   ;;  %v25631_v21 = vld [vmem:[%s34457_s7 + $0x440] ss:$16 sps:$4 sm:$0xff]   ;;  %v25636_v59 = vld [vmem:[%s34457_s7 + $0x44c] ss:$16 sps:$4 sm:$0xff]  }
 0x708   :  { %13100 = vmatprep.subr.bf16.mxu1 %v25588_v50  ;;  %v25634_v5 = vld [vmem:[%s34457_s7 + $0x448] ss:$16 sps:$4 sm:$0xff]   ;;  %v25639_v45 = vld [vmem:[%s34457_s7 + $0x464] ss:$16 sps:$4 sm:$0xff]   ;;  %v25642_v62 = vld [vmem:[%s34457_s7 + $0x46c] ss:$16 sps:$4 sm:$0xff]  }
 0x709   :  { %v25637_v7 = vld [vmem:[%s34457_s7 + $0x460] ss:$16 sps:$4 sm:$0xff]   ;;  %v25640_v56 = vld [vmem:[%s34457_s7 + $0x468] ss:$16 sps:$4 sm:$0xff]   ;;  %v25645_v50 = vld [vmem:[%s34457_s7 + $0x484] ss:$16 sps:$4 sm:$0xff]  }
 0x70a   :  { %12979 = vmatpush1.bf16.msra.mxu0 %v25583_v40  ;;  %v25648_v40 = vld [vmem:[%s34457_s7 + $0x48c] ss:$16 sps:$4 sm:$0xff]   ;;  %v25670_v57 = vld [vmem:[%s34457_s7 + $0x508] ss:$16 sps:$4 sm:$0xff]  }
 0x70b   :  { %13101 = vmatpush1.bf16.msra.mxu1 %v25586_v16  ;;  %12980 = vmatprep.subr.bf16.mxu0 %v25591_v18  ;;  %v25643_v16 = vld [vmem:[%s34457_s7 + $0x480] ss:$16 sps:$4 sm:$0xff]   ;;  %v25646_v18 = vld [vmem:[%s34457_s7 + $0x488] ss:$16 sps:$4 sm:$0xff]  }
 0x70c   :  { %13102 = vmatprep.subr.bf16.mxu1 %v25594_v8  ;;  %v25651_v8 = vld [vmem:[%s34457_s7 + $0x4a4] ss:$16 sps:$4 sm:$0xff]  }
 0x70e   :  { %12981 = vmatpush1.bf16.msra.mxu0 %v25589_v60  ;;  %v25649_v60 = vld [vmem:[%s34457_s7 + $0x4a0] ss:$16 sps:$4 sm:$0xff]  }
 0x70f   :  { %13103 = vmatpush1.bf16.msra.mxu1 %v25592_v55  ;;  %12982 = vmatprep.subr.bf16.mxu0 %v25597_v22  ;;  %v25654_v55 = vld [vmem:[%s34457_s7 + $0x4ac] ss:$16 sps:$4 sm:$0xff]   ;;  %v25652_v22 = vld [vmem:[%s34457_s7 + $0x4a8] ss:$16 sps:$4 sm:$0xff]  }
 0x710   :  { %13104 = vmatprep.subr.bf16.mxu1 %v25600_v63  ;;  %v25657_v63 = vld [vmem:[%s34457_s7 + $0x4c4] ss:$16 sps:$4 sm:$0xff]  }
 0x712   :  { %12983 = vmatpush1.bf16.msra.mxu0 %v25595_v0  ;;  %v25660_v0 = vld [vmem:[%s34457_s7 + $0x4cc] ss:$16 sps:$4 sm:$0xff]  }
 0x713   :  { %13105 = vmatpush1.bf16.msra.mxu1 %v25598_v44  ;;  %12984 = vmatprep.subr.bf16.mxu0 %v25603_v11  ;;  %v25655_v44 = vld [vmem:[%s34457_s7 + $0x4c0] ss:$16 sps:$4 sm:$0xff]   ;;  %v25658_v11 = vld [vmem:[%s34457_s7 + $0x4c8] ss:$16 sps:$4 sm:$0xff]  }
 0x714   :  { %13106 = vmatprep.subr.bf16.mxu1 %v25606_v28  ;;  %v25661_v28 = vld [vmem:[%s34457_s7 + $0x4e0] ss:$16 sps:$4 sm:$0xff]  }
 0x716   :  { %12985 = vmatpush1.bf16.msra.mxu0 %v25601_v38  ;;  %v25663_v38 = vld [vmem:[%s34457_s7 + $0x4e4] ss:$16 sps:$4 sm:$0xff]  }
 0x717   :  { %13107 = vmatpush1.bf16.msra.mxu1 %v25604_v58  ;;  %12986 = vmatprep.subr.bf16.mxu0 %v25609_v39  ;;  %v25664_v58 = vld [vmem:[%s34457_s7 + $0x4e8] ss:$16 sps:$4 sm:$0xff]   ;;  %v25666_v39 = vld [vmem:[%s34457_s7 + $0x4ec] ss:$16 sps:$4 sm:$0xff]  }
 0x718   :  { %13108 = vmatprep.subr.bf16.mxu1 %v25612_v49 }
 0x71a   :  { %12987 = vmatpush1.bf16.msra.mxu0 %v25607_v29 }
 0x71b   :  { %13109 = vmatpush1.bf16.msra.mxu1 %v25610_v6  ;;  %12988 = vmatprep.subr.bf16.mxu0 %v25615_v54 }
 0x71c   :  { %13110 = vmatprep.subr.bf16.mxu1 %v25618_v9  ;;  %v25667_v9 = vld [vmem:[%s34457_s7 + $0x500] ss:$16 sps:$4 sm:$0xff]  }
 0x71e   :  { %12989 = vmatpush1.bf16.msra.mxu0 %v25613_v4  ;;  %v25669_v4 = vld [vmem:[%s34457_s7 + $0x504] ss:$16 sps:$4 sm:$0xff]  }
 0x71f   :  { %13111 = vmatpush1.bf16.msra.mxu1 %v25616_v48  ;;  %14380 = vmatprep.subr.bf16.mxu0 %v25621_v15  ;;  %v25685_v15 = vld [vmem:[%s34457_s7 + $0x560] ss:$16 sps:$4 sm:$0xff]  }
 0x720   :  { %14502 = vmatprep.subr.bf16.mxu1 %v25624_v47  ;;  %v25688_v47 = vld [vmem:[%s34457_s7 + $0x568] ss:$16 sps:$4 sm:$0xff]  }
 0x721   :  { %12991 = vmatmul.mubr.bf16.vlgmr.msra.gmra.mrb[76].mxu0 %v12233_v13 }
 0x722   :  { %13113 = vmatmul.mubr.bf16.vlgmr.msra.gmra.mrb[76].mxu1 %v12233_v13  ;;  %13000 = vmatprep.mubr.bf16.mxu0 %v12244_v25  ;;  %v25672_v13 = vld [vmem:[%s34457_s7 + $0x50c] ss:$16 sps:$4 sm:$0xff]  }
 0x723   :  { %13122 = vmatprep.mubr.bf16.mxu1 %v12244_v25  ;;  %14381 = vmatpush1.bf16.msra.mxu0 %v25619_v27  ;;  %v25682_v27 = vld [vmem:[%s34457_s7 + $0x548] ss:$16 sps:$4 sm:$0xff]  }
 0x724   :  { %14503 = vmatpush1.bf16.msra.mxu1 %v25622_v41  ;;  %14382 = vmatprep.subr.bf16.mxu0 %v25627_v19  ;;  %v25687_v41 = vld [vmem:[%s34457_s7 + $0x564] ss:$16 sps:$4 sm:$0xff]   ;;  %v25691_v19 = vld [vmem:[%s34457_s7 + $0x580] ss:$16 sps:$4 sm:$0xff]  }
 0x725   :  { %14504 = vmatprep.subr.bf16.mxu1 %v25630_v12  ;;  %v25694_v12 = vld [vmem:[%s34457_s7 + $0x588] ss:$16 sps:$4 sm:$0xff]  }
 0x727   :  { %14383 = vmatpush1.bf16.msra.mxu0 %v25625_v20  ;;  %v25690_v20 = vld [vmem:[%s34457_s7 + $0x56c] ss:$16 sps:$4 sm:$0xff]  }
 0x728   :  { %14505 = vmatpush1.bf16.msra.mxu1 %v25628_v24  ;;  %14384 = vmatprep.subr.bf16.mxu0 %v25633_v26  ;;  %v25693_v24 = vld [vmem:[%s34457_s7 + $0x584] ss:$16 sps:$4 sm:$0xff]   ;;  %v25696_v26 = vld [vmem:[%s34457_s7 + $0x58c] ss:$16 sps:$4 sm:$0xff]  }
 0x729   :  { %13001 = vmatmul.mubr.bf16.gmra.mrb[80].mxu0 %v12242_v30  ;;  %14506 = vmatprep.subr.bf16.mxu1 %v25636_v59  ;;  %v25702_v59 = vld [vmem:[%s34457_s7 + $0x5ac] ss:$16 sps:$4 sm:$0xff]  }
 0x72a   :  { %13123 = vmatmul.mubr.bf16.gmra.mrb[80].mxu1 %v12242_v30  ;;  %13010 = vmatprep.mubr.bf16.mxu0 %v12243_v42 }
 0x72b   :  { %13132 = vmatprep.mubr.bf16.mxu1 %v12243_v42  ;;  %14385 = vmatpush1.bf16.msra.mxu0 %v25631_v21  ;;  %v25699_v21 = vld [vmem:[%s34457_s7 + $0x5a4] ss:$16 sps:$4 sm:$0xff]  }
 0x72c   :  { %14507 = vmatpush1.bf16.msra.mxu1 %v25634_v5  ;;  %14386 = vmatprep.subr.bf16.mxu0 %v25639_v45  ;;  %v25697_v5 = vld [vmem:[%s34457_s7 + $0x5a0] ss:$16 sps:$4 sm:$0xff]   ;;  %v25700_v45 = vld [vmem:[%s34457_s7 + $0x5a8] ss:$16 sps:$4 sm:$0xff]  }
 0x72d   :  { %14508 = vmatprep.subr.bf16.mxu1 %v25642_v62  ;;  %v25705_v62 = vld [vmem:[%s34457_s7 + $0x5c4] ss:$16 sps:$4 sm:$0xff]  }
 0x72f   :  { %14387 = vmatpush1.bf16.msra.mxu0 %v25637_v7  ;;  %v25708_v7 = vld [vmem:[%s34457_s7 + $0x5cc] ss:$16 sps:$4 sm:$0xff]  }
 0x730   :  { %14509 = vmatpush1.bf16.msra.mxu1 %v25640_v56  ;;  %14388 = vmatprep.subr.bf16.mxu0 %v25645_v50  ;;  %v25703_v56 = vld [vmem:[%s34457_s7 + $0x5c0] ss:$16 sps:$4 sm:$0xff]   ;;  %v25706_v50 = vld [vmem:[%s34457_s7 + $0x5c8] ss:$16 sps:$4 sm:$0xff]  }
 0x731   :  { %13011 = vmatmul.mubr.bf16.gmra.mrb[120].mxu0 %v12241_v2  ;;  %14510 = vmatprep.subr.bf16.mxu1 %v25648_v40  ;;  %v25711_v40 = vld [vmem:[%s34457_s7 + $0x5e4] ss:$16 sps:$4 sm:$0xff]  }
 0x732   :  { %13133 = vmatmul.mubr.bf16.gmra.mrb[120].mxu1 %v12241_v2 }
 0x733   :  { %14389 = vmatpush1.bf16.msra.mxu0 %v25643_v16  ;;  %v25709_v16 = vld [vmem:[%s34457_s7 + $0x5e0] ss:$16 sps:$4 sm:$0xff]  }
 0x734   :  { %14511 = vmatpush1.bf16.msra.mxu1 %v25646_v18  ;;  %14390 = vmatprep.subr.bf16.mxu0 %v25651_v8  ;;  %v25714_v18 = vld [vmem:[%s34457_s7 + $0x5ec] ss:$16 sps:$4 sm:$0xff]   ;;  %v25712_v8 = vld [vmem:[%s34457_s7 + $0x5e8] ss:$16 sps:$4 sm:$0xff]  }
 0x735   :  { %14512 = vmatprep.subr.bf16.mxu1 %v25654_v55  ;;  %v25720_v55 = vld [vmem:[%s34457_s7 + $0x60c] ss:$16 sps:$4 sm:$0xff]  }
 0x737   :  { %14391 = vmatpush1.bf16.msra.mxu0 %v25649_v60  ;;  %v25717_v60 = vld [vmem:[%s34457_s7 + $0x604] ss:$16 sps:$4 sm:$0xff]  }
 0x738   :  { %14513 = vmatpush1.bf16.msra.mxu1 %v25652_v22  ;;  %14392 = vmatprep.subr.bf16.mxu0 %v25657_v63 }
 0x739   :  { %14514 = vmatprep.subr.bf16.mxu1 %v25660_v0 }
 0x73b   :  { %14393 = vmatpush1.bf16.msra.mxu0 %v25655_v44 }
 0x73c   :  { %14515 = vmatpush1.bf16.msra.mxu1 %v25658_v11  ;;  %14394 = vmatprep.subr.bf16.mxu0 %v25663_v38 }
 0x73d   :  { %14516 = vmatprep.subr.bf16.mxu1 %v25666_v39  ;;  %v13161_v39 = vld [vmem:[%s34458_s6] sm:$0xf] }
 0x73f   :  { %14395 = vmatpush1.bf16.msra.mxu0 %v25661_v28 }
 0x740   :  { %14517 = vmatpush1.bf16.msra.mxu1 %v25664_v58  ;;  %14396 = vmatprep.subr.bf16.mxu0 %v25669_v4 }
 0x741   :  { %v31891_v17 = vpop.f32.mrb[108].mxu0  ;;  %14518 = vmatprep.subr.bf16.mxu1 %v25672_v13 }
 0x742   :  { %v31893_v46 = vpop.f32.mrb[108].mxu1  ;;  %v31895_v14 = vpop.f32.mrb[109].mxu0 }
 0x743   :  { %v31897_v1 = vpop.f32.mrb[109].mxu1  ;;  %v11878_v51 = vpop.f32.mrb[110].mxu0  ;;  %14397 = vmatpush1.bf16.msra.mxu0 %v25667_v9 }
 0x744   :  { %v12000_v43 = vpop.f32.mrb[110].mxu1  ;;  %v11879_v61 = vpop.f32.mrb[111].mxu0  ;;  %14519 = vmatpush1.bf16.msra.mxu1 %v25670_v57 }
 0x745   :  { %v12001_v10 = vpop.f32.mrb[111].mxu1  ;;  %v25678_v61 = vld [vmem:[%s34457_s7 + $0x52c] ss:$16 sps:$4 sm:$0xff]  }
 0x746   :  { %14520 = vmatprep.subr.bf16.mxu1 %v25678_v61 }
 0x782   :  { %v11935_v49 = vpop.f32.mrb[112].mxu0 }
 0x783   :  { %v11936_v29 = vadd.f32 %v11935_v49, %v31891_v17  ;;  %v12057_v6 = vpop.f32.mrb[112].mxu1  ;;  %v11937_v54 = vpop.f32.mrb[113].mxu0  ;;  %v32125_v49 = vrot.slane %v13161_v39, %v27455_v32 }
 0x784   :  { %v12058_v53 = vadd.f32 %v12057_v6, %v31893_v46  ;;  %v11938_v48 = vadd.f32 %v11937_v54, %v31895_v14  ;;  %v12059_v23 = vpop.f32.mrb[113].mxu1  ;;  %v11939_v42 = vpop.f32.mrb[114].mxu0  ;;  %v25673_v46 = vld [vmem:[%s34457_s7 + $0x520] ss:$16 sps:$4 sm:$0xff]   ;;  %v25675_v14 = vld [vmem:[%s34457_s7 + $0x524] ss:$16 sps:$4 sm:$0xff]   ;;  %v32131_v6 = vrot.slane %v13161_v39, %v27462_v35  ;;  %v32134_v54 = vrot.slane %v13161_v39, %v27464_v36 }
 0x785   :  { %v32011_v25 = vadd.f32 %v11936_v29, %v31794_v31  ;;  %v12060_v2 = vadd.f32 %v12059_v23, %v31897_v1  ;;  %v12061_v30 = vpop.f32.mrb[114].mxu1  ;;  %v11940_v17 = vpop.f32.mrb[115].mxu0  ;;  %v25676_v1 = vld [vmem:[%s34457_s7 + $0x528] ss:$16 sps:$4 sm:$0xff]   ;;  %14398 = vmatprep.subr.bf16.mxu0 %v25675_v14  ;;  %v32128_v29 = vrot.slane %v13161_v39, %v27457_v33 }
 0x786   :  { %v32021_v51 = vadd.f32 %v12058_v53, %v31804_v34  ;;  %v32024_v43 = vadd.f32 %v11938_v48, %v31807_v52  ;;  %v12062_v31 = vpop.f32.mrb[115].mxu1  ;;  %14399 = vmatpush1.bf16.msra.mxu0 %v25673_v46  ;;  %14521 = vmatpush1.bf16.msra.mxu1 %v25676_v1  ;;  %v25679_v34 = vld [vmem:[%s34457_s7 + $0x540] ss:$16 sps:$4 sm:$0xff]   ;;  %v25681_v52 = vld [vmem:[%s34457_s7 + $0x544] ss:$16 sps:$4 sm:$0xff]  }
 0x787   :  { %v32033_v10 = vadd.f32 %v12060_v2, %v31813_v3  ;;  %v25684_v3 = vld [vmem:[%s34457_s7 + $0x54c] ss:$16 sps:$4 sm:$0xff]   ;;  %14400 = vmatprep.subr.bf16.mxu0 %v25681_v52 }
 0x788   :  { %14522 = vmatprep.subr.bf16.mxu1 %v25684_v3 }
 0x78a   :  { %14401 = vmatpush1.bf16.msra.mxu0 %v25679_v34  ;;  %14523 = vmatpush1.bf16.msra.mxu1 %v25682_v27 }
 0x78b   :  { %14402 = vmatprep.subr.bf16.mxu0 %v25687_v41  ;;  %14524 = vmatprep.subr.bf16.mxu1 %v25690_v20 }
 0x78e   :  { %14403 = vmatpush1.bf16.msra.mxu0 %v25685_v15  ;;  %14525 = vmatpush1.bf16.msra.mxu1 %v25688_v47 }
 0x78f   :  { %14404 = vmatprep.subr.bf16.mxu0 %v25693_v24  ;;  %14526 = vmatprep.subr.bf16.mxu1 %v25696_v26 }
 0x792   :  { %14405 = vmatpush1.bf16.msra.mxu0 %v25691_v19  ;;  %14527 = vmatpush1.bf16.msra.mxu1 %v25694_v12 }
 0x793   :  { %14406 = vmatprep.subr.bf16.mxu0 %v25699_v21  ;;  %14528 = vmatprep.subr.bf16.mxu1 %v25702_v59 }
 0x796   :  { %14407 = vmatpush1.bf16.msra.mxu0 %v25697_v5  ;;  %14529 = vmatpush1.bf16.msra.mxu1 %v25700_v45 }
 0x797   :  { %14408 = vmatprep.subr.bf16.mxu0 %v25705_v62  ;;  %14530 = vmatprep.subr.bf16.mxu1 %v25708_v7 }
 0x79a   :  { %14409 = vmatpush1.bf16.msra.mxu0 %v25703_v56  ;;  %14531 = vmatpush1.bf16.msra.mxu1 %v25706_v50 }
 0x79b   :  { %14410 = vmatprep.subr.bf16.mxu0 %v25711_v40  ;;  %14532 = vmatprep.subr.bf16.mxu1 %v25714_v18 }
 0x79e   :  { %14411 = vmatpush1.bf16.msra.mxu0 %v25709_v16  ;;  %14533 = vmatpush1.bf16.msra.mxu1 %v25712_v8 }
 0x79f   :  { %14441 = vmatprep.subr.bf16.mxu0 %v25717_v60  ;;  %14563 = vmatprep.subr.bf16.mxu1 %v25720_v55 }
 0x7c3   :  { %v32113_v22 = vpop.f32.mrb[116].mxu0 }
 0x7c4   :  { %v32115_v63 = vpop.f32.mrb[116].mxu1  ;;  %v32117_v0 = vpop.f32.mrb[117].mxu0 }
 0x7c5   :  { %v32119_v44 = vpop.f32.mrb[117].mxu1  ;;  %v12955_v11 = vpop.f32.mrb[118].mxu0 }
 0x7c6   :  { %v13077_v28 = vpop.f32.mrb[118].mxu1  ;;  %v12956_v38 = vpop.f32.mrb[119].mxu0 }
 0x7c7   :  { %v13078_v58 = vpop.f32.mrb[119].mxu1 }
 0x7f4   :  { %v12992_v9 = vpop.f32.mrb[76].mxu0 }
 0x7f5   :  { %v13183_v4 = vadd.f32 %v32125_v49, %v12992_v9  ;;  %v13114_v53 = vpop.f32.mrb[76].mxu1  ;;  %v12994_v48 = vpop.f32.mrb[77].mxu0 }
 0x7f6   :  { %v13185_v23 = vadd.f32 %v32128_v29, %v13114_v53  ;;  %v13184_v42 = vadd.f32 %v32131_v6, %v12994_v48  ;;  %v13116_v57 = vpop.f32.mrb[77].mxu1  ;;  %v12996_v13 = vpop.f32.mrb[78].mxu0 }
 0x7f7   :  { %v13203_v2 = vmax.f32 %v13183_v4, 0.0  ;;  %v13186_v30 = vadd.f32 %v32134_v54, %v13116_v57  ;;  %v13187_v17 = vadd.f32 %v32125_v49, %v12996_v13  ;;  %v13118_v46 = vpop.f32.mrb[78].mxu1  ;;  %v12998_v14 = vpop.f32.mrb[79].mxu0 }
 0x7f8   :  { %v13205_v31 = vmax.f32 %v13185_v23, 0.0  ;;  %v13204_v1 = vmax.f32 %v13184_v42, 0.0  ;;  %v13189_v61 = vadd.f32 %v32128_v29, %v13118_v46  ;;  %v13188_v34 = vadd.f32 %v32131_v6, %v12998_v14  ;;  %v13120_v52 = vpop.f32.mrb[79].mxu1 }
 0x7f9   :  { %v13206_v27 = vmax.f32 %v13186_v30, 0.0  ;;  %v13207_v3 = vmax.f32 %v13187_v17, 0.0  ;;  %v13190_v15 = vadd.f32 %v32134_v54, %v13120_v52 }
 0x7fa   :  { %v22921_v41 = vpack.c.bf16 %v13204_v1, %v13203_v2  ;;  %v13209_v47 = vmax.f32 %v13189_v61, 0.0  ;;  %v13208_v20 = vmax.f32 %v13188_v34, 0.0 }
 0x7fb   :  { %v22922_v19 = vpack.c.bf16 %v13206_v27, %v13205_v31  ;;  %v13210_v24 = vmax.f32 %v13190_v15, 0.0 }
 0x7fc   :  { %v13251_v12 = vrot.slane %v22921_v41, 7  ;;  %v22923_v26 = vpack.c.bf16 %v13208_v20, %v13207_v3  ;;  %v13002_v21 = vpop.f32.mrb[80].mxu0 }
 0x7fd   :  { %v13252_v59 = vrot.slane %v22922_v19, 7  ;;  %v22924_v5 = vpack.c.bf16 %v13210_v24, %v13209_v47  ;;  %v13191_v45 = vadd.f32 %v32125_v49, %v13002_v21  ;;  %v13124_v62 = vpop.f32.mrb[80].mxu1  ;;  %v13004_v7 = vpop.f32.mrb[81].mxu0 }
 0x7fe   :  { %v13253_v56 = vrot.slane %v13251_v12, 4  ;;  %13267 = vst [vmem:[#allocation3] sm:$0xee] %v13251_v12  ;;  %v13254_v50 = vrot.slane %v22923_v26, 7  ;;  %v13193_v40 = vadd.f32 %v32128_v29, %v13124_v62  ;;  %v13192_v16 = vadd.f32 %v32131_v6, %v13004_v7  ;;  %v13126_v18 = vpop.f32.mrb[81].mxu1  ;;  %v13006_v8 = vpop.f32.mrb[82].mxu0 }
 0x7ff   :  { %v13256_v60 = vrot.slane %v13252_v59, 4  ;;  %13268 = vst [vmem:[#allocation3 + $0x8] sm:$0xee] %v13252_v59  ;;  %v13257_v55 = vrot.slane %v22924_v5, 7  ;;  %v13211_v11 = vmax.f32 %v13191_v45, 0.0  ;;  %v13194_v28 = vadd.f32 %v32134_v54, %v13126_v18  ;;  %v13128_v38 = vpop.f32.mrb[82].mxu1 }
 0x800   :  { %v13008_v58 = vpop.f32.mrb[83].mxu0  ;;  %v32150_v39 = vsel %vm26767_vm4, %v13253_v56, %v13254_v50  ;;  %v13259_v9 = vrot.slane %v13254_v50, 4  ;;  %v13213_v4 = vmax.f32 %v13193_v40, 0.0  ;;  %v13212_v53 = vmax.f32 %v13192_v16, 0.0  ;;  %v13130_v48 = vpop.f32.mrb[83].mxu1 }
 0x801   :  { %13269 = vst [vmem:[#allocation3 + $0x10] sm:$0xff] %v32150_v39  ;;  %v32155_v23 = vsel %vm26767_vm4, %v13256_v60, %v13257_v55  ;;  %v13260_v42 = vrot.slane %v13257_v55, 4  ;;  %v13214_v57 = vmax.f32 %v13194_v28, 0.0  ;;  %v13195_v13 = vadd.f32 %v32125_v49, %v13006_v8 }
 0x802   :  { %13271 = vst [vmem:[#allocation3 + $0x20] sm:$0x11] %v13259_v9  ;;  %13270 = vst [vmem:[#allocation3 + $0x18] sm:$0xff] %v32155_v23  ;;  %v22925_v2 = vpack.c.bf16 %v13212_v53, %v13211_v11  ;;  %v13197_v30 = vadd.f32 %v32128_v29, %v13128_v38  ;;  %v13196_v17 = vadd.f32 %v32131_v6, %v13008_v58 }
 0x803   :  { %v13198_v46 = vadd.f32 %v32134_v54, %v13130_v48  ;;  %13272 = vst [vmem:[#allocation3 + $0x28] sm:$0x11] %v13260_v42  ;;  %v22926_v14 = vpack.c.bf16 %v13214_v57, %v13213_v4  ;;  %v13215_v31 = vmax.f32 %v13195_v13, 0.0 }
 0x804   :  { %v13299_v1 = vrot.slane %v22925_v2, 7  ;;  %v13217_v61 = vmax.f32 %v13197_v30, 0.0  ;;  %v13216_v34 = vmax.f32 %v13196_v17, 0.0  ;;  %v13012_v27 = vpop.f32.mrb[120].mxu0 }
 0x805   :  { %v13218_v52 = vmax.f32 %v13198_v46, 0.0  ;;  %v13300_v3 = vrot.slane %v22926_v14, 7  ;;  %v13013_v15 = vadd.f32 %v13012_v27, %v32113_v22  ;;  %v13134_v41 = vpop.f32.mrb[120].mxu1  ;;  %v13014_v47 = vpop.f32.mrb[121].mxu0  ;;  %v13325_v20 = vld [vmem:[#allocation3] sm:$0xff] }
 0x806   :  { %v13301_v19 = vrot.slane %v13299_v1, 4  ;;  %13319 = vst [vmem:[#allocation3 + $0x20] sm:$0x88] %v13299_v1  ;;  %v22927_v24 = vpack.c.bf16 %v13216_v34, %v13215_v31  ;;  %v13135_v26 = vadd.f32 %v13134_v41, %v32115_v63  ;;  %v13136_v21 = vpop.f32.mrb[121].mxu1  ;;  %v13016_v59 = vpop.f32.mrb[122].mxu0  ;;  %v13015_v62 = vadd.f32 %v13014_v47, %v32117_v0 }
 0x807   :  { %v22928_v12 = vpack.c.bf16 %v13218_v52, %v13217_v61  ;;  %v13304_v5 = vrot.slane %v13300_v3, 4  ;;  %13320 = vst [vmem:[#allocation3 + $0x28] sm:$0x88] %v13300_v3  ;;  %v13157_v45 = vadd.f32 %v13013_v15, %v32011_v25  ;;  %v13137_v7 = vadd.f32 %v13136_v21, %v32119_v44  ;;  %v13138_v22 = vpop.f32.mrb[122].mxu1  ;;  %v13017_v56 = vpop.f32.mrb[123].mxu0  ;;  %v32230_v59 = vld [vmem:[#allocation3 + $0x8] sm:$0xff] }
 0x808   :  { %v13302_v50 = vrot.slane %v22927_v24, 7  ;;  %v13159_v16 = vadd.f32 %v13135_v26, %v32021_v51  ;;  %v13139_v18 = vpop.f32.mrb[123].mxu1  ;;  %v32169_v8 = vcombine.low %v13325_v20, %v32150_v39  ;;  %v13158_v60 = vadd.f32 %v13015_v62, %v32024_v43  ;;  %v25715_v15 = vld [vmem:[%s34457_s7 + $0x600] ss:$16 sps:$4 sm:$0xff]   ;;  %v25718_v41 = vld [vmem:[%s34457_s7 + $0x608] ss:$16 sps:$4 sm:$0xff]  }
 0x809   :  { %v13305_v40 = vrot.slane %v22928_v12, 7  ;;  %v13199_v63 = vadd.f32 %v32125_v49, %v13157_v45  ;;  %v13160_v25 = vadd.f32 %v13137_v7, %v32033_v10  ;;  %v32175_v0 = vcombine.high %v13325_v20, %v32150_v39  ;;  %v25721_v24 = vld [vmem:[%s34457_s7 + $0x620] ss:$16 sps:$4 sm:$0xff]   ;;  %v25724_v12 = vld [vmem:[%s34457_s7 + $0x628] ss:$16 sps:$4 sm:$0xff]  }
 0x80a   :  { %v13303_v44 = vsel %vm26767_vm4, %v13301_v19, %v13302_v50  ;;  %v13201_v11 = vadd.f32 %v32128_v29, %v13159_v16  ;;  %v13200_v28 = vadd.f32 %v32131_v6, %v13158_v60  ;;  %v13639_v10 = vshll.u32 %v32169_v8, 16  ;;  %v25723_v19 = vld [vmem:[%s34457_s7 + $0x624] ss:$16 sps:$4 sm:$0xff]   ;;  %v25732_v21 = vld [vmem:[%s34457_s7 + $0x64c] ss:$16 sps:$4 sm:$0xff]  }
 0x80b   :  { %v32181_v55 = vsel %vm26767_vm4, %v13304_v5, %v13305_v40  ;;  %v13219_v51 = vmax.f32 %v13199_v63, 0.0  ;;  %v13202_v49 = vadd.f32 %v32134_v54, %v13160_v25  ;;  %v13651_v43 = vshll.u32 %v32175_v0, 16  ;;  %v25729_v26 = vld [vmem:[%s34457_s7 + $0x644] ss:$16 sps:$4 sm:$0xff]   ;;  %v25727_v5 = vld [vmem:[%s34457_s7 + $0x640] ss:$16 sps:$4 sm:$0xff]  }
 0x80c   :  { %v13221_v38 = vmax.f32 %v13201_v11, 0.0  ;;  %v13220_v58 = vmax.f32 %v13200_v28, 0.0  ;;  %v13641_v57 = vrot.slane %v13639_v10, 1  ;;  %v13649_v6 = vshrl.u32 %v32175_v0, 16  ;;  %v25730_v45 = vld [vmem:[%s34457_s7 + $0x648] ss:$16 sps:$4 sm:$0xff]  }
 0x80d   :  { %v13222_v9 = vmax.f32 %v13202_v49, 0.0  ;;  %v13329_v4 = vld [vmem:[#allocation3 + $0x20] sm:$0xff]  ;;  %v13653_v42 = vrot.slane %v13651_v43, 1  ;;  %v13637_v2 = vshrl.u32 %v32169_v8, 16  ;;  %v13307_v17 = vrot.slane %v13302_v50, 4 }
 0x80e   :  { %v32188_v53 = vcombine.low %v13329_v4, %v13303_v44  ;;  %v32190_v48 = vcombine.high %v13329_v4, %v13303_v44  ;;  %v22929_v13 = vpack.c.bf16 %v13220_v58, %v13219_v51  ;;  %v13310_v46 = vrot.slane %v13305_v40, 4  ;;  %v25737_v56 = vld [vmem:[%s34457_s7 + $0x664] ss:$16 sps:$4 sm:$0xff]   ;;  %v25740_v50 = vld [vmem:[%s34457_s7 + $0x66c] ss:$16 sps:$4 sm:$0xff]  }
 0x80f   :  { %v22930_v29 = vpack.c.bf16 %v13222_v9, %v13221_v38  ;;  %v13654_v1 = vor.u32 %v13653_v42, %v13649_v6  ;;  %v13642_v34 = vor.u32 %v13641_v57, %v13637_v2  ;;  %v13330_v40 = vld [vmem:[#allocation3 + $0x28] sm:$0xff]  ;;  %v32251_v18 = vcombine.high %v32230_v59, %v32155_v23  ;;  %v15530_v11 = vld [vmem:[#allocation3] sm:$0xee] }
 0x810   :  { %v13656_v54 = vshll.u32 %v32190_v48, 16  ;;  %v13644_v30 = vshll.u32 %v32188_v53, 16  ;;  %v13308_v14 = vrot.slane %v22929_v13, 7  ;;  %v13692_v16 = vshrl.u32 %v32190_v48, 16  ;;  %v25735_v42 = vld [vmem:[%s34457_s7 + $0x660] ss:$16 sps:$4 sm:$0xff]  }
 0x811   :  { %v13311_v31 = vrot.slane %v22930_v29, 7  ;;  %v13684_v60 = vshrl.u32 %v32188_v53, 16  ;;  %v32257_v51 = vcombine.high %v13330_v40, %v32181_v55  ;;  %v13675_v38 = vshll.u32 %v32251_v18, 16  ;;  %v25738_v57 = vld [vmem:[%s34457_s7 + $0x668] ss:$16 sps:$4 sm:$0xff]  }
 0x812   :  { %v13658_v61 = vrot.slane %v13656_v54, 1  ;;  %v13646_v52 = vrot.slane %v13644_v30, 1  ;;  %v13309_v27 = vsel %vm26767_vm4, %v13307_v17, %v13308_v14  ;;  %v25743_v13 = vld [vmem:[%s34457_s7 + $0x684] ss:$16 sps:$4 sm:$0xff]   ;;  %v32273_v29 = vcombine.high %v15530_v11, %v32150_v39  ;;  %v25746_v6 = vld [vmem:[%s34457_s7 + $0x68c] ss:$16 sps:$4 sm:$0xff]  }
 0x813   :  { %v13312_v3 = vsel %vm26767_vm4, %v13310_v46, %v13311_v31  ;;  %13323 = vst [vmem:[#allocation3 + $0x40] sm:$0x77] %v13309_v27  ;;  %v25741_v2 = vld [vmem:[%s34457_s7 + $0x680] ss:$16 sps:$4 sm:$0xff]   ;;  %v25744_v17 = vld [vmem:[%s34457_s7 + $0x688] ss:$16 sps:$4 sm:$0xff]  }
 0x814   :  { %13324 = vst [vmem:[#allocation3 + $0x48] sm:$0x77] %v13312_v3  ;;  %v13659_v47 = vsel %vm176_vm6, %v13654_v1, %v13658_v61  ;;  %v13647_v20 = vsel %vm176_vm6, %v13642_v34, %v13646_v52  ;;  %v13694_v44 = vor.u32 %v13692_v16, %v13658_v61  ;;  %v13686_v49 = vor.u32 %v13684_v60, %v13646_v52  ;;  %v25749_v14 = vld [vmem:[%s34457_s7 + $0x6a4] ss:$16 sps:$4 sm:$0xff]   ;;  %v25752_v31 = vld [vmem:[%s34457_s7 + $0x6ac] ss:$16 sps:$4 sm:$0xff]  }
 0x815   :  { %14412 = vmatprep.mubr.bf16.mxu0 %v13659_v47  ;;  %14534 = vmatprep.mubr.bf16.mxu1 %v13659_v47  ;;  %v13680_v46 = vshll.u32 %v32257_v51, 16  ;;  %v32292_v1 = vcombine.low %v15530_v11, %v32150_v39  ;;  %v15531_v61 = vld [vmem:[#allocation3 + $0x8] sm:$0xee]  ;;  %v13673_v34 = vshrl.u32 %v32251_v18, 16  ;;  %v13677_v52 = vrot.slane %v13675_v38, 1 }
 0x816   :  { %14413 = vmatmul.mubr.bf16.vlgmr.msra.gmra.mrb[124].mxu0 %v13647_v20  ;;  %14535 = vmatmul.mubr.bf16.vlgmr.msra.gmra.mrb[124].mxu1 %v13647_v20  ;;  %v16761_v27 = vshrl.u32 %v32273_v29, 16  ;;  %v32297_v3 = vcombine.low %v13330_v40, %v32181_v55  ;;  %v16769_v39 = vrot.slane %v13656_v54, 2  ;;  %v25747_v20 = vld [vmem:[%s34457_s7 + $0x6a0] ss:$16 sps:$4 sm:$0xff]   ;;  %v16756_v54 = vrot.slane %v13684_v60, 1 }
 0x817   :  { %14442 = vmatpush1.bf16.msra.mxu0 %v25715_v15  ;;  %14564 = vmatpush1.bf16.msra.mxu1 %v25718_v41  ;;  %v16764_v15 = vshll.u32 %v32273_v29, 16  ;;  %v16768_v41 = vrot.slane %v13692_v16, 1  ;;  %v25758_v40 = vld [vmem:[%s34457_s7 + $0x6cc] ss:$16 sps:$4 sm:$0xff]   ;;  %v32326_v16 = vcombine.low %v15531_v61, %v32155_v23  ;;  %v25753_v11 = vld [vmem:[%s34457_s7 + $0x6c0] ss:$16 sps:$4 sm:$0xff]  }
 0x818   :  { %14443 = vmatprep.subr.bf16.mxu0 %v25723_v19  ;;  %14565 = vmatprep.subr.bf16.mxu1 %v25726_v37  ;;  %v32306_v19 = vrot.slane %v13680_v46, 1  ;;  %v32309_v37 = vcombine.high %v15531_v61, %v32155_v23  ;;  %v25764_v38 = vld [vmem:[%s34457_s7 + $0x6ec] ss:$16 sps:$4 sm:$0xff]   ;;  %v25762_v61 = vld [vmem:[%s34457_s7 + $0x6e8] ss:$16 sps:$4 sm:$0xff]  }
 0x819   :  { %v16766_v55 = vrot.slane %v16764_v15, 2  ;;  %v25770_v15 = vld [vmem:[%s34457_s7 + $0x70c] ss:$16 sps:$4 sm:$0xff]  }
 0x81a   :  { %v13463_v62 = vld [vmem:[#allocation3 + $0x40] sm:$0x77] }
 0x81b   :  { %14444 = vmatpush1.bf16.msra.mxu0 %v25721_v24  ;;  %14566 = vmatpush1.bf16.msra.mxu1 %v25724_v12  ;;  %v32238_v7 = vcombine.high %v13463_v62, %v13463_v62  ;;  %v32240_v22 = vcombine.low %v13463_v62, %v13463_v62  ;;  %v16763_v24 = vrot.slane %v16761_v27, 1  ;;  %v32311_v12 = vor.u32 %v16769_v39, %v16768_v41  ;;  %v25750_v62 = vld [vmem:[%s34457_s7 + $0x6a8] ss:$16 sps:$4 sm:$0xff]   ;;  %v25767_v27 = vld [vmem:[%s34457_s7 + $0x704] ss:$16 sps:$4 sm:$0xff]  }
 0x81c   :  { %14445 = vmatprep.subr.bf16.mxu0 %v25729_v26  ;;  %14567 = vmatprep.subr.bf16.mxu1 %v25732_v21  ;;  %v16749_v26 = vshrl.u32 %v32292_v1, 16  ;;  %v16752_v21 = vshll.u32 %v32292_v1, 16 }
 0x81d   :  { %v13696_v63 = vshll.u32 %v32238_v7, 16  ;;  %v13688_v25 = vshll.u32 %v32240_v22, 16  ;;  %v13719_v10 = vshrl.u32 %v32238_v7, 16  ;;  %v13716_v47 = vshrl.u32 %v32240_v22, 16 }
 0x81e   :  { %v16751_v60 = vrot.slane %v16749_v26, 1  ;;  %v25768_v26 = vld [vmem:[%s34457_s7 + $0x708] ss:$16 sps:$4 sm:$0xff]  }
 0x81f   :  { %14446 = vmatpush1.bf16.msra.mxu0 %v25727_v5  ;;  %14568 = vmatpush1.bf16.msra.mxu1 %v25730_v45  ;;  %v13698_v28 = vrot.slane %v13696_v63, 1  ;;  %v13690_v43 = vrot.slane %v13688_v25, 1  ;;  %v13678_v45 = vor.u32 %v13677_v52, %v13673_v34  ;;  %v16767_v63 = vor.u32 %v16766_v55, %v16763_v24  ;;  %v25765_v55 = vld [vmem:[%s34457_s7 + $0x700] ss:$16 sps:$4 sm:$0xff]  }
 0x820   :  { %14447 = vmatprep.subr.bf16.mxu0 %v25737_v56  ;;  %14569 = vmatprep.subr.bf16.mxu1 %v25740_v50  ;;  %v25755_v56 = vld [vmem:[%s34457_s7 + $0x6c4] ss:$16 sps:$4 sm:$0xff]   ;;  %v13708_v50 = vshrl.u32 %v32257_v51, 16  ;;  %v16754_v25 = vrot.slane %v16752_v21, 2 }
 0x821   :  { %v13699_v58 = vsel %vm176_vm6, %v13694_v44, %v13698_v28  ;;  %v13691_v9 = vsel %vm176_vm6, %v13686_v49, %v13690_v43  ;;  %v13721_v4 = vor.u32 %v13719_v10, %v13698_v28  ;;  %v13718_v5 = vor.u32 %v13716_v47, %v13690_v43  ;;  %v25756_v28 = vld [vmem:[%s34457_s7 + $0x6c8] ss:$16 sps:$4 sm:$0xff]   ;;  %v25761_v10 = vld [vmem:[%s34457_s7 + $0x6e4] ss:$16 sps:$4 sm:$0xff]  }
 0x822   :  { %14422 = vmatprep.mubr.bf16.mxu0 %v13699_v58  ;;  %14544 = vmatprep.mubr.bf16.mxu1 %v13699_v58  ;;  %v13683_v44 = vsel %vm176_vm6, %v13678_v45, %v32306_v19  ;;  %v13700_v49 = vshrl.u32 %v32297_v3, 16  ;;  %v16757_v43 = vrot.slane %v13644_v30, 2  ;;  %v13668_v58 = vshll.u32 %v32297_v3, 16  ;;  %v25776_v45 = vld [vmem:[%s34457_s7 + $0x72c] ss:$16 sps:$4 sm:$0xff]  }
 0x823   :  { %14423 = vmatmul.mubr.bf16.gmra.mrb[128].mxu0 %v13691_v9  ;;  %14545 = vmatmul.mubr.bf16.gmra.mrb[128].mxu1 %v13691_v9  ;;  %v32348_v9 = vsel %vm1158_vm8, %v16767_v63, %v32311_v12  ;;  %v25774_v63 = vld [vmem:[%s34457_s7 + $0x728] ss:$16 sps:$4 sm:$0xff]  }
 0x824   :  { %14432 = vmatprep.mubr.bf16.mxu0 %v13721_v4  ;;  %14554 = vmatprep.mubr.bf16.mxu1 %v13721_v4  ;;  %v16755_v4 = vor.u32 %v16754_v25, %v16751_v60  ;;  %v32351_v30 = vor.u32 %v16757_v43, %v16756_v54  ;;  %v16780_v34 = vrot.slane %v13700_v49, 1  ;;  %v25779_v60 = vld [vmem:[%s34457_s7 + $0x744] ss:$16 sps:$4 sm:$0xff]   ;;  %v25782_v25 = vld [vmem:[%s34457_s7 + $0x74c] ss:$16 sps:$4 sm:$0xff]  }
 0x825   :  { %14448 = vmatpush1.bf16.msra.mxu0 %v25735_v42  ;;  %14570 = vmatpush1.bf16.msra.mxu1 %v25738_v57  ;;  %v16785_v42 = vshrl.u32 %v32309_v37, 16  ;;  %v16788_v57 = vshll.u32 %v32309_v37, 16  ;;  %v25788_v43 = vld [vmem:[%s34457_s7 + $0x76c] ss:$16 sps:$4 sm:$0xff]  }
 0x826   :  { %14449 = vmatprep.subr.bf16.mxu0 %v25743_v13  ;;  %14571 = vmatprep.subr.bf16.mxu1 %v25746_v6  ;;  %v16792_v13 = vrot.slane %v13708_v50, 1  ;;  %v16793_v6 = vrot.slane %v13680_v46, 2  ;;  %v32368_v46 = vsel %vm1158_vm8, %v16755_v4, %v32351_v30  ;;  %v25791_v4 = vld [vmem:[%s34457_s7 + $0x784] ss:$16 sps:$4 sm:$0xff]  }
 0x827   :  { %v16790_v41 = vrot.slane %v16788_v57, 2  ;;  %v25789_v57 = vld [vmem:[%s34457_s7 + $0x780] ss:$16 sps:$4 sm:$0xff]  }
 0x828   :  { %v32370_v52 = vor.u32 %v16793_v6, %v16792_v13  ;;  %v25792_v13 = vld [vmem:[%s34457_s7 + $0x788] ss:$16 sps:$4 sm:$0xff]   ;;  %v25797_v6 = vld [vmem:[%s34457_s7 + $0x7a4] ss:$16 sps:$4 sm:$0xff]  }
 0x829   :  { %14450 = vmatpush1.bf16.msra.mxu0 %v25741_v2  ;;  %14572 = vmatpush1.bf16.msra.mxu1 %v25744_v17  ;;  %v16787_v2 = vrot.slane %v16785_v42, 1  ;;  %v16773_v17 = vshrl.u32 %v32326_v16, 16  ;;  %v25794_v42 = vld [vmem:[%s34457_s7 + $0x78c] ss:$16 sps:$4 sm:$0xff]  }
 0x82a   :  { %14451 = vmatprep.subr.bf16.mxu0 %v25749_v14  ;;  %14573 = vmatprep.subr.bf16.mxu1 %v25752_v31  ;;  %v16776_v14 = vshll.u32 %v32326_v16, 16  ;;  %v25759_v31 = vld [vmem:[%s34457_s7 + $0x6e0] ss:$16 sps:$4 sm:$0xff]  }
 0x82b   :  { %14433 = vmatmul.mubr.bf16.gmra.mrb[132].mxu0 %v13718_v5  ;;  %14555 = vmatmul.mubr.bf16.gmra.mrb[132].mxu1 %v13718_v5  ;;  %v16775_v39 = vrot.slane %v16773_v17, 1  ;;  %v16791_v24 = vor.u32 %v16790_v41, %v16787_v2  ;;  %v25773_v5 = vld [vmem:[%s34457_s7 + $0x724] ss:$16 sps:$4 sm:$0xff]   ;;  %v25800_v2 = vld [vmem:[%s34457_s7 + $0x7ac] ss:$16 sps:$4 sm:$0xff]  }
 0x82c   :  { %14473 = vmatprep.mubr.bf16.mxu0 %v13683_v44  ;;  %14595 = vmatprep.mubr.bf16.mxu1 %v13683_v44  ;;  %v16778_v47 = vrot.slane %v16776_v14, 2  ;;  %v25777_v44 = vld [vmem:[%s34457_s7 + $0x740] ss:$16 sps:$4 sm:$0xff]   ;;  %v25798_v14 = vld [vmem:[%s34457_s7 + $0x7a8] ss:$16 sps:$4 sm:$0xff]  }
 0x82d   :  { %14452 = vmatpush1.bf16.msra.mxu0 %v25747_v20  ;;  %14574 = vmatpush1.bf16.msra.mxu1 %v25750_v62  ;;  %v16781_v20 = vrot.slane %v13668_v58, 2  ;;  %v32396_v62 = vsel %vm1158_vm8, %v16791_v24, %v32370_v52  ;;  %v25795_v17 = vld [vmem:[%s34457_s7 + $0x7a0] ss:$16 sps:$4 sm:$0xff]   ;;  %v25804_v41 = vld [vmem:[%s34457_s7 + $0x7c8] ss:$16 sps:$4 sm:$0xff]  }
 0x82e   :  { %14453 = vmatprep.subr.bf16.mxu0 %v25755_v56  ;;  %14575 = vmatprep.subr.bf16.mxu1 %v25758_v40  ;;  %v16779_v21 = vor.u32 %v16778_v47, %v16775_v39  ;;  %v25771_v40 = vld [vmem:[%s34457_s7 + $0x720] ss:$16 sps:$4 sm:$0xff]   ;;  %v25809_v39 = vld [vmem:[%s34457_s7 + $0x7e4] ss:$16 sps:$4 sm:$0xff]   ;;  %v25810_v24 = vld [vmem:[%s34457_s7 + $0x7e8] ss:$16 sps:$4 sm:$0xff]  }
 0x82f   :  { %v32386_v54 = vor.u32 %v16781_v20, %v16780_v34  ;;  %v13464_v34 = vld [vmem:[#allocation3 + $0x48] sm:$0x77] }
 0x830   :  { %v25807_v20 = vld [vmem:[%s34457_s7 + $0x7e0] ss:$16 sps:$4 sm:$0xff]  }
 0x831   :  { %14454 = vmatpush1.bf16.msra.mxu0 %v25753_v11  ;;  %14576 = vmatpush1.bf16.msra.mxu1 %v25756_v28  ;;  %v32400_v56 = vsel %vm1158_vm8, %v16779_v21, %v32386_v54  ;;  %v25780_v11 = vld [vmem:[%s34457_s7 + $0x748] ss:$16 sps:$4 sm:$0xff]   ;;  %v25785_v28 = vld [vmem:[%s34457_s7 + $0x764] ss:$16 sps:$4 sm:$0xff]  }
 0x832   :  { %14455 = vmatprep.subr.bf16.mxu0 %v25761_v10  ;;  %14577 = vmatprep.subr.bf16.mxu1 %v25764_v38  ;;  %v25783_v10 = vld [vmem:[%s34457_s7 + $0x760] ss:$16 sps:$4 sm:$0xff]   ;;  %v25786_v38 = vld [vmem:[%s34457_s7 + $0x768] ss:$16 sps:$4 sm:$0xff]  }
 0x835   :  { %14456 = vmatpush1.bf16.msra.mxu0 %v25759_v31  ;;  %14578 = vmatpush1.bf16.msra.mxu1 %v25762_v61  ;;  %v25803_v31 = vld [vmem:[%s34457_s7 + $0x7c4] ss:$16 sps:$4 sm:$0xff]   ;;  %v25806_v61 = vld [vmem:[%s34457_s7 + $0x7cc] ss:$16 sps:$4 sm:$0xff]  }
 0x836   :  { %14457 = vmatprep.subr.bf16.mxu0 %v25767_v27  ;;  %14579 = vmatprep.subr.bf16.mxu1 %v25770_v15  ;;  %v32464_v27 = vcombine.low %v32230_v59, %v32155_v23  ;;  %v25801_v15 = vld [vmem:[%s34457_s7 + $0x7c0] ss:$16 sps:$4 sm:$0xff]   ;;  %v25812_v23 = vld [vmem:[%s34457_s7 + $0x7ec] ss:$16 sps:$4 sm:$0xff]   ;;  %v32478_v59 = vcombine.high %v13464_v34, %v13464_v34 }
 0x838   :  { %v13663_v47 = vshll.u32 %v32464_v27, 16  ;;  %v13712_v21 = vshll.u32 %v32478_v59, 16 }
 0x839   :  { %14458 = vmatpush1.bf16.msra.mxu0 %v25765_v55  ;;  %14580 = vmatpush1.bf16.msra.mxu1 %v25768_v26  ;;  %v25815_v55 = vld [vmem:[%s34457_s7 + $0x4] ss:$16 sps:$4 sm:$0xff]   ;;  %v25818_v26 = vld [vmem:[%s34457_s7 + $0xc] ss:$16 sps:$4 sm:$0xff]  }
 0x83a   :  { %14459 = vmatprep.subr.bf16.mxu0 %v25773_v5  ;;  %14581 = vmatprep.subr.bf16.mxu1 %v25776_v45  ;;  %v13665_v5 = vrot.slane %v13663_v47, 1  ;;  %v13661_v45 = vshrl.u32 %v32464_v27, 16 }
 0x83d   :  { %14460 = vmatpush1.bf16.msra.mxu0 %v25771_v40  ;;  %14582 = vmatpush1.bf16.msra.mxu1 %v25774_v63  ;;  %v13670_v40 = vrot.slane %v13668_v58, 1  ;;  %v32497_v63 = vcombine.low %v13464_v34, %v13464_v34  ;;  %v25825_v58 = vld [vmem:[%s34457_s7 + $0x2c] ss:$16 sps:$4 sm:$0xff]  }
 0x83e   :  { %14461 = vmatprep.subr.bf16.mxu0 %v25779_v60  ;;  %14583 = vmatprep.subr.bf16.mxu1 %v25782_v25  ;;  %v25813_v60 = vld [vmem:[%s34457_s7] ss:$16 sps:$4 sm:$0xff]   ;;  %v25816_v25 = vld [vmem:[%s34457_s7 + $0x8] ss:$16 sps:$4 sm:$0xff]  }
 0x83f   :  { %v13722_v47 = vshrl.u32 %v32497_v63, 16 }
 0x841   :  { %14462 = vmatpush1.bf16.msra.mxu0 %v25777_v44  ;;  %14584 = vmatpush1.bf16.msra.mxu1 %v25780_v11  ;;  %v13714_v44 = vrot.slane %v13712_v21, 1  ;;  %v13666_v11 = vor.u32 %v13665_v5, %v13661_v45  ;;  %v25845_v5 = vld [vmem:[%s34457_s7 + $0xa0] ss:$16 sps:$4 sm:$0xff]   ;;  %v25848_v45 = vld [vmem:[%s34457_s7 + $0xa8] ss:$16 sps:$4 sm:$0xff]  }
 0x842   :  { %14463 = vmatprep.subr.bf16.mxu0 %v25785_v28  ;;  %14585 = vmatprep.subr.bf16.mxu1 %v25788_v43  ;;  %v25822_v28 = vld [vmem:[%s34457_s7 + $0x24] ss:$16 sps:$4 sm:$0xff]   ;;  %v13710_v43 = vor.u32 %v13708_v50, %v32306_v19  ;;  %v25823_v19 = vld [vmem:[%s34457_s7 + $0x28] ss:$16 sps:$4 sm:$0xff]  }
 0x845   :  { %14464 = vmatpush1.bf16.msra.mxu0 %v25783_v10  ;;  %14586 = vmatpush1.bf16.msra.mxu1 %v25786_v38  ;;  %v13671_v10 = vsel %vm176_vm6, %v13666_v11, %v13670_v40  ;;  %v13704_v38 = vshll.u32 %v32497_v63, 16  ;;  %v25862_v11 = vld [vmem:[%s34457_s7 + $0xec] ss:$16 sps:$4 sm:$0xff]  }
 0x846   :  { %14465 = vmatprep.subr.bf16.mxu0 %v25791_v4  ;;  %14587 = vmatprep.subr.bf16.mxu1 %v25794_v42  ;;  %v13715_v4 = vsel %vm176_vm6, %v13710_v43, %v13714_v44  ;;  %v25820_v42 = vld [vmem:[%s34457_s7 + $0x20] ss:$16 sps:$4 sm:$0xff]   ;;  %v25865_v43 = vld [vmem:[%s34457_s7 + $0x104] ss:$16 sps:$4 sm:$0xff]  }
 0x847   :  { %v13706_v50 = vrot.slane %v13704_v38, 1  ;;  %v25863_v38 = vld [vmem:[%s34457_s7 + $0x100] ss:$16 sps:$4 sm:$0xff]  }
 0x849   :  { %14466 = vmatpush1.bf16.msra.mxu0 %v25789_v57  ;;  %14588 = vmatpush1.bf16.msra.mxu1 %v25792_v13  ;;  %v25829_v57 = vld [vmem:[%s34457_s7 + $0x44] ss:$16 sps:$4 sm:$0xff]   ;;  %v25832_v13 = vld [vmem:[%s34457_s7 + $0x4c] ss:$16 sps:$4 sm:$0xff]   ;;  %v13724_v21 = vor.u32 %v13722_v47, %v13706_v50 }
 0x84a   :  { %14467 = vmatprep.subr.bf16.mxu0 %v25797_v6  ;;  %14589 = vmatprep.subr.bf16.mxu1 %v25800_v2  ;;  %v25827_v6 = vld [vmem:[%s34457_s7 + $0x40] ss:$16 sps:$4 sm:$0xff]   ;;  %v25830_v2 = vld [vmem:[%s34457_s7 + $0x48] ss:$16 sps:$4 sm:$0xff]   ;;  %v25898_v47 = vld [vmem:[%s34457_s7 + $0x1ac] ss:$16 sps:$4 sm:$0xff]  }
 0x84d   :  { %14468 = vmatpush1.bf16.msra.mxu0 %v25795_v17  ;;  %14590 = vmatpush1.bf16.msra.mxu1 %v25798_v14  ;;  %v13702_v17 = vor.u32 %v13700_v49, %v13670_v40  ;;  %v13725_v14 = vshrl.u32 %v32478_v59, 16  ;;  %v25833_v49 = vld [vmem:[%s34457_s7 + $0x60] ss:$16 sps:$4 sm:$0xff]   ;;  %v25853_v40 = vld [vmem:[%s34457_s7 + $0xc4] ss:$16 sps:$4 sm:$0xff]  }
 0x84e   :  { %14469 = vmatprep.subr.bf16.mxu0 %v25803_v31  ;;  %14591 = vmatprep.subr.bf16.mxu1 %v25806_v61  ;;  %v25835_v31 = vld [vmem:[%s34457_s7 + $0x64] ss:$16 sps:$4 sm:$0xff]   ;;  %v25838_v61 = vld [vmem:[%s34457_s7 + $0x6c] ss:$16 sps:$4 sm:$0xff]  }
 0x84f   :  { %v13707_v34 = vsel %vm176_vm6, %v13702_v17, %v13706_v50  ;;  %v25869_v50 = vld [vmem:[%s34457_s7 + $0x120] ss:$16 sps:$4 sm:$0xff]   ;;  %v25878_v17 = vld [vmem:[%s34457_s7 + $0x148] ss:$16 sps:$4 sm:$0xff]  }
 0x851   :  { %14470 = vmatpush1.bf16.msra.mxu0 %v25801_v15  ;;  %14592 = vmatpush1.bf16.msra.mxu1 %v25804_v41  ;;  %v13727_v15 = vor.u32 %v13725_v14, %v13714_v44  ;;  %v25836_v41 = vld [vmem:[%s34457_s7 + $0x68] ss:$16 sps:$4 sm:$0xff]   ;;  %v25859_v44 = vld [vmem:[%s34457_s7 + $0xe4] ss:$16 sps:$4 sm:$0xff]  }
 0x852   :  { %14471 = vmatprep.subr.bf16.mxu0 %v25809_v39  ;;  %14593 = vmatprep.subr.bf16.mxu1 %v25812_v23  ;;  %v25841_v39 = vld [vmem:[%s34457_s7 + $0x84] ss:$16 sps:$4 sm:$0xff]   ;;  %v25844_v23 = vld [vmem:[%s34457_s7 + $0x8c] ss:$16 sps:$4 sm:$0xff]  }
 0x853   :  { %v25883_v14 = vld [vmem:[%s34457_s7 + $0x164] ss:$16 sps:$4 sm:$0xff]  }
 0x855   :  { %14472 = vmatpush1.bf16.msra.mxu0 %v25807_v20  ;;  %14594 = vmatpush1.bf16.msra.mxu1 %v25810_v24  ;;  %v25839_v20 = vld [vmem:[%s34457_s7 + $0x80] ss:$16 sps:$4 sm:$0xff]   ;;  %v25842_v24 = vld [vmem:[%s34457_s7 + $0x88] ss:$16 sps:$4 sm:$0xff]  }
 0x856   :  { %15286 = vmatprep.subr.bf16.mxu0 %v25815_v55  ;;  %15408 = vmatprep.subr.bf16.mxu1 %v25818_v26  ;;  %v25847_v55 = vld [vmem:[%s34457_s7 + $0xa4] ss:$16 sps:$4 sm:$0xff]   ;;  %v25850_v26 = vld [vmem:[%s34457_s7 + $0xac] ss:$16 sps:$4 sm:$0xff]  }
 0x858   :  { %14474 = vmatmul.mubr.bf16.vlgmr.msra.gmra.mrb[124].mxu0 %v13671_v10  ;;  %14596 = vmatmul.mubr.bf16.vlgmr.msra.gmra.mrb[124].mxu1 %v13671_v10  ;;  %v25868_v10 = vld [vmem:[%s34457_s7 + $0x10c] ss:$16 sps:$4 sm:$0xff]  }
 0x859   :  { %14483 = vmatprep.mubr.bf16.mxu0 %v13715_v4  ;;  %14605 = vmatprep.mubr.bf16.mxu1 %v13715_v4  ;;  %v25866_v4 = vld [vmem:[%s34457_s7 + $0x108] ss:$16 sps:$4 sm:$0xff]  }
 0x85a   :  { %15287 = vmatpush1.bf16.msra.mxu0 %v25813_v60  ;;  %15409 = vmatpush1.bf16.msra.mxu1 %v25816_v25  ;;  %v25851_v60 = vld [vmem:[%s34457_s7 + $0xc0] ss:$16 sps:$4 sm:$0xff]   ;;  %v25854_v25 = vld [vmem:[%s34457_s7 + $0xc8] ss:$16 sps:$4 sm:$0xff]  }
 0x85b   :  { %15288 = vmatprep.subr.bf16.mxu0 %v25822_v28  ;;  %15410 = vmatprep.subr.bf16.mxu1 %v25825_v58  ;;  %v25857_v28 = vld [vmem:[%s34457_s7 + $0xe0] ss:$16 sps:$4 sm:$0xff]   ;;  %v25860_v58 = vld [vmem:[%s34457_s7 + $0xe8] ss:$16 sps:$4 sm:$0xff]  }
 0x85e   :  { %15289 = vmatpush1.bf16.msra.mxu0 %v25820_v42  ;;  %15411 = vmatpush1.bf16.msra.mxu1 %v25823_v19  ;;  %v25871_v42 = vld [vmem:[%s34457_s7 + $0x124] ss:$16 sps:$4 sm:$0xff]   ;;  %v25874_v19 = vld [vmem:[%s34457_s7 + $0x12c] ss:$16 sps:$4 sm:$0xff]  }
 0x85f   :  { %15290 = vmatprep.subr.bf16.mxu0 %v25829_v57  ;;  %15412 = vmatprep.subr.bf16.mxu1 %v25832_v13  ;;  %v25872_v57 = vld [vmem:[%s34457_s7 + $0x128] ss:$16 sps:$4 sm:$0xff]   ;;  %v25877_v13 = vld [vmem:[%s34457_s7 + $0x144] ss:$16 sps:$4 sm:$0xff]  }
 0x860   :  { %14484 = vmatmul.mubr.bf16.gmra.mrb[128].mxu0 %v13707_v34  ;;  %14606 = vmatmul.mubr.bf16.gmra.mrb[128].mxu1 %v13707_v34  ;;  %v25884_v34 = vld [vmem:[%s34457_s7 + $0x168] ss:$16 sps:$4 sm:$0xff]  }
 0x861   :  { %14493 = vmatprep.mubr.bf16.mxu0 %v13727_v15  ;;  %14615 = vmatprep.mubr.bf16.mxu1 %v13727_v15  ;;  %v25889_v15 = vld [vmem:[%s34457_s7 + $0x184] ss:$16 sps:$4 sm:$0xff]  }
 0x862   :  { %15291 = vmatpush1.bf16.msra.mxu0 %v25827_v6  ;;  %15413 = vmatpush1.bf16.msra.mxu1 %v25830_v2  ;;  %v25880_v6 = vld [vmem:[%s34457_s7 + $0x14c] ss:$16 sps:$4 sm:$0xff]   ;;  %v25875_v2 = vld [vmem:[%s34457_s7 + $0x140] ss:$16 sps:$4 sm:$0xff]  }
 0x863   :  { %15292 = vmatprep.subr.bf16.mxu0 %v25835_v31  ;;  %15414 = vmatprep.subr.bf16.mxu1 %v25838_v61  ;;  %v25886_v31 = vld [vmem:[%s34457_s7 + $0x16c] ss:$16 sps:$4 sm:$0xff]   ;;  %v25881_v61 = vld [vmem:[%s34457_s7 + $0x160] ss:$16 sps:$4 sm:$0xff]  }
 0x866   :  { %15293 = vmatpush1.bf16.msra.mxu0 %v25833_v49  ;;  %15415 = vmatpush1.bf16.msra.mxu1 %v25836_v41  ;;  %v25892_v49 = vld [vmem:[%s34457_s7 + $0x18c] ss:$16 sps:$4 sm:$0xff]   ;;  %v25887_v41 = vld [vmem:[%s34457_s7 + $0x180] ss:$16 sps:$4 sm:$0xff]  }
 0x867   :  { %15294 = vmatprep.subr.bf16.mxu0 %v25841_v39  ;;  %15416 = vmatprep.subr.bf16.mxu1 %v25844_v23  ;;  %v25890_v39 = vld [vmem:[%s34457_s7 + $0x188] ss:$16 sps:$4 sm:$0xff]   ;;  %v25895_v23 = vld [vmem:[%s34457_s7 + $0x1a4] ss:$16 sps:$4 sm:$0xff]  }
 0x868   :  { %14494 = vmatmul.mubr.bf16.gmra.mrb[136].mxu0 %v13724_v21  ;;  %14616 = vmatmul.mubr.bf16.gmra.mrb[136].mxu1 %v13724_v21  ;;  %v25899_v21 = vld [vmem:[%s34457_s7 + $0x1c0] ss:$16 sps:$4 sm:$0xff]  }
 0x869   :  { %15318 = vmatprep.mubr.bf16.mxu0 %v32175_v0  ;;  %15440 = vmatprep.mubr.bf16.mxu1 %v32175_v0  ;;  %v25856_v0 = vld [vmem:[%s34457_s7 + $0xcc] ss:$16 sps:$4 sm:$0xff]  }
 0x86a   :  { %15295 = vmatpush1.bf16.msra.mxu0 %v25839_v20  ;;  %15417 = vmatpush1.bf16.msra.mxu1 %v25842_v24  ;;  %v25893_v20 = vld [vmem:[%s34457_s7 + $0x1a0] ss:$16 sps:$4 sm:$0xff]   ;;  %v25896_v24 = vld [vmem:[%s34457_s7 + $0x1a8] ss:$16 sps:$4 sm:$0xff]  }
 0x86b   :  { %15296 = vmatprep.subr.bf16.mxu0 %v25847_v55  ;;  %15418 = vmatprep.subr.bf16.mxu1 %v25850_v26  ;;  %v25901_v55 = vld [vmem:[%s34457_s7 + $0x1c4] ss:$16 sps:$4 sm:$0xff]   ;;  %v25904_v26 = vld [vmem:[%s34457_s7 + $0x1cc] ss:$16 sps:$4 sm:$0xff]  }
 0x86e   :  { %15297 = vmatpush1.bf16.msra.mxu0 %v25845_v5  ;;  %15419 = vmatpush1.bf16.msra.mxu1 %v25848_v45  ;;  %v25902_v5 = vld [vmem:[%s34457_s7 + $0x1c8] ss:$16 sps:$4 sm:$0xff]   ;;  %v25907_v45 = vld [vmem:[%s34457_s7 + $0x1e4] ss:$16 sps:$4 sm:$0xff]  }
 0x86f   :  { %15298 = vmatprep.subr.bf16.mxu0 %v25853_v40  ;;  %15420 = vmatprep.subr.bf16.mxu1 %v25856_v0  ;;  %v25910_v40 = vld [vmem:[%s34457_s7 + $0x1ec] ss:$16 sps:$4 sm:$0xff]   ;;  %v25905_v0 = vld [vmem:[%s34457_s7 + $0x1e0] ss:$16 sps:$4 sm:$0xff]  }
 0x872   :  { %15299 = vmatpush1.bf16.msra.mxu0 %v25851_v60  ;;  %15421 = vmatpush1.bf16.msra.mxu1 %v25854_v25  ;;  %v25908_v60 = vld [vmem:[%s34457_s7 + $0x1e8] ss:$16 sps:$4 sm:$0xff]   ;;  %v25913_v25 = vld [vmem:[%s34457_s7 + $0x204] ss:$16 sps:$4 sm:$0xff]  }
 0x873   :  { %15300 = vmatprep.subr.bf16.mxu0 %v25859_v44  ;;  %15422 = vmatprep.subr.bf16.mxu1 %v25862_v11  ;;  %v25916_v44 = vld [vmem:[%s34457_s7 + $0x20c] ss:$16 sps:$4 sm:$0xff]   ;;  %v25911_v11 = vld [vmem:[%s34457_s7 + $0x200] ss:$16 sps:$4 sm:$0xff]  }
 0x876   :  { %15301 = vmatpush1.bf16.msra.mxu0 %v25857_v28  ;;  %15423 = vmatpush1.bf16.msra.mxu1 %v25860_v58  ;;  %v25914_v28 = vld [vmem:[%s34457_s7 + $0x208] ss:$16 sps:$4 sm:$0xff]   ;;  %v25919_v58 = vld [vmem:[%s34457_s7 + $0x224] ss:$16 sps:$4 sm:$0xff]  }
 0x877   :  { %15302 = vmatprep.subr.bf16.mxu0 %v25865_v43  ;;  %15424 = vmatprep.subr.bf16.mxu1 %v25868_v10  ;;  %v25922_v43 = vld [vmem:[%s34457_s7 + $0x22c] ss:$16 sps:$4 sm:$0xff]   ;;  %v25917_v10 = vld [vmem:[%s34457_s7 + $0x220] ss:$16 sps:$4 sm:$0xff]  }
 0x87a   :  { %15303 = vmatpush1.bf16.msra.mxu0 %v25863_v38  ;;  %15425 = vmatpush1.bf16.msra.mxu1 %v25866_v4  ;;  %v25920_v38 = vld [vmem:[%s34457_s7 + $0x228] ss:$16 sps:$4 sm:$0xff]   ;;  %v25925_v4 = vld [vmem:[%s34457_s7 + $0x244] ss:$16 sps:$4 sm:$0xff]  }
 0x87b   :  { %15304 = vmatprep.subr.bf16.mxu0 %v25871_v42  ;;  %15426 = vmatprep.subr.bf16.mxu1 %v25874_v19  ;;  %v13333_v42 = vld [vmem:[#allocation3 + $0x40] sm:$0x33]  ;;  %v25923_v19 = vld [vmem:[%s34457_s7 + $0x240] ss:$16 sps:$4 sm:$0xff]  }
 0x87e   :  { %15305 = vmatpush1.bf16.msra.mxu0 %v25869_v50  ;;  %15427 = vmatpush1.bf16.msra.mxu1 %v25872_v57  ;;  %v25926_v50 = vld [vmem:[%s34457_s7 + $0x248] ss:$16 sps:$4 sm:$0xff]   ;;  %v21974_v57 = vcombine.high %v13333_v42, %v13333_v42 }
 0x87f   :  { %15306 = vmatprep.subr.bf16.mxu0 %v25877_v13  ;;  %15428 = vmatprep.subr.bf16.mxu1 %v25880_v6  ;;  %v25932_v13 = vld [vmem:[%s34457_s7 + $0x264] ss:$16 sps:$4 sm:$0xff]   ;;  %v25935_v6 = vld [vmem:[%s34457_s7 + $0x26c] ss:$16 sps:$4 sm:$0xff]  }
 0x882   :  { %15307 = vmatpush1.bf16.msra.mxu0 %v25875_v2  ;;  %15429 = vmatpush1.bf16.msra.mxu1 %v25878_v17  ;;  %v25930_v2 = vld [vmem:[%s34457_s7 + $0x260] ss:$16 sps:$4 sm:$0xff]   ;;  %v25933_v17 = vld [vmem:[%s34457_s7 + $0x268] ss:$16 sps:$4 sm:$0xff]  }
 0x883   :  { %15308 = vmatprep.subr.bf16.mxu0 %v25883_v14  ;;  %15430 = vmatprep.subr.bf16.mxu1 %v25886_v31  ;;  %v25939_v14 = vld [vmem:[%s34457_s7 + $0x284] ss:$16 sps:$4 sm:$0xff]   ;;  %v25942_v31 = vld [vmem:[%s34457_s7 + $0x28c] ss:$16 sps:$4 sm:$0xff]  }
 0x886   :  { %15309 = vmatpush1.bf16.msra.mxu0 %v25881_v61  ;;  %15431 = vmatpush1.bf16.msra.mxu1 %v25884_v34  ;;  %v25937_v61 = vld [vmem:[%s34457_s7 + $0x280] ss:$16 sps:$4 sm:$0xff]   ;;  %v21973_v34 = vcombine.low %v13333_v42, %v13333_v42 }
 0x887   :  { %15310 = vmatprep.subr.bf16.mxu0 %v25889_v15  ;;  %15432 = vmatprep.subr.bf16.mxu1 %v25892_v49  ;;  %v25940_v15 = vld [vmem:[%s34457_s7 + $0x288] ss:$16 sps:$4 sm:$0xff]   ;;  %v25945_v49 = vld [vmem:[%s34457_s7 + $0x2a4] ss:$16 sps:$4 sm:$0xff]   ;;  %v25979_v42 = vld [vmem:[%s34457_s7 + $0x360] ss:$16 sps:$4 sm:$0xff]  }
 0x88a   :  { %15311 = vmatpush1.bf16.msra.mxu0 %v25887_v41  ;;  %15433 = vmatpush1.bf16.msra.mxu1 %v25890_v39  ;;  %v25948_v41 = vld [vmem:[%s34457_s7 + $0x2ac] ss:$16 sps:$4 sm:$0xff]   ;;  %v25943_v39 = vld [vmem:[%s34457_s7 + $0x2a0] ss:$16 sps:$4 sm:$0xff]  }
 0x88b   :  { %15312 = vmatprep.subr.bf16.mxu0 %v25895_v23  ;;  %15434 = vmatprep.subr.bf16.mxu1 %v25898_v47  ;;  %v25946_v23 = vld [vmem:[%s34457_s7 + $0x2a8] ss:$16 sps:$4 sm:$0xff]   ;;  %v25951_v47 = vld [vmem:[%s34457_s7 + $0x2c4] ss:$16 sps:$4 sm:$0xff]  }
 0x88e   :  { %15313 = vmatpush1.bf16.msra.mxu0 %v25893_v20  ;;  %15435 = vmatpush1.bf16.msra.mxu1 %v25896_v24  ;;  %v25954_v20 = vld [vmem:[%s34457_s7 + $0x2cc] ss:$16 sps:$4 sm:$0xff]   ;;  %v25949_v24 = vld [vmem:[%s34457_s7 + $0x2c0] ss:$16 sps:$4 sm:$0xff]  }
 0x88f   :  { %15314 = vmatprep.subr.bf16.mxu0 %v25901_v55  ;;  %15436 = vmatprep.subr.bf16.mxu1 %v25904_v26  ;;  %v25957_v55 = vld [vmem:[%s34457_s7 + $0x2e4] ss:$16 sps:$4 sm:$0xff]   ;;  %v25960_v26 = vld [vmem:[%s34457_s7 + $0x2ec] ss:$16 sps:$4 sm:$0xff]  }
 0x892   :  { %15315 = vmatpush1.bf16.msra.mxu0 %v25899_v21  ;;  %15437 = vmatpush1.bf16.msra.mxu1 %v25902_v5  ;;  %v25955_v21 = vld [vmem:[%s34457_s7 + $0x2e0] ss:$16 sps:$4 sm:$0xff]   ;;  %v25958_v5 = vld [vmem:[%s34457_s7 + $0x2e8] ss:$16 sps:$4 sm:$0xff]  }
 0x893   :  { %15316 = vmatprep.subr.bf16.mxu0 %v25907_v45  ;;  %15438 = vmatprep.subr.bf16.mxu1 %v25910_v40  ;;  %v25963_v45 = vld [vmem:[%s34457_s7 + $0x304] ss:$16 sps:$4 sm:$0xff]   ;;  %v25966_v40 = vld [vmem:[%s34457_s7 + $0x30c] ss:$16 sps:$4 sm:$0xff]  }
 0x896   :  { %15317 = vmatpush1.bf16.msra.mxu0 %v25905_v0  ;;  %15439 = vmatpush1.bf16.msra.mxu1 %v25908_v60  ;;  %v25961_v0 = vld [vmem:[%s34457_s7 + $0x300] ss:$16 sps:$4 sm:$0xff]   ;;  %v25964_v60 = vld [vmem:[%s34457_s7 + $0x308] ss:$16 sps:$4 sm:$0xff]  }
 0x897   :  { %15347 = vmatprep.subr.bf16.mxu0 %v25913_v25  ;;  %15469 = vmatprep.subr.bf16.mxu1 %v25916_v44  ;;  %v25969_v25 = vld [vmem:[%s34457_s7 + $0x324] ss:$16 sps:$4 sm:$0xff]   ;;  %v25972_v44 = vld [vmem:[%s34457_s7 + $0x32c] ss:$16 sps:$4 sm:$0xff]  }
 0x899   :  { %15319 = vmatmul.mubr.bf16.vlgmr.msra.gmra.mrb[124].mxu0 %v32169_v8  ;;  %15441 = vmatmul.mubr.bf16.vlgmr.msra.gmra.mrb[124].mxu1 %v32169_v8  ;;  %v25928_v8 = vld [vmem:[%s34457_s7 + $0x24c] ss:$16 sps:$4 sm:$0xff]  }
 0x89a   :  { %15328 = vmatprep.mubr.bf16.mxu0 %v32190_v48  ;;  %15348 = vmatpush1.bf16.msra.mxu0 %v25911_v11  ;;  %v25967_v11 = vld [vmem:[%s34457_s7 + $0x320] ss:$16 sps:$4 sm:$0xff]  }
 0x89b   :  { %15450 = vmatprep.mubr.bf16.mxu1 %v32190_v48  ;;  %15470 = vmatpush1.bf16.msra.mxu1 %v25914_v28  ;;  %v25970_v28 = vld [vmem:[%s34457_s7 + $0x328] ss:$16 sps:$4 sm:$0xff]  }
 0x89c   :  { %15349 = vmatprep.subr.bf16.mxu0 %v25919_v58  ;;  %15471 = vmatprep.subr.bf16.mxu1 %v25922_v43  ;;  %v25975_v58 = vld [vmem:[%s34457_s7 + $0x344] ss:$16 sps:$4 sm:$0xff]   ;;  %v25978_v43 = vld [vmem:[%s34457_s7 + $0x34c] ss:$16 sps:$4 sm:$0xff]  }
 0x89e   :  { %15350 = vmatpush1.bf16.msra.mxu0 %v25917_v10  ;;  %v25973_v10 = vld [vmem:[%s34457_s7 + $0x340] ss:$16 sps:$4 sm:$0xff]  }
 0x89f   :  { %15472 = vmatpush1.bf16.msra.mxu1 %v25920_v38  ;;  %15351 = vmatprep.subr.bf16.mxu0 %v25925_v4  ;;  %v25976_v38 = vld [vmem:[%s34457_s7 + $0x348] ss:$16 sps:$4 sm:$0xff]   ;;  %v25981_v4 = vld [vmem:[%s34457_s7 + $0x364] ss:$16 sps:$4 sm:$0xff]  }
 0x8a0   :  { %15473 = vmatprep.subr.bf16.mxu1 %v25928_v8  ;;  %v25984_v8 = vld [vmem:[%s34457_s7 + $0x36c] ss:$16 sps:$4 sm:$0xff]  }
 0x8a1   :  { %15329 = vmatmul.mubr.bf16.gmra.mrb[128].mxu0 %v32188_v53  ;;  %15451 = vmatmul.mubr.bf16.gmra.mrb[128].mxu1 %v32188_v53 }
 0x8a2   :  { %15338 = vmatprep.mubr.bf16.mxu0 %v21974_v57  ;;  %15352 = vmatpush1.bf16.msra.mxu0 %v25923_v19  ;;  %v25982_v19 = vld [vmem:[%s34457_s7 + $0x368] ss:$16 sps:$4 sm:$0xff]  }
 0x8a3   :  { %15460 = vmatprep.mubr.bf16.mxu1 %v21974_v57  ;;  %15474 = vmatpush1.bf16.msra.mxu1 %v25926_v50  ;;  %v25987_v50 = vld [vmem:[%s34457_s7 + $0x384] ss:$16 sps:$4 sm:$0xff]   ;;  %v25990_v57 = vld [vmem:[%s34457_s7 + $0x38c] ss:$16 sps:$4 sm:$0xff]  }
 0x8a4   :  { %15353 = vmatprep.subr.bf16.mxu0 %v25932_v13  ;;  %15475 = vmatprep.subr.bf16.mxu1 %v25935_v6  ;;  %v25985_v13 = vld [vmem:[%s34457_s7 + $0x380] ss:$16 sps:$4 sm:$0xff]   ;;  %v25988_v6 = vld [vmem:[%s34457_s7 + $0x388] ss:$16 sps:$4 sm:$0xff]  }
 0x8a6   :  { %15354 = vmatpush1.bf16.msra.mxu0 %v25930_v2  ;;  %v25993_v2 = vld [vmem:[%s34457_s7 + $0x3a4] ss:$16 sps:$4 sm:$0xff]  }
 0x8a7   :  { %15476 = vmatpush1.bf16.msra.mxu1 %v25933_v17  ;;  %15355 = vmatprep.subr.bf16.mxu0 %v25939_v14  ;;  %v25996_v17 = vld [vmem:[%s34457_s7 + $0x3ac] ss:$16 sps:$4 sm:$0xff]   ;;  %v25991_v14 = vld [vmem:[%s34457_s7 + $0x3a0] ss:$16 sps:$4 sm:$0xff]  }
 0x8a8   :  { %15477 = vmatprep.subr.bf16.mxu1 %v25942_v31  ;;  %v25994_v31 = vld [vmem:[%s34457_s7 + $0x3a8] ss:$16 sps:$4 sm:$0xff]  }
 0x8a9   :  { %15339 = vmatmul.mubr.bf16.gmra.mrb[140].mxu0 %v21973_v34  ;;  %15461 = vmatmul.mubr.bf16.gmra.mrb[140].mxu1 %v21973_v34  ;;  %v26002_v34 = vld [vmem:[%s34457_s7 + $0x3cc] ss:$16 sps:$4 sm:$0xff]  }
 0x8aa   :  { %15356 = vmatpush1.bf16.msra.mxu0 %v25937_v61  ;;  %15379 = vmatprep.mubr.bf16.mxu0 %v32251_v18  ;;  %v25999_v61 = vld [vmem:[%s34457_s7 + $0x3c4] ss:$16 sps:$4 sm:$0xff]  }
 0x8ab   :  { %15478 = vmatpush1.bf16.msra.mxu1 %v25940_v15  ;;  %15501 = vmatprep.mubr.bf16.mxu1 %v32251_v18  ;;  %v25952_v18 = vld [vmem:[%s34457_s7 + $0x2c8] ss:$16 sps:$4 sm:$0xff]   ;;  %v25997_v15 = vld [vmem:[%s34457_s7 + $0x3c0] ss:$16 sps:$4 sm:$0xff]  }
 0x8ac   :  { %15357 = vmatprep.subr.bf16.mxu0 %v25945_v49  ;;  %15479 = vmatprep.subr.bf16.mxu1 %v25948_v41  ;;  %v26000_v49 = vld [vmem:[%s34457_s7 + $0x3c8] ss:$16 sps:$4 sm:$0xff]   ;;  %v26005_v41 = vld [vmem:[%s34457_s7 + $0x3e4] ss:$16 sps:$4 sm:$0xff]  }
 0x8ae   :  { %15358 = vmatpush1.bf16.msra.mxu0 %v25943_v39  ;;  %v26008_v39 = vld [vmem:[%s34457_s7 + $0x3ec] ss:$16 sps:$4 sm:$0xff]  }
 0x8af   :  { %15480 = vmatpush1.bf16.msra.mxu1 %v25946_v23  ;;  %15359 = vmatprep.subr.bf16.mxu0 %v25951_v47  ;;  %v26003_v23 = vld [vmem:[%s34457_s7 + $0x3e0] ss:$16 sps:$4 sm:$0xff]   ;;  %v26006_v47 = vld [vmem:[%s34457_s7 + $0x3e8] ss:$16 sps:$4 sm:$0xff]  }
 0x8b0   :  { %15481 = vmatprep.subr.bf16.mxu1 %v25954_v20  ;;  %v26011_v20 = vld [vmem:[%s34457_s7 + $0x804] ss:$16 sps:$4 sm:$0xff]  }
 0x8b2   :  { %15360 = vmatpush1.bf16.msra.mxu0 %v25949_v24  ;;  %v26014_v24 = vld [vmem:[%s34457_s7 + $0x80c] ss:$16 sps:$4 sm:$0xff]  }
 0x8b3   :  { %15482 = vmatpush1.bf16.msra.mxu1 %v25952_v18  ;;  %15361 = vmatprep.subr.bf16.mxu0 %v25957_v55  ;;  %v26009_v18 = vld [vmem:[%s34457_s7 + $0x800] ss:$16 sps:$4 sm:$0xff]   ;;  %v26012_v55 = vld [vmem:[%s34457_s7 + $0x808] ss:$16 sps:$4 sm:$0xff]  }
 0x8b4   :  { %15483 = vmatprep.subr.bf16.mxu1 %v25960_v26  ;;  %v26017_v26 = vld [vmem:[%s34457_s7 + $0x824] ss:$16 sps:$4 sm:$0xff]  }
 0x8b6   :  { %15362 = vmatpush1.bf16.msra.mxu0 %v25955_v21  ;;  %v26020_v21 = vld [vmem:[%s34457_s7 + $0x82c] ss:$16 sps:$4 sm:$0xff]  }
 0x8b7   :  { %15484 = vmatpush1.bf16.msra.mxu1 %v25958_v5  ;;  %15363 = vmatprep.subr.bf16.mxu0 %v25963_v45  ;;  %v26015_v5 = vld [vmem:[%s34457_s7 + $0x820] ss:$16 sps:$4 sm:$0xff]   ;;  %v26018_v45 = vld [vmem:[%s34457_s7 + $0x828] ss:$16 sps:$4 sm:$0xff]  }
 0x8b8   :  { %15485 = vmatprep.subr.bf16.mxu1 %v25966_v40  ;;  %v26023_v40 = vld [vmem:[%s34457_s7 + $0x844] ss:$16 sps:$4 sm:$0xff]  }
 0x8ba   :  { %15364 = vmatpush1.bf16.msra.mxu0 %v25961_v0  ;;  %v13334_v0 = vld [vmem:[#allocation3 + $0x48] sm:$0x33] }
 0x8bb   :  { %15486 = vmatpush1.bf16.msra.mxu1 %v25964_v60  ;;  %15365 = vmatprep.subr.bf16.mxu0 %v25969_v25  ;;  %v26021_v60 = vld [vmem:[%s34457_s7 + $0x840] ss:$16 sps:$4 sm:$0xff]   ;;  %v26024_v25 = vld [vmem:[%s34457_s7 + $0x848] ss:$16 sps:$4 sm:$0xff]  }
 0x8bc   :  { %15487 = vmatprep.subr.bf16.mxu1 %v25972_v44  ;;  %v21976_v44 = vcombine.high %v13334_v0, %v13334_v0 }
 0x8be   :  { %15366 = vmatpush1.bf16.msra.mxu0 %v25967_v11  ;;  %v26030_v11 = vld [vmem:[%s34457_s7 + $0x864] ss:$16 sps:$4 sm:$0xff]  }
 0x8bf   :  { %15488 = vmatpush1.bf16.msra.mxu1 %v25970_v28  ;;  %15367 = vmatprep.subr.bf16.mxu0 %v25975_v58  ;;  %v26033_v28 = vld [vmem:[%s34457_s7 + $0x86c] ss:$16 sps:$4 sm:$0xff]   ;;  %v26028_v58 = vld [vmem:[%s34457_s7 + $0x860] ss:$16 sps:$4 sm:$0xff]  }
 0x8c0   :  { %15489 = vmatprep.subr.bf16.mxu1 %v25978_v43  ;;  %v26031_v43 = vld [vmem:[%s34457_s7 + $0x868] ss:$16 sps:$4 sm:$0xff]  }
 0x8c2   :  { %15368 = vmatpush1.bf16.msra.mxu0 %v25973_v10  ;;  %v26037_v10 = vld [vmem:[%s34457_s7 + $0x884] ss:$16 sps:$4 sm:$0xff]  }
 0x8c3   :  { %15490 = vmatpush1.bf16.msra.mxu1 %v25976_v38  ;;  %15369 = vmatprep.subr.bf16.mxu0 %v25981_v4  ;;  %v26040_v38 = vld [vmem:[%s34457_s7 + $0x88c] ss:$16 sps:$4 sm:$0xff]   ;;  %v15675_v4 = vrot.slane %v32190_v48, 1 }
 0x8c4   :  { %15491 = vmatprep.subr.bf16.mxu1 %v25984_v8  ;;  %v21975_v8 = vcombine.low %v13334_v0, %v13334_v0 }
 0x8c6   :  { %15370 = vmatpush1.bf16.msra.mxu0 %v25979_v42  ;;  %v26035_v42 = vld [vmem:[%s34457_s7 + $0x880] ss:$16 sps:$4 sm:$0xff]  }
 0x8c7   :  { %15492 = vmatpush1.bf16.msra.mxu1 %v25982_v19  ;;  %15371 = vmatprep.subr.bf16.mxu0 %v25987_v50  ;;  %v15674_v19 = vrot.slane %v32273_v29, 1  ;;  %v26038_v50 = vld [vmem:[%s34457_s7 + $0x888] ss:$16 sps:$4 sm:$0xff]   ;;  %v26046_v29 = vld [vmem:[%s34457_s7 + $0x8ac] ss:$16 sps:$4 sm:$0xff]  }
 0x8c8   :  { %15493 = vmatprep.subr.bf16.mxu1 %v25990_v57  ;;  %v26043_v57 = vld [vmem:[%s34457_s7 + $0x8a4] ss:$16 sps:$4 sm:$0xff]  }
 0x8ca   :  { %15372 = vmatpush1.bf16.msra.mxu0 %v25985_v13  ;;  %v15676_v13 = vsel %vm810_vm7, %v15674_v19, %v15675_v4  ;;  %v26088_v19 = vld [vmem:[%s34457_s7 + $0x98c] ss:$16 sps:$4 sm:$0xff]  }
 0x8cb   :  { %15494 = vmatpush1.bf16.msra.mxu1 %v25988_v6  ;;  %15373 = vmatprep.subr.bf16.mxu0 %v25993_v2  ;;  %v26041_v6 = vld [vmem:[%s34457_s7 + $0x8a0] ss:$16 sps:$4 sm:$0xff]   ;;  %v26044_v2 = vld [vmem:[%s34457_s7 + $0x8a8] ss:$16 sps:$4 sm:$0xff]  }
 0x8cc   :  { %15495 = vmatprep.subr.bf16.mxu1 %v25996_v17  ;;  %v26049_v17 = vld [vmem:[%s34457_s7 + $0x8c4] ss:$16 sps:$4 sm:$0xff]  }
 0x8ce   :  { %15374 = vmatpush1.bf16.msra.mxu0 %v25991_v14  ;;  %v26052_v14 = vld [vmem:[%s34457_s7 + $0x8cc] ss:$16 sps:$4 sm:$0xff]  }
 0x8cf   :  { %15496 = vmatpush1.bf16.msra.mxu1 %v25994_v31  ;;  %15375 = vmatprep.subr.bf16.mxu0 %v25999_v61  ;;  %v26047_v31 = vld [vmem:[%s34457_s7 + $0x8c0] ss:$16 sps:$4 sm:$0xff]   ;;  %v26050_v61 = vld [vmem:[%s34457_s7 + $0x8c8] ss:$16 sps:$4 sm:$0xff]  }
 0x8d0   :  { %15497 = vmatprep.subr.bf16.mxu1 %v26002_v34  ;;  %v26055_v34 = vld [vmem:[%s34457_s7 + $0x8e4] ss:$16 sps:$4 sm:$0xff]  }
 0x8d2   :  { %15376 = vmatpush1.bf16.msra.mxu0 %v25997_v15  ;;  %v26058_v15 = vld [vmem:[%s34457_s7 + $0x8ec] ss:$16 sps:$4 sm:$0xff]  }
 0x8d3   :  { %15498 = vmatpush1.bf16.msra.mxu1 %v26000_v49  ;;  %15377 = vmatprep.subr.bf16.mxu0 %v26005_v41  ;;  %v26053_v49 = vld [vmem:[%s34457_s7 + $0x8e0] ss:$16 sps:$4 sm:$0xff]   ;;  %v26056_v41 = vld [vmem:[%s34457_s7 + $0x8e8] ss:$16 sps:$4 sm:$0xff]  }
 0x8d4   :  { %15499 = vmatprep.subr.bf16.mxu1 %v26008_v39  ;;  %v26061_v39 = vld [vmem:[%s34457_s7 + $0x904] ss:$16 sps:$4 sm:$0xff]  }
 0x8d6   :  { %15378 = vmatpush1.bf16.msra.mxu0 %v26003_v23  ;;  %v26064_v23 = vld [vmem:[%s34457_s7 + $0x90c] ss:$16 sps:$4 sm:$0xff]  }
 0x8d7   :  { %15500 = vmatpush1.bf16.msra.mxu1 %v26006_v47  ;;  %16343 = vmatprep.subr.bf16.mxu0 %v26011_v20  ;;  %v26059_v47 = vld [vmem:[%s34457_s7 + $0x900] ss:$16 sps:$4 sm:$0xff]   ;;  %v26062_v20 = vld [vmem:[%s34457_s7 + $0x908] ss:$16 sps:$4 sm:$0xff]  }
 0x8d8   :  { %16465 = vmatprep.subr.bf16.mxu1 %v26014_v24  ;;  %v26067_v24 = vld [vmem:[%s34457_s7 + $0x924] ss:$16 sps:$4 sm:$0xff]  }
 0x8d9   :  { %15380 = vmatmul.mubr.bf16.vlgmr.msra.gmra.mrb[124].mxu0 %v32464_v27 }
 0x8da   :  { %15502 = vmatmul.mubr.bf16.vlgmr.msra.gmra.mrb[124].mxu1 %v32464_v27  ;;  %15389 = vmatprep.mubr.bf16.mxu0 %v32257_v51  ;;  %v26026_v27 = vld [vmem:[%s34457_s7 + $0x84c] ss:$16 sps:$4 sm:$0xff]  }
 0x8db   :  { %15511 = vmatprep.mubr.bf16.mxu1 %v32257_v51  ;;  %16344 = vmatpush1.bf16.msra.mxu0 %v26009_v18  ;;  %v26070_v18 = vld [vmem:[%s34457_s7 + $0x92c] ss:$16 sps:$4 sm:$0xff]  }
 0x8dc   :  { %16466 = vmatpush1.bf16.msra.mxu1 %v26012_v55  ;;  %16345 = vmatprep.subr.bf16.mxu0 %v26017_v26  ;;  %v26065_v55 = vld [vmem:[%s34457_s7 + $0x920] ss:$16 sps:$4 sm:$0xff]   ;;  %v26068_v26 = vld [vmem:[%s34457_s7 + $0x928] ss:$16 sps:$4 sm:$0xff]  }
 0x8dd   :  { %16467 = vmatprep.subr.bf16.mxu1 %v26020_v21  ;;  %v26073_v21 = vld [vmem:[%s34457_s7 + $0x944] ss:$16 sps:$4 sm:$0xff]  }
 0x8df   :  { %16346 = vmatpush1.bf16.msra.mxu0 %v26015_v5  ;;  %v26076_v5 = vld [vmem:[%s34457_s7 + $0x94c] ss:$16 sps:$4 sm:$0xff]  }
 0x8e0   :  { %16468 = vmatpush1.bf16.msra.mxu1 %v26018_v45  ;;  %16347 = vmatprep.subr.bf16.mxu0 %v26023_v40 }
 0x8e1   :  { %15390 = vmatmul.mubr.bf16.gmra.mrb[128].mxu0 %v32297_v3  ;;  %16469 = vmatprep.subr.bf16.mxu1 %v26026_v27 }
 0x8e2   :  { %15512 = vmatmul.mubr.bf16.gmra.mrb[128].mxu1 %v32297_v3  ;;  %15399 = vmatprep.mubr.bf16.mxu0 %v21976_v44 }
 0x8e3   :  { %15521 = vmatprep.mubr.bf16.mxu1 %v21976_v44  ;;  %16348 = vmatpush1.bf16.msra.mxu0 %v26021_v60  ;;  %v26071_v60 = vld [vmem:[%s34457_s7 + $0x940] ss:$16 sps:$4 sm:$0xff]  }
 0x8e4   :  { %16470 = vmatpush1.bf16.msra.mxu1 %v26024_v25  ;;  %16349 = vmatprep.subr.bf16.mxu0 %v26030_v11  ;;  %v26074_v11 = vld [vmem:[%s34457_s7 + $0x948] ss:$16 sps:$4 sm:$0xff]  }
 0x8e5   :  { %16471 = vmatprep.subr.bf16.mxu1 %v26033_v28  ;;  %v26079_v28 = vld [vmem:[%s34457_s7 + $0x964] ss:$16 sps:$4 sm:$0xff]  }
 0x8e7   :  { %16350 = vmatpush1.bf16.msra.mxu0 %v26028_v58 }
 0x8e8   :  { %16472 = vmatpush1.bf16.msra.mxu1 %v26031_v43  ;;  %16351 = vmatprep.subr.bf16.mxu0 %v26037_v10  ;;  %v26082_v10 = vld [vmem:[%s34457_s7 + $0x96c] ss:$16 sps:$4 sm:$0xff]  }
 0x8e9   :  { %15400 = vmatmul.mubr.bf16.gmra.mrb[144].mxu0 %v21975_v8  ;;  %16473 = vmatprep.subr.bf16.mxu1 %v26040_v38  ;;  %v26077_v38 = vld [vmem:[%s34457_s7 + $0x960] ss:$16 sps:$4 sm:$0xff]  }
 0x8ea   :  { %15522 = vmatmul.mubr.bf16.gmra.mrb[144].mxu1 %v21975_v8  ;;  %16375 = vmatprep.mubr.bf16.mxu0 %v15676_v13  ;;  %v26080_v8 = vld [vmem:[%s34457_s7 + $0x968] ss:$16 sps:$4 sm:$0xff]  }
 0x8eb   :  { %16352 = vmatpush1.bf16.msra.mxu0 %v26035_v42  ;;  %16497 = vmatprep.mubr.bf16.mxu1 %v15676_v13  ;;  %v26085_v42 = vld [vmem:[%s34457_s7 + $0x984] ss:$16 sps:$4 sm:$0xff]  }
 0x8ec   :  { %16474 = vmatpush1.bf16.msra.mxu1 %v26038_v50  ;;  %16353 = vmatprep.subr.bf16.mxu0 %v26043_v57  ;;  %v26083_v50 = vld [vmem:[%s34457_s7 + $0x980] ss:$16 sps:$4 sm:$0xff]   ;;  %v26086_v57 = vld [vmem:[%s34457_s7 + $0x988] ss:$16 sps:$4 sm:$0xff]   ;;  %v26091_v13 = vld [vmem:[%s34457_s7 + $0x9a4] ss:$16 sps:$4 sm:$0xff]  }
 0x8ed   :  { %16475 = vmatprep.subr.bf16.mxu1 %v26046_v29  ;;  %v26094_v29 = vld [vmem:[%s34457_s7 + $0x9ac] ss:$16 sps:$4 sm:$0xff]  }
 0x8ef   :  { %16354 = vmatpush1.bf16.msra.mxu0 %v26041_v6  ;;  %v26089_v6 = vld [vmem:[%s34457_s7 + $0x9a0] ss:$16 sps:$4 sm:$0xff]  }
 0x8f0   :  { %16476 = vmatpush1.bf16.msra.mxu1 %v26044_v2  ;;  %16355 = vmatprep.subr.bf16.mxu0 %v26049_v17  ;;  %v26092_v2 = vld [vmem:[%s34457_s7 + $0x9a8] ss:$16 sps:$4 sm:$0xff]   ;;  %v26097_v17 = vld [vmem:[%s34457_s7 + $0x9c4] ss:$16 sps:$4 sm:$0xff]  }
 0x8f1   :  { %16477 = vmatprep.subr.bf16.mxu1 %v26052_v14  ;;  %v26100_v14 = vld [vmem:[%s34457_s7 + $0x9cc] ss:$16 sps:$4 sm:$0xff]  }
 0x8f3   :  { %16356 = vmatpush1.bf16.msra.mxu0 %v26047_v31  ;;  %v26095_v31 = vld [vmem:[%s34457_s7 + $0x9c0] ss:$16 sps:$4 sm:$0xff]  }
 0x8f4   :  { %16478 = vmatpush1.bf16.msra.mxu1 %v26050_v61  ;;  %16357 = vmatprep.subr.bf16.mxu0 %v26055_v34  ;;  %v26098_v61 = vld [vmem:[%s34457_s7 + $0x9c8] ss:$16 sps:$4 sm:$0xff]   ;;  %v26103_v34 = vld [vmem:[%s34457_s7 + $0x9e4] ss:$16 sps:$4 sm:$0xff]  }
 0x8f5   :  { %16479 = vmatprep.subr.bf16.mxu1 %v26058_v15  ;;  %v26106_v15 = vld [vmem:[%s34457_s7 + $0x9ec] ss:$16 sps:$4 sm:$0xff]  }
 0x8f7   :  { %16358 = vmatpush1.bf16.msra.mxu0 %v26053_v49  ;;  %v26101_v49 = vld [vmem:[%s34457_s7 + $0x9e0] ss:$16 sps:$4 sm:$0xff]  }
 0x8f8   :  { %16480 = vmatpush1.bf16.msra.mxu1 %v26056_v41  ;;  %16359 = vmatprep.subr.bf16.mxu0 %v26061_v39  ;;  %v26104_v41 = vld [vmem:[%s34457_s7 + $0x9e8] ss:$16 sps:$4 sm:$0xff]   ;;  %v26109_v39 = vld [vmem:[%s34457_s7 + $0xa04] ss:$16 sps:$4 sm:$0xff]  }
 0x8f9   :  { %16481 = vmatprep.subr.bf16.mxu1 %v26064_v23  ;;  %v15672_v23 = vrot.slane %v32188_v53, 1 }
 0x8fb   :  { %16360 = vmatpush1.bf16.msra.mxu0 %v26059_v47  ;;  %v26112_v47 = vld [vmem:[%s34457_s7 + $0xa0c] ss:$16 sps:$4 sm:$0xff]  }
 0x8fc   :  { %16482 = vmatpush1.bf16.msra.mxu1 %v26062_v20  ;;  %16361 = vmatprep.subr.bf16.mxu0 %v26067_v24  ;;  %v15685_v20 = vrot.slane %v32238_v7, 1  ;;  %v15671_v24 = vrot.slane %v32292_v1, 1  ;;  %v26115_v7 = vld [vmem:[%s34457_s7 + $0xa24] ss:$16 sps:$4 sm:$0xff]  }
 0x8fd   :  { %16483 = vmatprep.subr.bf16.mxu1 %v26070_v18  ;;  %v26107_v18 = vld [vmem:[%s34457_s7 + $0xa00] ss:$16 sps:$4 sm:$0xff]  }
 0x8fe   :  { %v33035_v45 = vpop.f32.mrb[132].mxu0  ;;  %v33037_v40 = vpop.f32.mrb[132].mxu1  ;;  %v15686_v1 = vsel %vm810_vm7, %v15675_v4, %v15685_v20  ;;  %v15683_v4 = vrot.slane %v32240_v22, 1  ;;  %v26122_v22 = vld [vmem:[%s34457_s7 + $0xa48] ss:$16 sps:$4 sm:$0xff]  }
 0x8ff   :  { %16362 = vmatpush1.bf16.msra.mxu0 %v26065_v55  ;;  %v33039_v27 = vpop.f32.mrb[133].mxu0  ;;  %v33041_v0 = vpop.f32.mrb[133].mxu1  ;;  %v15673_v55 = vsel %vm810_vm7, %v15671_v24, %v15672_v23  ;;  %v26158_v24 = vld [vmem:[%s34457_s7 + $0xb08] ss:$16 sps:$4 sm:$0xff]  }
 0x900   :  { %16484 = vmatpush1.bf16.msra.mxu1 %v26068_v26  ;;  %v14438_v25 = vpop.f32.mrb[134].mxu0  ;;  %v14560_v44 = vpop.f32.mrb[134].mxu1  ;;  %16363 = vmatprep.subr.bf16.mxu0 %v26073_v21  ;;  %v26110_v26 = vld [vmem:[%s34457_s7 + $0xa08] ss:$16 sps:$4 sm:$0xff]   ;;  %v26118_v21 = vld [vmem:[%s34457_s7 + $0xa2c] ss:$16 sps:$4 sm:$0xff]  }
 0x901   :  { %16485 = vmatprep.subr.bf16.mxu1 %v26076_v5  ;;  %v14439_v58 = vpop.f32.mrb[135].mxu0  ;;  %v14561_v43 = vpop.f32.mrb[135].mxu1  ;;  %v26113_v5 = vld [vmem:[%s34457_s7 + $0xa20] ss:$16 sps:$4 sm:$0xff]   ;;  %v26121_v25 = vld [vmem:[%s34457_s7 + $0xa44] ss:$16 sps:$4 sm:$0xff]  }
 0x902   :  { %v26124_v44 = vld [vmem:[%s34457_s7 + $0xa4c] ss:$16 sps:$4 sm:$0xff]   ;;  %v26127_v58 = vld [vmem:[%s34457_s7 + $0xa64] ss:$16 sps:$4 sm:$0xff]  }
 0x903   :  { %16364 = vmatpush1.bf16.msra.mxu0 %v26071_v60  ;;  %v26116_v60 = vld [vmem:[%s34457_s7 + $0xa28] ss:$16 sps:$4 sm:$0xff]   ;;  %v26130_v43 = vld [vmem:[%s34457_s7 + $0xa6c] ss:$16 sps:$4 sm:$0xff]  }
 0x904   :  { %16486 = vmatpush1.bf16.msra.mxu1 %v26074_v11  ;;  %16365 = vmatprep.subr.bf16.mxu0 %v26079_v28  ;;  %v26119_v11 = vld [vmem:[%s34457_s7 + $0xa40] ss:$16 sps:$4 sm:$0xff]   ;;  %v15684_v28 = vsel %vm810_vm7, %v15672_v23, %v15683_v4  ;;  %v26157_v23 = vld [vmem:[%s34457_s7 + $0xb04] ss:$16 sps:$4 sm:$0xff]  }
 0x905   :  { %16487 = vmatprep.subr.bf16.mxu1 %v26082_v10  ;;  %v26125_v10 = vld [vmem:[%s34457_s7 + $0xa60] ss:$16 sps:$4 sm:$0xff]  }
 0x907   :  { %16366 = vmatpush1.bf16.msra.mxu0 %v26077_v38  ;;  %v26128_v38 = vld [vmem:[%s34457_s7 + $0xa68] ss:$16 sps:$4 sm:$0xff]  }
 0x908   :  { %16488 = vmatpush1.bf16.msra.mxu1 %v26080_v8  ;;  %16367 = vmatprep.subr.bf16.mxu0 %v26085_v42  ;;  %v26133_v8 = vld [vmem:[%s34457_s7 + $0xa84] ss:$16 sps:$4 sm:$0xff]   ;;  %v26136_v42 = vld [vmem:[%s34457_s7 + $0xa8c] ss:$16 sps:$4 sm:$0xff]  }
 0x909   :  { %16489 = vmatprep.subr.bf16.mxu1 %v26088_v19  ;;  %v15681_v19 = vrot.slane %v32257_v51, 1 }
 0x90b   :  { %16368 = vmatpush1.bf16.msra.mxu0 %v26083_v50  ;;  %v26131_v50 = vld [vmem:[%s34457_s7 + $0xa80] ss:$16 sps:$4 sm:$0xff]  }
 0x90c   :  { %16490 = vmatpush1.bf16.msra.mxu1 %v26086_v57  ;;  %16369 = vmatprep.subr.bf16.mxu0 %v26091_v13  ;;  %v15680_v57 = vrot.slane %v32309_v37, 1  ;;  %v26134_v13 = vld [vmem:[%s34457_s7 + $0xa88] ss:$16 sps:$4 sm:$0xff]   ;;  %v26142_v37 = vld [vmem:[%s34457_s7 + $0xaac] ss:$16 sps:$4 sm:$0xff]  }
 0x90d   :  { %16491 = vmatprep.subr.bf16.mxu1 %v26094_v29  ;;  %v26139_v29 = vld [vmem:[%s34457_s7 + $0xaa4] ss:$16 sps:$4 sm:$0xff]  }
 0x90f   :  { %16370 = vmatpush1.bf16.msra.mxu0 %v26089_v6  ;;  %v15682_v6 = vsel %vm810_vm7, %v15680_v57, %v15681_v19  ;;  %v26184_v57 = vld [vmem:[%s34457_s7 + $0xb8c] ss:$16 sps:$4 sm:$0xff]  }
 0x910   :  { %16492 = vmatpush1.bf16.msra.mxu1 %v26092_v2  ;;  %16371 = vmatprep.subr.bf16.mxu0 %v26097_v17  ;;  %v26137_v2 = vld [vmem:[%s34457_s7 + $0xaa0] ss:$16 sps:$4 sm:$0xff]   ;;  %v26140_v17 = vld [vmem:[%s34457_s7 + $0xaa8] ss:$16 sps:$4 sm:$0xff]  }
 0x911   :  { %16493 = vmatprep.subr.bf16.mxu1 %v26100_v14  ;;  %v26145_v14 = vld [vmem:[%s34457_s7 + $0xac4] ss:$16 sps:$4 sm:$0xff]  }
 0x913   :  { %16372 = vmatpush1.bf16.msra.mxu0 %v26095_v31  ;;  %v26148_v31 = vld [vmem:[%s34457_s7 + $0xacc] ss:$16 sps:$4 sm:$0xff]  }
 0x914   :  { %16494 = vmatpush1.bf16.msra.mxu1 %v26098_v61  ;;  %16373 = vmatprep.subr.bf16.mxu0 %v26103_v34  ;;  %v26143_v61 = vld [vmem:[%s34457_s7 + $0xac0] ss:$16 sps:$4 sm:$0xff]   ;;  %v26146_v34 = vld [vmem:[%s34457_s7 + $0xac8] ss:$16 sps:$4 sm:$0xff]  }
 0x915   :  { %16495 = vmatprep.subr.bf16.mxu1 %v26106_v15  ;;  %v26151_v15 = vld [vmem:[%s34457_s7 + $0xae4] ss:$16 sps:$4 sm:$0xff]  }
 0x917   :  { %16374 = vmatpush1.bf16.msra.mxu0 %v26101_v49  ;;  %v26154_v49 = vld [vmem:[%s34457_s7 + $0xaec] ss:$16 sps:$4 sm:$0xff]  }
 0x918   :  { %16496 = vmatpush1.bf16.msra.mxu1 %v26104_v41  ;;  %16404 = vmatprep.subr.bf16.mxu0 %v26109_v39  ;;  %v26149_v41 = vld [vmem:[%s34457_s7 + $0xae0] ss:$16 sps:$4 sm:$0xff]   ;;  %v26152_v39 = vld [vmem:[%s34457_s7 + $0xae8] ss:$16 sps:$4 sm:$0xff]  }
 0x919   :  { %16526 = vmatprep.subr.bf16.mxu1 %v26112_v47  ;;  %v26160_v47 = vld [vmem:[%s34457_s7 + $0xb0c] ss:$16 sps:$4 sm:$0xff]  }
 0x91a   :  { %16376 = vmatmul.mubr.bf16.vlgmr.msra.gmra.mrb[124].mxu0 %v15673_v55 }
 0x91b   :  { %16498 = vmatmul.mubr.bf16.vlgmr.msra.gmra.mrb[124].mxu1 %v15673_v55  ;;  %16385 = vmatprep.mubr.bf16.mxu0 %v15686_v1  ;;  %v26166_v55 = vld [vmem:[%s34457_s7 + $0xb2c] ss:$16 sps:$4 sm:$0xff]  }
 0x91c   :  { %16405 = vmatpush1.bf16.msra.mxu0 %v26107_v18  ;;  %16507 = vmatprep.mubr.bf16.mxu1 %v15686_v1  ;;  %v26163_v18 = vld [vmem:[%s34457_s7 + $0xb24] ss:$16 sps:$4 sm:$0xff]  }
 0x91d   :  { %16527 = vmatpush1.bf16.msra.mxu1 %v26110_v26  ;;  %16406 = vmatprep.subr.bf16.mxu0 %v26115_v7 }
 0x91e   :  { %16528 = vmatprep.subr.bf16.mxu1 %v26118_v21 }
 0x920   :  { %16407 = vmatpush1.bf16.msra.mxu0 %v26113_v5 }
 0x921   :  { %16529 = vmatpush1.bf16.msra.mxu1 %v26116_v60  ;;  %16408 = vmatprep.subr.bf16.mxu0 %v26121_v25 }
 0x922   :  { %16386 = vmatmul.mubr.bf16.gmra.mrb[128].mxu0 %v15684_v28  ;;  %16530 = vmatprep.subr.bf16.mxu1 %v26124_v44 }
 0x923   :  { %16508 = vmatmul.mubr.bf16.gmra.mrb[128].mxu1 %v15684_v28  ;;  %16395 = vmatprep.mubr.bf16.mxu0 %v15685_v20  ;;  %v26169_v28 = vld [vmem:[%s34457_s7 + $0xb44] ss:$16 sps:$4 sm:$0xff]  }
 0x924   :  { %16409 = vmatpush1.bf16.msra.mxu0 %v26119_v11  ;;  %16517 = vmatprep.mubr.bf16.mxu1 %v15685_v20  ;;  %v26155_v20 = vld [vmem:[%s34457_s7 + $0xb00] ss:$16 sps:$4 sm:$0xff]  }
 0x925   :  { %16531 = vmatpush1.bf16.msra.mxu1 %v26122_v22  ;;  %16410 = vmatprep.subr.bf16.mxu0 %v26127_v58 }
 0x926   :  { %16532 = vmatprep.subr.bf16.mxu1 %v26130_v43  ;;  %v26170_v43 = vld [vmem:[%s34457_s7 + $0xb48] ss:$16 sps:$4 sm:$0xff]  }
 0x928   :  { %16411 = vmatpush1.bf16.msra.mxu0 %v26125_v10  ;;  %v26175_v10 = vld [vmem:[%s34457_s7 + $0xb64] ss:$16 sps:$4 sm:$0xff]  }
 0x929   :  { %16533 = vmatpush1.bf16.msra.mxu1 %v26128_v38  ;;  %16412 = vmatprep.subr.bf16.mxu0 %v26133_v8  ;;  %v26178_v38 = vld [vmem:[%s34457_s7 + $0xb6c] ss:$16 sps:$4 sm:$0xff]   ;;  %v26173_v8 = vld [vmem:[%s34457_s7 + $0xb60] ss:$16 sps:$4 sm:$0xff]  }
 0x92a   :  { %16396 = vmatmul.mubr.bf16.gmra.mrb[148].mxu0 %v15683_v4  ;;  %16534 = vmatprep.subr.bf16.mxu1 %v26136_v42  ;;  %v26176_v42 = vld [vmem:[%s34457_s7 + $0xb68] ss:$16 sps:$4 sm:$0xff]  }
 0x92b   :  { %16518 = vmatmul.mubr.bf16.gmra.mrb[148].mxu1 %v15683_v4  ;;  %16436 = vmatprep.mubr.bf16.mxu0 %v15682_v6  ;;  %v26161_v4 = vld [vmem:[%s34457_s7 + $0xb20] ss:$16 sps:$4 sm:$0xff]  }
 0x92c   :  { %16413 = vmatpush1.bf16.msra.mxu0 %v26131_v50  ;;  %16558 = vmatprep.mubr.bf16.mxu1 %v15682_v6  ;;  %v26181_v50 = vld [vmem:[%s34457_s7 + $0xb84] ss:$16 sps:$4 sm:$0xff]  }
 0x92d   :  { %16535 = vmatpush1.bf16.msra.mxu1 %v26134_v13  ;;  %16414 = vmatprep.subr.bf16.mxu0 %v26139_v29  ;;  %v26179_v13 = vld [vmem:[%s34457_s7 + $0xb80] ss:$16 sps:$4 sm:$0xff]   ;;  %v26182_v29 = vld [vmem:[%s34457_s7 + $0xb88] ss:$16 sps:$4 sm:$0xff]   ;;  %v26187_v6 = vld [vmem:[%s34457_s7 + $0xba4] ss:$16 sps:$4 sm:$0xff]  }
 0x92e   :  { %16536 = vmatprep.subr.bf16.mxu1 %v26142_v37  ;;  %v26190_v37 = vld [vmem:[%s34457_s7 + $0xbac] ss:$16 sps:$4 sm:$0xff]  }
 0x930   :  { %16415 = vmatpush1.bf16.msra.mxu0 %v26137_v2  ;;  %v26185_v2 = vld [vmem:[%s34457_s7 + $0xba0] ss:$16 sps:$4 sm:$0xff]  }
 0x931   :  { %16537 = vmatpush1.bf16.msra.mxu1 %v26140_v17  ;;  %16416 = vmatprep.subr.bf16.mxu0 %v26145_v14  ;;  %v26188_v17 = vld [vmem:[%s34457_s7 + $0xba8] ss:$16 sps:$4 sm:$0xff]   ;;  %v26193_v14 = vld [vmem:[%s34457_s7 + $0xbc4] ss:$16 sps:$4 sm:$0xff]  }
 0x932   :  { %16538 = vmatprep.subr.bf16.mxu1 %v26148_v31  ;;  %v26196_v31 = vld [vmem:[%s34457_s7 + $0xbcc] ss:$16 sps:$4 sm:$0xff]  }
 0x934   :  { %16417 = vmatpush1.bf16.msra.mxu0 %v26143_v61  ;;  %v26191_v61 = vld [vmem:[%s34457_s7 + $0xbc0] ss:$16 sps:$4 sm:$0xff]  }
 0x935   :  { %16539 = vmatpush1.bf16.msra.mxu1 %v26146_v34  ;;  %16418 = vmatprep.subr.bf16.mxu0 %v26151_v15  ;;  %v26194_v34 = vld [vmem:[%s34457_s7 + $0xbc8] ss:$16 sps:$4 sm:$0xff]   ;;  %v26199_v15 = vld [vmem:[%s34457_s7 + $0xbe4] ss:$16 sps:$4 sm:$0xff]  }
 0x936   :  { %16540 = vmatprep.subr.bf16.mxu1 %v26154_v49  ;;  %v26202_v49 = vld [vmem:[%s34457_s7 + $0xbec] ss:$16 sps:$4 sm:$0xff]  }
 0x938   :  { %16419 = vmatpush1.bf16.msra.mxu0 %v26149_v41  ;;  %v26197_v41 = vld [vmem:[%s34457_s7 + $0xbe0] ss:$16 sps:$4 sm:$0xff]  }
 0x939   :  { %16541 = vmatpush1.bf16.msra.mxu1 %v26152_v39  ;;  %16420 = vmatprep.subr.bf16.mxu0 %v26157_v23  ;;  %v26200_v39 = vld [vmem:[%s34457_s7 + $0xbe8] ss:$16 sps:$4 sm:$0xff]   ;;  %v26205_v23 = vld [vmem:[%s34457_s7 + $0xc04] ss:$16 sps:$4 sm:$0xff]  }
 0x93a   :  { %16542 = vmatprep.subr.bf16.mxu1 %v26160_v47  ;;  %v15678_v47 = vrot.slane %v32297_v3, 1 }
 0x93b   :  { %v14495_v26 = vpop.f32.mrb[136].mxu0  ;;  %v14617_v7 = vpop.f32.mrb[136].mxu1 }
 0x93c   :  { %16421 = vmatpush1.bf16.msra.mxu0 %v26155_v20  ;;  %v33238_v1 = vadd.f32 %v14495_v26, %v33035_v45  ;;  %v33241_v21 = vadd.f32 %v14617_v7, %v33037_v40  ;;  %v14497_v5 = vpop.f32.mrb[137].mxu0  ;;  %v14619_v60 = vpop.f32.mrb[137].mxu1  ;;  %v26164_v45 = vld [vmem:[%s34457_s7 + $0xb28] ss:$16 sps:$4 sm:$0xff]   ;;  %v26208_v20 = vld [vmem:[%s34457_s7 + $0xc0c] ss:$16 sps:$4 sm:$0xff]  }
 0x93d   :  { %16543 = vmatpush1.bf16.msra.mxu1 %v26158_v24  ;;  %v33247_v25 = vadd.f32 %v14497_v5, %v33039_v27  ;;  %v33250_v44 = vadd.f32 %v14619_v60, %v33041_v0  ;;  %16422 = vmatprep.subr.bf16.mxu0 %v26163_v18  ;;  %v14499_v40 = vpop.f32.mrb[138].mxu0  ;;  %v14621_v11 = vpop.f32.mrb[138].mxu1  ;;  %v26172_v27 = vld [vmem:[%s34457_s7 + $0xb4c] ss:$16 sps:$4 sm:$0xff]   ;;  %v26167_v0 = vld [vmem:[%s34457_s7 + $0xb40] ss:$16 sps:$4 sm:$0xff]  }
 0x93e   :  { %16544 = vmatprep.subr.bf16.mxu1 %v26166_v55  ;;  %v14500_v22 = vpop.f32.mrb[139].mxu0  ;;  %v14622_v58 = vpop.f32.mrb[139].mxu1  ;;  %v15689_v24 = vrot.slane %v32478_v59, 1  ;;  %v15677_v18 = vrot.slane %v32326_v16, 1  ;;  %v26203_v55 = vld [vmem:[%s34457_s7 + $0xc00] ss:$16 sps:$4 sm:$0xff]  }
 0x93f   :  { %v26206_v7 = vld [vmem:[%s34457_s7 + $0xc08] ss:$16 sps:$4 sm:$0xff]   ;;  %v26211_v59 = vld [vmem:[%s34457_s7 + $0xc24] ss:$16 sps:$4 sm:$0xff]   ;;  %v26214_v5 = vld [vmem:[%s34457_s7 + $0xc2c] ss:$16 sps:$4 sm:$0xff]  }
 0x940   :  { %16423 = vmatpush1.bf16.msra.mxu0 %v26161_v4  ;;  %v15679_v26 = vsel %vm810_vm7, %v15677_v18, %v15678_v47  ;;  %v15690_v16 = vsel %vm810_vm7, %v15681_v19, %v15689_v24  ;;  %v26209_v60 = vld [vmem:[%s34457_s7 + $0xc20] ss:$16 sps:$4 sm:$0xff]   ;;  %v26212_v4 = vld [vmem:[%s34457_s7 + $0xc28] ss:$16 sps:$4 sm:$0xff]   ;;  %v15687_v19 = vrot.slane %v32497_v63, 1 }
 0x941   :  { %16545 = vmatpush1.bf16.msra.mxu1 %v26164_v45  ;;  %16424 = vmatprep.subr.bf16.mxu0 %v26169_v28  ;;  %v26217_v45 = vld [vmem:[%s34457_s7 + $0xc44] ss:$16 sps:$4 sm:$0xff]   ;;  %v26220_v40 = vld [vmem:[%s34457_s7 + $0xc4c] ss:$16 sps:$4 sm:$0xff]   ;;  %v26215_v11 = vld [vmem:[%s34457_s7 + $0xc40] ss:$16 sps:$4 sm:$0xff]  }
 0x942   :  { %16546 = vmatprep.subr.bf16.mxu1 %v26172_v27  ;;  %v15688_v28 = vsel %vm810_vm7, %v15678_v47, %v15687_v19  ;;  %v26218_v63 = vld [vmem:[%s34457_s7 + $0xc48] ss:$16 sps:$4 sm:$0xff]   ;;  %v26223_v22 = vld [vmem:[%s34457_s7 + $0xc64] ss:$16 sps:$4 sm:$0xff]   ;;  %v26226_v58 = vld [vmem:[%s34457_s7 + $0xc6c] ss:$16 sps:$4 sm:$0xff]  }
 0x943   :  { %v26221_v27 = vld [vmem:[%s34457_s7 + $0xc60] ss:$16 sps:$4 sm:$0xff]  }
 0x944   :  { %16425 = vmatpush1.bf16.msra.mxu0 %v26167_v0  ;;  %v26224_v0 = vld [vmem:[%s34457_s7 + $0xc68] ss:$16 sps:$4 sm:$0xff]  }
 0x945   :  { %16547 = vmatpush1.bf16.msra.mxu1 %v26170_v43  ;;  %16426 = vmatprep.subr.bf16.mxu0 %v26175_v10  ;;  %v26229_v43 = vld [vmem:[%s34457_s7 + $0xc84] ss:$16 sps:$4 sm:$0xff]   ;;  %v26232_v10 = vld [vmem:[%s34457_s7 + $0xc8c] ss:$16 sps:$4 sm:$0xff]  }
 0x946   :  { %16548 = vmatprep.subr.bf16.mxu1 %v26178_v38  ;;  %v26227_v38 = vld [vmem:[%s34457_s7 + $0xc80] ss:$16 sps:$4 sm:$0xff]  }
 0x948   :  { %16427 = vmatpush1.bf16.msra.mxu0 %v26173_v8  ;;  %v26230_v8 = vld [vmem:[%s34457_s7 + $0xc88] ss:$16 sps:$4 sm:$0xff]  }
 0x949   :  { %16549 = vmatpush1.bf16.msra.mxu1 %v26176_v42  ;;  %16428 = vmatprep.subr.bf16.mxu0 %v26181_v50  ;;  %v26235_v42 = vld [vmem:[%s34457_s7 + $0xca4] ss:$16 sps:$4 sm:$0xff]   ;;  %v26238_v50 = vld [vmem:[%s34457_s7 + $0xcac] ss:$16 sps:$4 sm:$0xff]  }
 0x94a   :  { %16550 = vmatprep.subr.bf16.mxu1 %v26184_v57  ;;  %v26233_v57 = vld [vmem:[%s34457_s7 + $0xca0] ss:$16 sps:$4 sm:$0xff]  }
 0x94c   :  { %16429 = vmatpush1.bf16.msra.mxu0 %v26179_v13  ;;  %v26236_v13 = vld [vmem:[%s34457_s7 + $0xca8] ss:$16 sps:$4 sm:$0xff]  }
 0x94d   :  { %16551 = vmatpush1.bf16.msra.mxu1 %v26182_v29  ;;  %16430 = vmatprep.subr.bf16.mxu0 %v26187_v6  ;;  %v26241_v29 = vld [vmem:[%s34457_s7 + $0xcc4] ss:$16 sps:$4 sm:$0xff]   ;;  %v26244_v6 = vld [vmem:[%s34457_s7 + $0xccc] ss:$16 sps:$4 sm:$0xff]  }
 0x94e   :  { %16552 = vmatprep.subr.bf16.mxu1 %v26190_v37  ;;  %v26242_v37 = vld [vmem:[%s34457_s7 + $0xcc8] ss:$16 sps:$4 sm:$0xff]  }
 0x950   :  { %16431 = vmatpush1.bf16.msra.mxu0 %v26185_v2  ;;  %v26247_v2 = vld [vmem:[%s34457_s7 + $0xce4] ss:$16 sps:$4 sm:$0xff]  }
 0x951   :  { %16553 = vmatpush1.bf16.msra.mxu1 %v26188_v17  ;;  %16432 = vmatprep.subr.bf16.mxu0 %v26193_v14  ;;  %v26250_v17 = vld [vmem:[%s34457_s7 + $0xcec] ss:$16 sps:$4 sm:$0xff]   ;;  %v26245_v14 = vld [vmem:[%s34457_s7 + $0xce0] ss:$16 sps:$4 sm:$0xff]  }
 0x952   :  { %16554 = vmatprep.subr.bf16.mxu1 %v26196_v31  ;;  %v26248_v31 = vld [vmem:[%s34457_s7 + $0xce8] ss:$16 sps:$4 sm:$0xff]  }
 0x954   :  { %16433 = vmatpush1.bf16.msra.mxu0 %v26191_v61  ;;  %v26253_v61 = vld [vmem:[%s34457_s7 + $0xd04] ss:$16 sps:$4 sm:$0xff]  }
 0x955   :  { %16555 = vmatpush1.bf16.msra.mxu1 %v26194_v34  ;;  %16434 = vmatprep.subr.bf16.mxu0 %v26199_v15  ;;  %v26256_v34 = vld [vmem:[%s34457_s7 + $0xd0c] ss:$16 sps:$4 sm:$0xff]   ;;  %v26251_v15 = vld [vmem:[%s34457_s7 + $0xd00] ss:$16 sps:$4 sm:$0xff]  }
 0x956   :  { %16556 = vmatprep.subr.bf16.mxu1 %v26202_v49  ;;  %v26254_v49 = vld [vmem:[%s34457_s7 + $0xd08] ss:$16 sps:$4 sm:$0xff]  }
 0x958   :  { %16435 = vmatpush1.bf16.msra.mxu0 %v26197_v41  ;;  %v26259_v41 = vld [vmem:[%s34457_s7 + $0xd24] ss:$16 sps:$4 sm:$0xff]  }
 0x959   :  { %16557 = vmatpush1.bf16.msra.mxu1 %v26200_v39  ;;  %17484 = vmatprep.subr.bf16.mxu0 %v26205_v23  ;;  %v26262_v39 = vld [vmem:[%s34457_s7 + $0xd2c] ss:$16 sps:$4 sm:$0xff]  }
 0x95a   :  { %17606 = vmatprep.subr.bf16.mxu1 %v26208_v20 }
 0x95b   :  { %16437 = vmatmul.mubr.bf16.vlgmr.msra.gmra.mrb[124].mxu0 %v15679_v26 }
 0x95c   :  { %16559 = vmatmul.mubr.bf16.vlgmr.msra.gmra.mrb[124].mxu1 %v15679_v26  ;;  %16446 = vmatprep.mubr.bf16.mxu0 %v15690_v16  ;;  %v26257_v26 = vld [vmem:[%s34457_s7 + $0xd20] ss:$16 sps:$4 sm:$0xff]  }
 0x95d   :  { %16568 = vmatprep.mubr.bf16.mxu1 %v15690_v16  ;;  %17485 = vmatpush1.bf16.msra.mxu0 %v26203_v55 }
 0x95e   :  { %17607 = vmatpush1.bf16.msra.mxu1 %v26206_v7  ;;  %17486 = vmatprep.subr.bf16.mxu0 %v26211_v59 }
 0x95f   :  { %17608 = vmatprep.subr.bf16.mxu1 %v26214_v5  ;;  %v26265_v5 = vld [vmem:[%s34457_s7 + $0xd44] ss:$16 sps:$4 sm:$0xff]  }
 0x961   :  { %17487 = vmatpush1.bf16.msra.mxu0 %v26209_v60 }
 0x962   :  { %17609 = vmatpush1.bf16.msra.mxu1 %v26212_v4  ;;  %17488 = vmatprep.subr.bf16.mxu0 %v26217_v45  ;;  %v26271_v45 = vld [vmem:[%s34457_s7 + $0xd64] ss:$16 sps:$4 sm:$0xff]  }
 0x963   :  { %16447 = vmatmul.mubr.bf16.gmra.mrb[128].mxu0 %v15688_v28  ;;  %17610 = vmatprep.subr.bf16.mxu1 %v26220_v40  ;;  %v26274_v40 = vld [vmem:[%s34457_s7 + $0xd6c] ss:$16 sps:$4 sm:$0xff]  }
 0x964   :  { %16569 = vmatmul.mubr.bf16.gmra.mrb[128].mxu1 %v15688_v28  ;;  %16456 = vmatprep.mubr.bf16.mxu0 %v15689_v24  ;;  %v26272_v28 = vld [vmem:[%s34457_s7 + $0xd68] ss:$16 sps:$4 sm:$0xff]  }
 0x965   :  { %16578 = vmatprep.mubr.bf16.mxu1 %v15689_v24  ;;  %17489 = vmatpush1.bf16.msra.mxu0 %v26215_v11  ;;  %v26269_v11 = vld [vmem:[%s34457_s7 + $0xd60] ss:$16 sps:$4 sm:$0xff]  }
 0x966   :  { %17611 = vmatpush1.bf16.msra.mxu1 %v26218_v63  ;;  %17490 = vmatprep.subr.bf16.mxu0 %v26223_v22  ;;  %v26277_v63 = vld [vmem:[%s34457_s7 + $0xd84] ss:$16 sps:$4 sm:$0xff]   ;;  %v26280_v22 = vld [vmem:[%s34457_s7 + $0xd8c] ss:$16 sps:$4 sm:$0xff]  }
 0x967   :  { %17612 = vmatprep.subr.bf16.mxu1 %v26226_v58  ;;  %v26275_v58 = vld [vmem:[%s34457_s7 + $0xd80] ss:$16 sps:$4 sm:$0xff]  }
 0x969   :  { %17491 = vmatpush1.bf16.msra.mxu0 %v26221_v27  ;;  %v16607_v27 = vld [vmem:[#allocation3 + $0x40] sm:$0xff] }
 0x96a   :  { %17613 = vmatpush1.bf16.msra.mxu1 %v26224_v0  ;;  %17492 = vmatprep.subr.bf16.mxu0 %v26229_v43  ;;  %v26278_v0 = vld [vmem:[%s34457_s7 + $0xd88] ss:$16 sps:$4 sm:$0xff]   ;;  %v26283_v43 = vld [vmem:[%s34457_s7 + $0xda4] ss:$16 sps:$4 sm:$0xff]  }
 0x96b   :  { %16457 = vmatmul.mubr.bf16.gmra.mrb[152].mxu0 %v15687_v19  ;;  %17614 = vmatprep.subr.bf16.mxu1 %v26232_v10  ;;  %v26286_v10 = vld [vmem:[%s34457_s7 + $0xdac] ss:$16 sps:$4 sm:$0xff]  }
 0x96c   :  { %16579 = vmatmul.mubr.bf16.gmra.mrb[152].mxu1 %v15687_v19  ;;  %17516 = vmatprep.mubr.bf16.mxu0 %v32348_v9  ;;  %v26266_v19 = vld [vmem:[%s34457_s7 + $0xd48] ss:$16 sps:$4 sm:$0xff]  }
 0x96d   :  { %17493 = vmatpush1.bf16.msra.mxu0 %v26227_v38  ;;  %17638 = vmatprep.mubr.bf16.mxu1 %v32348_v9  ;;  %v26239_v9 = vld [vmem:[%s34457_s7 + $0xcc0] ss:$16 sps:$4 sm:$0xff]   ;;  %v33512_v38 = vcombine.high %v16607_v27, %v16607_v27 }
 0x96e   :  { %17615 = vmatpush1.bf16.msra.mxu1 %v26230_v8  ;;  %17494 = vmatprep.subr.bf16.mxu0 %v26235_v42  ;;  %v26281_v8 = vld [vmem:[%s34457_s7 + $0xda0] ss:$16 sps:$4 sm:$0xff]   ;;  %v26284_v42 = vld [vmem:[%s34457_s7 + $0xda8] ss:$16 sps:$4 sm:$0xff]  }
 0x96f   :  { %17616 = vmatprep.subr.bf16.mxu1 %v26238_v50  ;;  %v26289_v50 = vld [vmem:[%s34457_s7 + $0xdc4] ss:$16 sps:$4 sm:$0xff]  }
 0x971   :  { %17495 = vmatpush1.bf16.msra.mxu0 %v26233_v57  ;;  %v26292_v57 = vld [vmem:[%s34457_s7 + $0xdcc] ss:$16 sps:$4 sm:$0xff]  }
 0x972   :  { %17617 = vmatpush1.bf16.msra.mxu1 %v26236_v13  ;;  %17496 = vmatprep.subr.bf16.mxu0 %v26241_v29  ;;  %v16806_v13 = vshrl.u32 %v33512_v38, 16  ;;  %v16809_v29 = vshll.u32 %v33512_v38, 16 }
 0x973   :  { %17618 = vmatprep.subr.bf16.mxu1 %v26244_v6  ;;  %v26287_v6 = vld [vmem:[%s34457_s7 + $0xdc0] ss:$16 sps:$4 sm:$0xff]  }
 0x975   :  { %17497 = vmatpush1.bf16.msra.mxu0 %v26239_v9  ;;  %v26290_v9 = vld [vmem:[%s34457_s7 + $0xdc8] ss:$16 sps:$4 sm:$0xff]  }
 0x976   :  { %17619 = vmatpush1.bf16.msra.mxu1 %v26242_v37  ;;  %17498 = vmatprep.subr.bf16.mxu0 %v26247_v2  ;;  %v26295_v37 = vld [vmem:[%s34457_s7 + $0xde4] ss:$16 sps:$4 sm:$0xff]   ;;  %v26298_v2 = vld [vmem:[%s34457_s7 + $0xdec] ss:$16 sps:$4 sm:$0xff]  }
 0x977   :  { %17620 = vmatprep.subr.bf16.mxu1 %v26250_v17  ;;  %v33540_v17 = vcombine.low %v16607_v27, %v16607_v27  ;;  %v26333_v27 = vld [vmem:[%s34457_s7 + $0xea4] ss:$16 sps:$4 sm:$0xff]  }
 0x979   :  { %17499 = vmatpush1.bf16.msra.mxu0 %v26245_v14  ;;  %v16808_v14 = vrot.slane %v16806_v13, 1  ;;  %v26348_v13 = vld [vmem:[%s34457_s7 + $0xeec] ss:$16 sps:$4 sm:$0xff]  }
 0x97a   :  { %17621 = vmatpush1.bf16.msra.mxu1 %v26248_v31  ;;  %17500 = vmatprep.subr.bf16.mxu0 %v26253_v61  ;;  %v16811_v31 = vrot.slane %v16809_v29, 2  ;;  %v26293_v61 = vld [vmem:[%s34457_s7 + $0xde0] ss:$16 sps:$4 sm:$0xff]  }
 0x97b   :  { %17622 = vmatprep.subr.bf16.mxu1 %v26256_v34  ;;  %v26296_v34 = vld [vmem:[%s34457_s7 + $0xde8] ss:$16 sps:$4 sm:$0xff]   ;;  %v26343_v29 = vld [vmem:[%s34457_s7 + $0xee0] ss:$16 sps:$4 sm:$0xff]  }
 0x97c   :  { %v15340_v23 = vpop.f32.mrb[140].mxu0  ;;  %v15462_v47 = vpop.f32.mrb[140].mxu1 }
 0x97d   :  { %17501 = vmatpush1.bf16.msra.mxu0 %v26251_v15  ;;  %v33453_v20 = vadd.f32 %v15340_v23, %v33238_v1  ;;  %v33456_v24 = vadd.f32 %v15462_v47, %v33241_v21  ;;  %v15342_v18 = vpop.f32.mrb[141].mxu0  ;;  %v15464_v55 = vpop.f32.mrb[141].mxu1  ;;  %v26260_v1 = vld [vmem:[%s34457_s7 + $0xd28] ss:$16 sps:$4 sm:$0xff]   ;;  %v26301_v15 = vld [vmem:[%s34457_s7 + $0xe04] ss:$16 sps:$4 sm:$0xff]   ;;  %v16812_v23 = vor.u32 %v16811_v31, %v16808_v14 }
 0x97e   :  { %17623 = vmatpush1.bf16.msra.mxu1 %v26254_v49  ;;  %v33462_v7 = vadd.f32 %v15342_v18, %v33247_v25  ;;  %v33465_v59 = vadd.f32 %v15464_v55, %v33250_v44  ;;  %17502 = vmatprep.subr.bf16.mxu0 %v26259_v41  ;;  %v15344_v21 = vpop.f32.mrb[142].mxu0  ;;  %v15466_v16 = vpop.f32.mrb[142].mxu1  ;;  %v26268_v25 = vld [vmem:[%s34457_s7 + $0xd4c] ss:$16 sps:$4 sm:$0xff]   ;;  %v26263_v44 = vld [vmem:[%s34457_s7 + $0xd40] ss:$16 sps:$4 sm:$0xff]  }
 0x97f   :  { %17624 = vmatprep.subr.bf16.mxu1 %v26262_v39  ;;  %v15345_v60 = vpop.f32.mrb[143].mxu0  ;;  %v15467_v4 = vpop.f32.mrb[143].mxu1  ;;  %v26304_v49 = vld [vmem:[%s34457_s7 + $0xe0c] ss:$16 sps:$4 sm:$0xff]   ;;  %v16797_v41 = vshrl.u32 %v33540_v17, 16  ;;  %v16800_v39 = vshll.u32 %v33540_v17, 16  ;;  %v16813_v21 = vsel %vm1158_vm8, %v32311_v12, %v16812_v23 }
 0x980   :  { %v26299_v47 = vld [vmem:[%s34457_s7 + $0xe00] ss:$16 sps:$4 sm:$0xff]   ;;  %v26302_v18 = vld [vmem:[%s34457_s7 + $0xe08] ss:$16 sps:$4 sm:$0xff]   ;;  %v26308_v55 = vld [vmem:[%s34457_s7 + $0xe24] ss:$16 sps:$4 sm:$0xff]  }
 0x981   :  { %17503 = vmatpush1.bf16.msra.mxu0 %v26257_v26  ;;  %v16799_v26 = vrot.slane %v16797_v41, 1  ;;  %v26311_v16 = vld [vmem:[%s34457_s7 + $0xe2c] ss:$16 sps:$4 sm:$0xff]   ;;  %v26309_v60 = vld [vmem:[%s34457_s7 + $0xe28] ss:$16 sps:$4 sm:$0xff]  }
 0x982   :  { %17625 = vmatpush1.bf16.msra.mxu1 %v26260_v1  ;;  %17504 = vmatprep.subr.bf16.mxu0 %v26265_v5  ;;  %v16802_v1 = vrot.slane %v16800_v39, 2  ;;  %v26306_v5 = vld [vmem:[%s34457_s7 + $0xe20] ss:$16 sps:$4 sm:$0xff]   ;;  %v26315_v4 = vld [vmem:[%s34457_s7 + $0xe44] ss:$16 sps:$4 sm:$0xff]  }
 0x983   :  { %17626 = vmatprep.subr.bf16.mxu1 %v26268_v25  ;;  %v26313_v25 = vld [vmem:[%s34457_s7 + $0xe40] ss:$16 sps:$4 sm:$0xff]   ;;  %v26352_v14 = vld [vmem:[%s34457_s7 + $0xf08] ss:$16 sps:$4 sm:$0xff]   ;;  %v26357_v31 = vld [vmem:[%s34457_s7 + $0xf24] ss:$16 sps:$4 sm:$0xff]  }
 0x984   :  { %v16803_v12 = vor.u32 %v16802_v1, %v16799_v26 }
 0x985   :  { %17505 = vmatpush1.bf16.msra.mxu0 %v26263_v44 }
 0x986   :  { %17627 = vmatpush1.bf16.msra.mxu1 %v26266_v19  ;;  %17506 = vmatprep.subr.bf16.mxu0 %v26271_v45  ;;  %v16804_v44 = vsel %vm1158_vm8, %v32351_v30, %v16803_v12  ;;  %v26316_v19 = vld [vmem:[%s34457_s7 + $0xe48] ss:$16 sps:$4 sm:$0xff]   ;;  %v26321_v45 = vld [vmem:[%s34457_s7 + $0xe64] ss:$16 sps:$4 sm:$0xff]   ;;  %v26319_v30 = vld [vmem:[%s34457_s7 + $0xe60] ss:$16 sps:$4 sm:$0xff]  }
 0x987   :  { %17628 = vmatprep.subr.bf16.mxu1 %v26274_v40  ;;  %v26324_v40 = vld [vmem:[%s34457_s7 + $0xe6c] ss:$16 sps:$4 sm:$0xff]  }
 0x989   :  { %17507 = vmatpush1.bf16.msra.mxu0 %v26269_v11  ;;  %v26322_v11 = vld [vmem:[%s34457_s7 + $0xe68] ss:$16 sps:$4 sm:$0xff]  }
 0x98a   :  { %17629 = vmatpush1.bf16.msra.mxu1 %v26272_v28  ;;  %17508 = vmatprep.subr.bf16.mxu0 %v26277_v63  ;;  %v26327_v28 = vld [vmem:[%s34457_s7 + $0xe84] ss:$16 sps:$4 sm:$0xff]   ;;  %v26330_v63 = vld [vmem:[%s34457_s7 + $0xe8c] ss:$16 sps:$4 sm:$0xff]  }
 0x98b   :  { %17630 = vmatprep.subr.bf16.mxu1 %v26280_v22  ;;  %v26325_v22 = vld [vmem:[%s34457_s7 + $0xe80] ss:$16 sps:$4 sm:$0xff]  }
 0x98d   :  { %17509 = vmatpush1.bf16.msra.mxu0 %v26275_v58  ;;  %v26328_v58 = vld [vmem:[%s34457_s7 + $0xe88] ss:$16 sps:$4 sm:$0xff]  }
 0x98e   :  { %17631 = vmatpush1.bf16.msra.mxu1 %v26278_v0  ;;  %17510 = vmatprep.subr.bf16.mxu0 %v26283_v43  ;;  %v26336_v0 = vld [vmem:[%s34457_s7 + $0xeac] ss:$16 sps:$4 sm:$0xff]   ;;  %v26331_v43 = vld [vmem:[%s34457_s7 + $0xea0] ss:$16 sps:$4 sm:$0xff]  }
 0x98f   :  { %17632 = vmatprep.subr.bf16.mxu1 %v26286_v10  ;;  %v26334_v10 = vld [vmem:[%s34457_s7 + $0xea8] ss:$16 sps:$4 sm:$0xff]  }
 0x991   :  { %17511 = vmatpush1.bf16.msra.mxu0 %v26281_v8  ;;  %v26339_v8 = vld [vmem:[%s34457_s7 + $0xec4] ss:$16 sps:$4 sm:$0xff]  }
 0x992   :  { %17633 = vmatpush1.bf16.msra.mxu1 %v26284_v42  ;;  %17512 = vmatprep.subr.bf16.mxu0 %v26289_v50  ;;  %v26342_v42 = vld [vmem:[%s34457_s7 + $0xecc] ss:$16 sps:$4 sm:$0xff]   ;;  %v26340_v50 = vld [vmem:[%s34457_s7 + $0xec8] ss:$16 sps:$4 sm:$0xff]  }
 0x993   :  { %17634 = vmatprep.subr.bf16.mxu1 %v26292_v57  ;;  %v26345_v57 = vld [vmem:[%s34457_s7 + $0xee4] ss:$16 sps:$4 sm:$0xff]  }
 0x995   :  { %17513 = vmatpush1.bf16.msra.mxu0 %v26287_v6  ;;  %v26346_v6 = vld [vmem:[%s34457_s7 + $0xee8] ss:$16 sps:$4 sm:$0xff]  }
 0x996   :  { %17635 = vmatpush1.bf16.msra.mxu1 %v26290_v9  ;;  %17514 = vmatprep.subr.bf16.mxu0 %v26295_v37  ;;  %v26351_v9 = vld [vmem:[%s34457_s7 + $0xf04] ss:$16 sps:$4 sm:$0xff]   ;;  %v26354_v37 = vld [vmem:[%s34457_s7 + $0xf0c] ss:$16 sps:$4 sm:$0xff]  }
 0x997   :  { %17636 = vmatprep.subr.bf16.mxu1 %v26298_v2  ;;  %v26349_v2 = vld [vmem:[%s34457_s7 + $0xf00] ss:$16 sps:$4 sm:$0xff]  }
 0x999   :  { %17515 = vmatpush1.bf16.msra.mxu0 %v26293_v61 }
 0x99a   :  { %17637 = vmatpush1.bf16.msra.mxu1 %v26296_v34  ;;  %17545 = vmatprep.subr.bf16.mxu0 %v26301_v15  ;;  %v26360_v34 = vld [vmem:[%s34457_s7 + $0xf2c] ss:$16 sps:$4 sm:$0xff]  }
 0x99b   :  { %17667 = vmatprep.subr.bf16.mxu1 %v26304_v49 }
 0x99c   :  { %17517 = vmatmul.mubr.bf16.vlgmr.msra.gmra.mrb[124].mxu0 %v32368_v46 }
 0x99d   :  { %17639 = vmatmul.mubr.bf16.vlgmr.msra.gmra.mrb[124].mxu1 %v32368_v46  ;;  %17526 = vmatprep.mubr.bf16.mxu0 %v16813_v21  ;;  %v26318_v46 = vld [vmem:[%s34457_s7 + $0xe4c] ss:$16 sps:$4 sm:$0xff]  }
 0x99e   :  { %17546 = vmatpush1.bf16.msra.mxu0 %v26299_v47  ;;  %17648 = vmatprep.mubr.bf16.mxu1 %v16813_v21 }
 0x99f   :  { %17668 = vmatpush1.bf16.msra.mxu1 %v26302_v18  ;;  %17547 = vmatprep.subr.bf16.mxu0 %v26308_v55  ;;  %v26355_v18 = vld [vmem:[%s34457_s7 + $0xf20] ss:$16 sps:$4 sm:$0xff]  }
 0x9a0   :  { %17669 = vmatprep.subr.bf16.mxu1 %v26311_v16  ;;  %v26366_v16 = vld [vmem:[%s34457_s7 + $0xf4c] ss:$16 sps:$4 sm:$0xff]  }
 0x9a2   :  { %17548 = vmatpush1.bf16.msra.mxu0 %v26306_v5  ;;  %v26364_v5 = vld [vmem:[%s34457_s7 + $0xf48] ss:$16 sps:$4 sm:$0xff]  }
 0x9a3   :  { %17670 = vmatpush1.bf16.msra.mxu1 %v26309_v60  ;;  %17549 = vmatprep.subr.bf16.mxu0 %v26315_v4  ;;  %v26369_v60 = vld [vmem:[%s34457_s7 + $0xf64] ss:$16 sps:$4 sm:$0xff]   ;;  %v26367_v4 = vld [vmem:[%s34457_s7 + $0xf60] ss:$16 sps:$4 sm:$0xff]  }
 0x9a4   :  { %17527 = vmatmul.mubr.bf16.gmra.mrb[128].mxu0 %v16804_v44  ;;  %17671 = vmatprep.subr.bf16.mxu1 %v26318_v46  ;;  %v26370_v46 = vld [vmem:[%s34457_s7 + $0xf68] ss:$16 sps:$4 sm:$0xff]  }
 0x9a5   :  { %17649 = vmatmul.mubr.bf16.gmra.mrb[128].mxu1 %v16804_v44  ;;  %17536 = vmatprep.mubr.bf16.mxu0 %v16812_v23  ;;  %v26378_v44 = vld [vmem:[%s34457_s7 + $0xf8c] ss:$16 sps:$4 sm:$0xff]  }
 0x9a6   :  { %17550 = vmatpush1.bf16.msra.mxu0 %v26313_v25  ;;  %17658 = vmatprep.mubr.bf16.mxu1 %v16812_v23  ;;  %v26375_v25 = vld [vmem:[%s34457_s7 + $0xf84] ss:$16 sps:$4 sm:$0xff]  }
 0x9a7   :  { %17672 = vmatpush1.bf16.msra.mxu1 %v26316_v19  ;;  %17551 = vmatprep.subr.bf16.mxu0 %v26321_v45  ;;  %v26373_v19 = vld [vmem:[%s34457_s7 + $0xf80] ss:$16 sps:$4 sm:$0xff]  }
 0x9a8   :  { %17673 = vmatprep.subr.bf16.mxu1 %v26324_v40  ;;  %v16608_v45 = vld [vmem:[#allocation3 + $0x48] sm:$0xff]  ;;  %v26376_v40 = vld [vmem:[%s34457_s7 + $0xf88] ss:$16 sps:$4 sm:$0xff]  }
 0x9aa   :  { %17552 = vmatpush1.bf16.msra.mxu0 %v26319_v30  ;;  %v26381_v30 = vld [vmem:[%s34457_s7 + $0xfa4] ss:$16 sps:$4 sm:$0xff]  }
 0x9ab   :  { %17674 = vmatpush1.bf16.msra.mxu1 %v26322_v11  ;;  %17553 = vmatprep.subr.bf16.mxu0 %v26327_v28  ;;  %v26384_v11 = vld [vmem:[%s34457_s7 + $0xfac] ss:$16 sps:$4 sm:$0xff]   ;;  %v33732_v28 = vcombine.high %v16608_v45, %v16608_v45 }
 0x9ac   :  { %17537 = vmatmul.mubr.bf16.gmra.mrb[156].mxu0 %v16803_v12  ;;  %17675 = vmatprep.subr.bf16.mxu1 %v26330_v63  ;;  %v26379_v63 = vld [vmem:[%s34457_s7 + $0xfa0] ss:$16 sps:$4 sm:$0xff]  }
 0x9ad   :  { %17659 = vmatmul.mubr.bf16.gmra.mrb[156].mxu1 %v16803_v12  ;;  %17577 = vmatprep.mubr.bf16.mxu0 %v32396_v62  ;;  %v26372_v12 = vld [vmem:[%s34457_s7 + $0xf6c] ss:$16 sps:$4 sm:$0xff]  }
 0x9ae   :  { %17554 = vmatpush1.bf16.msra.mxu0 %v26325_v22  ;;  %17699 = vmatprep.mubr.bf16.mxu1 %v32396_v62  ;;  %v26337_v62 = vld [vmem:[%s34457_s7 + $0xec0] ss:$16 sps:$4 sm:$0xff]   ;;  %v26382_v22 = vld [vmem:[%s34457_s7 + $0xfa8] ss:$16 sps:$4 sm:$0xff]  }
 0x9af   :  { %17676 = vmatpush1.bf16.msra.mxu1 %v26328_v58  ;;  %17555 = vmatprep.subr.bf16.mxu0 %v26333_v27  ;;  %v26387_v58 = vld [vmem:[%s34457_s7 + $0xfc4] ss:$16 sps:$4 sm:$0xff]   ;;  %v26390_v27 = vld [vmem:[%s34457_s7 + $0xfcc] ss:$16 sps:$4 sm:$0xff]  }
 0x9b0   :  { %17677 = vmatprep.subr.bf16.mxu1 %v26336_v0  ;;  %v16824_v0 = vshrl.u32 %v33732_v28, 16 }
 0x9b2   :  { %17556 = vmatpush1.bf16.msra.mxu0 %v26331_v43  ;;  %v16827_v43 = vshll.u32 %v33732_v28, 16 }
 0x9b3   :  { %17678 = vmatpush1.bf16.msra.mxu1 %v26334_v10  ;;  %17557 = vmatprep.subr.bf16.mxu0 %v26339_v8  ;;  %v26385_v10 = vld [vmem:[%s34457_s7 + $0xfc0] ss:$16 sps:$4 sm:$0xff]   ;;  %v26388_v8 = vld [vmem:[%s34457_s7 + $0xfc8] ss:$16 sps:$4 sm:$0xff]  }
 0x9b4   :  { %17679 = vmatprep.subr.bf16.mxu1 %v26342_v42  ;;  %v26393_v42 = vld [vmem:[%s34457_s7 + $0xfe4] ss:$16 sps:$4 sm:$0xff]  }
 0x9b6   :  { %17558 = vmatpush1.bf16.msra.mxu0 %v26337_v62  ;;  %v26396_v62 = vld [vmem:[%s34457_s7 + $0xfec] ss:$16 sps:$4 sm:$0xff]  }
 0x9b7   :  { %17680 = vmatpush1.bf16.msra.mxu1 %v26340_v50  ;;  %17559 = vmatprep.subr.bf16.mxu0 %v26345_v57  ;;  %v33760_v50 = vcombine.low %v16608_v45, %v16608_v45  ;;  %v16826_v57 = vrot.slane %v16824_v0, 1  ;;  %v26423_v45 = vld [vmem:[%s34457_s7 + $0x1080] ss:$16 sps:$4 sm:$0xff]   ;;  %v26437_v0 = vld [vmem:[%s34457_s7 + $0x10c4] ss:$16 sps:$4 sm:$0xff]  }
 0x9b8   :  { %17681 = vmatprep.subr.bf16.mxu1 %v26348_v13  ;;  %v16829_v13 = vrot.slane %v16827_v43, 2  ;;  %v26440_v43 = vld [vmem:[%s34457_s7 + $0x10cc] ss:$16 sps:$4 sm:$0xff]  }
 0x9ba   :  { %17560 = vmatpush1.bf16.msra.mxu0 %v26343_v29  ;;  %v26391_v29 = vld [vmem:[%s34457_s7 + $0xfe0] ss:$16 sps:$4 sm:$0xff]  }
 0x9bb   :  { %17682 = vmatpush1.bf16.msra.mxu1 %v26346_v6  ;;  %17561 = vmatprep.subr.bf16.mxu0 %v26351_v9  ;;  %v26394_v6 = vld [vmem:[%s34457_s7 + $0xfe8] ss:$16 sps:$4 sm:$0xff]   ;;  %v26399_v9 = vld [vmem:[%s34457_s7 + $0x1004] ss:$16 sps:$4 sm:$0xff]  }
 0x9bc   :  { %17683 = vmatprep.subr.bf16.mxu1 %v26354_v37  ;;  %v15401_v61 = vpop.f32.mrb[144].mxu0  ;;  %v26402_v37 = vld [vmem:[%s34457_s7 + $0x100c] ss:$16 sps:$4 sm:$0xff]  }
 0x9bd   :  { %v33673_v15 = vadd.f32 %v15401_v61, %v33453_v20  ;;  %v15523_v49 = vpop.f32.mrb[144].mxu1  ;;  %v15403_v41 = vpop.f32.mrb[145].mxu0  ;;  %v26358_v20 = vld [vmem:[%s34457_s7 + $0xf28] ss:$16 sps:$4 sm:$0xff]   ;;  %v26397_v61 = vld [vmem:[%s34457_s7 + $0x1000] ss:$16 sps:$4 sm:$0xff]  }
 0x9be   :  { %17562 = vmatpush1.bf16.msra.mxu0 %v26349_v2  ;;  %v33676_v39 = vadd.f32 %v15523_v49, %v33456_v24  ;;  %v33679_v23 = vadd.f32 %v15403_v41, %v33462_v7  ;;  %v15525_v47 = vpop.f32.mrb[145].mxu1  ;;  %v15405_v55 = vpop.f32.mrb[146].mxu0  ;;  %v26363_v7 = vld [vmem:[%s34457_s7 + $0xf44] ss:$16 sps:$4 sm:$0xff]   ;;  %v16815_v2 = vshrl.u32 %v33760_v50, 16 }
 0x9bf   :  { %17684 = vmatpush1.bf16.msra.mxu1 %v26352_v14  ;;  %v33685_v26 = vadd.f32 %v15525_v47, %v33465_v59  ;;  %17563 = vmatprep.subr.bf16.mxu0 %v26357_v31  ;;  %v15527_v24 = vpop.f32.mrb[146].mxu1  ;;  %v15406_v1 = vpop.f32.mrb[147].mxu0  ;;  %v26361_v59 = vld [vmem:[%s34457_s7 + $0xf40] ss:$16 sps:$4 sm:$0xff]   ;;  %v16818_v14 = vshll.u32 %v33760_v50, 16  ;;  %v16830_v31 = vor.u32 %v16829_v13, %v16826_v57 }
 0x9c0   :  { %17685 = vmatprep.subr.bf16.mxu1 %v26360_v34  ;;  %v15528_v21 = vpop.f32.mrb[147].mxu1  ;;  %v26400_v34 = vld [vmem:[%s34457_s7 + $0x1008] ss:$16 sps:$4 sm:$0xff]   ;;  %v26406_v49 = vld [vmem:[%s34457_s7 + $0x1024] ss:$16 sps:$4 sm:$0xff]   ;;  %v16817_v41 = vrot.slane %v16815_v2, 1 }
 0x9c1   :  { %v16820_v47 = vrot.slane %v16818_v14, 2  ;;  %v26409_v55 = vld [vmem:[%s34457_s7 + $0x102c] ss:$16 sps:$4 sm:$0xff]   ;;  %v26407_v24 = vld [vmem:[%s34457_s7 + $0x1028] ss:$16 sps:$4 sm:$0xff]  }
 0x9c2   :  { %17564 = vmatpush1.bf16.msra.mxu0 %v26355_v18  ;;  %v16831_v18 = vsel %vm1158_vm8, %v32370_v52, %v16830_v31  ;;  %v26413_v1 = vld [vmem:[%s34457_s7 + $0x1044] ss:$16 sps:$4 sm:$0xff]   ;;  %v26441_v57 = vld [vmem:[%s34457_s7 + $0x10e0] ss:$16 sps:$4 sm:$0xff]   ;;  %v26444_v13 = vld [vmem:[%s34457_s7 + $0x10e8] ss:$16 sps:$4 sm:$0xff]  }
 0x9c3   :  { %17686 = vmatpush1.bf16.msra.mxu1 %v26358_v20  ;;  %17565 = vmatprep.subr.bf16.mxu0 %v26363_v7  ;;  %v26404_v20 = vld [vmem:[%s34457_s7 + $0x1020] ss:$16 sps:$4 sm:$0xff]   ;;  %v16821_v52 = vor.u32 %v16820_v47, %v16817_v41  ;;  %v26455_v2 = vld [vmem:[%s34457_s7 + $0x1124] ss:$16 sps:$4 sm:$0xff]  }
 0x9c4   :  { %17687 = vmatprep.subr.bf16.mxu1 %v26366_v16  ;;  %v26411_v7 = vld [vmem:[%s34457_s7 + $0x1040] ss:$16 sps:$4 sm:$0xff]   ;;  %v26414_v16 = vld [vmem:[%s34457_s7 + $0x1048] ss:$16 sps:$4 sm:$0xff]  }
 0x9c5   :  { %v16822_v21 = vsel %vm1158_vm8, %v32386_v54, %v16821_v52  ;;  %v26417_v54 = vld [vmem:[%s34457_s7 + $0x1060] ss:$16 sps:$4 sm:$0xff]  }
 0x9c6   :  { %17566 = vmatpush1.bf16.msra.mxu0 %v26361_v59  ;;  %v26419_v59 = vld [vmem:[%s34457_s7 + $0x1064] ss:$16 sps:$4 sm:$0xff]   ;;  %v26453_v41 = vld [vmem:[%s34457_s7 + $0x1120] ss:$16 sps:$4 sm:$0xff]  }
 0x9c7   :  { %17688 = vmatpush1.bf16.msra.mxu1 %v26364_v5  ;;  %17567 = vmatprep.subr.bf16.mxu0 %v26369_v60  ;;  %v33815_v5 = vld [vmem:[#allocation3] sm:$0xcc]  ;;  %v26422_v60 = vld [vmem:[%s34457_s7 + $0x106c] ss:$16 sps:$4 sm:$0xff]  }
 0x9c8   :  { %17689 = vmatprep.subr.bf16.mxu1 %v26372_v12  ;;  %v33823_v12 = vld [vmem:[#allocation3 + $0x10] sm:$0xff] }
 0x9ca   :  { %17568 = vmatpush1.bf16.msra.mxu0 %v26367_v4  ;;  %v22754_v4 = vcombine.high %v33815_v5, %v33823_v12 }
 0x9cb   :  { %17690 = vmatpush1.bf16.msra.mxu1 %v26370_v46  ;;  %17569 = vmatprep.subr.bf16.mxu0 %v26375_v25  ;;  %v26420_v46 = vld [vmem:[%s34457_s7 + $0x1068] ss:$16 sps:$4 sm:$0xff]   ;;  %v26425_v25 = vld [vmem:[%s34457_s7 + $0x1084] ss:$16 sps:$4 sm:$0xff]  }
 0x9cc   :  { %17691 = vmatprep.subr.bf16.mxu1 %v26378_v44  ;;  %v26428_v44 = vld [vmem:[%s34457_s7 + $0x108c] ss:$16 sps:$4 sm:$0xff]  }
 0x9ce   :  { %17570 = vmatpush1.bf16.msra.mxu0 %v26373_v19  ;;  %v17893_v19 = vrot.slane %v32190_v48, 2  ;;  %v26504_v48 = vld [vmem:[%s34457_s7 + $0x1228] ss:$16 sps:$4 sm:$0xff]  }
 0x9cf   :  { %17692 = vmatpush1.bf16.msra.mxu1 %v26376_v40  ;;  %17571 = vmatprep.subr.bf16.mxu0 %v26381_v30  ;;  %v17892_v40 = vrot.slane %v22754_v4, 2  ;;  %v26426_v30 = vld [vmem:[%s34457_s7 + $0x1088] ss:$16 sps:$4 sm:$0xff]   ;;  %v26476_v4 = vld [vmem:[%s34457_s7 + $0x118c] ss:$16 sps:$4 sm:$0xff]  }
 0x9d0   :  { %17693 = vmatprep.subr.bf16.mxu1 %v26384_v11  ;;  %v26431_v11 = vld [vmem:[%s34457_s7 + $0x10a4] ss:$16 sps:$4 sm:$0xff]  }
 0x9d2   :  { %17572 = vmatpush1.bf16.msra.mxu0 %v26379_v63  ;;  %v17894_v63 = vsel %vm1522_vm9, %v17892_v40, %v17893_v19  ;;  %v26477_v40 = vld [vmem:[%s34457_s7 + $0x11a0] ss:$16 sps:$4 sm:$0xff]  }
 0x9d3   :  { %17694 = vmatpush1.bf16.msra.mxu1 %v26382_v22  ;;  %17573 = vmatprep.subr.bf16.mxu0 %v26387_v58  ;;  %v26434_v22 = vld [vmem:[%s34457_s7 + $0x10ac] ss:$16 sps:$4 sm:$0xff]   ;;  %v26429_v58 = vld [vmem:[%s34457_s7 + $0x10a0] ss:$16 sps:$4 sm:$0xff]  }
 0x9d4   :  { %17695 = vmatprep.subr.bf16.mxu1 %v26390_v27  ;;  %v26432_v27 = vld [vmem:[%s34457_s7 + $0x10a8] ss:$16 sps:$4 sm:$0xff]  }
 0x9d6   :  { %17574 = vmatpush1.bf16.msra.mxu0 %v26385_v10  ;;  %v26435_v10 = vld [vmem:[%s34457_s7 + $0x10c0] ss:$16 sps:$4 sm:$0xff]  }
 0x9d7   :  { %17696 = vmatpush1.bf16.msra.mxu1 %v26388_v8  ;;  %17575 = vmatprep.subr.bf16.mxu0 %v26393_v42  ;;  %v26438_v8 = vld [vmem:[%s34457_s7 + $0x10c8] ss:$16 sps:$4 sm:$0xff]   ;;  %v26443_v42 = vld [vmem:[%s34457_s7 + $0x10e4] ss:$16 sps:$4 sm:$0xff]  }
 0x9d8   :  { %17697 = vmatprep.subr.bf16.mxu1 %v26396_v62  ;;  %v26446_v62 = vld [vmem:[%s34457_s7 + $0x10ec] ss:$16 sps:$4 sm:$0xff]  }
 0x9da   :  { %17576 = vmatpush1.bf16.msra.mxu0 %v26391_v29  ;;  %v26449_v29 = vld [vmem:[%s34457_s7 + $0x1104] ss:$16 sps:$4 sm:$0xff]  }
 0x9db   :  { %17698 = vmatpush1.bf16.msra.mxu1 %v26394_v6  ;;  %18561 = vmatprep.subr.bf16.mxu0 %v26399_v9  ;;  %v26452_v6 = vld [vmem:[%s34457_s7 + $0x110c] ss:$16 sps:$4 sm:$0xff]   ;;  %v26447_v9 = vld [vmem:[%s34457_s7 + $0x1100] ss:$16 sps:$4 sm:$0xff]  }
 0x9dc   :  { %18683 = vmatprep.subr.bf16.mxu1 %v26402_v37  ;;  %v26450_v37 = vld [vmem:[%s34457_s7 + $0x1108] ss:$16 sps:$4 sm:$0xff]  }
 0x9dd   :  { %17578 = vmatmul.mubr.bf16.vlgmr.msra.gmra.mrb[124].mxu0 %v32400_v56 }
 0x9de   :  { %17700 = vmatmul.mubr.bf16.vlgmr.msra.gmra.mrb[124].mxu1 %v32400_v56  ;;  %17587 = vmatprep.mubr.bf16.mxu0 %v16831_v18  ;;  %v26416_v56 = vld [vmem:[%s34457_s7 + $0x104c] ss:$16 sps:$4 sm:$0xff]  }
 0x9df   :  { %17709 = vmatprep.mubr.bf16.mxu1 %v16831_v18  ;;  %18562 = vmatpush1.bf16.msra.mxu0 %v26397_v61  ;;  %v26456_v18 = vld [vmem:[%s34457_s7 + $0x1128] ss:$16 sps:$4 sm:$0xff]  }
 0x9e0   :  { %18684 = vmatpush1.bf16.msra.mxu1 %v26400_v34  ;;  %18563 = vmatprep.subr.bf16.mxu0 %v26406_v49 }
 0x9e1   :  { %18685 = vmatprep.subr.bf16.mxu1 %v26409_v55 }
 0x9e3   :  { %18564 = vmatpush1.bf16.msra.mxu0 %v26404_v20 }
 0x9e4   :  { %18686 = vmatpush1.bf16.msra.mxu1 %v26407_v24  ;;  %18565 = vmatprep.subr.bf16.mxu0 %v26413_v1  ;;  %v26461_v24 = vld [vmem:[%s34457_s7 + $0x1144] ss:$16 sps:$4 sm:$0xff]   ;;  %v26464_v1 = vld [vmem:[%s34457_s7 + $0x114c] ss:$16 sps:$4 sm:$0xff]  }
 0x9e5   :  { %17588 = vmatmul.mubr.bf16.gmra.mrb[128].mxu0 %v16822_v21  ;;  %18687 = vmatprep.subr.bf16.mxu1 %v26416_v56  ;;  %v26459_v56 = vld [vmem:[%s34457_s7 + $0x1140] ss:$16 sps:$4 sm:$0xff]  }
 0x9e6   :  { %17710 = vmatmul.mubr.bf16.gmra.mrb[128].mxu1 %v16822_v21  ;;  %17597 = vmatprep.mubr.bf16.mxu0 %v16830_v31  ;;  %v26467_v21 = vld [vmem:[%s34457_s7 + $0x1164] ss:$16 sps:$4 sm:$0xff]  }
 0x9e7   :  { %17719 = vmatprep.mubr.bf16.mxu1 %v16830_v31  ;;  %18566 = vmatpush1.bf16.msra.mxu0 %v26411_v7  ;;  %v26458_v31 = vld [vmem:[%s34457_s7 + $0x112c] ss:$16 sps:$4 sm:$0xff]   ;;  %v26462_v7 = vld [vmem:[%s34457_s7 + $0x1148] ss:$16 sps:$4 sm:$0xff]  }
 0x9e8   :  { %18688 = vmatpush1.bf16.msra.mxu1 %v26414_v16  ;;  %18567 = vmatprep.subr.bf16.mxu0 %v26419_v59  ;;  %v26470_v16 = vld [vmem:[%s34457_s7 + $0x116c] ss:$16 sps:$4 sm:$0xff]   ;;  %v26465_v59 = vld [vmem:[%s34457_s7 + $0x1160] ss:$16 sps:$4 sm:$0xff]  }
 0x9e9   :  { %18689 = vmatprep.subr.bf16.mxu1 %v26422_v60  ;;  %v26468_v60 = vld [vmem:[%s34457_s7 + $0x1168] ss:$16 sps:$4 sm:$0xff]  }
 0x9eb   :  { %18568 = vmatpush1.bf16.msra.mxu0 %v26417_v54  ;;  %v26473_v54 = vld [vmem:[%s34457_s7 + $0x1184] ss:$16 sps:$4 sm:$0xff]  }
 0x9ec   :  { %18690 = vmatpush1.bf16.msra.mxu1 %v26420_v46  ;;  %18569 = vmatprep.subr.bf16.mxu0 %v26425_v25  ;;  %v26471_v46 = vld [vmem:[%s34457_s7 + $0x1180] ss:$16 sps:$4 sm:$0xff]   ;;  %v26474_v25 = vld [vmem:[%s34457_s7 + $0x1188] ss:$16 sps:$4 sm:$0xff]  }
 0x9ed   :  { %17598 = vmatmul.mubr.bf16.gmra.mrb[160].mxu0 %v16821_v52  ;;  %18691 = vmatprep.subr.bf16.mxu1 %v26428_v44  ;;  %v26479_v44 = vld [vmem:[%s34457_s7 + $0x11a4] ss:$16 sps:$4 sm:$0xff]  }
 0x9ee   :  { %17720 = vmatmul.mubr.bf16.gmra.mrb[160].mxu1 %v16821_v52  ;;  %18593 = vmatprep.mubr.bf16.mxu0 %v17894_v63 }
 0x9ef   :  { %18570 = vmatpush1.bf16.msra.mxu0 %v26423_v45  ;;  %18715 = vmatprep.mubr.bf16.mxu1 %v17894_v63  ;;  %v26482_v45 = vld [vmem:[%s34457_s7 + $0x11ac] ss:$16 sps:$4 sm:$0xff]  }
 0x9f0   :  { %18692 = vmatpush1.bf16.msra.mxu1 %v26426_v30  ;;  %18571 = vmatprep.subr.bf16.mxu0 %v26431_v11  ;;  %v26480_v30 = vld [vmem:[%s34457_s7 + $0x11a8] ss:$16 sps:$4 sm:$0xff]   ;;  %v26485_v11 = vld [vmem:[%s34457_s7 + $0x11c4] ss:$16 sps:$4 sm:$0xff]   ;;  %v26488_v63 = vld [vmem:[%s34457_s7 + $0x11cc] ss:$16 sps:$4 sm:$0xff]  }
 0x9f1   :  { %18693 = vmatprep.subr.bf16.mxu1 %v26434_v22  ;;  %v26483_v22 = vld [vmem:[%s34457_s7 + $0x11c0] ss:$16 sps:$4 sm:$0xff]  }
 0x9f3   :  { %18572 = vmatpush1.bf16.msra.mxu0 %v26429_v58  ;;  %v26486_v58 = vld [vmem:[%s34457_s7 + $0x11c8] ss:$16 sps:$4 sm:$0xff]  }
 0x9f4   :  { %18694 = vmatpush1.bf16.msra.mxu1 %v26432_v27  ;;  %18573 = vmatprep.subr.bf16.mxu0 %v26437_v0  ;;  %v26491_v27 = vld [vmem:[%s34457_s7 + $0x11e4] ss:$16 sps:$4 sm:$0xff]   ;;  %v26494_v0 = vld [vmem:[%s34457_s7 + $0x11ec] ss:$16 sps:$4 sm:$0xff]  }
 0x9f5   :  { %18695 = vmatprep.subr.bf16.mxu1 %v26440_v43  ;;  %v22753_v43 = vcombine.low %v33815_v5, %v33823_v12  ;;  %v26500_v5 = vld [vmem:[%s34457_s7 + $0x120c] ss:$16 sps:$4 sm:$0xff]   ;;  %v17903_v12 = vrot.slane %v33512_v38, 2 }
 0x9f7   :  { %18574 = vmatpush1.bf16.msra.mxu0 %v26435_v10  ;;  %v26489_v10 = vld [vmem:[%s34457_s7 + $0x11e0] ss:$16 sps:$4 sm:$0xff]   ;;  %v17904_v38 = vsel %vm1522_vm9, %v17893_v19, %v17903_v12  ;;  %v17901_v19 = vrot.slane %v33540_v17, 2  ;;  %v26510_v17 = vld [vmem:[%s34457_s7 + $0x1248] ss:$16 sps:$4 sm:$0xff]  }
 0x9f8   :  { %18696 = vmatpush1.bf16.msra.mxu1 %v26438_v8  ;;  %18575 = vmatprep.subr.bf16.mxu0 %v26443_v42  ;;  %v26492_v8 = vld [vmem:[%s34457_s7 + $0x11e8] ss:$16 sps:$4 sm:$0xff]   ;;  %v26497_v42 = vld [vmem:[%s34457_s7 + $0x1204] ss:$16 sps:$4 sm:$0xff]  }
 0x9f9   :  { %18697 = vmatprep.subr.bf16.mxu1 %v26446_v62  ;;  %v17890_v62 = vrot.slane %v32188_v53, 2  ;;  %v26498_v53 = vld [vmem:[%s34457_s7 + $0x1208] ss:$16 sps:$4 sm:$0xff]  }
 0x9fb   :  { %18576 = vmatpush1.bf16.msra.mxu0 %v26441_v57  ;;  %v17889_v57 = vrot.slane %v22753_v43, 2  ;;  %v26545_v43 = vld [vmem:[%s34457_s7 + $0x1304] ss:$16 sps:$4 sm:$0xff]  }
 0x9fc   :  { %18698 = vmatpush1.bf16.msra.mxu1 %v26444_v13  ;;  %18577 = vmatprep.subr.bf16.mxu0 %v26449_v29  ;;  %v26495_v13 = vld [vmem:[%s34457_s7 + $0x1200] ss:$16 sps:$4 sm:$0xff]  }
 0x9fd   :  { %18699 = vmatprep.subr.bf16.mxu1 %v26452_v6  ;;  %v33897_v14 = vpop.f32.mrb[148].mxu0  ;;  %v17891_v29 = vsel %vm1522_vm9, %v17889_v57, %v17890_v62  ;;  %v26503_v6 = vld [vmem:[%s34457_s7 + $0x1224] ss:$16 sps:$4 sm:$0xff]  }
 0x9fe   :  { %v33902_v61 = vpop.f32.mrb[148].mxu1  ;;  %v33904_v34 = vpop.f32.mrb[149].mxu0 }
 0x9ff   :  { %18578 = vmatpush1.bf16.msra.mxu0 %v26447_v9  ;;  %v33906_v49 = vpop.f32.mrb[149].mxu1  ;;  %v16401_v47 = vpop.f32.mrb[150].mxu0  ;;  %v26506_v9 = vld [vmem:[%s34457_s7 + $0x122c] ss:$16 sps:$4 sm:$0xff]  }
 0xa00   :  { %18700 = vmatpush1.bf16.msra.mxu1 %v26450_v37  ;;  %18579 = vmatprep.subr.bf16.mxu0 %v26455_v2  ;;  %v16523_v55 = vpop.f32.mrb[150].mxu1  ;;  %v16402_v20 = vpop.f32.mrb[151].mxu0  ;;  %v26501_v37 = vld [vmem:[%s34457_s7 + $0x1220] ss:$16 sps:$4 sm:$0xff]   ;;  %v26509_v2 = vld [vmem:[%s34457_s7 + $0x1244] ss:$16 sps:$4 sm:$0xff]   ;;  %v17902_v47 = vsel %vm1522_vm9, %v17890_v62, %v17901_v19 }
 0xa01   :  { %18701 = vmatprep.subr.bf16.mxu1 %v26458_v31  ;;  %v16524_v52 = vpop.f32.mrb[151].mxu1  ;;  %v26512_v31 = vld [vmem:[%s34457_s7 + $0x124c] ss:$16 sps:$4 sm:$0xff]   ;;  %v26551_v62 = vld [vmem:[%s34457_s7 + $0x1324] ss:$16 sps:$4 sm:$0xff]  }
 0xa02   :  { %v34035_v55 = vld [vmem:[#allocation3 + $0x8] sm:$0xcc]  ;;  %v34043_v52 = vld [vmem:[#allocation3 + $0x18] sm:$0xff] }
 0xa03   :  { %18580 = vmatpush1.bf16.msra.mxu0 %v26453_v41  ;;  %v26507_v41 = vld [vmem:[%s34457_s7 + $0x1240] ss:$16 sps:$4 sm:$0xff]   ;;  %v26518_v20 = vld [vmem:[%s34457_s7 + $0x126c] ss:$16 sps:$4 sm:$0xff]  }
 0xa04   :  { %18702 = vmatpush1.bf16.msra.mxu1 %v26456_v18  ;;  %18581 = vmatprep.subr.bf16.mxu0 %v26461_v24  ;;  %v26515_v18 = vld [vmem:[%s34457_s7 + $0x1264] ss:$16 sps:$4 sm:$0xff]   ;;  %v26513_v24 = vld [vmem:[%s34457_s7 + $0x1260] ss:$16 sps:$4 sm:$0xff]  }
 0xa05   :  { %18703 = vmatprep.subr.bf16.mxu1 %v26464_v1  ;;  %v22756_v1 = vcombine.high %v34035_v55, %v34043_v52 }
 0xa07   :  { %18582 = vmatpush1.bf16.msra.mxu0 %v26459_v56  ;;  %v26516_v56 = vld [vmem:[%s34457_s7 + $0x1268] ss:$16 sps:$4 sm:$0xff]  }
 0xa08   :  { %18704 = vmatpush1.bf16.msra.mxu1 %v26462_v7  ;;  %18583 = vmatprep.subr.bf16.mxu0 %v26467_v21  ;;  %v26521_v7 = vld [vmem:[%s34457_s7 + $0x1284] ss:$16 sps:$4 sm:$0xff]   ;;  %v26524_v21 = vld [vmem:[%s34457_s7 + $0x128c] ss:$16 sps:$4 sm:$0xff]  }
 0xa09   :  { %18705 = vmatprep.subr.bf16.mxu1 %v26470_v16  ;;  %v17899_v16 = vrot.slane %v32257_v51, 2 }
 0xa0b   :  { %18584 = vmatpush1.bf16.msra.mxu0 %v26465_v59  ;;  %v26519_v59 = vld [vmem:[%s34457_s7 + $0x1280] ss:$16 sps:$4 sm:$0xff]  }
 0xa0c   :  { %18706 = vmatpush1.bf16.msra.mxu1 %v26468_v60  ;;  %18585 = vmatprep.subr.bf16.mxu0 %v26473_v54  ;;  %v17898_v60 = vrot.slane %v22756_v1, 2  ;;  %v26522_v54 = vld [vmem:[%s34457_s7 + $0x1288] ss:$16 sps:$4 sm:$0xff]   ;;  %v26572_v1 = vld [vmem:[%s34457_s7 + $0x138c] ss:$16 sps:$4 sm:$0xff]  }
 0xa0d   :  { %18707 = vmatprep.subr.bf16.mxu1 %v26476_v4  ;;  %v26527_v4 = vld [vmem:[%s34457_s7 + $0x12a4] ss:$16 sps:$4 sm:$0xff]  }
 0xa0f   :  { %18586 = vmatpush1.bf16.msra.mxu0 %v26471_v46  ;;  %v17900_v46 = vsel %vm1522_vm9, %v17898_v60, %v17899_v16  ;;  %v26573_v60 = vld [vmem:[%s34457_s7 + $0x13a0] ss:$16 sps:$4 sm:$0xff]  }
 0xa10   :  { %18708 = vmatpush1.bf16.msra.mxu1 %v26474_v25  ;;  %18587 = vmatprep.subr.bf16.mxu0 %v26479_v44  ;;  %v26530_v25 = vld [vmem:[%s34457_s7 + $0x12ac] ss:$16 sps:$4 sm:$0xff]   ;;  %v26525_v44 = vld [vmem:[%s34457_s7 + $0x12a0] ss:$16 sps:$4 sm:$0xff]  }
 0xa11   :  { %18709 = vmatprep.subr.bf16.mxu1 %v26482_v45  ;;  %v26528_v45 = vld [vmem:[%s34457_s7 + $0x12a8] ss:$16 sps:$4 sm:$0xff]  }
 0xa13   :  { %18588 = vmatpush1.bf16.msra.mxu0 %v26477_v40  ;;  %v26533_v40 = vld [vmem:[%s34457_s7 + $0x12c4] ss:$16 sps:$4 sm:$0xff]  }
 0xa14   :  { %18710 = vmatpush1.bf16.msra.mxu1 %v26480_v30  ;;  %18589 = vmatprep.subr.bf16.mxu0 %v26485_v11  ;;  %v26536_v30 = vld [vmem:[%s34457_s7 + $0x12cc] ss:$16 sps:$4 sm:$0xff]   ;;  %v26531_v11 = vld [vmem:[%s34457_s7 + $0x12c0] ss:$16 sps:$4 sm:$0xff]  }
 0xa15   :  { %18711 = vmatprep.subr.bf16.mxu1 %v26488_v63  ;;  %v26534_v63 = vld [vmem:[%s34457_s7 + $0x12c8] ss:$16 sps:$4 sm:$0xff]  }
 0xa17   :  { %18590 = vmatpush1.bf16.msra.mxu0 %v26483_v22  ;;  %v26539_v22 = vld [vmem:[%s34457_s7 + $0x12e4] ss:$16 sps:$4 sm:$0xff]  }
 0xa18   :  { %18712 = vmatpush1.bf16.msra.mxu1 %v26486_v58  ;;  %18591 = vmatprep.subr.bf16.mxu0 %v26491_v27  ;;  %v26542_v58 = vld [vmem:[%s34457_s7 + $0x12ec] ss:$16 sps:$4 sm:$0xff]   ;;  %v26537_v27 = vld [vmem:[%s34457_s7 + $0x12e0] ss:$16 sps:$4 sm:$0xff]  }
 0xa19   :  { %18713 = vmatprep.subr.bf16.mxu1 %v26494_v0  ;;  %v26540_v0 = vld [vmem:[%s34457_s7 + $0x12e8] ss:$16 sps:$4 sm:$0xff]  }
 0xa1b   :  { %18592 = vmatpush1.bf16.msra.mxu0 %v26489_v10  ;;  %v26548_v10 = vld [vmem:[%s34457_s7 + $0x130c] ss:$16 sps:$4 sm:$0xff]  }
 0xa1c   :  { %18714 = vmatpush1.bf16.msra.mxu1 %v26492_v8  ;;  %18622 = vmatprep.subr.bf16.mxu0 %v26497_v42  ;;  %v26543_v8 = vld [vmem:[%s34457_s7 + $0x1300] ss:$16 sps:$4 sm:$0xff]   ;;  %v26546_v42 = vld [vmem:[%s34457_s7 + $0x1308] ss:$16 sps:$4 sm:$0xff]  }
 0xa1d   :  { %18744 = vmatprep.subr.bf16.mxu1 %v26500_v5 }
 0xa1e   :  { %18594 = vmatmul.mubr.bf16.vlgmr.msra.gmra.mrb[124].mxu0 %v17891_v29 }
 0xa1f   :  { %18716 = vmatmul.mubr.bf16.vlgmr.msra.gmra.mrb[124].mxu1 %v17891_v29  ;;  %18603 = vmatprep.mubr.bf16.mxu0 %v17904_v38 }
 0xa20   :  { %18623 = vmatpush1.bf16.msra.mxu0 %v26495_v13  ;;  %18725 = vmatprep.mubr.bf16.mxu1 %v17904_v38 }
 0xa21   :  { %18745 = vmatpush1.bf16.msra.mxu1 %v26498_v53  ;;  %18624 = vmatprep.subr.bf16.mxu0 %v26503_v6 }
 0xa22   :  { %18746 = vmatprep.subr.bf16.mxu1 %v26506_v9  ;;  %v26549_v9 = vld [vmem:[%s34457_s7 + $0x1320] ss:$16 sps:$4 sm:$0xff]  }
 0xa24   :  { %18625 = vmatpush1.bf16.msra.mxu0 %v26501_v37 }
 0xa25   :  { %18747 = vmatpush1.bf16.msra.mxu1 %v26504_v48  ;;  %18626 = vmatprep.subr.bf16.mxu0 %v26509_v2 }
 0xa26   :  { %18604 = vmatmul.mubr.bf16.gmra.mrb[128].mxu0 %v17902_v47  ;;  %18748 = vmatprep.subr.bf16.mxu1 %v26512_v31 }
 0xa27   :  { %18726 = vmatmul.mubr.bf16.gmra.mrb[128].mxu1 %v17902_v47  ;;  %18613 = vmatprep.mubr.bf16.mxu0 %v17903_v12 }
 0xa28   :  { %18627 = vmatpush1.bf16.msra.mxu0 %v26507_v41  ;;  %18735 = vmatprep.mubr.bf16.mxu1 %v17903_v12  ;;  %v26554_v12 = vld [vmem:[%s34457_s7 + $0x132c] ss:$16 sps:$4 sm:$0xff]  }
 0xa29   :  { %18749 = vmatpush1.bf16.msra.mxu1 %v26510_v17  ;;  %18628 = vmatprep.subr.bf16.mxu0 %v26515_v18  ;;  %v26555_v17 = vld [vmem:[%s34457_s7 + $0x1340] ss:$16 sps:$4 sm:$0xff]  }
 0xa2a   :  { %18750 = vmatprep.subr.bf16.mxu1 %v26518_v20  ;;  %v26561_v18 = vld [vmem:[%s34457_s7 + $0x1360] ss:$16 sps:$4 sm:$0xff]   ;;  %v26564_v20 = vld [vmem:[%s34457_s7 + $0x1368] ss:$16 sps:$4 sm:$0xff]  }
 0xa2c   :  { %18629 = vmatpush1.bf16.msra.mxu0 %v26513_v24  ;;  %v26569_v24 = vld [vmem:[%s34457_s7 + $0x1384] ss:$16 sps:$4 sm:$0xff]  }
 0xa2d   :  { %18751 = vmatpush1.bf16.msra.mxu1 %v26516_v56  ;;  %18630 = vmatprep.subr.bf16.mxu0 %v26521_v7  ;;  %v26567_v56 = vld [vmem:[%s34457_s7 + $0x1380] ss:$16 sps:$4 sm:$0xff]   ;;  %v26570_v7 = vld [vmem:[%s34457_s7 + $0x1388] ss:$16 sps:$4 sm:$0xff]  }
 0xa2e   :  { %18614 = vmatmul.mubr.bf16.gmra.mrb[164].mxu0 %v17901_v19  ;;  %18752 = vmatprep.subr.bf16.mxu1 %v26524_v21  ;;  %v26575_v21 = vld [vmem:[%s34457_s7 + $0x13a4] ss:$16 sps:$4 sm:$0xff]  }
 0xa2f   :  { %18736 = vmatmul.mubr.bf16.gmra.mrb[164].mxu1 %v17901_v19  ;;  %18654 = vmatprep.mubr.bf16.mxu0 %v17900_v46 }
 0xa30   :  { %18631 = vmatpush1.bf16.msra.mxu0 %v26519_v59  ;;  %18776 = vmatprep.mubr.bf16.mxu1 %v17900_v46  ;;  %v26578_v59 = vld [vmem:[%s34457_s7 + $0x13ac] ss:$16 sps:$4 sm:$0xff]  }
 0xa31   :  { %18753 = vmatpush1.bf16.msra.mxu1 %v26522_v54  ;;  %18632 = vmatprep.subr.bf16.mxu0 %v26527_v4  ;;  %v26576_v54 = vld [vmem:[%s34457_s7 + $0x13a8] ss:$16 sps:$4 sm:$0xff]   ;;  %v26581_v4 = vld [vmem:[%s34457_s7 + $0x13c4] ss:$16 sps:$4 sm:$0xff]   ;;  %v26584_v46 = vld [vmem:[%s34457_s7 + $0x13cc] ss:$16 sps:$4 sm:$0xff]  }
 0xa32   :  { %18754 = vmatprep.subr.bf16.mxu1 %v26530_v25  ;;  %v26579_v25 = vld [vmem:[%s34457_s7 + $0x13c0] ss:$16 sps:$4 sm:$0xff]  }
 0xa34   :  { %18633 = vmatpush1.bf16.msra.mxu0 %v26525_v44  ;;  %v26582_v44 = vld [vmem:[%s34457_s7 + $0x13c8] ss:$16 sps:$4 sm:$0xff]  }
 0xa35   :  { %18755 = vmatpush1.bf16.msra.mxu1 %v26528_v45  ;;  %18634 = vmatprep.subr.bf16.mxu0 %v26533_v40  ;;  %v26587_v45 = vld [vmem:[%s34457_s7 + $0x13e4] ss:$16 sps:$4 sm:$0xff]   ;;  %v26590_v40 = vld [vmem:[%s34457_s7 + $0x13ec] ss:$16 sps:$4 sm:$0xff]  }
 0xa36   :  { %18756 = vmatprep.subr.bf16.mxu1 %v26536_v30  ;;  %v22755_v30 = vcombine.low %v34035_v55, %v34043_v52 }
 0xa38   :  { %18635 = vmatpush1.bf16.msra.mxu0 %v26531_v11  ;;  %v26585_v11 = vld [vmem:[%s34457_s7 + $0x13e0] ss:$16 sps:$4 sm:$0xff]  }
 0xa39   :  { %18757 = vmatpush1.bf16.msra.mxu1 %v26534_v63  ;;  %18636 = vmatprep.subr.bf16.mxu0 %v26539_v22  ;;  %v26588_v63 = vld [vmem:[%s34457_s7 + $0x13e8] ss:$16 sps:$4 sm:$0xff]   ;;  %v17896_v22 = vrot.slane %v32297_v3, 2 }
 0xa3a   :  { %18758 = vmatprep.subr.bf16.mxu1 %v26542_v58  ;;  %v17907_v58 = vrot.slane %v33732_v28, 2 }
 0xa3c   :  { %18637 = vmatpush1.bf16.msra.mxu0 %v26537_v27  ;;  %v17895_v27 = vrot.slane %v22755_v30, 2  ;;  %v17908_v52 = vsel %vm1522_vm9, %v17899_v16, %v17907_v58 }
 0xa3d   :  { %18759 = vmatpush1.bf16.msra.mxu1 %v26540_v0  ;;  %18638 = vmatprep.subr.bf16.mxu0 %v26545_v43  ;;  %v17905_v0 = vrot.slane %v33760_v50, 2 }
 0xa3e   :  { %18760 = vmatprep.subr.bf16.mxu1 %v26548_v10  ;;  %v16458_v5 = vpop.f32.mrb[152].mxu0  ;;  %v17897_v55 = vsel %vm1522_vm9, %v17895_v27, %v17896_v22 }
 0xa3f   :  { %v16459_v57 = vadd.f32 %v16458_v5, %v33897_v14  ;;  %v16580_v13 = vpop.f32.mrb[152].mxu1  ;;  %v16460_v29 = vpop.f32.mrb[153].mxu0  ;;  %v26552_v14 = vld [vmem:[%s34457_s7 + $0x1328] ss:$16 sps:$4 sm:$0xff]   ;;  %v17906_v43 = vsel %vm1522_vm9, %v17896_v22, %v17905_v0 }
 0xa40   :  { %18639 = vmatpush1.bf16.msra.mxu0 %v26543_v8  ;;  %v16581_v53 = vadd.f32 %v16580_v13, %v33902_v61  ;;  %v16461_v6 = vadd.f32 %v16460_v29, %v33904_v34  ;;  %v16582_v38 = vpop.f32.mrb[153].mxu1  ;;  %v16462_v37 = vpop.f32.mrb[154].mxu0  ;;  %v26557_v34 = vld [vmem:[%s34457_s7 + $0x1344] ss:$16 sps:$4 sm:$0xff]  }
 0xa41   :  { %18761 = vmatpush1.bf16.msra.mxu1 %v26546_v42  ;;  %v34127_v48 = vadd.f32 %v16459_v57, %v33673_v15  ;;  %v16583_v19 = vadd.f32 %v16582_v38, %v33906_v49  ;;  %18640 = vmatprep.subr.bf16.mxu0 %v26551_v62  ;;  %v16584_v61 = vpop.f32.mrb[154].mxu1  ;;  %v16463_v2 = vpop.f32.mrb[155].mxu0  ;;  %v26560_v49 = vld [vmem:[%s34457_s7 + $0x134c] ss:$16 sps:$4 sm:$0xff]  }
 0xa42   :  { %v34137_v31 = vadd.f32 %v16581_v53, %v33676_v39  ;;  %v34140_v41 = vadd.f32 %v16461_v6, %v33679_v23  ;;  %18762 = vmatprep.subr.bf16.mxu1 %v26554_v12  ;;  %v16585_v15 = vpop.f32.mrb[155].mxu1  ;;  %v26558_v39 = vld [vmem:[%s34457_s7 + $0x1348] ss:$16 sps:$4 sm:$0xff]   ;;  %v26563_v23 = vld [vmem:[%s34457_s7 + $0x1364] ss:$16 sps:$4 sm:$0xff]  }
 0xa43   :  { %v34146_v47 = vadd.f32 %v16583_v19, %v33685_v26  ;;  %v26566_v26 = vld [vmem:[%s34457_s7 + $0x136c] ss:$16 sps:$4 sm:$0xff]  }
 0xa44   :  { %18641 = vmatpush1.bf16.msra.mxu0 %v26549_v9 }
 0xa45   :  { %18763 = vmatpush1.bf16.msra.mxu1 %v26552_v14  ;;  %18642 = vmatprep.subr.bf16.mxu0 %v26557_v34 }
 0xa46   :  { %18764 = vmatprep.subr.bf16.mxu1 %v26560_v49 }
 0xa48   :  { %18643 = vmatpush1.bf16.msra.mxu0 %v26555_v17 }
 0xa49   :  { %18765 = vmatpush1.bf16.msra.mxu1 %v26558_v39  ;;  %18644 = vmatprep.subr.bf16.mxu0 %v26563_v23 }
 0xa4a   :  { %18766 = vmatprep.subr.bf16.mxu1 %v26566_v26 }
 0xa4c   :  { %18645 = vmatpush1.bf16.msra.mxu0 %v26561_v18 }
 0xa4d   :  { %18767 = vmatpush1.bf16.msra.mxu1 %v26564_v20  ;;  %18646 = vmatprep.subr.bf16.mxu0 %v26569_v24  ;;  %v34258_v20 = vld [vmem:[%s34460_s9 + $0x50] sm:$0xff] }
 0xa4e   :  { %18768 = vmatprep.subr.bf16.mxu1 %v26572_v1 }
 0xa50   :  { %18647 = vmatpush1.bf16.msra.mxu0 %v26567_v56  ;;  %v34274_v56 = vld [vmem:[%s34460_s9 + $0x58] sm:$0xff] }
 0xa51   :  { %18769 = vmatpush1.bf16.msra.mxu1 %v26570_v7  ;;  %18648 = vmatprep.subr.bf16.mxu0 %v26575_v21 }
 0xa52   :  { %18770 = vmatprep.subr.bf16.mxu1 %v26578_v59 }
 0xa54   :  { %18649 = vmatpush1.bf16.msra.mxu0 %v26573_v60  ;;  %v18931_v60 = vrot.slane %v34258_v20, 4 }
 0xa55   :  { %18771 = vmatpush1.bf16.msra.mxu1 %v26576_v54  ;;  %18650 = vmatprep.subr.bf16.mxu0 %v26581_v4 }
 0xa56   :  { %18772 = vmatprep.subr.bf16.mxu1 %v26584_v46 }
 0xa58   :  { %18651 = vmatpush1.bf16.msra.mxu0 %v26579_v25 }
 0xa59   :  { %18773 = vmatpush1.bf16.msra.mxu1 %v26582_v44  ;;  %18652 = vmatprep.subr.bf16.mxu0 %v26587_v45  ;;  %v18932_v44 = vrot.slane %v34274_v56, 4  ;;  %v18887_v45 = vld [vmem:[%s34460_s9] sm:$0xff] }
 0xa5a   :  { %18774 = vmatprep.subr.bf16.mxu1 %v26590_v40 }
 0xa5c   :  { %18653 = vmatpush1.bf16.msra.mxu0 %v26585_v11 }
 0xa5d   :  { %18775 = vmatpush1.bf16.msra.mxu1 %v26588_v63 }
 0xa5f   :  { %18655 = vmatmul.mubr.bf16.vlgmr.msra.gmra.mrb[124].mxu0 %v17897_v55 }
 0xa60   :  { %18777 = vmatmul.mubr.bf16.vlgmr.msra.gmra.mrb[124].mxu1 %v17897_v55  ;;  %18664 = vmatprep.mubr.bf16.mxu0 %v17908_v52  ;;  %v18889_v55 = vld [vmem:[%s34460_s9 + $0x10] sm:$0xff] }
 0xa61   :  { %18786 = vmatprep.mubr.bf16.mxu1 %v17908_v52  ;;  %v18888_v52 = vld [vmem:[%s34460_s9 + $0x8] sm:$0xff] }
 0xa67   :  { %18665 = vmatmul.mubr.bf16.gmra.mrb[128].mxu0 %v17906_v43 }
 0xa68   :  { %18787 = vmatmul.mubr.bf16.gmra.mrb[128].mxu1 %v17906_v43  ;;  %18674 = vmatprep.mubr.bf16.mxu0 %v17907_v58 }
 0xa69   :  { %18796 = vmatprep.mubr.bf16.mxu1 %v17907_v58 }
 0xa6f   :  { %18675 = vmatmul.mubr.bf16.gmra.mrb[168].mxu0 %v17905_v0 }
 0xa70   :  { %18797 = vmatmul.mubr.bf16.gmra.mrb[168].mxu1 %v17905_v0 }
 0xa7f   :  { %v17538_v3 = vpop.f32.mrb[156].mxu0 }
 0xa80   :  { %v17660_v28 = vpop.f32.mrb[156].mxu1  ;;  %v17540_v10 = vpop.f32.mrb[157].mxu0 }
 0xa81   :  { %v17662_v8 = vpop.f32.mrb[157].mxu1  ;;  %v17542_v51 = vpop.f32.mrb[158].mxu0 }
 0xa82   :  { %v17664_v42 = vpop.f32.mrb[158].mxu1  ;;  %v17543_v16 = vpop.f32.mrb[159].mxu0 }
 0xa83   :  { %v17665_v62 = vpop.f32.mrb[159].mxu1  ;;  %v18890_v42 = vld [vmem:[%s34460_s9 + $0x18] sm:$0xff]  ;;  %v18891_v16 = vld [vmem:[%s34460_s9 + $0x20] sm:$0xff] }
 0xac0   :  { %v17599_v5 = vpop.f32.mrb[160].mxu0 }
 0xac1   :  { %v17600_v12 = vadd.f32 %v17599_v5, %v17538_v3  ;;  %v17721_v57 = vpop.f32.mrb[160].mxu1  ;;  %v17601_v50 = vpop.f32.mrb[161].mxu0 }
 0xac2   :  { %v17722_v13 = vadd.f32 %v17721_v57, %v17660_v28  ;;  %v17602_v29 = vadd.f32 %v17601_v50, %v17540_v10  ;;  %v17723_v53 = vpop.f32.mrb[161].mxu1  ;;  %v17603_v6 = vpop.f32.mrb[162].mxu0  ;;  %v34326_v57 = vld [vmem:[%s34460_s9 + $0x78] sm:$0xff] }
 0xac3   :  { %v34225_v38 = vadd.f32 %v17600_v12, %v34127_v48  ;;  %v17724_v9 = vadd.f32 %v17723_v53, %v17662_v8  ;;  %v17725_v37 = vpop.f32.mrb[162].mxu1  ;;  %v17604_v19 = vpop.f32.mrb[163].mxu0  ;;  %v18893_v53 = vld [vmem:[%s34460_s9 + $0x30] sm:$0xff]  ;;  %v18892_v6 = vld [vmem:[%s34460_s9 + $0x28] sm:$0xff] }
 0xac4   :  { %v34228_v14 = vadd.f32 %v17722_v13, %v34137_v31  ;;  %v34231_v61 = vadd.f32 %v17602_v29, %v34140_v41  ;;  %v17726_v2 = vpop.f32.mrb[163].mxu1  ;;  %v18825_v41 = vld [vmem:[%s34459_s8] sm:$0xf] }
 0xac5   :  { %v34234_v34 = vadd.f32 %v17724_v9, %v34146_v47  ;;  %v34248_v18 = vrot.slane %v18825_v41, %v27455_v32  ;;  %v34253_v47 = vld [vmem:[%s34460_s9 + $0x40] sm:$0xff]  ;;  %v34261_v24 = vrot.slane %v18825_v41, %v27457_v33  ;;  %v34264_v1 = vrot.slane %v18825_v41, %v27462_v35  ;;  %v34269_v32 = vld [vmem:[%s34460_s9 + $0x48] sm:$0xff]  ;;  %v34287_v35 = vld [vmem:[%s34460_s9 + $0x70] sm:$0xff] }
 0xac6   :  { %v34277_v7 = vrot.slane %v18825_v41, %v27464_v36  ;;  %v34282_v33 = vld [vmem:[%s34460_s9 + $0x60] sm:$0xff]  ;;  %v18929_v59 = vrot.slane %v34253_v47, 4  ;;  %v34294_v36 = vld [vmem:[%s34460_s9 + $0x68] sm:$0xff]  ;;  %v18930_v25 = vrot.slane %v34269_v32, 4  ;;  %v18937_v58 = vrot.slane %v34287_v35, 4 }
 0xac7   :  { %v18933_v22 = vrot.slane %v34282_v33, 4  ;;  %v18935_v10 = vrot.slane %v34294_v36, 4 }
 0xb01   :  { %v34236_v15 = vpop.f32.mrb[164].mxu0 }
 0xb02   :  { %v34238_v49 = vpop.f32.mrb[164].mxu1  ;;  %v34240_v17 = vpop.f32.mrb[165].mxu0 }
 0xb03   :  { %v34242_v48 = vpop.f32.mrb[165].mxu1  ;;  %v18619_v39 = vpop.f32.mrb[166].mxu0 }
 0xb04   :  { %v18741_v23 = vpop.f32.mrb[166].mxu1  ;;  %v18620_v26 = vpop.f32.mrb[167].mxu0 }
 0xb05   :  { %v18742_v31 = vpop.f32.mrb[167].mxu1  ;;  %v18894_v23 = vld [vmem:[%s34460_s9 + $0x38] sm:$0xff] }
 0xb32   :  { %v18656_v21 = vpop.f32.mrb[124].mxu0 }
 0xb33   :  { %v18847_v54 = vadd.f32 %v34248_v18, %v18656_v21  ;;  %v18778_v4 = vpop.f32.mrb[124].mxu1  ;;  %v18658_v46 = vpop.f32.mrb[125].mxu0  ;;  %v18939_v21 = vrot.slane %v34326_v57, 4 }
 0xb34   :  { %v18849_v40 = vadd.f32 %v34261_v24, %v18778_v4  ;;  %v18848_v30 = vadd.f32 %v34264_v1, %v18658_v46  ;;  %v18780_v11 = vpop.f32.mrb[125].mxu1  ;;  %v18660_v63 = vpop.f32.mrb[126].mxu0 }
 0xb35   :  { %v18867_v27 = vmax.f32 %v18847_v54, 0.0  ;;  %v18850_v0 = vadd.f32 %v34277_v7, %v18780_v11  ;;  %v18851_v43 = vadd.f32 %v34248_v18, %v18660_v63  ;;  %v18782_v3 = vpop.f32.mrb[126].mxu1  ;;  %v18662_v28 = vpop.f32.mrb[127].mxu0  ;;  %v18934_v63 = vsel %vm18928_vm10, %v18929_v59, %v18933_v22 }
 0xb36   :  { %v18869_v8 = vmax.f32 %v18849_v40, 0.0  ;;  %v18868_v51 = vmax.f32 %v18848_v30, 0.0  ;;  %v18853_v62 = vadd.f32 %v34261_v24, %v18782_v3  ;;  %v18852_v5 = vadd.f32 %v34264_v1, %v18662_v28  ;;  %v18784_v12 = vpop.f32.mrb[127].mxu1 }
 0xb37   :  { %v18895_v50 = vadd.f32 %v18887_v45, %v18867_v27  ;;  %v18870_v13 = vmax.f32 %v18850_v0, 0.0  ;;  %v18871_v29 = vmax.f32 %v18851_v43, 0.0  ;;  %v18854_v9 = vadd.f32 %v34277_v7, %v18784_v12 }
 0xb38   :  { %v18897_v37 = vadd.f32 %v18889_v55, %v18869_v8  ;;  %v18896_v19 = vadd.f32 %v18888_v52, %v18868_v51  ;;  %v18873_v2 = vmax.f32 %v18853_v62, 0.0  ;;  %v18872_v39 = vmax.f32 %v18852_v5, 0.0 }
 0xb39   :  { %18903 = vst [vmem:[%s34461_s10] sm:$0xff] %v18895_v50  ;;  %v18898_v26 = vadd.f32 %v18890_v42, %v18870_v13  ;;  %v18899_v31 = vadd.f32 %v18891_v16, %v18871_v29  ;;  %v18874_v41 = vmax.f32 %v18854_v9, 0.0  ;;  %v18938_v43 = vsel %vm18928_vm10, %v18931_v60, %v18937_v58 }
 0xb3a   :  { %18905 = vst [vmem:[%s34461_s10 + $0x10] sm:$0xff] %v18897_v37  ;;  %18904 = vst [vmem:[%s34461_s10 + $0x8] sm:$0xff] %v18896_v19  ;;  %v18901_v54 = vadd.f32 %v18893_v53, %v18873_v2  ;;  %v18900_v4 = vadd.f32 %v18892_v6, %v18872_v39  ;;  %v18666_v46 = vpop.f32.mrb[128].mxu0  ;;  %v18936_v3 = vsel %vm18928_vm10, %v18930_v25, %v18935_v10 }
 0xb3b   :  { %18906 = vst [vmem:[%s34461_s10 + $0x18] sm:$0xff] %v18898_v26  ;;  %18907 = vst [vmem:[%s34461_s10 + $0x20] sm:$0xff] %v18899_v31  ;;  %v18902_v45 = vadd.f32 %v18894_v23, %v18874_v41  ;;  %v18855_v40 = vadd.f32 %v34248_v18, %v18666_v46  ;;  %v18788_v30 = vpop.f32.mrb[128].mxu1  ;;  %v18668_v11 = vpop.f32.mrb[129].mxu0  ;;  %v18940_v62 = vsel %vm18928_vm10, %v18932_v44, %v18939_v21 }
 0xb3c   :  { %18909 = vst [vmem:[%s34461_s10 + $0x30] sm:$0xff] %v18901_v54  ;;  %18908 = vst [vmem:[%s34461_s10 + $0x28] sm:$0xff] %v18900_v4  ;;  %v18857_v27 = vadd.f32 %v34261_v24, %v18788_v30  ;;  %v18856_v55 = vadd.f32 %v34264_v1, %v18668_v11  ;;  %v18790_v52 = vpop.f32.mrb[129].mxu1  ;;  %v18670_v0 = vpop.f32.mrb[130].mxu0 }
 0xb3d   :  { %18910 = vst [vmem:[%s34461_s10 + $0x38] sm:$0xff] %v18902_v45  ;;  %v18875_v28 = vmax.f32 %v18855_v40, 0.0  ;;  %v18858_v8 = vadd.f32 %v34277_v7, %v18790_v52  ;;  %v18859_v51 = vadd.f32 %v34248_v18, %v18670_v0  ;;  %v18792_v42 = vpop.f32.mrb[130].mxu1  ;;  %v18672_v16 = vpop.f32.mrb[131].mxu0 }
 0xb3e   :  { %v18877_v5 = vmax.f32 %v18857_v27, 0.0  ;;  %v18876_v12 = vmax.f32 %v18856_v55, 0.0  ;;  %v18861_v50 = vadd.f32 %v34261_v24, %v18792_v42  ;;  %v18860_v13 = vadd.f32 %v34264_v1, %v18672_v16  ;;  %v18794_v29 = vpop.f32.mrb[131].mxu1 }
 0xb3f   :  { %v18953_v53 = vadd.f32 %v18929_v59, %v18875_v28  ;;  %v18878_v6 = vmax.f32 %v18858_v8, 0.0  ;;  %v18879_v9 = vmax.f32 %v18859_v51, 0.0  ;;  %v18862_v37 = vadd.f32 %v34277_v7, %v18794_v29 }
 0xb40   :  { %v18955_v19 = vadd.f32 %v18931_v60, %v18877_v5  ;;  %v18954_v2 = vadd.f32 %v18930_v25, %v18876_v12  ;;  %v18881_v39 = vmax.f32 %v18861_v50, 0.0  ;;  %v18880_v23 = vmax.f32 %v18860_v13, 0.0 }
 0xb41   :  { %v18977_v26 = vrot.slane %v18953_v53, 4  ;;  %v18956_v31 = vadd.f32 %v18932_v44, %v18878_v6  ;;  %v18957_v41 = vadd.f32 %v18934_v63, %v18879_v9  ;;  %v18882_v54 = vmax.f32 %v18862_v37, 0.0 }
 0xb42   :  { %v18983_v47 = vrot.slane %v18955_v19, 4  ;;  %v18980_v59 = vrot.slane %v18954_v2, 4  ;;  %v18959_v4 = vadd.f32 %v18938_v43, %v18881_v39  ;;  %v18958_v46 = vadd.f32 %v18936_v3, %v18880_v23  ;;  %v18676_v45 = vpop.f32.mrb[168].mxu0 }
 0xb43   :  { %v18986_v40 = vrot.slane %v18956_v31, 4  ;;  %v18978_v30 = vrot.slane %v18957_v41, 4  ;;  %v18960_v20 = vadd.f32 %v18940_v62, %v18882_v54  ;;  %v18677_v60 = vadd.f32 %v18676_v45, %v34236_v15  ;;  %v18798_v32 = vpop.f32.mrb[168].mxu1  ;;  %v18678_v25 = vpop.f32.mrb[169].mxu0 }
 0xb44   :  { %v18984_v11 = vrot.slane %v18959_v4, 4  ;;  %v18981_v27 = vrot.slane %v18958_v46, 4  ;;  %v18799_v55 = vadd.f32 %v18798_v32, %v34238_v49  ;;  %v18679_v56 = vadd.f32 %v18678_v25, %v34240_v17  ;;  %v18800_v44 = vpop.f32.mrb[169].mxu1  ;;  %v18680_v63 = vpop.f32.mrb[170].mxu0 }
 0xb45   :  { %v18979_v52 = vsel %vm18928_vm10, %v18977_v26, %v18978_v30  ;;  %v18987_v0 = vrot.slane %v18960_v20, 4  ;;  %v18821_v43 = vadd.f32 %v18677_v60, %v34225_v38  ;;  %v18801_v3 = vadd.f32 %v18800_v44, %v34242_v48  ;;  %v18802_v28 = vpop.f32.mrb[170].mxu1  ;;  %v18681_v8 = vpop.f32.mrb[171].mxu0 }
 0xb46   :  { %22893 = vst [vmem:[%s34461_s10 + $0x40] sm:$0xff] %v18979_v52  ;;  %v18985_v15 = vsel %vm18928_vm10, %v18983_v47, %v18984_v11  ;;  %v18982_v49 = vsel %vm18928_vm10, %v18980_v59, %v18981_v27  ;;  %v18823_v17 = vadd.f32 %v18799_v55, %v34228_v14  ;;  %v18822_v51 = vadd.f32 %v18679_v56, %v34231_v61  ;;  %v18803_v42 = vpop.f32.mrb[171].mxu1 }
 0xb47   :  { %22895 = vst [vmem:[%s34461_s10 + $0x50] sm:$0xff] %v18985_v15  ;;  %22894 = vst [vmem:[%s34461_s10 + $0x48] sm:$0xff] %v18982_v49  ;;  %v18988_v38 = vsel %vm18928_vm10, %v18986_v40, %v18987_v0  ;;  %v18863_v48 = vadd.f32 %v34248_v18, %v18821_v43  ;;  %v18824_v16 = vadd.f32 %v18801_v3, %v34234_v34 }
 0xb48   :  { %22896 = vst [vmem:[%s34461_s10 + $0x58] sm:$0xff] %v18988_v38  ;;  %v18865_v14 = vadd.f32 %v34261_v24, %v18823_v17  ;;  %v18864_v61 = vadd.f32 %v34264_v1, %v18822_v51 }
 0xb49   :  { %v18883_v62 = vmax.f32 %v18863_v48, 0.0  ;;  %v18866_v5 = vadd.f32 %v34277_v7, %v18824_v16 }
 0xb4a   :  { %v18885_v12 = vmax.f32 %v18865_v14, 0.0  ;;  %v18884_v50 = vmax.f32 %v18864_v61, 0.0 }
 0xb4b   :  { %v18961_v13 = vadd.f32 %v18933_v22, %v18883_v62  ;;  %v18886_v29 = vmax.f32 %v18866_v5, 0.0 }
 0xb4c   :  { %v18963_v34 = vadd.f32 %v18937_v58, %v18885_v12  ;;  %v18962_v18 = vadd.f32 %v18935_v10, %v18884_v50 }
 0xb4d   :  { %v18989_v53 = vrot.slane %v18961_v13, 4  ;;  %v18964_v24 = vadd.f32 %v18939_v21, %v18886_v29 }
 0xb4e   :  { %v18993_v1 = vrot.slane %v18963_v34, 4  ;;  %v18991_v6 = vrot.slane %v18962_v18, 4 }
 0xb4f   :  { %v18990_v7 = vsel %vm18928_vm10, %v18978_v30, %v18989_v53  ;;  %v18995_v9 = vrot.slane %v18964_v24, 4 }
 0xb50   :  { %22897 = vst [vmem:[%s34461_s10 + $0x60] sm:$0xff] %v18990_v7  ;;  %v18994_v33 = vsel %vm18928_vm10, %v18984_v11, %v18993_v1  ;;  %v18992_v35 = vsel %vm18928_vm10, %v18981_v27, %v18991_v6 }
 0xb51   :  { %22899 = vst [vmem:[%s34461_s10 + $0x70] sm:$0xff] %v18994_v33  ;;  %22898 = vst [vmem:[%s34461_s10 + $0x68] sm:$0xff] %v18992_v35  ;;  %v18996_v36 = vsel %vm18928_vm10, %v18987_v0, %v18995_v9 }
 0xb52   :  { %22900 = vst [vmem:[%s34461_s10 + $0x78] sm:$0xff] %v18996_v36 }

</bundles_post_ra>
